<compile_context>
chip_gen: v6e
topology: v6e:2x2x1
jax: 0.10.0
libtpu: 0.0.40
codegen_flags: <defaults>
</compile_context>

<pallas_src>
import jax
import jax.numpy as jnp
from jax import lax
from jax.experimental import pallas as pl
from jax.experimental.pallas import tpu as pltpu

BN_EPS = 1e-5


# ------------------------------- Pallas kernel ------------------------------ #

def _make_dense_block_kernel(H, W, C0, G, cmid, L, pad):
    """Builds the fused per-image dense-block kernel.

    Kernel refs: [x, (s1,b1,w1,s2,b2,w2stack) x L, out, zbuf_scratch]
      x    : (1, H*W, C0)           NHWC-flattened input image
      out  : (1, H*W, C0 + L*G)     concatenated features (written in place)
      zbuf : (H*W + 2*pad, cmid)    zero-padded buffer for the 9 shifted 3x3-conv reads
    """
    HW = H * W

    def kernel(*refs):
        x_ref = refs[0]
        out_ref = refs[1 + 6 * L]
        zbuf = refs[2 + 6 * L]

        # Output block is the concatenation: channels [0, C0) are the block input.
        out_ref[0, :, 0:C0] = x_ref[0].astype(out_ref.dtype)

        # Zero the halo buffer once per image; pad rows stay zero, the interior is
        # fully overwritten every layer.
        zbuf[...] = jnp.zeros_like(zbuf)

        # Hoisted W-boundary masks for the 3x3-conv taps with dx=0 / dx=2
        # (H-boundaries are handled by the zero padding in zbuf).
        w_idx = lax.broadcasted_iota(jnp.int32, (HW, 1), 0) % W
        m_left = (w_idx >= 1).astype(jnp.float32)
        m_right = (w_idx < W - 1).astype(jnp.float32)

        for i in range(L):
            s1, b1, w1, s2, b2, w2 = refs[1 + 6 * i:1 + 6 * (i + 1)]
            cin = C0 + i * G

            # bn1 + relu1 -> 1x1 conv -> bn2 + relu2, all on VMEM-resident features.
            feat = out_ref[0, :, 0:cin].astype(jnp.float32)
            h = jnp.maximum(feat * s1[...] + b1[...], 0.0)
            y = jnp.dot(h, w1[...], preferred_element_type=jnp.float32)
            z = jnp.maximum(y * s2[...] + b2[...], 0.0)           # (HW, cmid)

            # 3x3 conv (stride 1, padding 1) as 9 shifted accumulating dots.
            zbuf[pad:pad + HW, :] = z
            acc = jnp.zeros((HW, G), jnp.float32)
            for dx in range(3):
                part = jnp.zeros((HW, G), jnp.float32)
                for dy in range(3):
                    k = dy * 3 + dx
                    off = pad + (dy - 1) * W + (dx - 1)
                    zs = zbuf[off:off + HW, :]
                    part = part + jnp.dot(zs, w2[k],
                                          preferred_element_type=jnp.float32)
                if dx == 0:
                    part = part * m_left
                elif dx == 2:
                    part = part * m_right
                acc = acc + part

            # New features go straight into their slot of the concatenated output.
            out_ref[0, :, cin:cin + G] = acc.astype(out_ref.dtype)

    return kernel


# ------------------------------ Pallas wrapper ------------------------------ #

def dense_block_pallas(x_flat, layer_params, H, W):
    """x_flat: (N, H*W, C0) NHWC-flattened input. Returns (N, H*W, C0 + L*G)."""
    N, HW, C0 = x_flat.shape
    L = len(layer_params)
    cmid = layer_params[0]["w1"].shape[1]
    G = layer_params[0]["w2stack"].shape[-1]
    Ct = C0 + L * G

    pad = ((W + 1 + 7) // 8) * 8          # >= W+1 rows of zero halo, sublane aligned
    zrows = HW + 2 * pad

    in_specs = [pl.BlockSpec((1, HW, C0), lambda n: (n, 0, 0))]
    args = [x_flat]
    for p in layer_params:
        cin = p["w1"].shape[0]
        in_specs += [
            pl.BlockSpec((1, cin), lambda n: (0, 0)),        # s1
            pl.BlockSpec((1, cin), lambda n: (0, 0)),        # b1
            pl.BlockSpec((cin, cmid), lambda n: (0, 0)),     # w1 (1x1 conv)
            pl.BlockSpec((1, cmid), lambda n: (0, 0)),       # s2
            pl.BlockSpec((1, cmid), lambda n: (0, 0)),       # b2
            pl.BlockSpec((9, cmid, G), lambda n: (0, 0, 0)),  # w2 taps (3x3 conv)
        ]
        args += [p["s1"], p["b1"], p["w1"], p["s2"], p["b2"], p["w2stack"]]

    kernel = _make_dense_block_kernel(H, W, C0, G, cmid, L, pad)
    return pl.pallas_call(
        kernel,
        out_shape=jax.ShapeDtypeStruct((N, HW, Ct), x_flat.dtype),
        grid_spec=pltpu.PrefetchScalarGridSpec(
            num_scalar_prefetch=0,
            grid=(N,),
            in_specs=in_specs,
            out_specs=pl.BlockSpec((1, HW, Ct), lambda n: (n, 0, 0)),
            scratch_shapes=[pltpu.VMEM((zrows, cmid), jnp.float32)],
        ),
        compiler_params=pltpu.CompilerParams(dimension_semantics=("parallel",)),
    )(*args)


# ---------------------------- Dense block forward --------------------------- #

def _fold_bn(gamma, beta, mean, var):
    scale = gamma / jnp.sqrt(var + BN_EPS)
    bias = beta - mean * scale
    return scale.reshape(1, -1), bias.reshape(1, -1)


def dense_block_forward(x_nchw, params):
    """Pallas implementation of _DenseBlock2D.forward (eval-mode BN, no dropout)."""
    n, c0, h, w = x_nchw.shape
    x = jnp.transpose(x_nchw, (0, 2, 3, 1)).reshape(n, h * w, c0)   # NCHW -> NHWC (once)

    prepped = []
    for p in params:
        s1, b1 = _fold_bn(p["gamma1"], p["beta1"], p["mean1"], p["var1"])
        s2, b2 = _fold_bn(p["gamma2"], p["beta2"], p["mean2"], p["var2"])
        prepped.append(dict(s1=s1, b1=b1, w1=p["w1"], s2=s2, b2=b2,
                            w2stack=p["w2stack"]))

    out = dense_block_pallas(x, prepped, h, w)                      # (N, HW, C_total)
    return jnp.transpose(out.reshape(n, h, w, -1), (0, 3, 1, 2))    # back to NCHW (once)


# ------------------------- Deterministic parameter init --------------------- #

def init_params(key, num_layers, num_input_features, bn_size, growth_rate):
    params = []
    cmid = bn_size * growth_rate
    for i in range(num_layers):
        cin = num_input_features + i * growth_rate
        ks = jax.random.split(jax.random.fold_in(key, i), 10)
        # PyTorch-shaped conv weights
        w1_t = jax.random.normal(ks[0], (cmid, cin, 1, 1), jnp.float32) * 0.1          # (Cout,Cin,1,1)
        w2_t = jax.random.normal(ks[1], (growth_rate, cmid, 3, 3), jnp.float32) * 0.1  # (G,Cmid,3,3)
        p = dict(
            gamma1=jax.random.uniform(ks[2], (cin,), jnp.float32, 0.5, 1.5),
            beta1=jax.random.normal(ks[3], (cin,), jnp.float32) * 0.1,
            mean1=jax.random.normal(ks[4], (cin,), jnp.float32) * 0.1,
            var1=jax.random.uniform(ks[5], (cin,), jnp.float32, 0.5, 1.5),
            gamma2=jax.random.uniform(ks[6], (cmid,), jnp.float32, 0.5, 1.5),
            beta2=jax.random.normal(ks[7], (cmid,), jnp.float32) * 0.1,
            mean2=jax.random.normal(ks[8], (cmid,), jnp.float32) * 0.1,
            var2=jax.random.uniform(ks[9], (cmid,), jnp.float32, 0.5, 1.5),
            # matmul-friendly layouts
            w1=jnp.transpose(w1_t[:, :, 0, 0], (1, 0)),                                # (Cin, Cmid)
            w2stack=jnp.transpose(w2_t, (2, 3, 1, 0)).reshape(9, cmid, growth_rate),   # (9, Cmid, G) taps
            # keep torch-shaped weights for the pure-JAX reference check
            w1_torch=w1_t,
            w2_torch=w2_t,
        )
        params.append(p)
    return params


# ------------------------------ Pure-JAX reference -------------------------- #

def _bn_nchw(x, gamma, beta, mean, var):
    inv = gamma / jnp.sqrt(var + BN_EPS)
    return x * inv[None, :, None, None] + (beta - mean * inv)[None, :, None, None]


def reference_forward(x_nchw, params):
    dn = ("NCHW", "OIHW", "NCHW")
    feats = [x_nchw]
    for p in params:
        cat = jnp.concatenate(feats, axis=1)
        h = jnp.maximum(_bn_nchw(cat, p["gamma1"], p["beta1"], p["mean1"], p["var1"]), 0.0)
        y = lax.conv_general_dilated(h, p["w1_torch"], (1, 1), "VALID", dimension_numbers=dn)
        z = jnp.maximum(_bn_nchw(y, p["gamma2"], p["beta2"], p["mean2"], p["var2"]), 0.0)
        new = lax.conv_general_dilated(z, p["w2_torch"], (1, 1), ((1, 1), (1, 1)),
                                       dimension_numbers=dn)
        feats.append(new)
    return jnp.concatenate(feats, axis=1)


# ------------------------------------ main ---------------------------------- #

if __name__ == "__main__":
    num_layers = 3
    num_input_features = 16
    bn_size = 4
    growth_rate = 8
    N, H, W = 2, 16, 16

    key = jax.random.PRNGKey(0)
    k_x, k_p = jax.random.split(key)
    x = jax.random.normal(k_x, (N, num_input_features, H, W), jnp.float32)  # NCHW
    params = init_params(k_p, num_layers, num_input_features, bn_size, growth_rate)

    out = dense_block_forward(x, params)
    out = jax.block_until_ready(out)

    expected_channels = num_input_features + num_layers * growth_rate
    assert out.shape == (N, expected_channels, H, W), out.shape

    ref = jax.block_until_ready(reference_forward(x, params))
    assert jnp.allclose(out, ref, atol=2e-3, rtol=2e-3), float(jnp.max(jnp.abs(out - ref)))

    print("KERNEL_OK")
</pallas_src>

<mosaic_0001>
module attributes {stable_mosaic.version = 11 : i64} {
  func.func @kernel(%arg0: i32, %arg1: memref<1x256x16xf32, #tpu.memory_space<vmem>>, %arg2: memref<1x16xf32, #tpu.memory_space<vmem>>, %arg3: memref<1x16xf32, #tpu.memory_space<vmem>>, %arg4: memref<16x32xf32, #tpu.memory_space<vmem>>, %arg5: memref<1x32xf32, #tpu.memory_space<vmem>>, %arg6: memref<1x32xf32, #tpu.memory_space<vmem>>, %arg7: memref<9x32x8xf32, #tpu.memory_space<vmem>>, %arg8: memref<1x24xf32, #tpu.memory_space<vmem>>, %arg9: memref<1x24xf32, #tpu.memory_space<vmem>>, %arg10: memref<24x32xf32, #tpu.memory_space<vmem>>, %arg11: memref<1x32xf32, #tpu.memory_space<vmem>>, %arg12: memref<1x32xf32, #tpu.memory_space<vmem>>, %arg13: memref<9x32x8xf32, #tpu.memory_space<vmem>>, %arg14: memref<1x32xf32, #tpu.memory_space<vmem>>, %arg15: memref<1x32xf32, #tpu.memory_space<vmem>>, %arg16: memref<32x32xf32, #tpu.memory_space<vmem>>, %arg17: memref<1x32xf32, #tpu.memory_space<vmem>>, %arg18: memref<1x32xf32, #tpu.memory_space<vmem>>, %arg19: memref<9x32x8xf32, #tpu.memory_space<vmem>>, %arg20: memref<1x256x40xf32, #tpu.memory_space<vmem>>, %arg21: memref<304x32xf32, #tpu.memory_space<vmem>>) attributes {dimension_semantics = [#tpu.dimension_semantics<parallel>], iteration_bounds = array<i64: 2>, scalar_prefetch = 0 : i64, scratch_operands = 1 : i64, tpu.core_type = #tpu.core_type<tc>, window_params = [{transform_indices = @transform_0, window_bounds = array<i64: 1, 256, 16>}, {pipeline_mode = #tpu.pipeline_mode<synchronous>, transform_indices = @transform_1, window_bounds = array<i64: 1, 16>}, {pipeline_mode = #tpu.pipeline_mode<synchronous>, transform_indices = @transform_2, window_bounds = array<i64: 1, 16>}, {pipeline_mode = #tpu.pipeline_mode<synchronous>, transform_indices = @transform_3, window_bounds = array<i64: 16, 32>}, {pipeline_mode = #tpu.pipeline_mode<synchronous>, transform_indices = @transform_4, window_bounds = array<i64: 1, 32>}, {pipeline_mode = #tpu.pipeline_mode<synchronous>, transform_indices = @transform_5, window_bounds = array<i64: 1, 32>}, {pipeline_mode = #tpu.pipeline_mode<synchronous>, transform_indices = @transform_6, window_bounds = array<i64: 9, 32, 8>}, {pipeline_mode = #tpu.pipeline_mode<synchronous>, transform_indices = @transform_7, window_bounds = array<i64: 1, 24>}, {pipeline_mode = #tpu.pipeline_mode<synchronous>, transform_indices = @transform_8, window_bounds = array<i64: 1, 24>}, {pipeline_mode = #tpu.pipeline_mode<synchronous>, transform_indices = @transform_9, window_bounds = array<i64: 24, 32>}, {pipeline_mode = #tpu.pipeline_mode<synchronous>, transform_indices = @transform_10, window_bounds = array<i64: 1, 32>}, {pipeline_mode = #tpu.pipeline_mode<synchronous>, transform_indices = @transform_11, window_bounds = array<i64: 1, 32>}, {pipeline_mode = #tpu.pipeline_mode<synchronous>, transform_indices = @transform_12, window_bounds = array<i64: 9, 32, 8>}, {pipeline_mode = #tpu.pipeline_mode<synchronous>, transform_indices = @transform_13, window_bounds = array<i64: 1, 32>}, {pipeline_mode = #tpu.pipeline_mode<synchronous>, transform_indices = @transform_14, window_bounds = array<i64: 1, 32>}, {pipeline_mode = #tpu.pipeline_mode<synchronous>, transform_indices = @transform_15, window_bounds = array<i64: 32, 32>}, {pipeline_mode = #tpu.pipeline_mode<synchronous>, transform_indices = @transform_16, window_bounds = array<i64: 1, 32>}, {pipeline_mode = #tpu.pipeline_mode<synchronous>, transform_indices = @transform_17, window_bounds = array<i64: 1, 32>}, {pipeline_mode = #tpu.pipeline_mode<synchronous>, transform_indices = @transform_18, window_bounds = array<i64: 9, 32, 8>}, {transform_indices = @transform_19, window_bounds = array<i64: 1, 256, 40>}]} {
    %c0 = arith.constant 0 : index
    %c0_0 = arith.constant 0 : index
    %c0_1 = arith.constant 0 : index
    %0 = vector.load %arg1[%c0, %c0_0, %c0_1] : memref<1x256x16xf32, #tpu.memory_space<vmem>>, vector<1x256x16xf32>
    %1 = vector.shape_cast %0 : vector<1x256x16xf32> to vector<256x16xf32>
    %c0_2 = arith.constant 0 : index
    %c0_3 = arith.constant 0 : index
    %c0_4 = arith.constant 0 : index
    %2 = vector.load %arg20[%c0_2, %c0_3, %c0_4] : memref<1x256x40xf32, #tpu.memory_space<vmem>>, vector<1x256x16xf32>
    %3 = vector.shape_cast %2 : vector<1x256x16xf32> to vector<256x16xf32>
    %4 = vector.shape_cast %1 : vector<256x16xf32> to vector<1x256x16xf32>
    tpu.vector_store %arg20[%c0_2, %c0_3, %c0_4], %4 {strides = array<i32>} : memref<1x256x40xf32, #tpu.memory_space<vmem>>, vector<1x256x16xf32>,
    %cst = arith.constant 0.000000e+00 : f32
    %5 = vector.broadcast %cst : f32 to vector<304x32xf32>
    %c0_5 = arith.constant 0 : index
    %c0_6 = arith.constant 0 : index
    %6 = vector.load %arg21[%c0_5, %c0_6] : memref<304x32xf32, #tpu.memory_space<vmem>>, vector<304x32xf32>
    tpu.vector_store %arg21[%c0_5, %c0_6], %5 {strides = array<i32>} : memref<304x32xf32, #tpu.memory_space<vmem>>, vector<304x32xf32>,
    %7 = tpu.iota {dimensions = array<i32: 0>} : vector<256x1xi32>
    %c16_i32 = arith.constant 16 : i32
    %c0_i32 = arith.constant 0 : i32
    %8 = arith.cmpi eq, %c16_i32, %c0_i32 : i32
    %c1_i32 = arith.constant 1 : i32
    %9 = arith.select %8, %c1_i32, %c16_i32 : i32
    %10 = vector.broadcast %9 : i32 to vector<256x1xi32>
    %11 = arith.remsi %7, %10 : vector<256x1xi32>
    %c0_i32_7 = arith.constant 0 : i32
    %12 = vector.broadcast %c0_i32_7 : i32 to vector<256x1xi32>
    %13 = arith.cmpi ne, %11, %12 : vector<256x1xi32>
    %c0_i32_8 = arith.constant 0 : i32
    %14 = vector.broadcast %c0_i32_8 : i32 to vector<256x1xi32>
    %15 = arith.cmpi slt, %11, %14 : vector<256x1xi32>
    %c0_i32_9 = arith.constant 0 : i32
    %16 = arith.cmpi slt, %9, %c0_i32_9 : i32
    %17 = vector.broadcast %16 : i1 to vector<256x1xi1>
    %18 = vector.broadcast %17 : vector<256x1xi1> to vector<256x1xi1>
    %19 = arith.xori %15, %18 : vector<256x1xi1>
    %20 = arith.andi %19, %13 : vector<256x1xi1>
    %21 = vector.broadcast %9 : i32 to vector<256x1xi32>
    %22 = arith.addi %11, %21 : vector<256x1xi32>
    %23 = arith.select %20, %22, %11 : vector<256x1xi1>, vector<256x1xi32>
    %c1_i32_10 = arith.constant 1 : i32
    %24 = vector.broadcast %c1_i32_10 : i32 to vector<256x1xi32>
    %25 = arith.cmpi sge, %23, %24 : vector<256x1xi32>
    %26 = arith.extui %25 : vector<256x1xi1> to vector<256x1xi32>
    %27 = arith.sitofp %26 : vector<256x1xi32> to vector<256x1xf32>
    %c15_i32 = arith.constant 15 : i32
    %28 = vector.broadcast %c15_i32 : i32 to vector<256x1xi32>
    %29 = arith.cmpi slt, %23, %28 : vector<256x1xi32>
    %30 = arith.extui %29 : vector<256x1xi1> to vector<256x1xi32>
    %31 = arith.sitofp %30 : vector<256x1xi32> to vector<256x1xf32>
    %c0_11 = arith.constant 0 : index
    %c0_12 = arith.constant 0 : index
    %c0_13 = arith.constant 0 : index
    %32 = vector.load %arg20[%c0_11, %c0_12, %c0_13] : memref<1x256x40xf32, #tpu.memory_space<vmem>>, vector<1x256x16xf32>
    %33 = vector.shape_cast %32 : vector<1x256x16xf32> to vector<256x16xf32>
    %c0_14 = arith.constant 0 : index
    %c0_15 = arith.constant 0 : index
    %34 = vector.load %arg2[%c0_14, %c0_15] : memref<1x16xf32, #tpu.memory_space<vmem>>, vector<1x16xf32>
    %35 = vector.broadcast %34 : vector<1x16xf32> to vector<256x16xf32>
    %36 = arith.mulf %33, %35 : vector<256x16xf32>
    %c0_16 = arith.constant 0 : index
    %c0_17 = arith.constant 0 : index
    %37 = vector.load %arg3[%c0_16, %c0_17] : memref<1x16xf32, #tpu.memory_space<vmem>>, vector<1x16xf32>
    %38 = vector.broadcast %37 : vector<1x16xf32> to vector<256x16xf32>
    %39 = arith.addf %36, %38 : vector<256x16xf32>
    %cst_18 = arith.constant 0.000000e+00 : f32
    %40 = vector.broadcast %cst_18 : f32 to vector<256x16xf32>
    %41 = arith.maximumf %39, %40 : vector<256x16xf32>
    %c0_19 = arith.constant 0 : index
    %c0_20 = arith.constant 0 : index
    %42 = vector.load %arg4[%c0_19, %c0_20] : memref<16x32xf32, #tpu.memory_space<vmem>>, vector<16x32xf32>
    %cst_21 = arith.constant dense<0.000000e+00> : vector<256x32xf32>
    %43 = tpu.matmul %41, %42, %cst_21 {dimension_numbers = #tpu.dot_dimension_numbers<[1], [0], [0], [1], [0, 0, 1, 1], [], []>} : vector<256x16xf32>, vector<16x32xf32>, vector<256x32xf32> -> vector<256x32xf32>
    %c0_22 = arith.constant 0 : index
    %c0_23 = arith.constant 0 : index
    %44 = vector.load %arg5[%c0_22, %c0_23] : memref<1x32xf32, #tpu.memory_space<vmem>>, vector<1x32xf32>
    %45 = vector.broadcast %44 : vector<1x32xf32> to vector<256x32xf32>
    %46 = arith.mulf %43, %45 : vector<256x32xf32>
    %c0_24 = arith.constant 0 : index
    %c0_25 = arith.constant 0 : index
    %47 = vector.load %arg6[%c0_24, %c0_25] : memref<1x32xf32, #tpu.memory_space<vmem>>, vector<1x32xf32>
    %48 = vector.broadcast %47 : vector<1x32xf32> to vector<256x32xf32>
    %49 = arith.addf %46, %48 : vector<256x32xf32>
    %cst_26 = arith.constant 0.000000e+00 : f32
    %50 = vector.broadcast %cst_26 : f32 to vector<256x32xf32>
    %51 = arith.maximumf %49, %50 : vector<256x32xf32>
    %c24 = arith.constant 24 : index
    %c0_27 = arith.constant 0 : index
    %52 = vector.load %arg21[%c24, %c0_27] : memref<304x32xf32, #tpu.memory_space<vmem>>, vector<256x32xf32>
    tpu.vector_store %arg21[%c24, %c0_27], %51 {strides = array<i32>} : memref<304x32xf32, #tpu.memory_space<vmem>>, vector<256x32xf32>,
    %cst_28 = arith.constant 0.000000e+00 : f32
    %53 = vector.broadcast %cst_28 : f32 to vector<256x8xf32>
    %cst_29 = arith.constant 0.000000e+00 : f32
    %54 = vector.broadcast %cst_29 : f32 to vector<256x8xf32>
    %c7 = arith.constant 7 : index
    %c0_30 = arith.constant 0 : index
    %55 = vector.load %arg21[%c7, %c0_30] : memref<304x32xf32, #tpu.memory_space<vmem>>, vector<256x32xf32>
    %c0_31 = arith.constant 0 : index
    %c0_32 = arith.constant 0 : index
    %c0_33 = arith.constant 0 : index
    %56 = vector.load %arg7[%c0_31, %c0_32, %c0_33] : memref<9x32x8xf32, #tpu.memory_space<vmem>>, vector<1x32x8xf32>
    %57 = vector.shape_cast %56 : vector<1x32x8xf32> to vector<32x8xf32>
    %cst_34 = arith.constant dense<0.000000e+00> : vector<256x8xf32>
    %58 = tpu.matmul %55, %57, %cst_34 {dimension_numbers = #tpu.dot_dimension_numbers<[1], [0], [0], [1], [0, 0, 1, 1], [], []>} : vector<256x32xf32>, vector<32x8xf32>, vector<256x8xf32> -> vector<256x8xf32>
    %59 = arith.addf %54, %58 : vector<256x8xf32>
    %c23 = arith.constant 23 : index
    %c0_35 = arith.constant 0 : index
    %60 = vector.load %arg21[%c23, %c0_35] : memref<304x32xf32, #tpu.memory_space<vmem>>, vector<256x32xf32>
    %c3 = arith.constant 3 : index
    %c0_36 = arith.constant 0 : index
    %c0_37 = arith.constant 0 : index
    %61 = vector.load %arg7[%c3, %c0_36, %c0_37] : memref<9x32x8xf32, #tpu.memory_space<vmem>>, vector<1x32x8xf32>
    %62 = vector.shape_cast %61 : vector<1x32x8xf32> to vector<32x8xf32>
    %cst_38 = arith.constant dense<0.000000e+00> : vector<256x8xf32>
    %63 = tpu.matmul %60, %62, %cst_38 {dimension_numbers = #tpu.dot_dimension_numbers<[1], [0], [0], [1], [0, 0, 1, 1], [], []>} : vector<256x32xf32>, vector<32x8xf32>, vector<256x8xf32> -> vector<256x8xf32>
    %64 = arith.addf %59, %63 : vector<256x8xf32>
    %c39 = arith.constant 39 : index
    %c0_39 = arith.constant 0 : index
    %65 = vector.load %arg21[%c39, %c0_39] : memref<304x32xf32, #tpu.memory_space<vmem>>, vector<256x32xf32>
    %c6 = arith.constant 6 : index
    %c0_40 = arith.constant 0 : index
    %c0_41 = arith.constant 0 : index
    %66 = vector.load %arg7[%c6, %c0_40, %c0_41] : memref<9x32x8xf32, #tpu.memory_space<vmem>>, vector<1x32x8xf32>
    %67 = vector.shape_cast %66 : vector<1x32x8xf32> to vector<32x8xf32>
    %cst_42 = arith.constant dense<0.000000e+00> : vector<256x8xf32>
    %68 = tpu.matmul %65, %67, %cst_42 {dimension_numbers = #tpu.dot_dimension_numbers<[1], [0], [0], [1], [0, 0, 1, 1], [], []>} : vector<256x32xf32>, vector<32x8xf32>, vector<256x8xf32> -> vector<256x8xf32>
    %69 = arith.addf %64, %68 : vector<256x8xf32>
    %70 = vector.broadcast %27 : vector<256x1xf32> to vector<256x8xf32>
    %71 = arith.mulf %69, %70 : vector<256x8xf32>
    %72 = arith.addf %53, %71 : vector<256x8xf32>
    %cst_43 = arith.constant 0.000000e+00 : f32
    %73 = vector.broadcast %cst_43 : f32 to vector<256x8xf32>
    %c8 = arith.constant 8 : index
    %c0_44 = arith.constant 0 : index
    %74 = vector.load %arg21[%c8, %c0_44] : memref<304x32xf32, #tpu.memory_space<vmem>>, vector<256x32xf32>
    %c1 = arith.constant 1 : index
    %c0_45 = arith.constant 0 : index
    %c0_46 = arith.constant 0 : index
    %75 = vector.load %arg7[%c1, %c0_45, %c0_46] : memref<9x32x8xf32, #tpu.memory_space<vmem>>, vector<1x32x8xf32>
    %76 = vector.shape_cast %75 : vector<1x32x8xf32> to vector<32x8xf32>
    %cst_47 = arith.constant dense<0.000000e+00> : vector<256x8xf32>
    %77 = tpu.matmul %74, %76, %cst_47 {dimension_numbers = #tpu.dot_dimension_numbers<[1], [0], [0], [1], [0, 0, 1, 1], [], []>} : vector<256x32xf32>, vector<32x8xf32>, vector<256x8xf32> -> vector<256x8xf32>
    %78 = arith.addf %73, %77 : vector<256x8xf32>
    %c24_48 = arith.constant 24 : index
    %c0_49 = arith.constant 0 : index
    %79 = vector.load %arg21[%c24_48, %c0_49] : memref<304x32xf32, #tpu.memory_space<vmem>>, vector<256x32xf32>
    %c4 = arith.constant 4 : index
    %c0_50 = arith.constant 0 : index
    %c0_51 = arith.constant 0 : index
    %80 = vector.load %arg7[%c4, %c0_50, %c0_51] : memref<9x32x8xf32, #tpu.memory_space<vmem>>, vector<1x32x8xf32>
    %81 = vector.shape_cast %80 : vector<1x32x8xf32> to vector<32x8xf32>
    %cst_52 = arith.constant dense<0.000000e+00> : vector<256x8xf32>
    %82 = tpu.matmul %79, %81, %cst_52 {dimension_numbers = #tpu.dot_dimension_numbers<[1], [0], [0], [1], [0, 0, 1, 1], [], []>} : vector<256x32xf32>, vector<32x8xf32>, vector<256x8xf32> -> vector<256x8xf32>
    %83 = arith.addf %78, %82 : vector<256x8xf32>
    %c40 = arith.constant 40 : index
    %c0_53 = arith.constant 0 : index
    %84 = vector.load %arg21[%c40, %c0_53] : memref<304x32xf32, #tpu.memory_space<vmem>>, vector<256x32xf32>
    %c7_54 = arith.constant 7 : index
    %c0_55 = arith.constant 0 : index
    %c0_56 = arith.constant 0 : index
    %85 = vector.load %arg7[%c7_54, %c0_55, %c0_56] : memref<9x32x8xf32, #tpu.memory_space<vmem>>, vector<1x32x8xf32>
    %86 = vector.shape_cast %85 : vector<1x32x8xf32> to vector<32x8xf32>
    %cst_57 = arith.constant dense<0.000000e+00> : vector<256x8xf32>
    %87 = tpu.matmul %84, %86, %cst_57 {dimension_numbers = #tpu.dot_dimension_numbers<[1], [0], [0], [1], [0, 0, 1, 1], [], []>} : vector<256x32xf32>, vector<32x8xf32>, vector<256x8xf32> -> vector<256x8xf32>
    %88 = arith.addf %83, %87 : vector<256x8xf32>
    %89 = arith.addf %72, %88 : vector<256x8xf32>
    %cst_58 = arith.constant 0.000000e+00 : f32
    %90 = vector.broadcast %cst_58 : f32 to vector<256x8xf32>
    %c9 = arith.constant 9 : index
    %c0_59 = arith.constant 0 : index
    %91 = vector.load %arg21[%c9, %c0_59] : memref<304x32xf32, #tpu.memory_space<vmem>>, vector<256x32xf32>
    %c2 = arith.constant 2 : index
    %c0_60 = arith.constant 0 : index
    %c0_61 = arith.constant 0 : index
    %92 = vector.load %arg7[%c2, %c0_60, %c0_61] : memref<9x32x8xf32, #tpu.memory_space<vmem>>, vector<1x32x8xf32>
    %93 = vector.shape_cast %92 : vector<1x32x8xf32> to vector<32x8xf32>
    %cst_62 = arith.constant dense<0.000000e+00> : vector<256x8xf32>
    %94 = tpu.matmul %91, %93, %cst_62 {dimension_numbers = #tpu.dot_dimension_numbers<[1], [0], [0], [1], [0, 0, 1, 1], [], []>} : vector<256x32xf32>, vector<32x8xf32>, vector<256x8xf32> -> vector<256x8xf32>
    %95 = arith.addf %90, %94 : vector<256x8xf32>
    %c25 = arith.constant 25 : index
    %c0_63 = arith.constant 0 : index
    %96 = vector.load %arg21[%c25, %c0_63] : memref<304x32xf32, #tpu.memory_space<vmem>>, vector<256x32xf32>
    %c5 = arith.constant 5 : index
    %c0_64 = arith.constant 0 : index
    %c0_65 = arith.constant 0 : index
    %97 = vector.load %arg7[%c5, %c0_64, %c0_65] : memref<9x32x8xf32, #tpu.memory_space<vmem>>, vector<1x32x8xf32>
    %98 = vector.shape_cast %97 : vector<1x32x8xf32> to vector<32x8xf32>
    %cst_66 = arith.constant dense<0.000000e+00> : vector<256x8xf32>
    %99 = tpu.matmul %96, %98, %cst_66 {dimension_numbers = #tpu.dot_dimension_numbers<[1], [0], [0], [1], [0, 0, 1, 1], [], []>} : vector<256x32xf32>, vector<32x8xf32>, vector<256x8xf32> -> vector<256x8xf32>
    %100 = arith.addf %95, %99 : vector<256x8xf32>
    %c41 = arith.constant 41 : index
    %c0_67 = arith.constant 0 : index
    %101 = vector.load %arg21[%c41, %c0_67] : memref<304x32xf32, #tpu.memory_space<vmem>>, vector<256x32xf32>
    %c8_68 = arith.constant 8 : index
    %c0_69 = arith.constant 0 : index
    %c0_70 = arith.constant 0 : index
    %102 = vector.load %arg7[%c8_68, %c0_69, %c0_70] : memref<9x32x8xf32, #tpu.memory_space<vmem>>, vector<1x32x8xf32>
    %103 = vector.shape_cast %102 : vector<1x32x8xf32> to vector<32x8xf32>
    %cst_71 = arith.constant dense<0.000000e+00> : vector<256x8xf32>
    %104 = tpu.matmul %101, %103, %cst_71 {dimension_numbers = #tpu.dot_dimension_numbers<[1], [0], [0], [1], [0, 0, 1, 1], [], []>} : vector<256x32xf32>, vector<32x8xf32>, vector<256x8xf32> -> vector<256x8xf32>
    %105 = arith.addf %100, %104 : vector<256x8xf32>
    %106 = vector.broadcast %31 : vector<256x1xf32> to vector<256x8xf32>
    %107 = arith.mulf %105, %106 : vector<256x8xf32>
    %108 = arith.addf %89, %107 : vector<256x8xf32>
    %c0_72 = arith.constant 0 : index
    %c0_73 = arith.constant 0 : index
    %c16 = arith.constant 16 : index
    %109 = vector.load %arg20[%c0_72, %c0_73, %c16] : memref<1x256x40xf32, #tpu.memory_space<vmem>>, vector<1x256x8xf32>
    %110 = vector.shape_cast %109 : vector<1x256x8xf32> to vector<256x8xf32>
    %111 = vector.shape_cast %108 : vector<256x8xf32> to vector<1x256x8xf32>
    tpu.vector_store %arg20[%c0_72, %c0_73, %c16], %111 {strides = array<i32>} : memref<1x256x40xf32, #tpu.memory_space<vmem>>, vector<1x256x8xf32>,
    %c0_74 = arith.constant 0 : index
    %c0_75 = arith.constant 0 : index
    %c0_76 = arith.constant 0 : index
    %112 = vector.load %arg20[%c0_74, %c0_75, %c0_76] : memref<1x256x40xf32, #tpu.memory_space<vmem>>, vector<1x256x24xf32>
    %113 = vector.shape_cast %112 : vector<1x256x24xf32> to vector<256x24xf32>
    %c0_77 = arith.constant 0 : index
    %c0_78 = arith.constant 0 : index
    %114 = vector.load %arg8[%c0_77, %c0_78] : memref<1x24xf32, #tpu.memory_space<vmem>>, vector<1x24xf32>
    %115 = vector.broadcast %114 : vector<1x24xf32> to vector<256x24xf32>
    %116 = arith.mulf %113, %115 : vector<256x24xf32>
    %c0_79 = arith.constant 0 : index
    %c0_80 = arith.constant 0 : index
    %117 = vector.load %arg9[%c0_79, %c0_80] : memref<1x24xf32, #tpu.memory_space<vmem>>, vector<1x24xf32>
    %118 = vector.broadcast %117 : vector<1x24xf32> to vector<256x24xf32>
    %119 = arith.addf %116, %118 : vector<256x24xf32>
    %cst_81 = arith.constant 0.000000e+00 : f32
    %120 = vector.broadcast %cst_81 : f32 to vector<256x24xf32>
    %121 = arith.maximumf %119, %120 : vector<256x24xf32>
    %c0_82 = arith.constant 0 : index
    %c0_83 = arith.constant 0 : index
    %122 = vector.load %arg10[%c0_82, %c0_83] : memref<24x32xf32, #tpu.memory_space<vmem>>, vector<24x32xf32>
    %cst_84 = arith.constant dense<0.000000e+00> : vector<256x32xf32>
    %123 = tpu.matmul %121, %122, %cst_84 {dimension_numbers = #tpu.dot_dimension_numbers<[1], [0], [0], [1], [0, 0, 1, 1], [], []>} : vector<256x24xf32>, vector<24x32xf32>, vector<256x32xf32> -> vector<256x32xf32>
    %c0_85 = arith.constant 0 : index
    %c0_86 = arith.constant 0 : index
    %124 = vector.load %arg11[%c0_85, %c0_86] : memref<1x32xf32, #tpu.memory_space<vmem>>, vector<1x32xf32>
    %125 = vector.broadcast %124 : vector<1x32xf32> to vector<256x32xf32>
    %126 = arith.mulf %123, %125 : vector<256x32xf32>
    %c0_87 = arith.constant 0 : index
    %c0_88 = arith.constant 0 : index
    %127 = vector.load %arg12[%c0_87, %c0_88] : memref<1x32xf32, #tpu.memory_space<vmem>>, vector<1x32xf32>
    %128 = vector.broadcast %127 : vector<1x32xf32> to vector<256x32xf32>
    %129 = arith.addf %126, %128 : vector<256x32xf32>
    %cst_89 = arith.constant 0.000000e+00 : f32
    %130 = vector.broadcast %cst_89 : f32 to vector<256x32xf32>
    %131 = arith.maximumf %129, %130 : vector<256x32xf32>
    %c24_90 = arith.constant 24 : index
    %c0_91 = arith.constant 0 : index
    %132 = vector.load %arg21[%c24_90, %c0_91] : memref<304x32xf32, #tpu.memory_space<vmem>>, vector<256x32xf32>
    tpu.vector_store %arg21[%c24_90, %c0_91], %131 {strides = array<i32>} : memref<304x32xf32, #tpu.memory_space<vmem>>, vector<256x32xf32>,
    %cst_92 = arith.constant 0.000000e+00 : f32
    %133 = vector.broadcast %cst_92 : f32 to vector<256x8xf32>
    %cst_93 = arith.constant 0.000000e+00 : f32
    %134 = vector.broadcast %cst_93 : f32 to vector<256x8xf32>
    %c7_94 = arith.constant 7 : index
    %c0_95 = arith.constant 0 : index
    %135 = vector.load %arg21[%c7_94, %c0_95] : memref<304x32xf32, #tpu.memory_space<vmem>>, vector<256x32xf32>
    %c0_96 = arith.constant 0 : index
    %c0_97 = arith.constant 0 : index
    %c0_98 = arith.constant 0 : index
    %136 = vector.load %arg13[%c0_96, %c0_97, %c0_98] : memref<9x32x8xf32, #tpu.memory_space<vmem>>, vector<1x32x8xf32>
    %137 = vector.shape_cast %136 : vector<1x32x8xf32> to vector<32x8xf32>
    %cst_99 = arith.constant dense<0.000000e+00> : vector<256x8xf32>
    %138 = tpu.matmul %135, %137, %cst_99 {dimension_numbers = #tpu.dot_dimension_numbers<[1], [0], [0], [1], [0, 0, 1, 1], [], []>} : vector<256x32xf32>, vector<32x8xf32>, vector<256x8xf32> -> vector<256x8xf32>
    %139 = arith.addf %134, %138 : vector<256x8xf32>
    %c23_100 = arith.constant 23 : index
    %c0_101 = arith.constant 0 : index
    %140 = vector.load %arg21[%c23_100, %c0_101] : memref<304x32xf32, #tpu.memory_space<vmem>>, vector<256x32xf32>
    %c3_102 = arith.constant 3 : index
    %c0_103 = arith.constant 0 : index
    %c0_104 = arith.constant 0 : index
    %141 = vector.load %arg13[%c3_102, %c0_103, %c0_104] : memref<9x32x8xf32, #tpu.memory_space<vmem>>, vector<1x32x8xf32>
    %142 = vector.shape_cast %141 : vector<1x32x8xf32> to vector<32x8xf32>
    %cst_105 = arith.constant dense<0.000000e+00> : vector<256x8xf32>
    %143 = tpu.matmul %140, %142, %cst_105 {dimension_numbers = #tpu.dot_dimension_numbers<[1], [0], [0], [1], [0, 0, 1, 1], [], []>} : vector<256x32xf32>, vector<32x8xf32>, vector<256x8xf32> -> vector<256x8xf32>
    %144 = arith.addf %139, %143 : vector<256x8xf32>
    %c39_106 = arith.constant 39 : index
    %c0_107 = arith.constant 0 : index
    %145 = vector.load %arg21[%c39_106, %c0_107] : memref<304x32xf32, #tpu.memory_space<vmem>>, vector<256x32xf32>
    %c6_108 = arith.constant 6 : index
    %c0_109 = arith.constant 0 : index
    %c0_110 = arith.constant 0 : index
    %146 = vector.load %arg13[%c6_108, %c0_109, %c0_110] : memref<9x32x8xf32, #tpu.memory_space<vmem>>, vector<1x32x8xf32>
    %147 = vector.shape_cast %146 : vector<1x32x8xf32> to vector<32x8xf32>
    %cst_111 = arith.constant dense<0.000000e+00> : vector<256x8xf32>
    %148 = tpu.matmul %145, %147, %cst_111 {dimension_numbers = #tpu.dot_dimension_numbers<[1], [0], [0], [1], [0, 0, 1, 1], [], []>} : vector<256x32xf32>, vector<32x8xf32>, vector<256x8xf32> -> vector<256x8xf32>
    %149 = arith.addf %144, %148 : vector<256x8xf32>
    %150 = vector.broadcast %27 : vector<256x1xf32> to vector<256x8xf32>
    %151 = arith.mulf %149, %150 : vector<256x8xf32>
    %152 = arith.addf %133, %151 : vector<256x8xf32>
    %cst_112 = arith.constant 0.000000e+00 : f32
    %153 = vector.broadcast %cst_112 : f32 to vector<256x8xf32>
    %c8_113 = arith.constant 8 : index
    %c0_114 = arith.constant 0 : index
    %154 = vector.load %arg21[%c8_113, %c0_114] : memref<304x32xf32, #tpu.memory_space<vmem>>, vector<256x32xf32>
    %c1_115 = arith.constant 1 : index
    %c0_116 = arith.constant 0 : index
    %c0_117 = arith.constant 0 : index
    %155 = vector.load %arg13[%c1_115, %c0_116, %c0_117] : memref<9x32x8xf32, #tpu.memory_space<vmem>>, vector<1x32x8xf32>
    %156 = vector.shape_cast %155 : vector<1x32x8xf32> to vector<32x8xf32>
    %cst_118 = arith.constant dense<0.000000e+00> : vector<256x8xf32>
    %157 = tpu.matmul %154, %156, %cst_118 {dimension_numbers = #tpu.dot_dimension_numbers<[1], [0], [0], [1], [0, 0, 1, 1], [], []>} : vector<256x32xf32>, vector<32x8xf32>, vector<256x8xf32> -> vector<256x8xf32>
    %158 = arith.addf %153, %157 : vector<256x8xf32>
    %c24_119 = arith.constant 24 : index
    %c0_120 = arith.constant 0 : index
    %159 = vector.load %arg21[%c24_119, %c0_120] : memref<304x32xf32, #tpu.memory_space<vmem>>, vector<256x32xf32>
    %c4_121 = arith.constant 4 : index
    %c0_122 = arith.constant 0 : index
    %c0_123 = arith.constant 0 : index
    %160 = vector.load %arg13[%c4_121, %c0_122, %c0_123] : memref<9x32x8xf32, #tpu.memory_space<vmem>>, vector<1x32x8xf32>
    %161 = vector.shape_cast %160 : vector<1x32x8xf32> to vector<32x8xf32>
    %cst_124 = arith.constant dense<0.000000e+00> : vector<256x8xf32>
    %162 = tpu.matmul %159, %161, %cst_124 {dimension_numbers = #tpu.dot_dimension_numbers<[1], [0], [0], [1], [0, 0, 1, 1], [], []>} : vector<256x32xf32>, vector<32x8xf32>, vector<256x8xf32> -> vector<256x8xf32>
    %163 = arith.addf %158, %162 : vector<256x8xf32>
    %c40_125 = arith.constant 40 : index
    %c0_126 = arith.constant 0 : index
    %164 = vector.load %arg21[%c40_125, %c0_126] : memref<304x32xf32, #tpu.memory_space<vmem>>, vector<256x32xf32>
    %c7_127 = arith.constant 7 : index
    %c0_128 = arith.constant 0 : index
    %c0_129 = arith.constant 0 : index
    %165 = vector.load %arg13[%c7_127, %c0_128, %c0_129] : memref<9x32x8xf32, #tpu.memory_space<vmem>>, vector<1x32x8xf32>
    %166 = vector.shape_cast %165 : vector<1x32x8xf32> to vector<32x8xf32>
    %cst_130 = arith.constant dense<0.000000e+00> : vector<256x8xf32>
    %167 = tpu.matmul %164, %166, %cst_130 {dimension_numbers = #tpu.dot_dimension_numbers<[1], [0], [0], [1], [0, 0, 1, 1], [], []>} : vector<256x32xf32>, vector<32x8xf32>, vector<256x8xf32> -> vector<256x8xf32>
    %168 = arith.addf %163, %167 : vector<256x8xf32>
    %169 = arith.addf %152, %168 : vector<256x8xf32>
    %cst_131 = arith.constant 0.000000e+00 : f32
    %170 = vector.broadcast %cst_131 : f32 to vector<256x8xf32>
    %c9_132 = arith.constant 9 : index
    %c0_133 = arith.constant 0 : index
    %171 = vector.load %arg21[%c9_132, %c0_133] : memref<304x32xf32, #tpu.memory_space<vmem>>, vector<256x32xf32>
    %c2_134 = arith.constant 2 : index
    %c0_135 = arith.constant 0 : index
    %c0_136 = arith.constant 0 : index
    %172 = vector.load %arg13[%c2_134, %c0_135, %c0_136] : memref<9x32x8xf32, #tpu.memory_space<vmem>>, vector<1x32x8xf32>
    %173 = vector.shape_cast %172 : vector<1x32x8xf32> to vector<32x8xf32>
    %cst_137 = arith.constant dense<0.000000e+00> : vector<256x8xf32>
    %174 = tpu.matmul %171, %173, %cst_137 {dimension_numbers = #tpu.dot_dimension_numbers<[1], [0], [0], [1], [0, 0, 1, 1], [], []>} : vector<256x32xf32>, vector<32x8xf32>, vector<256x8xf32> -> vector<256x8xf32>
    %175 = arith.addf %170, %174 : vector<256x8xf32>
    %c25_138 = arith.constant 25 : index
    %c0_139 = arith.constant 0 : index
    %176 = vector.load %arg21[%c25_138, %c0_139] : memref<304x32xf32, #tpu.memory_space<vmem>>, vector<256x32xf32>
    %c5_140 = arith.constant 5 : index
    %c0_141 = arith.constant 0 : index
    %c0_142 = arith.constant 0 : index
    %177 = vector.load %arg13[%c5_140, %c0_141, %c0_142] : memref<9x32x8xf32, #tpu.memory_space<vmem>>, vector<1x32x8xf32>
    %178 = vector.shape_cast %177 : vector<1x32x8xf32> to vector<32x8xf32>
    %cst_143 = arith.constant dense<0.000000e+00> : vector<256x8xf32>
    %179 = tpu.matmul %176, %178, %cst_143 {dimension_numbers = #tpu.dot_dimension_numbers<[1], [0], [0], [1], [0, 0, 1, 1], [], []>} : vector<256x32xf32>, vector<32x8xf32>, vector<256x8xf32> -> vector<256x8xf32>
    %180 = arith.addf %175, %179 : vector<256x8xf32>
    %c41_144 = arith.constant 41 : index
    %c0_145 = arith.constant 0 : index
    %181 = vector.load %arg21[%c41_144, %c0_145] : memref<304x32xf32, #tpu.memory_space<vmem>>, vector<256x32xf32>
    %c8_146 = arith.constant 8 : index
    %c0_147 = arith.constant 0 : index
    %c0_148 = arith.constant 0 : index
    %182 = vector.load %arg13[%c8_146, %c0_147, %c0_148] : memref<9x32x8xf32, #tpu.memory_space<vmem>>, vector<1x32x8xf32>
    %183 = vector.shape_cast %182 : vector<1x32x8xf32> to vector<32x8xf32>
    %cst_149 = arith.constant dense<0.000000e+00> : vector<256x8xf32>
    %184 = tpu.matmul %181, %183, %cst_149 {dimension_numbers = #tpu.dot_dimension_numbers<[1], [0], [0], [1], [0, 0, 1, 1], [], []>} : vector<256x32xf32>, vector<32x8xf32>, vector<256x8xf32> -> vector<256x8xf32>
    %185 = arith.addf %180, %184 : vector<256x8xf32>
    %186 = vector.broadcast %31 : vector<256x1xf32> to vector<256x8xf32>
    %187 = arith.mulf %185, %186 : vector<256x8xf32>
    %188 = arith.addf %169, %187 : vector<256x8xf32>
    %c0_150 = arith.constant 0 : index
    %c0_151 = arith.constant 0 : index
    %c24_152 = arith.constant 24 : index
    %189 = vector.load %arg20[%c0_150, %c0_151, %c24_152] : memref<1x256x40xf32, #tpu.memory_space<vmem>>, vector<1x256x8xf32>
    %190 = vector.shape_cast %189 : vector<1x256x8xf32> to vector<256x8xf32>
    %191 = vector.shape_cast %188 : vector<256x8xf32> to vector<1x256x8xf32>
    tpu.vector_store %arg20[%c0_150, %c0_151, %c24_152], %191 {strides = array<i32>} : memref<1x256x40xf32, #tpu.memory_space<vmem>>, vector<1x256x8xf32>,
    %c0_153 = arith.constant 0 : index
    %c0_154 = arith.constant 0 : index
    %c0_155 = arith.constant 0 : index
    %192 = vector.load %arg20[%c0_153, %c0_154, %c0_155] : memref<1x256x40xf32, #tpu.memory_space<vmem>>, vector<1x256x32xf32>
    %193 = vector.shape_cast %192 : vector<1x256x32xf32> to vector<256x32xf32>
    %c0_156 = arith.constant 0 : index
    %c0_157 = arith.constant 0 : index
    %194 = vector.load %arg14[%c0_156, %c0_157] : memref<1x32xf32, #tpu.memory_space<vmem>>, vector<1x32xf32>
    %195 = vector.broadcast %194 : vector<1x32xf32> to vector<256x32xf32>
    %196 = arith.mulf %193, %195 : vector<256x32xf32>
    %c0_158 = arith.constant 0 : index
    %c0_159 = arith.constant 0 : index
    %197 = vector.load %arg15[%c0_158, %c0_159] : memref<1x32xf32, #tpu.memory_space<vmem>>, vector<1x32xf32>
    %198 = vector.broadcast %197 : vector<1x32xf32> to vector<256x32xf32>
    %199 = arith.addf %196, %198 : vector<256x32xf32>
    %cst_160 = arith.constant 0.000000e+00 : f32
    %200 = vector.broadcast %cst_160 : f32 to vector<256x32xf32>
    %201 = arith.maximumf %199, %200 : vector<256x32xf32>
    %c0_161 = arith.constant 0 : index
    %c0_162 = arith.constant 0 : index
    %202 = vector.load %arg16[%c0_161, %c0_162] : memref<32x32xf32, #tpu.memory_space<vmem>>, vector<32x32xf32>
    %cst_163 = arith.constant dense<0.000000e+00> : vector<256x32xf32>
    %203 = tpu.matmul %201, %202, %cst_163 {dimension_numbers = #tpu.dot_dimension_numbers<[1], [0], [0], [1], [0, 0, 1, 1], [], []>} : vector<256x32xf32>, vector<32x32xf32>, vector<256x32xf32> -> vector<256x32xf32>
    %c0_164 = arith.constant 0 : index
    %c0_165 = arith.constant 0 : index
    %204 = vector.load %arg17[%c0_164, %c0_165] : memref<1x32xf32, #tpu.memory_space<vmem>>, vector<1x32xf32>
    %205 = vector.broadcast %204 : vector<1x32xf32> to vector<256x32xf32>
    %206 = arith.mulf %203, %205 : vector<256x32xf32>
    %c0_166 = arith.constant 0 : index
    %c0_167 = arith.constant 0 : index
    %207 = vector.load %arg18[%c0_166, %c0_167] : memref<1x32xf32, #tpu.memory_space<vmem>>, vector<1x32xf32>
    %208 = vector.broadcast %207 : vector<1x32xf32> to vector<256x32xf32>
    %209 = arith.addf %206, %208 : vector<256x32xf32>
    %cst_168 = arith.constant 0.000000e+00 : f32
    %210 = vector.broadcast %cst_168 : f32 to vector<256x32xf32>
    %211 = arith.maximumf %209, %210 : vector<256x32xf32>
    %c24_169 = arith.constant 24 : index
    %c0_170 = arith.constant 0 : index
    %212 = vector.load %arg21[%c24_169, %c0_170] : memref<304x32xf32, #tpu.memory_space<vmem>>, vector<256x32xf32>
    tpu.vector_store %arg21[%c24_169, %c0_170], %211 {strides = array<i32>} : memref<304x32xf32, #tpu.memory_space<vmem>>, vector<256x32xf32>,
    %cst_171 = arith.constant 0.000000e+00 : f32
    %213 = vector.broadcast %cst_171 : f32 to vector<256x8xf32>
    %cst_172 = arith.constant 0.000000e+00 : f32
    %214 = vector.broadcast %cst_172 : f32 to vector<256x8xf32>
    %c7_173 = arith.constant 7 : index
    %c0_174 = arith.constant 0 : index
    %215 = vector.load %arg21[%c7_173, %c0_174] : memref<304x32xf32, #tpu.memory_space<vmem>>, vector<256x32xf32>
    %c0_175 = arith.constant 0 : index
    %c0_176 = arith.constant 0 : index
    %c0_177 = arith.constant 0 : index
    %216 = vector.load %arg19[%c0_175, %c0_176, %c0_177] : memref<9x32x8xf32, #tpu.memory_space<vmem>>, vector<1x32x8xf32>
    %217 = vector.shape_cast %216 : vector<1x32x8xf32> to vector<32x8xf32>
    %cst_178 = arith.constant dense<0.000000e+00> : vector<256x8xf32>
    %218 = tpu.matmul %215, %217, %cst_178 {dimension_numbers = #tpu.dot_dimension_numbers<[1], [0], [0], [1], [0, 0, 1, 1], [], []>} : vector<256x32xf32>, vector<32x8xf32>, vector<256x8xf32> -> vector<256x8xf32>
    %219 = arith.addf %214, %218 : vector<256x8xf32>
    %c23_179 = arith.constant 23 : index
    %c0_180 = arith.constant 0 : index
    %220 = vector.load %arg21[%c23_179, %c0_180] : memref<304x32xf32, #tpu.memory_space<vmem>>, vector<256x32xf32>
    %c3_181 = arith.constant 3 : index
    %c0_182 = arith.constant 0 : index
    %c0_183 = arith.constant 0 : index
    %221 = vector.load %arg19[%c3_181, %c0_182, %c0_183] : memref<9x32x8xf32, #tpu.memory_space<vmem>>, vector<1x32x8xf32>
    %222 = vector.shape_cast %221 : vector<1x32x8xf32> to vector<32x8xf32>
    %cst_184 = arith.constant dense<0.000000e+00> : vector<256x8xf32>
    %223 = tpu.matmul %220, %222, %cst_184 {dimension_numbers = #tpu.dot_dimension_numbers<[1], [0], [0], [1], [0, 0, 1, 1], [], []>} : vector<256x32xf32>, vector<32x8xf32>, vector<256x8xf32> -> vector<256x8xf32>
    %224 = arith.addf %219, %223 : vector<256x8xf32>
    %c39_185 = arith.constant 39 : index
    %c0_186 = arith.constant 0 : index
    %225 = vector.load %arg21[%c39_185, %c0_186] : memref<304x32xf32, #tpu.memory_space<vmem>>, vector<256x32xf32>
    %c6_187 = arith.constant 6 : index
    %c0_188 = arith.constant 0 : index
    %c0_189 = arith.constant 0 : index
    %226 = vector.load %arg19[%c6_187, %c0_188, %c0_189] : memref<9x32x8xf32, #tpu.memory_space<vmem>>, vector<1x32x8xf32>
    %227 = vector.shape_cast %226 : vector<1x32x8xf32> to vector<32x8xf32>
    %cst_190 = arith.constant dense<0.000000e+00> : vector<256x8xf32>
    %228 = tpu.matmul %225, %227, %cst_190 {dimension_numbers = #tpu.dot_dimension_numbers<[1], [0], [0], [1], [0, 0, 1, 1], [], []>} : vector<256x32xf32>, vector<32x8xf32>, vector<256x8xf32> -> vector<256x8xf32>
    %229 = arith.addf %224, %228 : vector<256x8xf32>
    %230 = vector.broadcast %27 : vector<256x1xf32> to vector<256x8xf32>
    %231 = arith.mulf %229, %230 : vector<256x8xf32>
    %232 = arith.addf %213, %231 : vector<256x8xf32>
    %cst_191 = arith.constant 0.000000e+00 : f32
    %233 = vector.broadcast %cst_191 : f32 to vector<256x8xf32>
    %c8_192 = arith.constant 8 : index
    %c0_193 = arith.constant 0 : index
    %234 = vector.load %arg21[%c8_192, %c0_193] : memref<304x32xf32, #tpu.memory_space<vmem>>, vector<256x32xf32>
    %c1_194 = arith.constant 1 : index
    %c0_195 = arith.constant 0 : index
    %c0_196 = arith.constant 0 : index
    %235 = vector.load %arg19[%c1_194, %c0_195, %c0_196] : memref<9x32x8xf32, #tpu.memory_space<vmem>>, vector<1x32x8xf32>
    %236 = vector.shape_cast %235 : vector<1x32x8xf32> to vector<32x8xf32>
    %cst_197 = arith.constant dense<0.000000e+00> : vector<256x8xf32>
    %237 = tpu.matmul %234, %236, %cst_197 {dimension_numbers = #tpu.dot_dimension_numbers<[1], [0], [0], [1], [0, 0, 1, 1], [], []>} : vector<256x32xf32>, vector<32x8xf32>, vector<256x8xf32> -> vector<256x8xf32>
    %238 = arith.addf %233, %237 : vector<256x8xf32>
    %c24_198 = arith.constant 24 : index
    %c0_199 = arith.constant 0 : index
    %239 = vector.load %arg21[%c24_198, %c0_199] : memref<304x32xf32, #tpu.memory_space<vmem>>, vector<256x32xf32>
    %c4_200 = arith.constant 4 : index
    %c0_201 = arith.constant 0 : index
    %c0_202 = arith.constant 0 : index
    %240 = vector.load %arg19[%c4_200, %c0_201, %c0_202] : memref<9x32x8xf32, #tpu.memory_space<vmem>>, vector<1x32x8xf32>
    %241 = vector.shape_cast %240 : vector<1x32x8xf32> to vector<32x8xf32>
    %cst_203 = arith.constant dense<0.000000e+00> : vector<256x8xf32>
    %242 = tpu.matmul %239, %241, %cst_203 {dimension_numbers = #tpu.dot_dimension_numbers<[1], [0], [0], [1], [0, 0, 1, 1], [], []>} : vector<256x32xf32>, vector<32x8xf32>, vector<256x8xf32> -> vector<256x8xf32>
    %243 = arith.addf %238, %242 : vector<256x8xf32>
    %c40_204 = arith.constant 40 : index
    %c0_205 = arith.constant 0 : index
    %244 = vector.load %arg21[%c40_204, %c0_205] : memref<304x32xf32, #tpu.memory_space<vmem>>, vector<256x32xf32>
    %c7_206 = arith.constant 7 : index
    %c0_207 = arith.constant 0 : index
    %c0_208 = arith.constant 0 : index
    %245 = vector.load %arg19[%c7_206, %c0_207, %c0_208] : memref<9x32x8xf32, #tpu.memory_space<vmem>>, vector<1x32x8xf32>
    %246 = vector.shape_cast %245 : vector<1x32x8xf32> to vector<32x8xf32>
    %cst_209 = arith.constant dense<0.000000e+00> : vector<256x8xf32>
    %247 = tpu.matmul %244, %246, %cst_209 {dimension_numbers = #tpu.dot_dimension_numbers<[1], [0], [0], [1], [0, 0, 1, 1], [], []>} : vector<256x32xf32>, vector<32x8xf32>, vector<256x8xf32> -> vector<256x8xf32>
    %248 = arith.addf %243, %247 : vector<256x8xf32>
    %249 = arith.addf %232, %248 : vector<256x8xf32>
    %cst_210 = arith.constant 0.000000e+00 : f32
    %250 = vector.broadcast %cst_210 : f32 to vector<256x8xf32>
    %c9_211 = arith.constant 9 : index
    %c0_212 = arith.constant 0 : index
    %251 = vector.load %arg21[%c9_211, %c0_212] : memref<304x32xf32, #tpu.memory_space<vmem>>, vector<256x32xf32>
    %c2_213 = arith.constant 2 : index
    %c0_214 = arith.constant 0 : index
    %c0_215 = arith.constant 0 : index
    %252 = vector.load %arg19[%c2_213, %c0_214, %c0_215] : memref<9x32x8xf32, #tpu.memory_space<vmem>>, vector<1x32x8xf32>
    %253 = vector.shape_cast %252 : vector<1x32x8xf32> to vector<32x8xf32>
    %cst_216 = arith.constant dense<0.000000e+00> : vector<256x8xf32>
    %254 = tpu.matmul %251, %253, %cst_216 {dimension_numbers = #tpu.dot_dimension_numbers<[1], [0], [0], [1], [0, 0, 1, 1], [], []>} : vector<256x32xf32>, vector<32x8xf32>, vector<256x8xf32> -> vector<256x8xf32>
    %255 = arith.addf %250, %254 : vector<256x8xf32>
    %c25_217 = arith.constant 25 : index
    %c0_218 = arith.constant 0 : index
    %256 = vector.load %arg21[%c25_217, %c0_218] : memref<304x32xf32, #tpu.memory_space<vmem>>, vector<256x32xf32>
    %c5_219 = arith.constant 5 : index
    %c0_220 = arith.constant 0 : index
    %c0_221 = arith.constant 0 : index
    %257 = vector.load %arg19[%c5_219, %c0_220, %c0_221] : memref<9x32x8xf32, #tpu.memory_space<vmem>>, vector<1x32x8xf32>
    %258 = vector.shape_cast %257 : vector<1x32x8xf32> to vector<32x8xf32>
    %cst_222 = arith.constant dense<0.000000e+00> : vector<256x8xf32>
    %259 = tpu.matmul %256, %258, %cst_222 {dimension_numbers = #tpu.dot_dimension_numbers<[1], [0], [0], [1], [0, 0, 1, 1], [], []>} : vector<256x32xf32>, vector<32x8xf32>, vector<256x8xf32> -> vector<256x8xf32>
    %260 = arith.addf %255, %259 : vector<256x8xf32>
    %c41_223 = arith.constant 41 : index
    %c0_224 = arith.constant 0 : index
    %261 = vector.load %arg21[%c41_223, %c0_224] : memref<304x32xf32, #tpu.memory_space<vmem>>, vector<256x32xf32>
    %c8_225 = arith.constant 8 : index
    %c0_226 = arith.constant 0 : index
    %c0_227 = arith.constant 0 : index
    %262 = vector.load %arg19[%c8_225, %c0_226, %c0_227] : memref<9x32x8xf32, #tpu.memory_space<vmem>>, vector<1x32x8xf32>
    %263 = vector.shape_cast %262 : vector<1x32x8xf32> to vector<32x8xf32>
    %cst_228 = arith.constant dense<0.000000e+00> : vector<256x8xf32>
    %264 = tpu.matmul %261, %263, %cst_228 {dimension_numbers = #tpu.dot_dimension_numbers<[1], [0], [0], [1], [0, 0, 1, 1], [], []>} : vector<256x32xf32>, vector<32x8xf32>, vector<256x8xf32> -> vector<256x8xf32>
    %265 = arith.addf %260, %264 : vector<256x8xf32>
    %266 = vector.broadcast %31 : vector<256x1xf32> to vector<256x8xf32>
    %267 = arith.mulf %265, %266 : vector<256x8xf32>
    %268 = arith.addf %249, %267 : vector<256x8xf32>
    %c0_229 = arith.constant 0 : index
    %c0_230 = arith.constant 0 : index
    %c32 = arith.constant 32 : index
    %269 = vector.load %arg20[%c0_229, %c0_230, %c32] : memref<1x256x40xf32, #tpu.memory_space<vmem>>, vector<1x256x8xf32>
    %270 = vector.shape_cast %269 : vector<1x256x8xf32> to vector<256x8xf32>
    %271 = vector.shape_cast %268 : vector<256x8xf32> to vector<1x256x8xf32>
    tpu.vector_store %arg20[%c0_229, %c0_230, %c32], %271 {strides = array<i32>} : memref<1x256x40xf32, #tpu.memory_space<vmem>>, vector<1x256x8xf32>,
    return
  }
  func.func @transform_0(%arg0: i32) -> (i32, i32, i32) {
    %c0_i32 = arith.constant 0 : i32
    %c0_i32_0 = arith.constant 0 : i32
    %c0_i32_1 = arith.constant 0 : i32
    return %arg0, %c0_i32, %c0_i32_0 : i32, i32, i32
  }
  func.func @transform_1(%arg0: i32) -> (i32, i32) {
    %c0_i32 = arith.constant 0 : i32
    %c0_i32_0 = arith.constant 0 : i32
    %c0_i32_1 = arith.constant 0 : i32
    return %c0_i32, %c0_i32_0 : i32, i32
  }
  func.func @transform_2(%arg0: i32) -> (i32, i32) {
    %c0_i32 = arith.constant 0 : i32
    %c0_i32_0 = arith.constant 0 : i32
    %c0_i32_1 = arith.constant 0 : i32
    return %c0_i32, %c0_i32_0 : i32, i32
  }
  func.func @transform_3(%arg0: i32) -> (i32, i32) {
    %c0_i32 = arith.constant 0 : i32
    %c0_i32_0 = arith.constant 0 : i32
    %c0_i32_1 = arith.constant 0 : i32
    return %c0_i32, %c0_i32_0 : i32, i32
  }
  func.func @transform_4(%arg0: i32) -> (i32, i32) {
    %c0_i32 = arith.constant 0 : i32
    %c0_i32_0 = arith.constant 0 : i32
    %c0_i32_1 = arith.constant 0 : i32
    return %c0_i32, %c0_i32_0 : i32, i32
  }
  func.func @transform_5(%arg0: i32) -> (i32, i32) {
    %c0_i32 = arith.constant 0 : i32
    %c0_i32_0 = arith.constant 0 : i32
    %c0_i32_1 = arith.constant 0 : i32
    return %c0_i32, %c0_i32_0 : i32, i32
  }
  func.func @transform_6(%arg0: i32) -> (i32, i32, i32) {
    %c0_i32 = arith.constant 0 : i32
    %c0_i32_0 = arith.constant 0 : i32
    %c0_i32_1 = arith.constant 0 : i32
    %c0_i32_2 = arith.constant 0 : i32
    return %c0_i32, %c0_i32_0, %c0_i32_1 : i32, i32, i32
  }
  func.func @transform_7(%arg0: i32) -> (i32, i32) {
    %c0_i32 = arith.constant 0 : i32
    %c0_i32_0 = arith.constant 0 : i32
    %c0_i32_1 = arith.constant 0 : i32
    return %c0_i32, %c0_i32_0 : i32, i32
  }
  func.func @transform_8(%arg0: i32) -> (i32, i32) {
    %c0_i32 = arith.constant 0 : i32
    %c0_i32_0 = arith.constant 0 : i32
    %c0_i32_1 = arith.constant 0 : i32
    return %c0_i32, %c0_i32_0 : i32, i32
  }
  func.func @transform_9(%arg0: i32) -> (i32, i32) {
    %c0_i32 = arith.constant 0 : i32
    %c0_i32_0 = arith.constant 0 : i32
    %c0_i32_1 = arith.constant 0 : i32
    return %c0_i32, %c0_i32_0 : i32, i32
  }
  func.func @transform_10(%arg0: i32) -> (i32, i32) {
    %c0_i32 = arith.constant 0 : i32
    %c0_i32_0 = arith.constant 0 : i32
    %c0_i32_1 = arith.constant 0 : i32
    return %c0_i32, %c0_i32_0 : i32, i32
  }
  func.func @transform_11(%arg0: i32) -> (i32, i32) {
    %c0_i32 = arith.constant 0 : i32
    %c0_i32_0 = arith.constant 0 : i32
    %c0_i32_1 = arith.constant 0 : i32
    return %c0_i32, %c0_i32_0 : i32, i32
  }
  func.func @transform_12(%arg0: i32) -> (i32, i32, i32) {
    %c0_i32 = arith.constant 0 : i32
    %c0_i32_0 = arith.constant 0 : i32
    %c0_i32_1 = arith.constant 0 : i32
    %c0_i32_2 = arith.constant 0 : i32
    return %c0_i32, %c0_i32_0, %c0_i32_1 : i32, i32, i32
  }
  func.func @transform_13(%arg0: i32) -> (i32, i32) {
    %c0_i32 = arith.constant 0 : i32
    %c0_i32_0 = arith.constant 0 : i32
    %c0_i32_1 = arith.constant 0 : i32
    return %c0_i32, %c0_i32_0 : i32, i32
  }
  func.func @transform_14(%arg0: i32) -> (i32, i32) {
    %c0_i32 = arith.constant 0 : i32
    %c0_i32_0 = arith.constant 0 : i32
    %c0_i32_1 = arith.constant 0 : i32
    return %c0_i32, %c0_i32_0 : i32, i32
  }
  func.func @transform_15(%arg0: i32) -> (i32, i32) {
    %c0_i32 = arith.constant 0 : i32
    %c0_i32_0 = arith.constant 0 : i32
    %c0_i32_1 = arith.constant 0 : i32
    return %c0_i32, %c0_i32_0 : i32, i32
  }
  func.func @transform_16(%arg0: i32) -> (i32, i32) {
    %c0_i32 = arith.constant 0 : i32
    %c0_i32_0 = arith.constant 0 : i32
    %c0_i32_1 = arith.constant 0 : i32
    return %c0_i32, %c0_i32_0 : i32, i32
  }
  func.func @transform_17(%arg0: i32) -> (i32, i32) {
    %c0_i32 = arith.constant 0 : i32
    %c0_i32_0 = arith.constant 0 : i32
    %c0_i32_1 = arith.constant 0 : i32
    return %c0_i32, %c0_i32_0 : i32, i32
  }
  func.func @transform_18(%arg0: i32) -> (i32, i32, i32) {
    %c0_i32 = arith.constant 0 : i32
    %c0_i32_0 = arith.constant 0 : i32
    %c0_i32_1 = arith.constant 0 : i32
    %c0_i32_2 = arith.constant 0 : i32
    return %c0_i32, %c0_i32_0, %c0_i32_1 : i32, i32, i32
  }
  func.func @transform_19(%arg0: i32) -> (i32, i32, i32) {
    %c0_i32 = arith.constant 0 : i32
    %c0_i32_0 = arith.constant 0 : i32
    %c0_i32_1 = arith.constant 0 : i32
    return %arg0, %c0_i32, %c0_i32_0 : i32, i32, i32
  }
}

</mosaic_0001>

<bundles_post_ra>
// kernel: tpu_custom_call.1
= control target key start
LH: loop header
LB: loop body
LE: loop exit
PB: predicated region body
PF: predicated region fallthrough
CT: control target
= control target key end

     0   :  { %s23029_s0 = inlined_call_operand.vmem [shape: f32[2,256,16], index: 0, kind: input, shape index: {}]   ;;  %s23030_s1 = inlined_call_operand.vmem [shape: f32[1,16], index: 1, kind: input, shape index: {}]   ;;  %s23031_s2 = inlined_call_operand.vmem [shape: f32[1,16], index: 2, kind: input, shape index: {}]   ;;  %s23032_s3 = inlined_call_operand.vmem [shape: f32[16,32], index: 3, kind: input, shape index: {}]   ;;  %s23033_s4 = inlined_call_operand.vmem [shape: f32[1,32], index: 4, kind: input, shape index: {}]   ;;  %s23034_s5 = inlined_call_operand.vmem [shape: f32[1,32], index: 5, kind: input, shape index: {}]   ;;  %s23035_s6 = inlined_call_operand.vmem [shape: f32[9,32,8], index: 6, kind: input, shape index: {}]   ;;  %s23036_s7 = inlined_call_operand.vmem [shape: f32[1,24], index: 7, kind: input, shape index: {}]   ;;  %s23037_s8 = inlined_call_operand.vmem [shape: f32[1,24], index: 8, kind: input, shape index: {}]   ;;  %s23038_s9 = inlined_call_operand.vmem [shape: f32[24,32], index: 9, kind: input, shape index: {}]   ;;  %s23039_s10 = inlined_call_operand.vmem [shape: f32[1,32], index: 10, kind: input, shape index: {}]   ;;  %s23040_s11 = inlined_call_operand.vmem [shape: f32[1,32], index: 11, kind: input, shape index: {}]   ;;  %s23041_s12 = inlined_call_operand.vmem [shape: f32[9,32,8], index: 12, kind: input, shape index: {}]   ;;  %s23042_s13 = inlined_call_operand.vmem [shape: f32[1,32], index: 13, kind: input, shape index: {}]   ;;  %s23043_s14 = inlined_call_operand.vmem [shape: f32[1,32], index: 14, kind: input, shape index: {}]   ;;  %s23044_s15 = inlined_call_operand.vmem [shape: f32[32,32], index: 15, kind: input, shape index: {}]   ;;  %s23045_s16 = inlined_call_operand.vmem [shape: f32[1,32], index: 16, kind: input, shape index: {}]   ;;  %s23046_s17 = inlined_call_operand.vmem [shape: f32[1,32], index: 17, kind: input, shape index: {}]   ;;  %s23047_s18 = inlined_call_operand.vmem [shape: f32[9,32,8], index: 18, kind: input, shape index: {}]   ;;  %s23048_s19 = inlined_call_operand.vmem [shape: f32[2,256,40], index: 19, kind: output, shape index: {}]  }
   0x1   :  { %23115 = sst [smem:[#allocation128_spill]] %s23029_s0  ;;  %s17018_s0 = smov 0  }
   0x2   :  { %23116 = sst [smem:[#allocation129_spill]] %s23030_s1 }
   0x3   :  { %23117 = sst [smem:[#allocation130_spill]] %s23031_s2 }
   0x4   :  { %23118 = sst [smem:[#allocation131_spill]] %s23032_s3 }
   0x5 LB: > { %s13030_s30 = sadd.s32 4294967295, %s16912_s0   ;;  %p13034_p0 = scmp.ge.s32.totalorder %s16912_s0, 1  ;;  %s16912_s0 = sphi %s17018_s0, %s29_s0  }
   0x6   : > { %p537_p1 = scmp.lt.s32.totalorder %s16912_s0, 3 }
   0x8   : > { %p538_p2 = pnand %p13034_p0, %p537_p1 }
   0xa   : > { %541 = sbr.rel (%p538_p2) target bundleno = 2484 (0x9b4), region = 96 }
   0xf   : > { %s23119_s1 = sld [smem:[#allocation131_spill]]  ;;  %p593_p3 = scmp.lt.s32.totalorder %s13030_s30, 1  ;;  %vm668_vm0 = vcmask 261120   ;;  %v23050_v2 = vmov 0.0   ;;  %vm635_vm1 = vcmask 130048  }
  0x10   : > { %673 = vst.msk [vmem:[#allocation2 + $0x20] sm:$0xff] %vm668_vm0, %v23050_v2  ;;  %669 = vst.msk [vmem:[#allocation2] sm:$0xff] %vm668_vm0, %v23050_v2  ;;  %s23120_s3 = sld [smem:[#allocation128_spill]]  ;;  %s16915_s2 = smov 16  }
  0x11   : > { %s23796_s30 = smov (!%p593_p3, %s13030_s30), 1  ;;  %670 = vst.msk [vmem:[#allocation2 + $0x8] sm:$0xff] %vm668_vm0, %v23050_v2  ;;  %671 = vst.msk [vmem:[#allocation2 + $0x10] sm:$0xff] %vm668_vm0, %v23050_v2  ;;  %s23121_s21 = sld [smem:[#allocation129_spill]] }
  0x12   : > { %672 = vst.msk [vmem:[#allocation2 + $0x18] sm:$0xff] %vm668_vm0, %v23050_v2  ;;  %674 = vst.msk [vmem:[#allocation2 + $0x28] sm:$0xff] %vm668_vm0, %v23050_v2  ;;  %s14141_s23 = sshll.u32 %s23796_s30, 8  ;;  %s16917_s24 = smov 32  }
  0x13   : > { %675 = vst.msk [vmem:[#allocation2 + $0x30] sm:$0xff] %vm668_vm0, %v23050_v2  ;;  %676 = vst.msk [vmem:[#allocation2 + $0x38] sm:$0xff] %vm668_vm0, %v23050_v2  ;;  %s17119_s29 = scalar_lea.vmem %s23048_s19, %s14141_s23 }
  0x14   : > { %677 = vst.msk [vmem:[#allocation2 + $0x40] sm:$0xff] %vm668_vm0, %v23050_v2  ;;  %678 = vst.msk [vmem:[#allocation2 + $0x48] sm:$0xff] %vm668_vm0, %v23050_v2 }
  0x15   : > { %v1459_v0 = vld [vmem:[%s23119_s1 + $0x8] sm:$0xff]  ;;  %v1458_v1 = vld [vmem:[%s23119_s1] sm:$0xff]  ;;  %679 = vst.msk [vmem:[#allocation2 + $0x50] sm:$0xff] %vm668_vm0, %v23050_v2  ;;  %680 = vst.msk [vmem:[#allocation2 + $0x58] sm:$0xff] %vm668_vm0, %v23050_v2 }
  0x16   : > { %15220 = vmatprep.subr.mxu0 %v1459_v0  ;;  %681 = vst.msk [vmem:[#allocation2 + $0x60] sm:$0xff] %vm668_vm0, %v23050_v2  ;;  %682 = vst.msk [vmem:[#allocation2 + $0x68] sm:$0xff] %vm668_vm0, %v23050_v2  ;;  %s17114_s26 = scalar_lea.vmem %s23120_s3, %s14141_s23  ;;  %s23122_s23 = sld [smem:[#allocation130_spill]] }
  0x17   : > { %15221 = vmatpush3.msra.mxu0 %v1459_v0  ;;  %683 = vst.msk [vmem:[#allocation2 + $0x70] sm:$0xff] %vm668_vm0, %v23050_v2  ;;  %684 = vst.msk [vmem:[#allocation2 + $0x78] sm:$0xff] %vm668_vm0, %v23050_v2  ;;  %v603_v3 = vld [vmem:[%s17114_s26] sm:$0xff]  ;;  %v604_v4 = vld [vmem:[%s17114_s26 + $0x8] sm:$0xff] }
  0x18   : > { %685 = vst.msk [vmem:[#allocation2 + $0x80] sm:$0xff] %vm668_vm0, %v23050_v2  ;;  %686 = vst.msk [vmem:[#allocation2 + $0x88] sm:$0xff] %vm668_vm0, %v23050_v2  ;;  %15222 = vmatprep.subr.mxu0 %v1458_v1  ;;  %v605_v5 = vld [vmem:[%s17114_s26 + $0x10] sm:$0xff]  ;;  %v606_v6 = vld [vmem:[%s17114_s26 + $0x18] sm:$0xff] }
  0x19   : > { %687 = vst.msk [vmem:[#allocation2 + $0x90] sm:$0xff] %vm668_vm0, %v23050_v2  ;;  %688 = vst.msk [vmem:[#allocation2 + $0x98] sm:$0xff] %vm668_vm0, %v23050_v2  ;;  %15223 = vmatpush3.msra.mxu0 %v1458_v1  ;;  %v607_v7 = vld [vmem:[%s17114_s26 + $0x20] sm:$0xff]  ;;  %v608_v8 = vld [vmem:[%s17114_s26 + $0x28] sm:$0xff] }
  0x1a   : > { %689 = vst.msk [vmem:[#allocation2 + $0xa0] sm:$0xff] %vm668_vm0, %v23050_v2  ;;  %690 = vst.msk [vmem:[#allocation2 + $0xa8] sm:$0xff] %vm668_vm0, %v23050_v2  ;;  %v609_v9 = vld [vmem:[%s17114_s26 + $0x30] sm:$0xff]  ;;  %v610_v10 = vld [vmem:[%s17114_s26 + $0x38] sm:$0xff] }
  0x1b   : > { %691 = vst.msk [vmem:[#allocation2 + $0xb0] sm:$0xff] %vm668_vm0, %v23050_v2  ;;  %692 = vst.msk [vmem:[#allocation2 + $0xb8] sm:$0xff] %vm668_vm0, %v23050_v2  ;;  %v611_v11 = vld [vmem:[%s17114_s26 + $0x40] sm:$0xff]  ;;  %v612_v12 = vld [vmem:[%s17114_s26 + $0x48] sm:$0xff] }
  0x1c   : > { %693 = vst.msk [vmem:[#allocation2 + $0xc0] sm:$0xff] %vm668_vm0, %v23050_v2  ;;  %694 = vst.msk [vmem:[#allocation2 + $0xc8] sm:$0xff] %vm668_vm0, %v23050_v2  ;;  %v613_v13 = vld [vmem:[%s17114_s26 + $0x50] sm:$0xff]  ;;  %v614_v14 = vld [vmem:[%s17114_s26 + $0x58] sm:$0xff] }
  0x1d   : > { %695 = vst.msk [vmem:[#allocation2 + $0xd0] sm:$0xff] %vm668_vm0, %v23050_v2  ;;  %696 = vst.msk [vmem:[#allocation2 + $0xd8] sm:$0xff] %vm668_vm0, %v23050_v2  ;;  %v17154_v15 = vld [vmem:[%s23121_s21] ss:$0 sm:$0xff]  ;;  %v616_v17 = vld [vmem:[%s17114_s26 + $0x68] sm:$0xff] }
  0x1e   : > { %697 = vst.msk [vmem:[#allocation2 + $0xe0] sm:$0xff] %vm668_vm0, %v23050_v2  ;;  %698 = vst.msk [vmem:[#allocation2 + $0xe8] sm:$0xff] %vm668_vm0, %v23050_v2  ;;  %v615_v16 = vld [vmem:[%s17114_s26 + $0x60] sm:$0xff]  ;;  %v617_v18 = vld [vmem:[%s17114_s26 + $0x70] sm:$0xff] }
  0x1f   : > { %699 = vst.msk [vmem:[#allocation2 + $0xf0] sm:$0xff] %vm668_vm0, %v23050_v2  ;;  %700 = vst.msk [vmem:[#allocation2 + $0xf8] sm:$0xff] %vm668_vm0, %v23050_v2  ;;  %v618_v19 = vld [vmem:[%s17114_s26 + $0x78] sm:$0xff]  ;;  %v619_v20 = vld [vmem:[%s17114_s26 + $0x80] sm:$0xff] }
  0x20   : > { %701 = vst.msk [vmem:[#allocation2 + $0x100] sm:$0xff] %vm668_vm0, %v23050_v2  ;;  %702 = vst.msk [vmem:[#allocation2 + $0x108] sm:$0xff] %vm668_vm0, %v23050_v2  ;;  %v620_v21 = vld [vmem:[%s17114_s26 + $0x88] sm:$0xff]  ;;  %v17177_v22 = vld [vmem:[%s23122_s23] ss:$0 sm:$0xff] }
  0x21   : > { %703 = vst.msk [vmem:[#allocation2 + $0x110] sm:$0xff] %vm668_vm0, %v23050_v2  ;;  %704 = vst.msk [vmem:[#allocation2 + $0x118] sm:$0xff] %vm668_vm0, %v23050_v2  ;;  %v621_v23 = vld [vmem:[%s17114_s26 + $0x90] sm:$0xff]  ;;  %v622_v24 = vld [vmem:[%s17114_s26 + $0x98] sm:$0xff] }
  0x22   : > { %705 = vst.msk [vmem:[#allocation2 + $0x120] sm:$0xff] %vm668_vm0, %v23050_v2  ;;  %706 = vst.msk [vmem:[#allocation2 + $0x128] sm:$0xff] %vm668_vm0, %v23050_v2  ;;  %v623_v25 = vld [vmem:[%s17114_s26 + $0xa0] sm:$0xff]  ;;  %v624_v26 = vld [vmem:[%s17114_s26 + $0xa8] sm:$0xff] }
  0x23   : > { %636 = vst.msk [vmem:[%s17119_s29] sm:$0xff] %vm635_vm1, %v603_v3  ;;  %637 = vst.msk [vmem:[%s17119_s29 + $0x8] sm:$0xff] %vm635_vm1, %v604_v4  ;;  %v625_v27 = vld [vmem:[%s17114_s26 + $0xb0] sm:$0xff]  ;;  %v626_v28 = vld [vmem:[%s17114_s26 + $0xb8] sm:$0xff] }
  0x24   : > { %638 = vst.msk [vmem:[%s17119_s29 + $0x10] sm:$0xff] %vm635_vm1, %v605_v5  ;;  %639 = vst.msk [vmem:[%s17119_s29 + $0x18] sm:$0xff] %vm635_vm1, %v606_v6  ;;  %v627_v57 = vld [vmem:[%s17114_s26 + $0xc0] sm:$0xff]  ;;  %v628_v58 = vld [vmem:[%s17114_s26 + $0xc8] sm:$0xff] }
  0x25   : > { %640 = vst.msk [vmem:[%s17119_s29 + $0x20] sm:$0xff] %vm635_vm1, %v607_v7  ;;  %641 = vst.msk [vmem:[%s17119_s29 + $0x28] sm:$0xff] %vm635_vm1, %v608_v8  ;;  %v629_v59 = vld [vmem:[%s17114_s26 + $0xd0] sm:$0xff]  ;;  %v630_v63 = vld [vmem:[%s17114_s26 + $0xd8] sm:$0xff] }
  0x26   : > { %642 = vst.msk [vmem:[%s17119_s29 + $0x30] sm:$0xff] %vm635_vm1, %v609_v9  ;;  %643 = vst.msk [vmem:[%s17119_s29 + $0x38] sm:$0xff] %vm635_vm1, %v610_v10  ;;  %v631_v0 = vld [vmem:[%s17114_s26 + $0xe0] sm:$0xff]  ;;  %v632_v1 = vld [vmem:[%s17114_s26 + $0xe8] sm:$0xff] }
  0x27   : > { %644 = vst.msk [vmem:[%s17119_s29 + $0x40] sm:$0xff] %vm635_vm1, %v611_v11  ;;  %645 = vst.msk [vmem:[%s17119_s29 + $0x48] sm:$0xff] %vm635_vm1, %v612_v12  ;;  %v633_v4 = vld [vmem:[%s17114_s26 + $0xf0] sm:$0xff]  ;;  %v634_v5 = vld [vmem:[%s17114_s26 + $0xf8] sm:$0xff]  ;;  %s16916_s26 = smov 24  }
  0x28   : > { %646 = vst.msk [vmem:[%s17119_s29 + $0x50] sm:$0xff] %vm635_vm1, %v613_v13  ;;  %647 = vst.msk [vmem:[%s17119_s29 + $0x58] sm:$0xff] %vm635_vm1, %v614_v14 }
  0x29   : > { %648 = vst.msk [vmem:[%s17119_s29 + $0x60] sm:$0xff] %vm635_vm1, %v615_v16  ;;  %649 = vst.msk [vmem:[%s17119_s29 + $0x68] sm:$0xff] %vm635_vm1, %v616_v17 }
  0x2a   : > { %650 = vst.msk [vmem:[%s17119_s29 + $0x70] sm:$0xff] %vm635_vm1, %v617_v18  ;;  %651 = vst.msk [vmem:[%s17119_s29 + $0x78] sm:$0xff] %vm635_vm1, %v618_v19  ;;  %v1316_v29 = vld [vmem:[%s17119_s29] sm:$0xff]  ;;  %v1317_v30 = vld [vmem:[%s17119_s29 + $0x8] sm:$0xff] }
  0x2b   : > { %652 = vst.msk [vmem:[%s17119_s29 + $0x80] sm:$0xff] %vm635_vm1, %v619_v20  ;;  %653 = vst.msk [vmem:[%s17119_s29 + $0x88] sm:$0xff] %vm635_vm1, %v620_v21  ;;  %v1318_v31 = vld [vmem:[%s17119_s29 + $0x10] sm:$0xff]  ;;  %v1355_v32 = vmul.f32 %v17154_v15, %v1316_v29  ;;  %v1356_v33 = vmul.f32 %v17154_v15, %v1317_v30  ;;  %v1319_v35 = vld [vmem:[%s17119_s29 + $0x18] sm:$0xff] }
  0x2c   : > { %654 = vst.msk [vmem:[%s17119_s29 + $0x90] sm:$0xff] %vm635_vm1, %v621_v23  ;;  %655 = vst.msk [vmem:[%s17119_s29 + $0x98] sm:$0xff] %vm635_vm1, %v622_v24  ;;  %v1357_v34 = vmul.f32 %v17154_v15, %v1318_v31  ;;  %v1320_v36 = vld [vmem:[%s17119_s29 + $0x20] sm:$0xff]  ;;  %v1321_v37 = vld [vmem:[%s17119_s29 + $0x28] sm:$0xff]  ;;  %v1358_v38 = vmul.f32 %v17154_v15, %v1319_v35 }
  0x2d   : > { %656 = vst.msk [vmem:[%s17119_s29 + $0xa0] sm:$0xff] %vm635_vm1, %v623_v25  ;;  %657 = vst.msk [vmem:[%s17119_s29 + $0xa8] sm:$0xff] %vm635_vm1, %v624_v26  ;;  %v1359_v39 = vmul.f32 %v17154_v15, %v1320_v36  ;;  %v1322_v40 = vld [vmem:[%s17119_s29 + $0x30] sm:$0xff]  ;;  %v1394_v41 = vadd.f32 %v17177_v22, %v1355_v32  ;;  %v1395_v42 = vadd.f32 %v17177_v22, %v1356_v33  ;;  %v1323_v51 = vld [vmem:[%s17119_s29 + $0x38] sm:$0xff] }
  0x2e   : > { %658 = vst.msk [vmem:[%s17119_s29 + $0xb0] sm:$0xff] %vm635_vm1, %v625_v27  ;;  %659 = vst.msk [vmem:[%s17119_s29 + $0xb8] sm:$0xff] %vm635_vm1, %v626_v28  ;;  %v1396_v43 = vadd.f32 %v17177_v22, %v1357_v34  ;;  %v1397_v44 = vadd.f32 %v17177_v22, %v1358_v38  ;;  %v1360_v45 = vmul.f32 %v17154_v15, %v1321_v37  ;;  %v1324_v52 = vld [vmem:[%s17119_s29 + $0x40] sm:$0xff]  ;;  %v1325_v53 = vld [vmem:[%s17119_s29 + $0x48] sm:$0xff] }
  0x2f   : > { %v1361_v46 = vmul.f32 %v17154_v15, %v1322_v40  ;;  %v1426_v47 = vmax.f32 %v1394_v41, 0.0  ;;  %v1427_v48 = vmax.f32 %v1395_v42, 0.0  ;;  %v1398_v50 = vadd.f32 %v17177_v22, %v1359_v39  ;;  %660 = vst.msk [vmem:[%s17119_s29 + $0xc0] sm:$0xff] %vm635_vm1, %v627_v57  ;;  %661 = vst.msk [vmem:[%s17119_s29 + $0xc8] sm:$0xff] %vm635_vm1, %v628_v58  ;;  %v1326_v3 = vld [vmem:[%s17119_s29 + $0x50] sm:$0xff]  ;;  %v1327_v12 = vld [vmem:[%s17119_s29 + $0x58] sm:$0xff] }
  0x30   : > { %v1428_v49 = vmax.f32 %v1396_v43, 0.0  ;;  %v1429_v54 = vmax.f32 %v1397_v44, 0.0  ;;  %v1399_v55 = vadd.f32 %v17177_v22, %v1360_v45  ;;  %v1362_v56 = vmul.f32 %v17154_v15, %v1323_v51  ;;  %662 = vst.msk [vmem:[%s17119_s29 + $0xd0] sm:$0xff] %vm635_vm1, %v629_v59  ;;  %663 = vst.msk [vmem:[%s17119_s29 + $0xd8] sm:$0xff] %vm635_vm1, %v630_v63  ;;  %v1328_v13 = vld [vmem:[%s17119_s29 + $0x60] sm:$0xff]  ;;  %v1329_v21 = vld [vmem:[%s17119_s29 + $0x68] sm:$0xff] }
  0x31   : > { %15224 = vmatprep.mubr.msk.f32.mxu0 %vm635_vm1, %v1426_v47  ;;  %v1430_v60 = vmax.f32 %v1398_v50, 0.0  ;;  %v1400_v61 = vadd.f32 %v17177_v22, %v1361_v46  ;;  %v1363_v62 = vmul.f32 %v17154_v15, %v1324_v52  ;;  %664 = vst.msk [vmem:[%s17119_s29 + $0xe0] sm:$0xff] %vm635_vm1, %v631_v0  ;;  %665 = vst.msk [vmem:[%s17119_s29 + $0xe8] sm:$0xff] %vm635_vm1, %v632_v1  ;;  %v1330_v23 = vld [vmem:[%s17119_s29 + $0x70] sm:$0xff]  ;;  %v1331_v30 = vld [vmem:[%s17119_s29 + $0x78] sm:$0xff] }
  0x32   : > { %15225 = vmatmul.mubr.msk.f32.vlgmr.msra.gmra.mxu0 %vm635_vm1, %v1427_v48  ;;  %666 = vst.msk [vmem:[%s17119_s29 + $0xf0] sm:$0xff] %vm635_vm1, %v633_v4  ;;  %667 = vst.msk [vmem:[%s17119_s29 + $0xf8] sm:$0xff] %vm635_vm1, %v634_v5  ;;  %v1431_v6 = vmax.f32 %v1399_v55, 0.0  ;;  %v1401_v7 = vadd.f32 %v17177_v22, %v1362_v56  ;;  %v1364_v8 = vmul.f32 %v17154_v15, %v1325_v53  ;;  %v1332_v31 = vld [vmem:[%s17119_s29 + $0x80] sm:$0xff]  ;;  %v1333_v38 = vld [vmem:[%s17119_s29 + $0x88] sm:$0xff] }
  0x33   : > { %15227 = vmatprep.mubr.msk.f32.mxu0 %vm635_vm1, %v1428_v49  ;;  %v1432_v9 = vmax.f32 %v1400_v61, 0.0  ;;  %v1402_v10 = vadd.f32 %v17177_v22, %v1363_v62  ;;  %v1365_v11 = vmul.f32 %v17154_v15, %v1326_v3  ;;  %v1366_v17 = vmul.f32 %v17154_v15, %v1327_v12  ;;  %v1334_v39 = vld [vmem:[%s17119_s29 + $0x90] sm:$0xff]  ;;  %v1335_v46 = vld [vmem:[%s17119_s29 + $0x98] sm:$0xff] }
  0x34   : > { %v1433_v14 = vmax.f32 %v1401_v7, 0.0  ;;  %v1403_v16 = vadd.f32 %v17177_v22, %v1364_v8  ;;  %v1367_v20 = vmul.f32 %v17154_v15, %v1328_v13  ;;  %v1368_v26 = vmul.f32 %v17154_v15, %v1329_v21  ;;  %v1336_v47 = vld [vmem:[%s17119_s29 + $0xa0] sm:$0xff] }
  0x35   : > { %v1434_v18 = vmax.f32 %v1402_v10, 0.0  ;;  %v1404_v19 = vadd.f32 %v17177_v22, %v1365_v11  ;;  %v1405_v25 = vadd.f32 %v17177_v22, %v1366_v17  ;;  %v1369_v29 = vmul.f32 %v17154_v15, %v1330_v23  ;;  %v1338_v55 = vld [vmem:[%s17119_s29 + $0xb0] sm:$0xff]  ;;  %v1339_v62 = vld [vmem:[%s17119_s29 + $0xb8] sm:$0xff] }
  0x36   : > { %15228 = vmatmul.mubr.msk.f32.gmra.mxu0 %vm635_vm1, %v1429_v54  ;;  %v1435_v24 = vmax.f32 %v1403_v16, 0.0  ;;  %v1406_v28 = vadd.f32 %v17177_v22, %v1367_v20  ;;  %v1407_v33 = vadd.f32 %v17177_v22, %v1368_v26  ;;  %v1370_v34 = vmul.f32 %v17154_v15, %v1331_v30  ;;  %v1337_v54 = vld [vmem:[%s17119_s29 + $0xa8] sm:$0xff]  ;;  %v1340_v63 = vld [vmem:[%s17119_s29 + $0xc0] sm:$0xff] }
  0x37   : > { %15230 = vmatprep.mubr.msk.f32.mxu0 %vm635_vm1, %v1430_v60  ;;  %v1436_v27 = vmax.f32 %v1404_v19, 0.0  ;;  %v1437_v32 = vmax.f32 %v1405_v25, 0.0  ;;  %v1408_v36 = vadd.f32 %v17177_v22, %v1369_v29  ;;  %v1371_v37 = vmul.f32 %v17154_v15, %v1332_v31  ;;  %v1341_v7 = vld [vmem:[%s17119_s29 + $0xc8] sm:$0xff]  ;;  %v1342_v8 = vld [vmem:[%s17119_s29 + $0xd0] sm:$0xff]  ;;  %v1343_v16 = vld [vmem:[%s17119_s29 + $0xd8] sm:$0xff] }
  0x38   : > { %v1438_v35 = vmax.f32 %v1406_v28, 0.0  ;;  %v1439_v40 = vmax.f32 %v1407_v33, 0.0  ;;  %v1409_v41 = vadd.f32 %v17177_v22, %v1370_v34  ;;  %v1372_v42 = vmul.f32 %v17154_v15, %v1333_v38  ;;  %v1344_v17 = vld [vmem:[%s17119_s29 + $0xe0] sm:$0xff]  ;;  %v1345_v25 = vld [vmem:[%s17119_s29 + $0xe8] sm:$0xff] }
  0x39   : > { %v1440_v43 = vmax.f32 %v1408_v36, 0.0  ;;  %v1410_v44 = vadd.f32 %v17177_v22, %v1371_v37  ;;  %v1373_v45 = vmul.f32 %v17154_v15, %v1334_v39  ;;  %v1374_v50 = vmul.f32 %v17154_v15, %v1335_v46  ;;  %v1346_v26 = vld [vmem:[%s17119_s29 + $0xf0] sm:$0xff]  ;;  %v1347_v33 = vld [vmem:[%s17119_s29 + $0xf8] sm:$0xff]  ;;  %v1955_v46 = vld [vmem:[%s23035_s6] sm:$0xff] }
  0x3a   : > { %15231 = vmatmul.mubr.msk.f32.gmra.mxu0 %vm635_vm1, %v1431_v6  ;;  %v1441_v48 = vmax.f32 %v1409_v41, 0.0  ;;  %v1411_v49 = vadd.f32 %v17177_v22, %v1372_v42  ;;  %v1375_v53 = vmul.f32 %v17154_v15, %v1336_v47  ;;  %v1376_v58 = vmul.f32 %v17154_v15, %v1337_v54  ;;  %v1923_v47 = vld [vmem:[#allocation2 + $0x7] sm:$0xff] }
  0x3b   : > { %15233 = vmatprep.mubr.msk.f32.mxu0 %vm635_vm1, %v1432_v9  ;;  %v1442_v51 = vmax.f32 %v1410_v44, 0.0  ;;  %v1412_v52 = vadd.f32 %v17177_v22, %v1373_v45  ;;  %v1413_v57 = vadd.f32 %v17177_v22, %v1374_v50  ;;  %v1377_v61 = vmul.f32 %v17154_v15, %v1338_v55  ;;  %v1956_v44 = vld [vmem:[%s23035_s6 + $0x8] sm:$0xff]  ;;  %v13109_v45 = vld [vmem:[%s23035_s6 + $0x70] sm:$0xff]  ;;  %v13107_v50 = vld [vmem:[%s23035_s6 + $0x60] sm:$0xff] }
  0x3c   : > { %v1443_v56 = vmax.f32 %v1411_v49, 0.0  ;;  %v1414_v60 = vadd.f32 %v17177_v22, %v1375_v53  ;;  %v1415_v1 = vadd.f32 %v17177_v22, %v1376_v58  ;;  %v1378_v3 = vmul.f32 %v17154_v15, %v1339_v62  ;;  %v1924_v49 = vld [vmem:[#allocation2 + $0xf] sm:$0xff]  ;;  %v13215_v55 = vld [vmem:[%s23035_s6 + $0x80] sm:$0xff] }
  0x3d   : > { %v1444_v59 = vmax.f32 %v1412_v52, 0.0  ;;  %v1445_v0 = vmax.f32 %v1413_v57, 0.0  ;;  %v1416_v5 = vadd.f32 %v17177_v22, %v1377_v61  ;;  %v1379_v6 = vmul.f32 %v17154_v15, %v1340_v63  ;;  %v13218_v52 = vld [vmem:[%s23035_s6 + $0x98] sm:$0xff]  ;;  %v13217_v53 = vld [vmem:[%s23035_s6 + $0x90] sm:$0xff]  ;;  %v13216_v54 = vld [vmem:[%s23035_s6 + $0x88] sm:$0xff] }
  0x3e   : > { %15234 = vmatmul.mubr.msk.f32.gmra.mxu0 %vm635_vm1, %v1433_v14  ;;  %v1446_v4 = vmax.f32 %v1414_v60, 0.0  ;;  %v1447_v9 = vmax.f32 %v1415_v1, 0.0  ;;  %v1417_v10 = vadd.f32 %v17177_v22, %v1378_v3  ;;  %v1380_v11 = vmul.f32 %v17154_v15, %v1341_v7  ;;  %v17407_v58 = vld [vmem:[%s23034_s5] ss:$0 sm:$0xff] }
  0x3f   : > { %15236 = vmatprep.mubr.msk.f32.mxu0 %vm635_vm1, %v1434_v18  ;;  %v1448_v12 = vmax.f32 %v1416_v5, 0.0  ;;  %v1418_v13 = vadd.f32 %v17177_v22, %v1379_v6  ;;  %v1381_v14 = vmul.f32 %v17154_v15, %v1342_v8  ;;  %v1382_v20 = vmul.f32 %v17154_v15, %v1343_v16  ;;  %v17417_v5 = vld [vmem:[%s23035_s6 + $0xf8] sm:$0xff] }
  0x40   : > { %v1449_v18 = vmax.f32 %v1417_v10, 0.0  ;;  %v1419_v19 = vadd.f32 %v17177_v22, %v1380_v11  ;;  %v1384_v29 = vmul.f32 %v17154_v15, %v1345_v25  ;;  %v1386_v36 = vmul.f32 %v17154_v15, %v1347_v33  ;;  %v13177_v33 = vld [vmem:[%s23035_s6 + $0xd0] sm:$0xff] }
  0x41   : > { %v1450_v21 = vmax.f32 %v1418_v13, 0.0  ;;  %v1420_v23 = vadd.f32 %v17177_v22, %v1381_v14  ;;  %v1421_v28 = vadd.f32 %v17177_v22, %v1382_v20 }
  0x42   : > { %15237 = vmatmul.mubr.msk.f32.gmra.mxu0 %vm635_vm1, %v1435_v24  ;;  %v1383_v24 = vmul.f32 %v17154_v15, %v1344_v17 }
  0x43   : > { %15239 = vmatprep.mubr.msk.f32.mxu0 %vm635_vm1, %v1436_v27  ;;  %v1451_v27 = vmax.f32 %v1419_v19, 0.0  ;;  %v1452_v30 = vmax.f32 %v1420_v23, 0.0  ;;  %v1453_v34 = vmax.f32 %v1421_v28, 0.0 }
  0x44   : > { %v1422_v31 = vadd.f32 %v17177_v22, %v1383_v24 }
  0x46   : > { %15240 = vmatmul.mubr.msk.f32.gmra.mxu0 %vm635_vm1, %v1437_v32  ;;  %v1385_v32 = vmul.f32 %v17154_v15, %v1346_v26  ;;  %v1454_v37 = vmax.f32 %v1422_v31, 0.0  ;;  %v1958_v15 = vld [vmem:[%s23035_s6 + $0x18] sm:$0xff] }
  0x47   : > { %15242 = vmatprep.mubr.msk.f32.mxu0 %vm635_vm1, %v1438_v35  ;;  %v1423_v35 = vadd.f32 %v17177_v22, %v1384_v29  ;;  %15328 = vmatprep.subr.mxu0 %v1958_v15 }
  0x48   : > { %v1424_v38 = vadd.f32 %v17177_v22, %v1385_v32  ;;  %15329 = vmatpush3.msra.mxu0 %v1958_v15 }
  0x49   : > { %v1455_v39 = vmax.f32 %v1423_v35, 0.0 }
  0x4a   : > { %15243 = vmatmul.mubr.msk.f32.gmra.mxu0 %vm635_vm1, %v1439_v40  ;;  %v1425_v40 = vadd.f32 %v17177_v22, %v1386_v36  ;;  %v1456_v41 = vmax.f32 %v1424_v38, 0.0  ;;  %v1957_v22 = vld [vmem:[%s23035_s6 + $0x10] sm:$0xff] }
  0x4b   : > { %15245 = vmatprep.mubr.msk.f32.mxu0 %vm635_vm1, %v1440_v43  ;;  %15330 = vmatprep.subr.mxu0 %v1957_v22  ;;  %v13110_v43 = vld [vmem:[%s23035_s6 + $0x78] sm:$0xff] }
  0x4c   : > { %v1457_v42 = vmax.f32 %v1425_v40, 0.0  ;;  %15331 = vmatpush3.msra.mxu0 %v1957_v22  ;;  %15272 = vmatprep.subr.mxu1 %v13110_v43  ;;  %v13176_v22 = vld [vmem:[%s23035_s6 + $0xc8] sm:$0xff] }
  0x4d   : > { %15332 = vmatprep.subr.mxu0 %v1956_v44  ;;  %15273 = vmatpush3.msra.mxu1 %v13110_v43 }
  0x4e   : > { %15246 = vmatmul.mubr.msk.f32.gmra.mxu0 %vm635_vm1, %v1441_v48  ;;  %15274 = vmatprep.subr.mxu1 %v13109_v45  ;;  %v13108_v48 = vld [vmem:[%s23035_s6 + $0x68] sm:$0xff] }
  0x4f   : > { %15248 = vmatprep.mubr.msk.f32.mxu0 %vm635_vm1, %v1442_v51  ;;  %15333 = vmatpush3.msra.mxu0 %v1956_v44  ;;  %v17384_v51 = vld [vmem:[%s23035_s6 + $0xd8] sm:$0xff] }
  0x50   : > { %15334 = vmatprep.subr.mxu0 %v1955_v46  ;;  %15275 = vmatpush3.msra.mxu1 %v13109_v45 }
  0x51   : > { %15335 = vmatpush3.msra.mxu0 %v1955_v46  ;;  %15276 = vmatprep.subr.mxu1 %v13108_v48 }
  0x52   : > { %15249 = vmatmul.mubr.msk.f32.gmra.mxu0 %vm635_vm1, %v1443_v56  ;;  %15277 = vmatpush3.msra.mxu1 %v13108_v48  ;;  %v17402_v56 = vld [vmem:[%s23033_s4] ss:$0 sm:$0xff] }
  0x53   : > { %15251 = vmatprep.mubr.msk.f32.mxu0 %vm635_vm1, %v1444_v59  ;;  %15278 = vmatprep.subr.mxu1 %v13107_v50 }
  0x54   : > { %15279 = vmatpush3.msra.mxu1 %v13107_v50  ;;  %15440 = vmatprep.subr.mxu0 %v13218_v52 }
  0x55   : > { %15384 = vmatprep.subr.mxu1 %v17384_v51 }
  0x56   : > { %15252 = vmatmul.mubr.msk.f32.gmra.mxu0 %vm635_vm1, %v1445_v0 }
  0x57   : > { %15254 = vmatprep.mubr.msk.f32.mxu0 %vm635_vm1, %v1446_v4 }
  0x5a   : > { %15255 = vmatmul.mubr.msk.f32.gmra.mxu0 %vm635_vm1, %v1447_v9 }
  0x5b   : > { %15257 = vmatprep.mubr.msk.f32.mxu0 %vm635_vm1, %v1448_v12 }
  0x5e   : > { %15258 = vmatmul.mubr.msk.f32.gmra.mxu0 %vm635_vm1, %v1449_v18 }
  0x5f   : > { %15260 = vmatprep.mubr.msk.f32.mxu0 %vm635_vm1, %v1450_v21 }
  0x62   : > { %15261 = vmatmul.mubr.msk.f32.gmra.mxu0 %vm635_vm1, %v1451_v27 }
  0x63   : > { %15263 = vmatprep.mubr.msk.f32.mxu0 %vm635_vm1, %v1452_v30 }
  0x66   : > { %15264 = vmatmul.mubr.msk.f32.gmra.mxu0 %vm635_vm1, %v1453_v34 }
  0x67   : > { %15266 = vmatprep.mubr.msk.f32.mxu0 %vm635_vm1, %v1454_v37 }
  0x6a   : > { %15267 = vmatmul.mubr.msk.f32.gmra.mxu0 %vm635_vm1, %v1455_v39 }
  0x6b   : > { %15269 = vmatprep.mubr.msk.f32.mxu0 %vm635_vm1, %v1456_v41 }
  0x6e   : > { %15270 = vmatmul.mubr.msk.f32.gmra.mxu0 %vm635_vm1, %v1457_v42 }
  0x6f   : > { %15336 = vmatprep.mubr.msk.f32.mxu0 %vm668_vm0, %v1923_v47 }
  0x72   : > { %15337 = vmatmul.mubr.msk.f32.vlgmr.msra.gmra.mxu0 %vm668_vm0, %v1924_v49 }
  0x73   : > { %15441 = vmatpush3.msra.mxu0 %v13218_v52 }
  0x74   : > { %15442 = vmatprep.subr.mxu0 %v13217_v53 }
  0x75   : > { %15443 = vmatpush3.msra.mxu0 %v13217_v53  ;;  %v13175_v53 = vld [vmem:[%s23035_s6 + $0xc0] sm:$0xff] }
  0x76   : > { %15444 = vmatprep.subr.mxu0 %v13216_v54 }
  0x77   : > { %15445 = vmatpush3.msra.mxu0 %v13216_v54 }
  0x78   : > { %15446 = vmatprep.subr.mxu0 %v13215_v55 }
  0x79   : > { %15447 = vmatpush3.msra.mxu0 %v13215_v55 }
  0x7a   : > { %15552 = vmatprep.subr.mxu0 %v17417_v5 }
  0xf2   : > { %v15226_v57 = vpop.f32.mrf.mxu0 }
  0xf3   : > { %v1789_v59 = vmul.f32 %v15226_v57, %v17402_v56 }
  0xf4   : > { %v1622_v60 = vpop.f32.mrf.mxu0 }
  0xf5   : > { %v1828_v61 = vadd.f32 %v17407_v58, %v1789_v59  ;;  %v1788_v62 = vmul.f32 %v17402_v56, %v1622_v60 }
  0xf6   : > { %v15229_v63 = vpop.f32.mrf.mxu0 }
  0xf7   : > { %v1860_v0 = vmax.f32 %v1828_v61, 0.0  ;;  %v1827_v1 = vadd.f32 %v17407_v58, %v1788_v62  ;;  %v1791_v3 = vmul.f32 %v15229_v63, %v17402_v56 }
  0xf8   : > { %v1632_v4 = vpop.f32.mrf.mxu0 }
  0xf9   : > { %1892 = vst.msk [vmem:[#allocation2 + $0x20] sm:$0xff] %vm668_vm0, %v1860_v0  ;;  %v1859_v6 = vmax.f32 %v1827_v1, 0.0  ;;  %v1830_v7 = vadd.f32 %v17407_v58, %v1791_v3  ;;  %v1790_v8 = vmul.f32 %v17402_v56, %v1632_v4  ;;  %v17505_v3 = vld [vmem:[%s23035_s6 + $0x38] sm:$0xff] }
  0xfa   : > { %v15232_v9 = vpop.f32.mrf.mxu0 }
  0xfb   : > { %1891 = vst.msk [vmem:[#allocation2 + $0x18] sm:$0xff] %vm668_vm0, %v1859_v6  ;;  %v1862_v10 = vmax.f32 %v1830_v7, 0.0  ;;  %v1829_v11 = vadd.f32 %v17407_v58, %v1790_v8  ;;  %v1793_v12 = vmul.f32 %v15232_v9, %v17402_v56 }
  0xfc   : > { %v1642_v13 = vpop.f32.mrf.mxu0 }
  0xfd   : > { %1894 = vst.msk [vmem:[#allocation2 + $0x30] sm:$0xff] %vm668_vm0, %v1862_v10  ;;  %v1861_v14 = vmax.f32 %v1829_v11, 0.0  ;;  %v1832_v16 = vadd.f32 %v17407_v58, %v1793_v12  ;;  %v1792_v17 = vmul.f32 %v17402_v56, %v1642_v13 }
  0xfe   : > { %v15235_v18 = vpop.f32.mrf.mxu0 }
  0xff   : > { %1893 = vst.msk [vmem:[#allocation2 + $0x28] sm:$0xff] %vm668_vm0, %v1861_v14  ;;  %v1864_v19 = vmax.f32 %v1832_v16, 0.0  ;;  %v1831_v20 = vadd.f32 %v17407_v58, %v1792_v17  ;;  %v1795_v21 = vmul.f32 %v15235_v18, %v17402_v56 }
 0x100   : > { %v1652_v23 = vpop.f32.mrf.mxu0 }
 0x101   : > { %1896 = vst.msk [vmem:[#allocation2 + $0x40] sm:$0xff] %vm668_vm0, %v1864_v19  ;;  %v1863_v24 = vmax.f32 %v1831_v20, 0.0  ;;  %v1834_v25 = vadd.f32 %v17407_v58, %v1795_v21  ;;  %v1794_v26 = vmul.f32 %v17402_v56, %v1652_v23 }
 0x102   : > { %v15238_v27 = vpop.f32.mrf.mxu0  ;;  %v1925_v28 = vld [vmem:[#allocation2 + $0x17] sm:$0xff]  ;;  %v1926_v29 = vld [vmem:[#allocation2 + $0x1f] sm:$0xff] }
 0x103   : > { %1895 = vst.msk [vmem:[#allocation2 + $0x38] sm:$0xff] %vm668_vm0, %v1863_v24  ;;  %v1866_v30 = vmax.f32 %v1834_v25, 0.0  ;;  %v1833_v31 = vadd.f32 %v17407_v58, %v1794_v26  ;;  %v1797_v32 = vmul.f32 %v15238_v27, %v17402_v56  ;;  %15280 = vmatprep.mubr.msk.f32.mxu1 %vm668_vm0, %v1925_v28  ;;  %15339 = vmatprep.mubr.msk.f32.mxu0 %vm668_vm0, %v1925_v28 }
 0x104   : > { %v1662_v34 = vpop.f32.mrf.mxu0  ;;  %15281 = vmatmul.mubr.msk.f32.vlgmr.msra.gmra.mxu1 %vm668_vm0, %v1926_v29  ;;  %15340 = vmatmul.mubr.msk.f32.gmra.mxu0 %vm668_vm0, %v1926_v29 }
 0x105   : > { %1898 = vst.msk [vmem:[#allocation2 + $0x50] sm:$0xff] %vm668_vm0, %v1866_v30  ;;  %v1865_v35 = vmax.f32 %v1833_v31, 0.0  ;;  %v1836_v36 = vadd.f32 %v17407_v58, %v1797_v32  ;;  %v1796_v37 = vmul.f32 %v17402_v56, %v1662_v34  ;;  %15385 = vmatpush3.msra.mxu1 %v17384_v51 }
 0x106   : > { %v15241_v38 = vpop.f32.mrf.mxu0  ;;  %v17449_v39 = vld [vmem:[#allocation2 + $0x27] sm:$0xff]  ;;  %v17451_v40 = vld [vmem:[#allocation2 + $0x2f] sm:$0xff]  ;;  %15386 = vmatprep.subr.mxu1 %v13177_v33 }
 0x107   : > { %1897 = vst.msk [vmem:[#allocation2 + $0x48] sm:$0xff] %vm668_vm0, %v1865_v35  ;;  %v1868_v41 = vmax.f32 %v1836_v36, 0.0  ;;  %v1835_v42 = vadd.f32 %v17407_v58, %v1796_v37  ;;  %v1799_v15 = vmul.f32 %v15241_v38, %v17402_v56  ;;  %15283 = vmatprep.mubr.msk.f32.mxu1 %vm668_vm0, %v17449_v39  ;;  %15342 = vmatprep.mubr.msk.f32.mxu0 %vm668_vm0, %v17449_v39 }
 0x108   : > { %v1672_v43 = vpop.f32.mrf.mxu0  ;;  %15284 = vmatmul.mubr.msk.f32.gmra.mxu1 %vm668_vm0, %v17451_v40  ;;  %15343 = vmatmul.mubr.msk.f32.gmra.mxu0 %vm668_vm0, %v17451_v40 }
 0x109   : > { %1900 = vst.msk [vmem:[#allocation2 + $0x60] sm:$0xff] %vm668_vm0, %v1868_v41  ;;  %v1867_v44 = vmax.f32 %v1835_v42, 0.0  ;;  %v1838_v45 = vadd.f32 %v17407_v58, %v1799_v15  ;;  %v1798_v46 = vmul.f32 %v17402_v56, %v1672_v43  ;;  %15387 = vmatpush3.msra.mxu1 %v13177_v33 }
 0x10a   : > { %v15244_v47 = vpop.f32.mrf.mxu0  ;;  %v17470_v48 = vld [vmem:[#allocation2 + $0x37] sm:$0xff]  ;;  %v17472_v49 = vld [vmem:[#allocation2 + $0x3f] sm:$0xff]  ;;  %15388 = vmatprep.subr.mxu1 %v13176_v22 }
 0x10b   : > { %1899 = vst.msk [vmem:[#allocation2 + $0x58] sm:$0xff] %vm668_vm0, %v1867_v44  ;;  %v1870_v50 = vmax.f32 %v1838_v45, 0.0  ;;  %v1837_v51 = vadd.f32 %v17407_v58, %v1798_v46  ;;  %v1801_v52 = vmul.f32 %v15244_v47, %v17402_v56  ;;  %15286 = vmatprep.mubr.msk.f32.mxu1 %vm668_vm0, %v17470_v48  ;;  %15345 = vmatprep.mubr.msk.f32.mxu0 %vm668_vm0, %v17470_v48 }
 0x10c   : > { %v1682_v54 = vpop.f32.mrf.mxu0  ;;  %15287 = vmatmul.mubr.msk.f32.gmra.mxu1 %vm668_vm0, %v17472_v49  ;;  %15346 = vmatmul.mubr.msk.f32.gmra.mxu0 %vm668_vm0, %v17472_v49 }
 0x10d   : > { %1902 = vst.msk [vmem:[#allocation2 + $0x70] sm:$0xff] %vm668_vm0, %v1870_v50  ;;  %v1869_v55 = vmax.f32 %v1837_v51, 0.0  ;;  %v1840_v57 = vadd.f32 %v17407_v58, %v1801_v52  ;;  %v1800_v59 = vmul.f32 %v17402_v56, %v1682_v54  ;;  %15389 = vmatpush3.msra.mxu1 %v13176_v22 }
 0x10e   : > { %v15247_v60 = vpop.f32.mrf.mxu0  ;;  %v17491_v61 = vld [vmem:[#allocation2 + $0x47] sm:$0xff]  ;;  %v17493_v62 = vld [vmem:[#allocation2 + $0x4f] sm:$0xff]  ;;  %15390 = vmatprep.subr.mxu1 %v13175_v53 }
 0x10f   : > { %1901 = vst.msk [vmem:[#allocation2 + $0x68] sm:$0xff] %vm668_vm0, %v1869_v55  ;;  %v1872_v63 = vmax.f32 %v1840_v57, 0.0  ;;  %v1839_v0 = vadd.f32 %v17407_v58, %v1800_v59  ;;  %v1803_v1 = vmul.f32 %v15247_v60, %v17402_v56  ;;  %15289 = vmatprep.mubr.msk.f32.mxu1 %vm668_vm0, %v17491_v61  ;;  %15348 = vmatprep.mubr.msk.f32.mxu0 %vm668_vm0, %v17491_v61 }
 0x110   : > { %v1692_v4 = vpop.f32.mrf.mxu0  ;;  %15290 = vmatmul.mubr.msk.f32.gmra.mxu1 %vm668_vm0, %v17493_v62  ;;  %15349 = vmatmul.mubr.msk.f32.gmra.mxu0 %vm668_vm0, %v17493_v62 }
 0x111   : > { %1904 = vst.msk [vmem:[#allocation2 + $0x80] sm:$0xff] %vm668_vm0, %v1872_v63  ;;  %v1871_v6 = vmax.f32 %v1839_v0, 0.0  ;;  %v1842_v7 = vadd.f32 %v17407_v58, %v1803_v1  ;;  %v1802_v8 = vmul.f32 %v17402_v56, %v1692_v4  ;;  %15391 = vmatpush3.msra.mxu1 %v13175_v53 }
 0x112   : > { %v15250_v9 = vpop.f32.mrf.mxu0  ;;  %v17514_v10 = vld [vmem:[#allocation2 + $0x57] sm:$0xff]  ;;  %v17516_v11 = vld [vmem:[#allocation2 + $0x5f] sm:$0xff]  ;;  %15496 = vmatprep.subr.mxu1 %v17505_v3 }
 0x113   : > { %1903 = vst.msk [vmem:[#allocation2 + $0x78] sm:$0xff] %vm668_vm0, %v1871_v6  ;;  %v1874_v12 = vmax.f32 %v1842_v7, 0.0  ;;  %v1841_v13 = vadd.f32 %v17407_v58, %v1802_v8  ;;  %v1805_v14 = vmul.f32 %v15250_v9, %v17402_v56  ;;  %15292 = vmatprep.mubr.msk.f32.mxu1 %vm668_vm0, %v17514_v10  ;;  %15351 = vmatprep.mubr.msk.f32.mxu0 %vm668_vm0, %v17514_v10 }
 0x114   : > { %v1702_v16 = vpop.f32.mrf.mxu0  ;;  %15293 = vmatmul.mubr.msk.f32.gmra.mxu1 %vm668_vm0, %v17516_v11  ;;  %15352 = vmatmul.mubr.msk.f32.gmra.mxu0 %vm668_vm0, %v17516_v11 }
 0x115   : > { %1906 = vst.msk [vmem:[#allocation2 + $0x90] sm:$0xff] %vm668_vm0, %v1874_v12  ;;  %v1873_v17 = vmax.f32 %v1841_v13, 0.0  ;;  %v1844_v18 = vadd.f32 %v17407_v58, %v1805_v14  ;;  %v1804_v19 = vmul.f32 %v17402_v56, %v1702_v16 }
 0x116   : > { %v15253_v20 = vpop.f32.mrf.mxu0  ;;  %v17533_v21 = vld [vmem:[#allocation2 + $0x67] sm:$0xff]  ;;  %v17535_v23 = vld [vmem:[#allocation2 + $0x6f] sm:$0xff] }
 0x117   : > { %1905 = vst.msk [vmem:[#allocation2 + $0x88] sm:$0xff] %vm668_vm0, %v1873_v17  ;;  %v1876_v24 = vmax.f32 %v1844_v18, 0.0  ;;  %v1843_v25 = vadd.f32 %v17407_v58, %v1804_v19  ;;  %v1807_v26 = vmul.f32 %v15253_v20, %v17402_v56  ;;  %15295 = vmatprep.mubr.msk.f32.mxu1 %vm668_vm0, %v17533_v21  ;;  %15354 = vmatprep.mubr.msk.f32.mxu0 %vm668_vm0, %v17533_v21 }
 0x118   : > { %v1712_v27 = vpop.f32.mrf.mxu0  ;;  %15296 = vmatmul.mubr.msk.f32.gmra.mxu1 %vm668_vm0, %v17535_v23  ;;  %15355 = vmatmul.mubr.msk.f32.gmra.mxu0 %vm668_vm0, %v17535_v23 }
 0x119   : > { %1908 = vst.msk [vmem:[#allocation2 + $0xa0] sm:$0xff] %vm668_vm0, %v1876_v24  ;;  %v1875_v28 = vmax.f32 %v1843_v25, 0.0  ;;  %v1846_v29 = vadd.f32 %v17407_v58, %v1807_v26  ;;  %v1806_v30 = vmul.f32 %v17402_v56, %v1712_v27 }
 0x11a   : > { %v15256_v31 = vpop.f32.mrf.mxu0  ;;  %v17551_v32 = vld [vmem:[#allocation2 + $0x77] sm:$0xff]  ;;  %v17553_v33 = vld [vmem:[#allocation2 + $0x7f] sm:$0xff] }
 0x11b   : > { %1907 = vst.msk [vmem:[#allocation2 + $0x98] sm:$0xff] %vm668_vm0, %v1875_v28  ;;  %v1878_v34 = vmax.f32 %v1846_v29, 0.0  ;;  %v1845_v35 = vadd.f32 %v17407_v58, %v1806_v30  ;;  %v1809_v36 = vmul.f32 %v15256_v31, %v17402_v56  ;;  %15298 = vmatprep.mubr.msk.f32.mxu1 %vm668_vm0, %v17551_v32  ;;  %15357 = vmatprep.mubr.msk.f32.mxu0 %vm668_vm0, %v17551_v32 }
 0x11c   : > { %v1722_v37 = vpop.f32.mrf.mxu0  ;;  %15299 = vmatmul.mubr.msk.f32.gmra.mxu1 %vm668_vm0, %v17553_v33  ;;  %15358 = vmatmul.mubr.msk.f32.gmra.mxu0 %vm668_vm0, %v17553_v33 }
 0x11d   : > { %1910 = vst.msk [vmem:[#allocation2 + $0xb0] sm:$0xff] %vm668_vm0, %v1878_v34  ;;  %v1877_v38 = vmax.f32 %v1845_v35, 0.0  ;;  %v1848_v41 = vadd.f32 %v17407_v58, %v1809_v36  ;;  %v1808_v42 = vmul.f32 %v17402_v56, %v1722_v37 }
 0x11e   : > { %v15259_v15 = vpop.f32.mrf.mxu0  ;;  %v17569_v22 = vld [vmem:[#allocation2 + $0x87] sm:$0xff]  ;;  %v17571_v43 = vld [vmem:[#allocation2 + $0x8f] sm:$0xff] }
 0x11f   : > { %1909 = vst.msk [vmem:[#allocation2 + $0xa8] sm:$0xff] %vm668_vm0, %v1877_v38  ;;  %v1880_v44 = vmax.f32 %v1848_v41, 0.0  ;;  %v1847_v45 = vadd.f32 %v17407_v58, %v1808_v42  ;;  %v1811_v46 = vmul.f32 %v15259_v15, %v17402_v56  ;;  %15301 = vmatprep.mubr.msk.f32.mxu1 %vm668_vm0, %v17569_v22  ;;  %15360 = vmatprep.mubr.msk.f32.mxu0 %vm668_vm0, %v17569_v22 }
 0x120   : > { %v1732_v47 = vpop.f32.mrf.mxu0  ;;  %15302 = vmatmul.mubr.msk.f32.gmra.mxu1 %vm668_vm0, %v17571_v43  ;;  %15361 = vmatmul.mubr.msk.f32.gmra.mxu0 %vm668_vm0, %v17571_v43 }
 0x121   : > { %1912 = vst.msk [vmem:[#allocation2 + $0xc0] sm:$0xff] %vm668_vm0, %v1880_v44  ;;  %v1879_v50 = vmax.f32 %v1847_v45, 0.0  ;;  %v1850_v51 = vadd.f32 %v17407_v58, %v1811_v46  ;;  %v1810_v52 = vmul.f32 %v17402_v56, %v1732_v47 }
 0x122   : > { %v15262_v53 = vpop.f32.mrf.mxu0  ;;  %v17587_v54 = vld [vmem:[#allocation2 + $0x97] sm:$0xff]  ;;  %v17589_v55 = vld [vmem:[#allocation2 + $0x9f] sm:$0xff] }
 0x123   : > { %1911 = vst.msk [vmem:[#allocation2 + $0xb8] sm:$0xff] %vm668_vm0, %v1879_v50  ;;  %v1882_v57 = vmax.f32 %v1850_v51, 0.0  ;;  %v1849_v59 = vadd.f32 %v17407_v58, %v1810_v52  ;;  %v1813_v60 = vmul.f32 %v15262_v53, %v17402_v56  ;;  %15304 = vmatprep.mubr.msk.f32.mxu1 %vm668_vm0, %v17587_v54  ;;  %15363 = vmatprep.mubr.msk.f32.mxu0 %vm668_vm0, %v17587_v54 }
 0x124   : > { %v1742_v63 = vpop.f32.mrf.mxu0  ;;  %15305 = vmatmul.mubr.msk.f32.gmra.mxu1 %vm668_vm0, %v17589_v55  ;;  %15364 = vmatmul.mubr.msk.f32.gmra.mxu0 %vm668_vm0, %v17589_v55 }
 0x125   : > { %1914 = vst.msk [vmem:[#allocation2 + $0xd0] sm:$0xff] %vm668_vm0, %v1882_v57  ;;  %v1881_v0 = vmax.f32 %v1849_v59, 0.0  ;;  %v1852_v1 = vadd.f32 %v17407_v58, %v1813_v60  ;;  %v1812_v4 = vmul.f32 %v17402_v56, %v1742_v63  ;;  %v17699_v59 = vld [vmem:[#allocation2 + $0x18] sm:$0xff] }
 0x126   : > { %v15265_v6 = vpop.f32.mrf.mxu0  ;;  %v17605_v7 = vld [vmem:[#allocation2 + $0xa7] sm:$0xff]  ;;  %v17607_v8 = vld [vmem:[#allocation2 + $0xaf] sm:$0xff] }
 0x127   : > { %1913 = vst.msk [vmem:[#allocation2 + $0xc8] sm:$0xff] %vm668_vm0, %v1881_v0  ;;  %v1884_v9 = vmax.f32 %v1852_v1, 0.0  ;;  %v1851_v12 = vadd.f32 %v17407_v58, %v1812_v4  ;;  %v1815_v13 = vmul.f32 %v15265_v6, %v17402_v56  ;;  %15307 = vmatprep.mubr.msk.f32.mxu1 %vm668_vm0, %v17605_v7  ;;  %15366 = vmatprep.mubr.msk.f32.mxu0 %vm668_vm0, %v17605_v7  ;;  %v17709_v0 = vld [vmem:[#allocation2 + $0x20] sm:$0xff]  ;;  %v17715_v1 = vld [vmem:[#allocation2 + $0x28] sm:$0xff]  ;;  %v13285_v4 = vld [vmem:[%s23035_s6 + $0xf0] sm:$0xff] }
 0x128   : > { %v1752_v14 = vpop.f32.mrf.mxu0  ;;  %15308 = vmatmul.mubr.msk.f32.gmra.mxu1 %vm668_vm0, %v17607_v8  ;;  %15367 = vmatmul.mubr.msk.f32.gmra.mxu0 %vm668_vm0, %v17607_v8  ;;  %v17725_v6 = vld [vmem:[#allocation2 + $0x30] sm:$0xff] }
 0x129   : > { %1916 = vst.msk [vmem:[#allocation2 + $0xe0] sm:$0xff] %vm668_vm0, %v1884_v9  ;;  %v1883_v16 = vmax.f32 %v1851_v12, 0.0  ;;  %v1854_v17 = vadd.f32 %v17407_v58, %v1815_v13  ;;  %v1814_v18 = vmul.f32 %v17402_v56, %v1752_v14  ;;  %v13213_v9 = vld [vmem:[%s23035_s6 + $0x30] sm:$0xff]  ;;  %v13283_v13 = vld [vmem:[%s23035_s6 + $0xe0] sm:$0xff] }
 0x12a   : > { %v15268_v19 = vpop.f32.mrf.mxu0  ;;  %v17623_v20 = vld [vmem:[#allocation2 + $0xb7] sm:$0xff]  ;;  %v17625_v24 = vld [vmem:[#allocation2 + $0xbf] sm:$0xff] }
 0x12b   : > { %1915 = vst.msk [vmem:[#allocation2 + $0xd8] sm:$0xff] %vm668_vm0, %v1883_v16  ;;  %v1886_v25 = vmax.f32 %v1854_v17, 0.0  ;;  %v1853_v26 = vadd.f32 %v17407_v58, %v1814_v18  ;;  %v1817_v27 = vmul.f32 %v15268_v19, %v17402_v56  ;;  %15310 = vmatprep.mubr.msk.f32.mxu1 %vm668_vm0, %v17623_v20  ;;  %15369 = vmatprep.mubr.msk.f32.mxu0 %vm668_vm0, %v17623_v20  ;;  %v17759_v12 = vld [vmem:[#allocation2 + $0x50] sm:$0xff]  ;;  %v17777_v14 = vld [vmem:[#allocation2 + $0x60] sm:$0xff]  ;;  %v17787_v16 = vld [vmem:[%s23035_s6 + $0x58] sm:$0xff] }
 0x12c   : > { %v1762_v28 = vpop.f32.mrf.mxu0  ;;  %15311 = vmatmul.mubr.msk.f32.gmra.mxu1 %vm668_vm0, %v17625_v24  ;;  %15370 = vmatmul.mubr.msk.f32.gmra.mxu0 %vm668_vm0, %v17625_v24  ;;  %v17801_v17 = vld [vmem:[#allocation2 + $0x70] sm:$0xff] }
 0x12d   : > { %1918 = vst.msk [vmem:[#allocation2 + $0xf0] sm:$0xff] %vm668_vm0, %v1886_v25  ;;  %v1885_v29 = vmax.f32 %v1853_v26, 0.0  ;;  %v1856_v30 = vadd.f32 %v17407_v58, %v1817_v27  ;;  %v1816_v31 = vmul.f32 %v17402_v56, %v1762_v28  ;;  %v17873_v18 = vld [vmem:[#allocation2 + $0xd0] sm:$0xff] }
 0x12e   : > { %v15271_v34 = vpop.f32.mrf.mxu0  ;;  %v17641_v35 = vld [vmem:[#allocation2 + $0xc7] sm:$0xff]  ;;  %v17643_v36 = vld [vmem:[#allocation2 + $0xcf] sm:$0xff] }
 0x12f   : > { %1917 = vst.msk [vmem:[#allocation2 + $0xe8] sm:$0xff] %vm668_vm0, %v1885_v29  ;;  %v1888_v37 = vmax.f32 %v1856_v30, 0.0  ;;  %v1855_v38 = vadd.f32 %v17407_v58, %v1816_v31  ;;  %v1819_v41 = vmul.f32 %v15271_v34, %v17402_v56  ;;  %15313 = vmatprep.mubr.msk.f32.mxu1 %vm668_vm0, %v17641_v35  ;;  %15372 = vmatprep.mubr.msk.f32.mxu0 %vm668_vm0, %v17641_v35  ;;  %v2549_v31 = vld [vmem:[#allocation2 + $0x11f] sm:$0xff]  ;;  %v2972_v34 = vld [vmem:[#allocation2 + $0x8] sm:$0xff] }
 0x130   : > { %v1772_v42 = vpop.f32.mrf.mxu0  ;;  %15314 = vmatmul.mubr.msk.f32.gmra.mxu1 %vm668_vm0, %v17643_v36  ;;  %15373 = vmatmul.mubr.msk.f32.gmra.mxu0 %vm668_vm0, %v17643_v36 }
 0x131   : > { %1920 = vst.msk [vmem:[#allocation2 + $0x100] sm:$0xff] %vm668_vm0, %v1888_v37  ;;  %v1887_v15 = vmax.f32 %v1855_v38, 0.0  ;;  %v1858_v44 = vadd.f32 %v17407_v58, %v1819_v41  ;;  %v1818_v45 = vmul.f32 %v17402_v56, %v1772_v42  ;;  %v13325_v37 = vld [vmem:[%s23035_s6 + $0xb0] sm:$0xff]  ;;  %v13324_v38 = vld [vmem:[%s23035_s6 + $0xa8] sm:$0xff]  ;;  %v13323_v42 = vld [vmem:[%s23035_s6 + $0xa0] sm:$0xff] }
 0x132   : > { %v17659_v46 = vld [vmem:[#allocation2 + $0xd7] sm:$0xff]  ;;  %v17661_v47 = vld [vmem:[#allocation2 + $0xdf] sm:$0xff]  ;;  %v13320_v41 = vld [vmem:[%s23035_s6 + $0x48] sm:$0xff] }
 0x133   : > { %1919 = vst.msk [vmem:[#allocation2 + $0xf8] sm:$0xff] %vm668_vm0, %v1887_v15  ;;  %v1890_v50 = vmax.f32 %v1858_v44, 0.0  ;;  %v1857_v51 = vadd.f32 %v17407_v58, %v1818_v45  ;;  %15316 = vmatprep.mubr.msk.f32.mxu1 %vm668_vm0, %v17659_v46  ;;  %15375 = vmatprep.mubr.msk.f32.mxu0 %vm668_vm0, %v17659_v46  ;;  %v17879_v19 = vld [vmem:[#allocation2 + $0xd8] sm:$0xff]  ;;  %v13319_v15 = vld [vmem:[%s23035_s6 + $0x40] sm:$0xff] }
 0x134   : > { %15317 = vmatmul.mubr.msk.f32.gmra.mxu1 %vm668_vm0, %v17661_v47  ;;  %15376 = vmatmul.mubr.msk.f32.gmra.mxu0 %vm668_vm0, %v17661_v47  ;;  %v17897_v25 = vld [vmem:[#allocation2 + $0xf0] sm:$0xff]  ;;  %v17982_v44 = vld [vmem:[%s23035_s6 + $0x118] sm:$0xff] }
 0x135   : > { %1922 = vst.msk [vmem:[#allocation2 + $0x110] sm:$0xff] %vm668_vm0, %v1890_v50  ;;  %v1889_v56 = vmax.f32 %v1857_v51, 0.0  ;;  %v3598_v45 = vld [vmem:[#allocation2 + $0x118] sm:$0xff]  ;;  %v18075_v50 = vpop.f32.mrf.mxu0 }
 0x136   : > { %v17674_v52 = vld [vmem:[#allocation2 + $0xe7] sm:$0xff]  ;;  %v17676_v53 = vld [vmem:[#allocation2 + $0xef] sm:$0xff] }
 0x137   : > { %1921 = vst.msk [vmem:[#allocation2 + $0x108] sm:$0xff] %vm668_vm0, %v1889_v56  ;;  %15319 = vmatprep.mubr.msk.f32.mxu1 %vm668_vm0, %v17674_v52  ;;  %15378 = vmatprep.mubr.msk.f32.mxu0 %vm668_vm0, %v17674_v52  ;;  %v3991_v51 = vld [vmem:[#allocation2 + $0x11] sm:$0xff]  ;;  %v3992_v56 = vld [vmem:[#allocation2 + $0x19] sm:$0xff] }
 0x138   : > { %15320 = vmatmul.mubr.msk.f32.gmra.mxu1 %vm668_vm0, %v17676_v53  ;;  %15379 = vmatmul.mubr.msk.f32.gmra.mxu0 %vm668_vm0, %v17676_v53  ;;  %v17909_v27 = vld [vmem:[#allocation2 + $0x100] sm:$0xff] }
 0x13a   : > { %v17687_v58 = vld [vmem:[#allocation2 + $0xf7] sm:$0xff]  ;;  %v17689_v57 = vld [vmem:[#allocation2 + $0xff] sm:$0xff] }
 0x13b   : > { %15322 = vmatprep.mubr.msk.f32.mxu1 %vm668_vm0, %v17687_v58  ;;  %15381 = vmatprep.mubr.msk.f32.mxu0 %vm668_vm0, %v17687_v58  ;;  %v17903_v26 = vld [vmem:[#allocation2 + $0xf8] sm:$0xff] }
 0x13c   : > { %15323 = vmatmul.mubr.msk.f32.gmra.mxu1 %vm668_vm0, %v17689_v57  ;;  %15382 = vmatmul.mubr.msk.f32.gmra.mxu0 %vm668_vm0, %v17689_v57  ;;  %v17921_v29 = vld [vmem:[#allocation2 + $0x110] sm:$0xff] }
 0x13d   : > { %15448 = vmatprep.mubr.msk.f32.mxu0 %vm668_vm0, %v17699_v59  ;;  %v2548_v30 = vld [vmem:[#allocation2 + $0x117] sm:$0xff] }
 0x13e   : > { %v17703_v60 = vld [vmem:[#allocation2 + $0x107] sm:$0xff]  ;;  %v17705_v63 = vld [vmem:[#allocation2 + $0x10f] sm:$0xff] }
 0x13f   : > { %15325 = vmatprep.mubr.msk.f32.mxu1 %vm668_vm0, %v17703_v60  ;;  %v17915_v28 = vld [vmem:[#allocation2 + $0x108] sm:$0xff] }
 0x140   : > { %15326 = vmatmul.mubr.msk.f32.gmra.mxu1 %vm668_vm0, %v17705_v63  ;;  %15449 = vmatmul.mubr.msk.f32.vlgmr.msra.gmra.mxu0 %vm668_vm0, %v17709_v0 }
 0x141   : > { %15392 = vmatprep.mubr.msk.f32.mxu1 %vm668_vm0, %v17449_v39  ;;  %15451 = vmatprep.mubr.msk.f32.mxu0 %vm668_vm0, %v17715_v1  ;;  %v17737_v39 = vld [vmem:[#allocation2 + $0x38] sm:$0xff] }
 0x142   : > { %15553 = vmatpush3.msra.mxu0 %v17417_v5  ;;  %v17741_v5 = vld [vmem:[#allocation2 + $0x40] sm:$0xff] }
 0x143   : > { %15554 = vmatprep.subr.mxu0 %v13285_v4 }
 0x144   : > { %15393 = vmatmul.mubr.msk.f32.vlgmr.msra.gmra.mxu1 %vm668_vm0, %v17451_v40  ;;  %15452 = vmatmul.mubr.msk.f32.gmra.mxu0 %vm668_vm0, %v17725_v6  ;;  %v13212_v40 = vld [vmem:[%s23035_s6 + $0x28] sm:$0xff] }
 0x145   : > { %15497 = vmatpush3.msra.mxu1 %v17505_v3  ;;  %15395 = vmatprep.mubr.msk.f32.mxu1 %vm668_vm0, %v17470_v48  ;;  %v13284_v3 = vld [vmem:[%s23035_s6 + $0xe8] sm:$0xff] }
 0x146   : > { %15454 = vmatprep.mubr.msk.f32.mxu0 %vm668_vm0, %v17737_v39  ;;  %15498 = vmatprep.subr.mxu1 %v13213_v9  ;;  %v17753_v48 = vld [vmem:[#allocation2 + $0x48] sm:$0xff] }
 0x147   : > { %15499 = vmatpush3.msra.mxu1 %v13213_v9  ;;  %15555 = vmatpush3.msra.mxu0 %v13285_v4  ;;  %v18101_v4 = vld [vmem:[#allocation2 + $0x31] sm:$0xff] }
 0x148   : > { %15396 = vmatmul.mubr.msk.f32.gmra.mxu1 %vm668_vm0, %v17472_v49  ;;  %15455 = vmatmul.mubr.msk.f32.gmra.mxu0 %vm668_vm0, %v17741_v5  ;;  %v13211_v49 = vld [vmem:[%s23035_s6 + $0x20] sm:$0xff] }
 0x149   : > { %15398 = vmatprep.mubr.msk.f32.mxu1 %vm668_vm0, %v17491_v61  ;;  %15457 = vmatprep.mubr.msk.f32.mxu0 %vm668_vm0, %v17753_v48  ;;  %v17771_v61 = vld [vmem:[#allocation2 + $0x58] sm:$0xff] }
 0x14a   : > { %15500 = vmatprep.subr.mxu1 %v13212_v40  ;;  %15556 = vmatprep.subr.mxu0 %v13284_v3 }
 0x14b   : > { %15501 = vmatpush3.msra.mxu1 %v13212_v40  ;;  %15557 = vmatpush3.msra.mxu0 %v13284_v3 }
 0x14c   : > { %15399 = vmatmul.mubr.msk.f32.gmra.mxu1 %vm668_vm0, %v17493_v62  ;;  %15458 = vmatmul.mubr.msk.f32.gmra.mxu0 %vm668_vm0, %v17759_v12  ;;  %v17782_v62 = vld [vmem:[%s23035_s6 + $0xb8] sm:$0xff] }
 0x14d   : > { %15401 = vmatprep.mubr.msk.f32.mxu1 %vm668_vm0, %v17514_v10  ;;  %15460 = vmatprep.mubr.msk.f32.mxu0 %vm668_vm0, %v17771_v61  ;;  %v17793_v10 = vld [vmem:[#allocation2 + $0x68] sm:$0xff] }
 0x14e   : > { %15502 = vmatprep.subr.mxu1 %v13211_v49  ;;  %15558 = vmatprep.subr.mxu0 %v13283_v13 }
 0x14f   : > { %15503 = vmatpush3.msra.mxu1 %v13211_v49  ;;  %15559 = vmatpush3.msra.mxu0 %v13283_v13  ;;  %v18120_v49 = vld [vmem:[#allocation2 + $0x41] sm:$0xff] }
 0x150   : > { %15402 = vmatmul.mubr.msk.f32.gmra.mxu1 %vm668_vm0, %v17516_v11  ;;  %15461 = vmatmul.mubr.msk.f32.gmra.mxu0 %vm668_vm0, %v17777_v14  ;;  %v17807_v11 = vld [vmem:[#allocation2 + $0x78] sm:$0xff]  ;;  %v13391_v13 = vld [vmem:[%s23035_s6 + $0x100] sm:$0xff] }
 0x151   : > { %15404 = vmatprep.mubr.msk.f32.mxu1 %vm668_vm0, %v17533_v21  ;;  %15463 = vmatprep.mubr.msk.f32.mxu0 %vm668_vm0, %v17793_v10  ;;  %v17813_v21 = vld [vmem:[#allocation2 + $0x80] sm:$0xff] }
 0x152   : > { %15608 = vmatprep.subr.mxu1 %v17782_v62  ;;  %15664 = vmatprep.subr.mxu0 %v17787_v16 }
 0x154   : > { %15405 = vmatmul.mubr.msk.f32.gmra.mxu1 %vm668_vm0, %v17535_v23  ;;  %15464 = vmatmul.mubr.msk.f32.gmra.mxu0 %vm668_vm0, %v17801_v17  ;;  %v17819_v23 = vld [vmem:[#allocation2 + $0x88] sm:$0xff] }
 0x155   : > { %15407 = vmatprep.mubr.msk.f32.mxu1 %vm668_vm0, %v17551_v32  ;;  %15466 = vmatprep.mubr.msk.f32.mxu0 %vm668_vm0, %v17807_v11  ;;  %v17825_v32 = vld [vmem:[#allocation2 + $0x90] sm:$0xff] }
 0x158   : > { %15408 = vmatmul.mubr.msk.f32.gmra.mxu1 %vm668_vm0, %v17553_v33  ;;  %15467 = vmatmul.mubr.msk.f32.gmra.mxu0 %vm668_vm0, %v17813_v21  ;;  %v17831_v33 = vld [vmem:[#allocation2 + $0x98] sm:$0xff] }
 0x159   : > { %15410 = vmatprep.mubr.msk.f32.mxu1 %vm668_vm0, %v17569_v22  ;;  %15469 = vmatprep.mubr.msk.f32.mxu0 %vm668_vm0, %v17819_v23  ;;  %v17837_v22 = vld [vmem:[#allocation2 + $0xa0] sm:$0xff] }
 0x15c   : > { %15411 = vmatmul.mubr.msk.f32.gmra.mxu1 %vm668_vm0, %v17571_v43  ;;  %15470 = vmatmul.mubr.msk.f32.gmra.mxu0 %vm668_vm0, %v17825_v32  ;;  %v17843_v43 = vld [vmem:[#allocation2 + $0xa8] sm:$0xff] }
 0x15d   : > { %15413 = vmatprep.mubr.msk.f32.mxu1 %vm668_vm0, %v17587_v54  ;;  %15472 = vmatprep.mubr.msk.f32.mxu0 %vm668_vm0, %v17831_v33  ;;  %v17849_v54 = vld [vmem:[#allocation2 + $0xb0] sm:$0xff] }
 0x160   : > { %15414 = vmatmul.mubr.msk.f32.gmra.mxu1 %vm668_vm0, %v17589_v55  ;;  %15473 = vmatmul.mubr.msk.f32.gmra.mxu0 %vm668_vm0, %v17837_v22  ;;  %v17855_v55 = vld [vmem:[#allocation2 + $0xb8] sm:$0xff] }
 0x161   : > { %15416 = vmatprep.mubr.msk.f32.mxu1 %vm668_vm0, %v17605_v7  ;;  %15475 = vmatprep.mubr.msk.f32.mxu0 %vm668_vm0, %v17843_v43  ;;  %v17861_v7 = vld [vmem:[#allocation2 + $0xc0] sm:$0xff] }
 0x164   : > { %15417 = vmatmul.mubr.msk.f32.gmra.mxu1 %vm668_vm0, %v17607_v8  ;;  %15476 = vmatmul.mubr.msk.f32.gmra.mxu0 %vm668_vm0, %v17849_v54  ;;  %v17867_v8 = vld [vmem:[#allocation2 + $0xc8] sm:$0xff] }
 0x165   : > { %15419 = vmatprep.mubr.msk.f32.mxu1 %vm668_vm0, %v17623_v20  ;;  %15478 = vmatprep.mubr.msk.f32.mxu0 %vm668_vm0, %v17855_v55  ;;  %v17885_v20 = vld [vmem:[#allocation2 + $0xe0] sm:$0xff] }
 0x168   : > { %15420 = vmatmul.mubr.msk.f32.gmra.mxu1 %vm668_vm0, %v17625_v24  ;;  %15479 = vmatmul.mubr.msk.f32.gmra.mxu0 %vm668_vm0, %v17861_v7  ;;  %v17891_v24 = vld [vmem:[#allocation2 + $0xe8] sm:$0xff] }
 0x169   : > { %15422 = vmatprep.mubr.msk.f32.mxu1 %vm668_vm0, %v17641_v35  ;;  %15481 = vmatprep.mubr.msk.f32.mxu0 %vm668_vm0, %v17867_v8  ;;  %v13321_v35 = vld [vmem:[%s23035_s6 + $0x50] sm:$0xff] }
 0x16c   : > { %15423 = vmatmul.mubr.msk.f32.gmra.mxu1 %vm668_vm0, %v17643_v36  ;;  %15482 = vmatmul.mubr.msk.f32.gmra.mxu0 %vm668_vm0, %v17873_v18  ;;  %v2973_v36 = vld [vmem:[#allocation2 + $0x10] sm:$0xff] }
 0x16d   : > { %15425 = vmatprep.mubr.msk.f32.mxu1 %vm668_vm0, %v17659_v46  ;;  %15484 = vmatprep.mubr.msk.f32.mxu0 %vm668_vm0, %v17879_v19  ;;  %v3599_v46 = vld [vmem:[#allocation2 + $0x120] sm:$0xff] }
 0x170   : > { %15426 = vmatmul.mubr.msk.f32.gmra.mxu1 %vm668_vm0, %v17661_v47  ;;  %15485 = vmatmul.mubr.msk.f32.gmra.mxu0 %vm668_vm0, %v17885_v20  ;;  %v3990_v47 = vld [vmem:[#allocation2 + $0x9] sm:$0xff] }
 0x171   : > { %15428 = vmatprep.mubr.msk.f32.mxu1 %vm668_vm0, %v17674_v52  ;;  %15487 = vmatprep.mubr.msk.f32.mxu0 %vm668_vm0, %v17891_v24  ;;  %v2359_v52 = vpop.f32.mrf.mxu0 }
 0x174   : > { %15429 = vmatmul.mubr.msk.f32.gmra.mxu1 %vm668_vm0, %v17676_v53  ;;  %15488 = vmatmul.mubr.msk.f32.gmra.mxu0 %vm668_vm0, %v17897_v25  ;;  %v3993_v53 = vld [vmem:[#allocation2 + $0x21] sm:$0xff] }
 0x175   : > { %15431 = vmatprep.mubr.msk.f32.mxu1 %vm668_vm0, %v17687_v58  ;;  %15490 = vmatprep.mubr.msk.f32.mxu0 %vm668_vm0, %v17903_v26  ;;  %v13393_v58 = vld [vmem:[%s23035_s6 + $0x110] sm:$0xff] }
 0x178   : > { %15432 = vmatmul.mubr.msk.f32.gmra.mxu1 %vm668_vm0, %v17689_v57  ;;  %15491 = vmatmul.mubr.msk.f32.gmra.mxu0 %vm668_vm0, %v17909_v27 }
 0x179   : > { %15434 = vmatprep.mubr.msk.f32.mxu1 %vm668_vm0, %v17703_v60  ;;  %15493 = vmatprep.mubr.msk.f32.mxu0 %vm668_vm0, %v17915_v28  ;;  %v18092_v60 = vld [vmem:[#allocation2 + $0x29] sm:$0xff] }
 0x17c   : > { %15435 = vmatmul.mubr.msk.f32.gmra.mxu1 %vm668_vm0, %v17705_v63  ;;  %15494 = vmatmul.mubr.msk.f32.gmra.mxu0 %vm668_vm0, %v17921_v29 }
 0x17d   : > { %15437 = vmatprep.mubr.msk.f32.mxu1 %vm668_vm0, %v2548_v30  ;;  %15560 = vmatprep.mubr.msk.f32.mxu0 %vm668_vm0, %v17715_v1  ;;  %v18177_v30 = vld [vmem:[#allocation2 + $0x79] sm:$0xff] }
 0x180   : > { %15438 = vmatmul.mubr.msk.f32.gmra.mxu1 %vm668_vm0, %v2549_v31  ;;  %15561 = vmatmul.mubr.msk.f32.vlgmr.msra.gmra.mxu0 %vm668_vm0, %v17725_v6 }
 0x181   : > { %15563 = vmatprep.mubr.msk.f32.mxu0 %vm668_vm0, %v17737_v39  ;;  %15504 = vmatprep.mubr.msk.f32.mxu1 %vm668_vm0, %v2972_v34 }
 0x182   : > { %15665 = vmatpush3.msra.mxu0 %v17787_v16 }
 0x183   : > { %15666 = vmatprep.subr.mxu0 %v13321_v35 }
 0x184   : > { %15505 = vmatmul.mubr.msk.f32.vlgmr.msra.gmra.mxu1 %vm668_vm0, %v2973_v36  ;;  %15564 = vmatmul.mubr.msk.f32.gmra.mxu0 %vm668_vm0, %v17741_v5 }
 0x185   : > { %15609 = vmatpush3.msra.mxu1 %v17782_v62  ;;  %15507 = vmatprep.mubr.msk.f32.mxu1 %vm668_vm0, %v17699_v59  ;;  %v18129_v62 = vld [vmem:[#allocation2 + $0x49] sm:$0xff] }
 0x186   : > { %15566 = vmatprep.mubr.msk.f32.mxu0 %vm668_vm0, %v17753_v48  ;;  %15610 = vmatprep.subr.mxu1 %v13325_v37 }
 0x187   : > { %15611 = vmatpush3.msra.mxu1 %v13325_v37  ;;  %15667 = vmatpush3.msra.mxu0 %v13321_v35  ;;  %v18187_v37 = vld [vmem:[#allocation2 + $0x81] sm:$0xff] }
 0x188   : > { %15508 = vmatmul.mubr.msk.f32.gmra.mxu1 %vm668_vm0, %v17709_v0  ;;  %15567 = vmatmul.mubr.msk.f32.gmra.mxu0 %vm668_vm0, %v17759_v12 }
 0x189   : > { %15510 = vmatprep.mubr.msk.f32.mxu1 %vm668_vm0, %v17715_v1  ;;  %15569 = vmatprep.mubr.msk.f32.mxu0 %vm668_vm0, %v17771_v61 }
 0x18a   : > { %15612 = vmatprep.subr.mxu1 %v13324_v38  ;;  %15668 = vmatprep.subr.mxu0 %v13320_v41 }
 0x18b   : > { %15613 = vmatpush3.msra.mxu1 %v13324_v38  ;;  %15669 = vmatpush3.msra.mxu0 %v13320_v41 }
 0x18c   : > { %15511 = vmatmul.mubr.msk.f32.gmra.mxu1 %vm668_vm0, %v17725_v6  ;;  %15570 = vmatmul.mubr.msk.f32.gmra.mxu0 %vm668_vm0, %v17777_v14  ;;  %v13392_v6 = vld [vmem:[%s23035_s6 + $0x108] sm:$0xff] }
 0x18d   : > { %15513 = vmatprep.mubr.msk.f32.mxu1 %vm668_vm0, %v17737_v39  ;;  %15572 = vmatprep.mubr.msk.f32.mxu0 %vm668_vm0, %v17793_v10 }
 0x18e   : > { %15614 = vmatprep.subr.mxu1 %v13323_v42  ;;  %15670 = vmatprep.subr.mxu0 %v13319_v15 }
 0x18f   : > { %15615 = vmatpush3.msra.mxu1 %v13323_v42  ;;  %15671 = vmatpush3.msra.mxu0 %v13319_v15  ;;  %v18193_v42 = vld [vmem:[#allocation2 + $0x89] sm:$0xff] }
 0x190   : > { %15514 = vmatmul.mubr.msk.f32.gmra.mxu1 %vm668_vm0, %v17741_v5  ;;  %15573 = vmatmul.mubr.msk.f32.gmra.mxu0 %vm668_vm0, %v17801_v17  ;;  %v18110_v5 = vld [vmem:[#allocation2 + $0x39] sm:$0xff] }
 0x191   : > { %15516 = vmatprep.mubr.msk.f32.mxu1 %vm668_vm0, %v17753_v48  ;;  %15575 = vmatprep.mubr.msk.f32.mxu0 %vm668_vm0, %v17807_v11 }
 0x192   : > { %15720 = vmatprep.subr.mxu1 %v17982_v44 }
 0x194   : > { %15517 = vmatmul.mubr.msk.f32.gmra.mxu1 %vm668_vm0, %v17759_v12  ;;  %15576 = vmatmul.mubr.msk.f32.gmra.mxu0 %vm668_vm0, %v17813_v21 }
 0x195   : > { %15519 = vmatprep.mubr.msk.f32.mxu1 %vm668_vm0, %v17771_v61  ;;  %15578 = vmatprep.mubr.msk.f32.mxu0 %vm668_vm0, %v17819_v23 }
 0x198   : > { %15520 = vmatmul.mubr.msk.f32.gmra.mxu1 %vm668_vm0, %v17777_v14  ;;  %15579 = vmatmul.mubr.msk.f32.gmra.mxu0 %vm668_vm0, %v17825_v32 }
 0x199   : > { %15522 = vmatprep.mubr.msk.f32.mxu1 %vm668_vm0, %v17793_v10  ;;  %15581 = vmatprep.mubr.msk.f32.mxu0 %vm668_vm0, %v17831_v33 }
 0x19c   : > { %15523 = vmatmul.mubr.msk.f32.gmra.mxu1 %vm668_vm0, %v17801_v17  ;;  %15582 = vmatmul.mubr.msk.f32.gmra.mxu0 %vm668_vm0, %v17837_v22 }
 0x19d   : > { %15525 = vmatprep.mubr.msk.f32.mxu1 %vm668_vm0, %v17807_v11  ;;  %15584 = vmatprep.mubr.msk.f32.mxu0 %vm668_vm0, %v17843_v43 }
 0x1a0   : > { %15526 = vmatmul.mubr.msk.f32.gmra.mxu1 %vm668_vm0, %v17813_v21  ;;  %15585 = vmatmul.mubr.msk.f32.gmra.mxu0 %vm668_vm0, %v17849_v54  ;;  %v18139_v21 = vld [vmem:[#allocation2 + $0x51] sm:$0xff] }
 0x1a1   : > { %15528 = vmatprep.mubr.msk.f32.mxu1 %vm668_vm0, %v17819_v23  ;;  %15587 = vmatprep.mubr.msk.f32.mxu0 %vm668_vm0, %v17855_v55 }
 0x1a4   : > { %15529 = vmatmul.mubr.msk.f32.gmra.mxu1 %vm668_vm0, %v17825_v32  ;;  %15588 = vmatmul.mubr.msk.f32.gmra.mxu0 %vm668_vm0, %v17861_v7 }
 0x1a5   : > { %15531 = vmatprep.mubr.msk.f32.mxu1 %vm668_vm0, %v17831_v33  ;;  %15590 = vmatprep.mubr.msk.f32.mxu0 %vm668_vm0, %v17867_v8  ;;  %v18145_v33 = vld [vmem:[#allocation2 + $0x59] sm:$0xff] }
 0x1a8   : > { %15532 = vmatmul.mubr.msk.f32.gmra.mxu1 %vm668_vm0, %v17837_v22  ;;  %15591 = vmatmul.mubr.msk.f32.gmra.mxu0 %vm668_vm0, %v17873_v18 }
 0x1a9   : > { %15534 = vmatprep.mubr.msk.f32.mxu1 %vm668_vm0, %v17843_v43  ;;  %15593 = vmatprep.mubr.msk.f32.mxu0 %vm668_vm0, %v17879_v19 }
 0x1ac   : > { %15535 = vmatmul.mubr.msk.f32.gmra.mxu1 %vm668_vm0, %v17849_v54  ;;  %15594 = vmatmul.mubr.msk.f32.gmra.mxu0 %vm668_vm0, %v17885_v20 }
 0x1ad   : > { %15537 = vmatprep.mubr.msk.f32.mxu1 %vm668_vm0, %v17855_v55  ;;  %15596 = vmatprep.mubr.msk.f32.mxu0 %vm668_vm0, %v17891_v24 }
 0x1b0   : > { %15538 = vmatmul.mubr.msk.f32.gmra.mxu1 %vm668_vm0, %v17861_v7  ;;  %15597 = vmatmul.mubr.msk.f32.gmra.mxu0 %vm668_vm0, %v17897_v25  ;;  %v18155_v7 = vld [vmem:[#allocation2 + $0x61] sm:$0xff] }
 0x1b1   : > { %15540 = vmatprep.mubr.msk.f32.mxu1 %vm668_vm0, %v17867_v8  ;;  %15599 = vmatprep.mubr.msk.f32.mxu0 %vm668_vm0, %v17903_v26 }
 0x1b4   : > { %15541 = vmatmul.mubr.msk.f32.gmra.mxu1 %vm668_vm0, %v17873_v18  ;;  %15600 = vmatmul.mubr.msk.f32.gmra.mxu0 %vm668_vm0, %v17909_v27 }
 0x1b5   : > { %15543 = vmatprep.mubr.msk.f32.mxu1 %vm668_vm0, %v17879_v19  ;;  %15602 = vmatprep.mubr.msk.f32.mxu0 %vm668_vm0, %v17915_v28  ;;  %v18161_v19 = vld [vmem:[#allocation2 + $0x69] sm:$0xff] }
 0x1b8   : > { %15544 = vmatmul.mubr.msk.f32.gmra.mxu1 %vm668_vm0, %v17885_v20  ;;  %15603 = vmatmul.mubr.msk.f32.gmra.mxu0 %vm668_vm0, %v17921_v29 }
 0x1b9   : > { %15546 = vmatprep.mubr.msk.f32.mxu1 %vm668_vm0, %v17891_v24  ;;  %15605 = vmatprep.mubr.msk.f32.mxu0 %vm668_vm0, %v3598_v45 }
 0x1bc   : > { %15547 = vmatmul.mubr.msk.f32.gmra.mxu1 %vm668_vm0, %v17897_v25  ;;  %15606 = vmatmul.mubr.msk.f32.gmra.mxu0 %vm668_vm0, %v3599_v46 }
 0x1bd   : > { %15549 = vmatprep.mubr.msk.f32.mxu1 %vm668_vm0, %v17903_v26  ;;  %15672 = vmatprep.mubr.msk.f32.mxu0 %vm668_vm0, %v3990_v47  ;;  %v18203_v47 = vld [vmem:[#allocation2 + $0x91] sm:$0xff] }
 0x1c0   : > { %15550 = vmatmul.mubr.msk.f32.gmra.mxu1 %vm668_vm0, %v17909_v27  ;;  %15673 = vmatmul.mubr.msk.f32.vlgmr.msra.gmra.mxu0 %vm668_vm0, %v3991_v51  ;;  %v18171_v27 = vld [vmem:[#allocation2 + $0x71] sm:$0xff] }
 0x1c1   : > { %15616 = vmatprep.mubr.msk.f32.mxu1 %vm668_vm0, %v3992_v56  ;;  %15675 = vmatprep.mubr.msk.f32.mxu0 %vm668_vm0, %v3992_v56 }
 0x1c4   : > { %v18088_v57 = vpop.f32.mrf.mxu1  ;;  %v15341_v59 = vpop.f32.mrf.mxu0  ;;  %15617 = vmatmul.mubr.msk.f32.vlgmr.msra.gmra.mxu1 %vm668_vm0, %v3993_v53  ;;  %15676 = vmatmul.mubr.msk.f32.gmra.mxu0 %vm668_vm0, %v3993_v53 }
 0x1c5   : > { %15721 = vmatpush3.msra.mxu1 %v17982_v44  ;;  %15619 = vmatprep.mubr.msk.f32.mxu1 %vm668_vm0, %v18092_v60 }
 0x1c6   : > { %15678 = vmatprep.mubr.msk.f32.mxu0 %vm668_vm0, %v18092_v60  ;;  %v2128_v63 = vpop.f32.mrf.mxu1  ;;  %v2369_v0 = vpop.f32.mrf.mxu0  ;;  %15722 = vmatprep.subr.mxu1 %v13393_v58 }
 0x1c7   : > { %v18099_v1 = vadd.f32 %v2359_v52, %v2128_v63  ;;  %15723 = vmatpush3.msra.mxu1 %v13393_v58  ;;  %v18209_v52 = vld [vmem:[#allocation2 + $0x99] sm:$0xff] }
 0x1c8   : > { %v15285_v9 = vpop.f32.mrf.mxu1  ;;  %v15344_v39 = vpop.f32.mrf.mxu0  ;;  %15620 = vmatmul.mubr.msk.f32.gmra.mxu1 %vm668_vm0, %v18101_v4  ;;  %15679 = vmatmul.mubr.msk.f32.gmra.mxu0 %vm668_vm0, %v18101_v4 }
 0x1c9   : > { %v18112_v40 = vadd.f32 %v15341_v59, %v15285_v9  ;;  %15622 = vmatprep.mubr.msk.f32.mxu1 %vm668_vm0, %v18110_v5  ;;  %15681 = vmatprep.mubr.msk.f32.mxu0 %vm668_vm0, %v18110_v5 }
 0x1ca   : > { %v2138_v3 = vpop.f32.mrf.mxu1  ;;  %v2379_v48 = vpop.f32.mrf.mxu0  ;;  %15724 = vmatprep.subr.mxu1 %v13392_v6 }
 0x1cb   : > { %v18118_v12 = vadd.f32 %v2369_v0, %v2138_v3  ;;  %15725 = vmatpush3.msra.mxu1 %v13392_v6  ;;  %v18221_v0 = vld [vmem:[#allocation2 + $0xa1] sm:$0xff] }
 0x1cc   : > { %v15288_v61 = vpop.f32.mrf.mxu1  ;;  %v15347_v14 = vpop.f32.mrf.mxu0  ;;  %15623 = vmatmul.mubr.msk.f32.gmra.mxu1 %vm668_vm0, %v18120_v49  ;;  %15682 = vmatmul.mubr.msk.f32.gmra.mxu0 %vm668_vm0, %v18120_v49 }
 0x1cd   : > { %v18131_v16 = vadd.f32 %v15344_v39, %v15288_v61  ;;  %15625 = vmatprep.mubr.msk.f32.mxu1 %vm668_vm0, %v18129_v62  ;;  %15684 = vmatprep.mubr.msk.f32.mxu0 %vm668_vm0, %v18129_v62  ;;  %v18227_v39 = vld [vmem:[#allocation2 + $0xa9] sm:$0xff]  ;;  %v18239_v61 = vld [vmem:[#allocation2 + $0xb1] sm:$0xff] }
 0x1ce   : > { %v2148_v10 = vpop.f32.mrf.mxu1  ;;  %v2389_v17 = vpop.f32.mrf.mxu0  ;;  %15726 = vmatprep.subr.mxu1 %v13391_v13 }
 0x1cf   : > { %v18137_v11 = vadd.f32 %v2379_v48, %v2148_v10  ;;  %15727 = vmatpush3.msra.mxu1 %v13391_v13 }
 0x1d0   : > { %v15291_v23 = vpop.f32.mrf.mxu1  ;;  %v15350_v32 = vpop.f32.mrf.mxu0  ;;  %15626 = vmatmul.mubr.msk.f32.gmra.mxu1 %vm668_vm0, %v18139_v21  ;;  %15685 = vmatmul.mubr.msk.f32.gmra.mxu0 %vm668_vm0, %v18139_v21 }
 0x1d1   : > { %v18147_v22 = vadd.f32 %v15347_v14, %v15291_v23  ;;  %15628 = vmatprep.mubr.msk.f32.mxu1 %vm668_vm0, %v18145_v33  ;;  %15687 = vmatprep.mubr.msk.f32.mxu0 %vm668_vm0, %v18145_v33 }
 0x1d2   : > { %v2158_v43 = vpop.f32.mrf.mxu1  ;;  %v2399_v54 = vpop.f32.mrf.mxu0 }
 0x1d3   : > { %v18153_v55 = vadd.f32 %v2389_v17, %v2158_v43  ;;  %v18245_v17 = vld [vmem:[#allocation2 + $0xb9] sm:$0xff] }
 0x1d4   : > { %v15294_v8 = vpop.f32.mrf.mxu1  ;;  %v15353_v18 = vpop.f32.mrf.mxu0  ;;  %15629 = vmatmul.mubr.msk.f32.gmra.mxu1 %vm668_vm0, %v18155_v7  ;;  %15688 = vmatmul.mubr.msk.f32.gmra.mxu0 %vm668_vm0, %v18155_v7 }
 0x1d5   : > { %v18163_v20 = vadd.f32 %v15350_v32, %v15294_v8  ;;  %15631 = vmatprep.mubr.msk.f32.mxu1 %vm668_vm0, %v18161_v19  ;;  %15690 = vmatprep.mubr.msk.f32.mxu0 %vm668_vm0, %v18161_v19 }
 0x1d6   : > { %v2168_v24 = vpop.f32.mrf.mxu1  ;;  %v2409_v25 = vpop.f32.mrf.mxu0 }
 0x1d7   : > { %v18169_v26 = vadd.f32 %v2399_v54, %v2168_v24  ;;  %v18257_v54 = vld [vmem:[#allocation2 + $0xc1] sm:$0xff]  ;;  %v18263_v24 = vld [vmem:[#allocation2 + $0xc9] sm:$0xff] }
 0x1d8   : > { %v15297_v28 = vpop.f32.mrf.mxu1  ;;  %v15356_v29 = vpop.f32.mrf.mxu0  ;;  %15632 = vmatmul.mubr.msk.f32.gmra.mxu1 %vm668_vm0, %v18171_v27  ;;  %15691 = vmatmul.mubr.msk.f32.gmra.mxu0 %vm668_vm0, %v18171_v27 }
 0x1d9   : > { %v18179_v31 = vadd.f32 %v15353_v18, %v15297_v28  ;;  %15634 = vmatprep.mubr.msk.f32.mxu1 %vm668_vm0, %v18177_v30  ;;  %15693 = vmatprep.mubr.msk.f32.mxu0 %vm668_vm0, %v18177_v30 }
 0x1da   : > { %v2178_v34 = vpop.f32.mrf.mxu1  ;;  %v2419_v35 = vpop.f32.mrf.mxu0 }
 0x1db   : > { %v18185_v36 = vadd.f32 %v2409_v25, %v2178_v34  ;;  %v18275_v34 = vld [vmem:[#allocation2 + $0xd1] sm:$0xff] }
 0x1dc   : > { %v15300_v38 = vpop.f32.mrf.mxu1  ;;  %v15359_v41 = vpop.f32.mrf.mxu0  ;;  %15635 = vmatmul.mubr.msk.f32.gmra.mxu1 %vm668_vm0, %v18187_v37  ;;  %15694 = vmatmul.mubr.msk.f32.gmra.mxu0 %vm668_vm0, %v18187_v37 }
 0x1dd   : > { %v18195_v15 = vadd.f32 %v15356_v29, %v15300_v38  ;;  %15637 = vmatprep.mubr.msk.f32.mxu1 %vm668_vm0, %v18193_v42  ;;  %15696 = vmatprep.mubr.msk.f32.mxu0 %vm668_vm0, %v18193_v42 }
 0x1de   : > { %v2188_v44 = vpop.f32.mrf.mxu1  ;;  %v2429_v45 = vpop.f32.mrf.mxu0 }
 0x1df   : > { %v18201_v46 = vadd.f32 %v2419_v35, %v2188_v44 }
 0x1e0   : > { %v15303_v51 = vpop.f32.mrf.mxu1  ;;  %v15362_v56 = vpop.f32.mrf.mxu0  ;;  %15638 = vmatmul.mubr.msk.f32.gmra.mxu1 %vm668_vm0, %v18203_v47  ;;  %15697 = vmatmul.mubr.msk.f32.gmra.mxu0 %vm668_vm0, %v18203_v47 }
 0x1e1   : > { %v18211_v53 = vadd.f32 %v15359_v41, %v15303_v51  ;;  %15640 = vmatprep.mubr.msk.f32.mxu1 %vm668_vm0, %v18209_v52  ;;  %15699 = vmatprep.mubr.msk.f32.mxu0 %vm668_vm0, %v18209_v52  ;;  %v18281_v41 = vld [vmem:[#allocation2 + $0xd9] sm:$0xff] }
 0x1e2   : > { %v2198_v58 = vpop.f32.mrf.mxu1  ;;  %v18217_v59 = vpop.f32.mrf.mxu0 }
 0x1e3   : > { %23123 = vst [vmem:[#allocation3_spill] sm:$0xff] %v18217_v59  ;;  %v18219_v63 = vadd.f32 %v2429_v45, %v2198_v58 }
 0x1e4   : > { %v15306_v6 = vpop.f32.mrf.mxu1  ;;  %v15365_v9 = vpop.f32.mrf.mxu0  ;;  %15641 = vmatmul.mubr.msk.f32.gmra.mxu1 %vm668_vm0, %v18221_v0  ;;  %15700 = vmatmul.mubr.msk.f32.gmra.mxu0 %vm668_vm0, %v18221_v0 }
 0x1e5   : > { %v18229_v3 = vadd.f32 %v15362_v56, %v15306_v6  ;;  %15643 = vmatprep.mubr.msk.f32.mxu1 %vm668_vm0, %v18227_v39  ;;  %15702 = vmatprep.mubr.msk.f32.mxu0 %vm668_vm0, %v18227_v39  ;;  %v18293_v56 = vld [vmem:[#allocation2 + $0xe1] sm:$0xff] }
 0x1e6   : > { %v18235_v48 = vpop.f32.mrf.mxu1  ;;  %v18237_v13 = vpop.f32.mrf.mxu0 }
 0x1e7   : > { %23124 = vst [vmem:[#allocation4_spill] sm:$0xff] %v18235_v48  ;;  %23125 = vst [vmem:[#allocation5_spill] sm:$0xff] %v18237_v13 }
 0x1e8   : > { %v15309_v14 = vpop.f32.mrf.mxu1  ;;  %v15368_v10 = vpop.f32.mrf.mxu0  ;;  %15644 = vmatmul.mubr.msk.f32.gmra.mxu1 %vm668_vm0, %v18239_v61  ;;  %15703 = vmatmul.mubr.msk.f32.gmra.mxu0 %vm668_vm0, %v18239_v61 }
 0x1e9   : > { %v18247_v23 = vadd.f32 %v15365_v9, %v15309_v14  ;;  %15646 = vmatprep.mubr.msk.f32.mxu1 %vm668_vm0, %v18245_v17  ;;  %15705 = vmatprep.mubr.msk.f32.mxu0 %vm668_vm0, %v18245_v17  ;;  %v18299_v9 = vld [vmem:[#allocation2 + $0xe9] sm:$0xff] }
 0x1ea   : > { %v18253_v32 = vpop.f32.mrf.mxu1  ;;  %v18255_v43 = vpop.f32.mrf.mxu0 }
 0x1eb   : > { %23126 = vst [vmem:[#allocation6_spill] sm:$0xff] %v18253_v32  ;;  %23127 = vst [vmem:[#allocation7_spill] sm:$0xff] %v18255_v43  ;;  %v18345_v43 = vld [vmem:[#allocation2 + $0x111] sm:$0xff] }
 0x1ec   : > { %v15312_v8 = vpop.f32.mrf.mxu1  ;;  %v15371_v18 = vpop.f32.mrf.mxu0  ;;  %15647 = vmatmul.mubr.msk.f32.gmra.mxu1 %vm668_vm0, %v18257_v54  ;;  %15706 = vmatmul.mubr.msk.f32.gmra.mxu0 %vm668_vm0, %v18257_v54 }
 0x1ed   : > { %v18265_v25 = vadd.f32 %v15368_v10, %v15312_v8  ;;  %15649 = vmatprep.mubr.msk.f32.mxu1 %vm668_vm0, %v18263_v24  ;;  %15708 = vmatprep.mubr.msk.f32.mxu0 %vm668_vm0, %v18263_v24 }
 0x1ee   : > { %v18271_v28 = vpop.f32.mrf.mxu1  ;;  %v18273_v29 = vpop.f32.mrf.mxu0 }
 0x1ef   : > { %23128 = vst [vmem:[#allocation8_spill] sm:$0xff] %v18271_v28  ;;  %23129 = vst [vmem:[#allocation9_spill] sm:$0xff] %v18273_v29 }
 0x1f0   : > { %v15315_v35 = vpop.f32.mrf.mxu1  ;;  %v15374_v38 = vpop.f32.mrf.mxu0  ;;  %15650 = vmatmul.mubr.msk.f32.gmra.mxu1 %vm668_vm0, %v18275_v34  ;;  %15709 = vmatmul.mubr.msk.f32.gmra.mxu0 %vm668_vm0, %v18275_v34 }
 0x1f1   : > { %v18283_v44 = vadd.f32 %v15371_v18, %v15315_v35  ;;  %15652 = vmatprep.mubr.msk.f32.mxu1 %vm668_vm0, %v18281_v41  ;;  %15711 = vmatprep.mubr.msk.f32.mxu0 %vm668_vm0, %v18281_v41  ;;  %v18311_v18 = vld [vmem:[#allocation2 + $0xf1] sm:$0xff] }
 0x1f2   : > { %v18289_v45 = vpop.f32.mrf.mxu1  ;;  %v18291_v51 = vpop.f32.mrf.mxu0 }
 0x1f3   : > { %23130 = vst [vmem:[#allocation10_spill] sm:$0xff] %v18289_v45  ;;  %23131 = vst [vmem:[#allocation11_spill] sm:$0xff] %v18291_v51 }
 0x1f4   : > { %v15318_v58 = vpop.f32.mrf.mxu1  ;;  %v15377_v6 = vpop.f32.mrf.mxu0  ;;  %15653 = vmatmul.mubr.msk.f32.gmra.mxu1 %vm668_vm0, %v18293_v56  ;;  %15712 = vmatmul.mubr.msk.f32.gmra.mxu0 %vm668_vm0, %v18293_v56 }
 0x1f5   : > { %v18301_v14 = vadd.f32 %v15374_v38, %v15318_v58  ;;  %15655 = vmatprep.mubr.msk.f32.mxu1 %vm668_vm0, %v18299_v9  ;;  %15714 = vmatprep.mubr.msk.f32.mxu0 %vm668_vm0, %v18299_v9  ;;  %v18317_v38 = vld [vmem:[#allocation2 + $0xf9] sm:$0xff] }
 0x1f6   : > { %v18307_v10 = vpop.f32.mrf.mxu1  ;;  %v18309_v8 = vpop.f32.mrf.mxu0 }
 0x1f7   : > { %23132 = vst [vmem:[#allocation12_spill] sm:$0xff] %v18307_v10  ;;  %23133 = vst [vmem:[#allocation13_spill] sm:$0xff] %v18309_v8  ;;  %v18329_v10 = vld [vmem:[#allocation2 + $0x101] sm:$0xff] }
 0x1f8   : > { %v15321_v35 = vpop.f32.mrf.mxu1  ;;  %v15380_v2 = vpop.f32.mrf.mxu0  ;;  %15656 = vmatmul.mubr.msk.f32.gmra.mxu1 %vm668_vm0, %v18311_v18  ;;  %15715 = vmatmul.mubr.msk.f32.gmra.mxu0 %vm668_vm0, %v18311_v18 }
 0x1f9   : > { %v18319_v58 = vadd.f32 %v15377_v6, %v15321_v35  ;;  %15658 = vmatprep.mubr.msk.f32.mxu1 %vm668_vm0, %v18317_v38  ;;  %15717 = vmatprep.mubr.msk.f32.mxu0 %vm668_vm0, %v18317_v38  ;;  %v18335_v6 = vld [vmem:[#allocation2 + $0x109] sm:$0xff] }
 0x1fa   : > { %v18325_v8 = vpop.f32.mrf.mxu1  ;;  %v18327_v51 = vpop.f32.mrf.mxu0 }
 0x1fb   : > { %23134 = vst [vmem:[#allocation14_spill] sm:$0xff] %v18325_v8  ;;  %23135 = vst [vmem:[#allocation15_spill] sm:$0xff] %v18327_v51 }
 0x1fc   : > { %v15324_v29 = vpop.f32.mrf.mxu1  ;;  %v15383_v45 = vpop.f32.mrf.mxu0  ;;  %15659 = vmatmul.mubr.msk.f32.gmra.mxu1 %vm668_vm0, %v18329_v10  ;;  %15718 = vmatmul.mubr.msk.f32.gmra.mxu0 %vm668_vm0, %v18329_v10 }
 0x1fd   : > { %v18337_v35 = vadd.f32 %v15380_v2, %v15324_v29  ;;  %15661 = vmatprep.mubr.msk.f32.mxu1 %vm668_vm0, %v18335_v6 }
 0x1fe   : > { %v18341_v8 = vpop.f32.mrf.mxu1  ;;  %v18343_v51 = vpop.f32.mrf.mxu0 }
 0x1ff   : > { %23136 = vst [vmem:[#allocation16_spill] sm:$0xff] %v18341_v8  ;;  %23137 = vst [vmem:[#allocation17_spill] sm:$0xff] %v18343_v51  ;;  %v2365_v51 = vadd.f32 %v18075_v50, %v18088_v57 }
 0x200   : > { %v15327_v28 = vpop.f32.mrf.mxu1  ;;  %v18347_v13 = vpop.f32.mrf.mxu0  ;;  %15662 = vmatmul.mubr.msk.f32.gmra.mxu1 %vm668_vm0, %v18345_v43 }
 0x201   : > { %v18351_v32 = vadd.f32 %v15383_v45, %v15327_v28  ;;  %15728 = vmatprep.mubr.msk.f32.mxu1 %vm668_vm0, %v18092_v60 }
 0x202   : > { %v18355_v2 = vpop.f32.mrf.mxu1  ;;  %v18357_v29 = vpop.f32.mrf.mxu0 }
 0x203   : > { %23138 = vst [vmem:[#allocation18_spill] sm:$0xff] %v18355_v2  ;;  %23139 = vst [vmem:[#allocation19_spill] sm:$0xff] %v18357_v29 }
 0x204   : > { %v15394_v8 = vpop.f32.mrf.mxu1  ;;  %v18361_v59 = vpop.f32.mrf.mxu0  ;;  %15729 = vmatmul.mubr.msk.f32.vlgmr.msra.gmra.mxu1 %vm668_vm0, %v18101_v4 }
 0x205   : > { %v18365_v48 = vadd.f32 %v15394_v8, %v2365_v51  ;;  %15731 = vmatprep.mubr.msk.f32.mxu1 %vm668_vm0, %v18110_v5 }
 0x206   : > { %v2717_v28 = vpop.f32.mrf.mxu1  ;;  %v18369_v60 = vpop.f32.mrf.mxu0 }
 0x207   : > { %v18372_v45 = vadd.f32 %v2717_v28, %v18099_v1 }
 0x208   : > { %v15397_v2 = vpop.f32.mrf.mxu1  ;;  %v18374_v29 = vpop.f32.mrf.mxu0  ;;  %15732 = vmatmul.mubr.msk.f32.gmra.mxu1 %vm668_vm0, %v18120_v49 }
 0x209   : > { %v18379_v50 = vadd.f32 %v15397_v2, %v18112_v40  ;;  %15734 = vmatprep.mubr.msk.f32.mxu1 %vm668_vm0, %v18129_v62 }
 0x20a   : > { %v2727_v57 = vpop.f32.mrf.mxu1  ;;  %v18383_v4 = vpop.f32.mrf.mxu0 }
 0x20b   : > { %v18386_v5 = vadd.f32 %v2727_v57, %v18118_v12 }
 0x20c   : > { %v15400_v1 = vpop.f32.mrf.mxu1  ;;  %v18388_v51 = vpop.f32.mrf.mxu0  ;;  %15735 = vmatmul.mubr.msk.f32.gmra.mxu1 %vm668_vm0, %v18139_v21 }
 0x20d   : > { %v18393_v49 = vadd.f32 %v15400_v1, %v18131_v16  ;;  %15737 = vmatprep.mubr.msk.f32.mxu1 %vm668_vm0, %v18145_v33 }
 0x20e   : > { %v2737_v40 = vpop.f32.mrf.mxu1  ;;  %v18397_v62 = vpop.f32.mrf.mxu0 }
 0x20f   : > { %v18400_v8 = vadd.f32 %v2737_v40, %v18137_v11 }
 0x210   : > { %v15403_v12 = vpop.f32.mrf.mxu1  ;;  %v18402_v2 = vpop.f32.mrf.mxu0  ;;  %15738 = vmatmul.mubr.msk.f32.gmra.mxu1 %vm668_vm0, %v18155_v7 }
 0x211   : > { %v18407_v21 = vadd.f32 %v15403_v12, %v18147_v22  ;;  %15740 = vmatprep.mubr.msk.f32.mxu1 %vm668_vm0, %v18161_v19 }
 0x212   : > { %v2747_v16 = vpop.f32.mrf.mxu1  ;;  %v18411_v33 = vpop.f32.mrf.mxu0 }
 0x213   : > { %23140 = vst [vmem:[#allocation20_spill] sm:$0xff] %v18411_v33  ;;  %v18414_v28 = vadd.f32 %v2747_v16, %v18153_v55  ;;  %v23259_v33 = vld [vmem:[#allocation12_spill] sm:$0xff] }
 0x214   : > { %v15406_v11 = vpop.f32.mrf.mxu1  ;;  %v18416_v57 = vpop.f32.mrf.mxu0  ;;  %15741 = vmatmul.mubr.msk.f32.gmra.mxu1 %vm668_vm0, %v18171_v27 }
 0x215   : > { %v18421_v7 = vadd.f32 %v15406_v11, %v18163_v20  ;;  %15743 = vmatprep.mubr.msk.f32.mxu1 %vm668_vm0, %v18177_v30 }
 0x216   : > { %v2757_v22 = vpop.f32.mrf.mxu1  ;;  %v18425_v19 = vpop.f32.mrf.mxu0 }
 0x217   : > { %23141 = vst [vmem:[#allocation21_spill] sm:$0xff] %v18425_v19  ;;  %v18428_v1 = vadd.f32 %v2757_v22, %v18169_v26 }
 0x218   : > { %v15409_v55 = vpop.f32.mrf.mxu1  ;;  %v18430_v40 = vpop.f32.mrf.mxu0  ;;  %15744 = vmatmul.mubr.msk.f32.gmra.mxu1 %vm668_vm0, %v18187_v37 }
 0x219   : > { %v18435_v27 = vadd.f32 %v15409_v55, %v18179_v31  ;;  %15746 = vmatprep.mubr.msk.f32.mxu1 %vm668_vm0, %v18193_v42 }
 0x21a   : > { %v2767_v20 = vpop.f32.mrf.mxu1  ;;  %v18439_v30 = vpop.f32.mrf.mxu0 }
 0x21b   : > { %23142 = vst [vmem:[#allocation22_spill] sm:$0xff] %v18439_v30  ;;  %v18442_v12 = vadd.f32 %v2767_v20, %v18185_v36 }
 0x21c   : > { %v15412_v26 = vpop.f32.mrf.mxu1  ;;  %v18444_v16 = vpop.f32.mrf.mxu0  ;;  %15747 = vmatmul.mubr.msk.f32.gmra.mxu1 %vm668_vm0, %v18203_v47 }
 0x21d   : > { %v18449_v37 = vadd.f32 %v15412_v26, %v18195_v15  ;;  %15749 = vmatprep.mubr.msk.f32.mxu1 %vm668_vm0, %v18209_v52 }
 0x21e   : > { %v2777_v31 = vpop.f32.mrf.mxu1  ;;  %v18453_v42 = vpop.f32.mrf.mxu0 }
 0x21f   : > { %23143 = vst [vmem:[#allocation23_spill] sm:$0xff] %v18453_v42  ;;  %v18456_v11 = vadd.f32 %v2777_v31, %v18201_v46 }
 0x220   : > { %v15415_v36 = vpop.f32.mrf.mxu1  ;;  %v18458_v22 = vpop.f32.mrf.mxu0  ;;  %15750 = vmatmul.mubr.msk.f32.gmra.mxu1 %vm668_vm0, %v18221_v0 }
 0x221   : > { %v18463_v47 = vadd.f32 %v15415_v36, %v18211_v53  ;;  %15752 = vmatprep.mubr.msk.f32.mxu1 %vm668_vm0, %v18227_v39 }
 0x222   : > { %v2787_v15 = vpop.f32.mrf.mxu1  ;;  %v18467_v52 = vpop.f32.mrf.mxu0 }
 0x223   : > { %23144 = vst [vmem:[#allocation24_spill] sm:$0xff] %v18467_v52  ;;  %v18470_v55 = vadd.f32 %v2787_v15, %v18219_v63 }
 0x224   : > { %v15418_v46 = vpop.f32.mrf.mxu1  ;;  %v18472_v20 = vpop.f32.mrf.mxu0  ;;  %15753 = vmatmul.mubr.msk.f32.gmra.mxu1 %vm668_vm0, %v18239_v61 }
 0x225   : > { %v18477_v0 = vadd.f32 %v15418_v46, %v18229_v3  ;;  %15755 = vmatprep.mubr.msk.f32.mxu1 %vm668_vm0, %v18245_v17 }
 0x226   : > { %v18481_v53 = vpop.f32.mrf.mxu1  ;;  %v18483_v39 = vpop.f32.mrf.mxu0 }
 0x227   : > { %23145 = vst [vmem:[#allocation25_spill] sm:$0xff] %v18483_v39 }
 0x228   : > { %v15421_v26 = vpop.f32.mrf.mxu1  ;;  %v18485_v31 = vpop.f32.mrf.mxu0  ;;  %15756 = vmatmul.mubr.msk.f32.gmra.mxu1 %vm668_vm0, %v18257_v54 }
 0x229   : > { %v18490_v63 = vadd.f32 %v15421_v26, %v18247_v23  ;;  %15758 = vmatprep.mubr.msk.f32.mxu1 %vm668_vm0, %v18263_v24 }
 0x22a   : > { %v18494_v3 = vpop.f32.mrf.mxu1  ;;  %v18496_v61 = vpop.f32.mrf.mxu0 }
 0x22b   : > { %23146 = vst [vmem:[#allocation26_spill] sm:$0xff] %v18494_v3  ;;  %23147 = vst [vmem:[#allocation27_spill] sm:$0xff] %v18496_v61 }
 0x22c   : > { %v15424_v17 = vpop.f32.mrf.mxu1  ;;  %v18498_v36 = vpop.f32.mrf.mxu0  ;;  %15759 = vmatmul.mubr.msk.f32.gmra.mxu1 %vm668_vm0, %v18275_v34 }
 0x22d   : > { %v18503_v15 = vadd.f32 %v15424_v17, %v18265_v25  ;;  %15761 = vmatprep.mubr.msk.f32.mxu1 %vm668_vm0, %v18281_v41 }
 0x22e   : > { %v18507_v23 = vpop.f32.mrf.mxu1  ;;  %v18509_v54 = vpop.f32.mrf.mxu0 }
 0x22f   : > { %23148 = vst [vmem:[#allocation28_spill] sm:$0xff] %v18507_v23  ;;  %23149 = vst [vmem:[#allocation29_spill] sm:$0xff] %v18509_v54 }
 0x230   : > { %v15427_v24 = vpop.f32.mrf.mxu1  ;;  %v18511_v46 = vpop.f32.mrf.mxu0  ;;  %15762 = vmatmul.mubr.msk.f32.gmra.mxu1 %vm668_vm0, %v18293_v56 }
 0x231   : > { %v18516_v26 = vadd.f32 %v15427_v24, %v18283_v44  ;;  %15764 = vmatprep.mubr.msk.f32.mxu1 %vm668_vm0, %v18299_v9 }
 0x232   : > { %v18520_v25 = vpop.f32.mrf.mxu1  ;;  %v18522_v34 = vpop.f32.mrf.mxu0 }
 0x233   : > { %23150 = vst [vmem:[#allocation30_spill] sm:$0xff] %v18520_v25  ;;  %23151 = vst [vmem:[#allocation31_spill] sm:$0xff] %v18522_v34 }
 0x234   : > { %v15430_v41 = vpop.f32.mrf.mxu1  ;;  %v18524_v17 = vpop.f32.mrf.mxu0  ;;  %15765 = vmatmul.mubr.msk.f32.gmra.mxu1 %vm668_vm0, %v18311_v18 }
 0x235   : > { %v18529_v54 = vadd.f32 %v15430_v41, %v18301_v14  ;;  %15767 = vmatprep.mubr.msk.f32.mxu1 %vm668_vm0, %v18317_v38  ;;  %v4616_v38 = vld [vmem:[#allocation2 + $0x119] sm:$0xff] }
 0x236   : > { %v18533_v44 = vpop.f32.mrf.mxu1  ;;  %v18535_v56 = vpop.f32.mrf.mxu0 }
 0x237   : > { %23152 = vst [vmem:[#allocation32_spill] sm:$0xff] %v18533_v44  ;;  %23153 = vst [vmem:[#allocation33_spill] sm:$0xff] %v18535_v56 }
 0x238   : > { %v15433_v9 = vpop.f32.mrf.mxu1  ;;  %v18537_v24 = vpop.f32.mrf.mxu0  ;;  %15768 = vmatmul.mubr.msk.f32.gmra.mxu1 %vm668_vm0, %v18329_v10  ;;  %v4617_v10 = vld [vmem:[#allocation2 + $0x121] sm:$0xff] }
 0x239   : > { %v18542_v34 = vadd.f32 %v15433_v9, %v18319_v58  ;;  %15770 = vmatprep.mubr.msk.f32.mxu1 %vm668_vm0, %v18335_v6 }
 0x23a   : > { %v18546_v14 = vpop.f32.mrf.mxu1  ;;  %v18548_v18 = vpop.f32.mrf.mxu0 }
 0x23b   : > { %23154 = vst [vmem:[#allocation34_spill] sm:$0xff] %v18546_v14  ;;  %23155 = vst [vmem:[#allocation35_spill] sm:$0xff] %v18548_v18 }
 0x23c   : > { %v15436_v41 = vpop.f32.mrf.mxu1  ;;  %v18550_v44 = vpop.f32.mrf.mxu0  ;;  %15771 = vmatmul.mubr.msk.f32.gmra.mxu1 %vm668_vm0, %v18345_v43 }
 0x23d   : > { %v18555_v56 = vadd.f32 %v15436_v41, %v18337_v35  ;;  %15773 = vmatprep.mubr.msk.f32.mxu1 %vm668_vm0, %v4616_v38 }
 0x23e   : > { %v18558_v58 = vpop.f32.mrf.mxu1  ;;  %v18560_v6 = vpop.f32.mrf.mxu0 }
 0x23f   : > { %23156 = vst [vmem:[#allocation36_spill] sm:$0xff] %v18558_v58  ;;  %23157 = vst [vmem:[#allocation37_spill] sm:$0xff] %v18560_v6 }
 0x240   : > { %v15439_v9 = vpop.f32.mrf.mxu1  ;;  %v15562_v14 = vpop.f32.mrf.mxu0  ;;  %15774 = vmatmul.mubr.msk.f32.gmra.mxu1 %vm668_vm0, %v4617_v10 }
 0x241   : > { %v18564_v18 = vadd.f32 %v15439_v9, %v18351_v32 }
 0x242   : > { %v18566_v61 = vpop.f32.mrf.mxu1  ;;  %v18568_v43 = vpop.f32.mrf.mxu0 }
 0x243   : > { %23158 = vst [vmem:[#allocation38_spill] sm:$0xff] %v18566_v61 }
 0x244   : > { %v15506_v35 = vpop.f32.mrf.mxu1  ;;  %v15565_v41 = vpop.f32.mrf.mxu0 }
 0x245   : > { %v3415_v38 = vadd.f32 %v15506_v35, %v18347_v13 }
 0x246   : > { %v18571_v39 = vpop.f32.mrf.mxu1  ;;  %v18573_v58 = vpop.f32.mrf.mxu0 }
 0x247   : > { %v3927_v6 = vadd.f32 %v15562_v14, %v3415_v38 }
 0x248   : > { %v15509_v25 = vpop.f32.mrf.mxu1  ;;  %v15568_v52 = vpop.f32.mrf.mxu0 }
 0x249   : > { %v18576_v10 = vadd.f32 %v3927_v6, %v18365_v48  ;;  %v3425_v32 = vadd.f32 %v15509_v25, %v18361_v59 }
 0x24a   : > { %v18579_v9 = vpop.f32.mrf.mxu1  ;;  %v18581_v61 = vpop.f32.mrf.mxu0 }
 0x24b   : > { %v3929_v42 = vadd.f32 %v15565_v41, %v3425_v32 }
 0x24c   : > { %v15512_v23 = vpop.f32.mrf.mxu1  ;;  %v15571_v30 = vpop.f32.mrf.mxu0 }
 0x24d   : > { %v18584_v13 = vadd.f32 %v3929_v42, %v18379_v50  ;;  %v3435_v35 = vadd.f32 %v15512_v23, %v18374_v29 }
 0x24e   : > { %v18587_v14 = vpop.f32.mrf.mxu1  ;;  %v18589_v38 = vpop.f32.mrf.mxu0 }
 0x24f   : > { %v3931_v48 = vadd.f32 %v15568_v52, %v3435_v35 }
 0x250   : > { %v15515_v6 = vpop.f32.mrf.mxu1  ;;  %v15574_v19 = vpop.f32.mrf.mxu0 }
 0x251   : > { %v18592_v59 = vadd.f32 %v3931_v48, %v18393_v49  ;;  %v3445_v25 = vadd.f32 %v15515_v6, %v18388_v51 }
 0x252   : > { %v18595_v41 = vpop.f32.mrf.mxu1  ;;  %v18597_v32 = vpop.f32.mrf.mxu0 }
 0x253   : > { %23159 = vst [vmem:[#allocation39_spill] sm:$0xff] %v18592_v59  ;;  %23160 = vst [vmem:[#allocation40_spill] sm:$0xff] %v18597_v32  ;;  %v3933_v50 = vadd.f32 %v15571_v30, %v3445_v25 }
 0x254   : > { %v15518_v42 = vpop.f32.mrf.mxu1  ;;  %v15577_v3 = vpop.f32.mrf.mxu0 }
 0x255   : > { %v18600_v29 = vadd.f32 %v3933_v50, %v18407_v21  ;;  %v3455_v23 = vadd.f32 %v15518_v42, %v18402_v2 }
 0x256   : > { %v18603_v52 = vpop.f32.mrf.mxu1  ;;  %v18605_v35 = vpop.f32.mrf.mxu0 }
 0x257   : > { %23161 = vst [vmem:[#allocation41_spill] sm:$0xff] %v18600_v29  ;;  %23162 = vst [vmem:[#allocation42_spill] sm:$0xff] %v18603_v52  ;;  %v3935_v49 = vadd.f32 %v15574_v19, %v3455_v23  ;;  %v23258_v52 = vld [vmem:[#allocation9_spill] sm:$0xff] }
 0x258   : > { %23163 = vst [vmem:[#allocation43_spill] sm:$0xff] %v18605_v35  ;;  %v15521_v48 = vpop.f32.mrf.mxu1  ;;  %v15580_v59 = vpop.f32.mrf.mxu0 }
 0x259   : > { %v18608_v51 = vadd.f32 %v3935_v49, %v18421_v7  ;;  %v3465_v6 = vadd.f32 %v15521_v48, %v18416_v57 }
 0x25a   : > { %v18611_v30 = vpop.f32.mrf.mxu1  ;;  %v18613_v25 = vpop.f32.mrf.mxu0 }
 0x25b   : > { %23164 = vst [vmem:[#allocation44_spill] sm:$0xff] %v18608_v51  ;;  %23165 = vst [vmem:[#allocation45_spill] sm:$0xff] %v18611_v30  ;;  %v3937_v21 = vadd.f32 %v15577_v3, %v3465_v6 }
 0x25c   : > { %23166 = vst [vmem:[#allocation46_spill] sm:$0xff] %v18613_v25  ;;  %v15524_v50 = vpop.f32.mrf.mxu1  ;;  %v15583_v29 = vpop.f32.mrf.mxu0 }
 0x25d   : > { %v18616_v2 = vadd.f32 %v3937_v21, %v18435_v27  ;;  %v3475_v42 = vadd.f32 %v15524_v50, %v18430_v40 }
 0x25e   : > { %v18619_v19 = vpop.f32.mrf.mxu1  ;;  %v18621_v23 = vpop.f32.mrf.mxu0 }
 0x25f   : > { %23167 = vst [vmem:[#allocation47_spill] sm:$0xff] %v18616_v2  ;;  %23168 = vst [vmem:[#allocation48_spill] sm:$0xff] %v18619_v19  ;;  %v3939_v7 = vadd.f32 %v15580_v59, %v3475_v42 }
 0x260   : > { %23169 = vst [vmem:[#allocation49_spill] sm:$0xff] %v18621_v23  ;;  %v15527_v49 = vpop.f32.mrf.mxu1  ;;  %v15586_v51 = vpop.f32.mrf.mxu0 }
 0x261   : > { %v18624_v57 = vadd.f32 %v3939_v7, %v18449_v37  ;;  %v3485_v48 = vadd.f32 %v15527_v49, %v18444_v16 }
 0x262   : > { %v18627_v3 = vpop.f32.mrf.mxu1  ;;  %v18629_v6 = vpop.f32.mrf.mxu0 }
 0x263   : > { %23170 = vst [vmem:[#allocation50_spill] sm:$0xff] %v18624_v57  ;;  %23171 = vst [vmem:[#allocation51_spill] sm:$0xff] %v18627_v3  ;;  %v3941_v27 = vadd.f32 %v15583_v29, %v3485_v48 }
 0x264   : > { %23172 = vst [vmem:[#allocation52_spill] sm:$0xff] %v18629_v6  ;;  %v15530_v21 = vpop.f32.mrf.mxu1  ;;  %v15589_v2 = vpop.f32.mrf.mxu0 }
 0x265   : > { %v18632_v40 = vadd.f32 %v3941_v27, %v18463_v47  ;;  %v3495_v50 = vadd.f32 %v15530_v21, %v18458_v22 }
 0x266   : > { %v18635_v59 = vpop.f32.mrf.mxu1  ;;  %v18637_v42 = vpop.f32.mrf.mxu0 }
 0x267   : > { %23173 = vst [vmem:[#allocation53_spill] sm:$0xff] %v18632_v40  ;;  %23174 = vst [vmem:[#allocation54_spill] sm:$0xff] %v18635_v59  ;;  %v3943_v37 = vadd.f32 %v15586_v51, %v3495_v50 }
 0x268   : > { %23175 = vst [vmem:[#allocation55_spill] sm:$0xff] %v18637_v42  ;;  %v15533_v7 = vpop.f32.mrf.mxu1  ;;  %v15592_v57 = vpop.f32.mrf.mxu0 }
 0x269   : > { %v18640_v16 = vadd.f32 %v3943_v37, %v18477_v0  ;;  %v3505_v49 = vadd.f32 %v15533_v7, %v18472_v20 }
 0x26a   : > { %v18643_v29 = vpop.f32.mrf.mxu1  ;;  %v18645_v48 = vpop.f32.mrf.mxu0 }
 0x26b   : > { %23176 = vst [vmem:[#allocation56_spill] sm:$0xff] %v18640_v16  ;;  %23177 = vst [vmem:[#allocation57_spill] sm:$0xff] %v18643_v29  ;;  %v3945_v47 = vadd.f32 %v15589_v2, %v3505_v49 }
 0x26c   : > { %23178 = vst [vmem:[#allocation58_spill] sm:$0xff] %v18645_v48  ;;  %v15536_v27 = vpop.f32.mrf.mxu1  ;;  %v15595_v40 = vpop.f32.mrf.mxu0  ;;  %v707_v48 = vlaneseq }
 0x26d   : > { %v18648_v22 = vadd.f32 %v3945_v47, %v18490_v63  ;;  %v3515_v21 = vadd.f32 %v15536_v27, %v18485_v31 }
 0x26e   : > { %v18651_v51 = vpop.f32.mrf.mxu1  ;;  %v18653_v50 = vpop.f32.mrf.mxu0  ;;  %v18765_v6 = vshrl.u32 %v707_v48, 7 }
 0x26f   : > { %23179 = vst [vmem:[#allocation59_spill] sm:$0xff] %v18648_v22  ;;  %23180 = vst [vmem:[#allocation60_spill] sm:$0xff] %v18651_v51  ;;  %v3947_v0 = vadd.f32 %v15592_v57, %v3515_v21 }
 0x270   : > { %23181 = vst [vmem:[#allocation61_spill] sm:$0xff] %v18653_v50  ;;  %v15539_v37 = vpop.f32.mrf.mxu1  ;;  %v15598_v16 = vpop.f32.mrf.mxu0  ;;  %v744_v48 = vand.u32 15, %v18765_v6  ;;  %v718_v3 = vadd.s32 80, %v18765_v6 }
 0x271   : > { %v18656_v20 = vadd.f32 %v3947_v0, %v18503_v15  ;;  %v3525_v7 = vadd.f32 %v15539_v37, %v18498_v36 }
 0x272   : > { %v18659_v2 = vpop.f32.mrf.mxu1  ;;  %v18661_v49 = vpop.f32.mrf.mxu0  ;;  %vm1124_vm2 = vcmp.ge.s32.totalorder %v744_v48, 1 }
 0x273   : > { %23182 = vst [vmem:[#allocation62_spill] sm:$0xff] %v18656_v20  ;;  %23183 = vst [vmem:[#allocation63_spill] sm:$0xff] %v18659_v2  ;;  %v3949_v63 = vadd.f32 %v15595_v40, %v3525_v7 }
 0x274   : > { %23184 = vst [vmem:[#allocation64_spill] sm:$0xff] %v18661_v49  ;;  %v15542_v47 = vpop.f32.mrf.mxu1  ;;  %v15601_v22 = vpop.f32.mrf.mxu0 }
 0x275   : > { %v18664_v31 = vadd.f32 %v3949_v63, %v18516_v26  ;;  %v3535_v27 = vadd.f32 %v15542_v47, %v18511_v46 }
 0x276   : > { %v18667_v57 = vpop.f32.mrf.mxu1  ;;  %v18669_v21 = vpop.f32.mrf.mxu0 }
 0x277   : > { %23185 = vst [vmem:[#allocation65_spill] sm:$0xff] %v18664_v31  ;;  %23186 = vst [vmem:[#allocation66_spill] sm:$0xff] %v18667_v57  ;;  %v3951_v15 = vadd.f32 %v15598_v16, %v3535_v27 }
 0x278   : > { %23187 = vst [vmem:[#allocation67_spill] sm:$0xff] %v18669_v21  ;;  %v15545_v0 = vpop.f32.mrf.mxu1  ;;  %v15604_v20 = vpop.f32.mrf.mxu0 }
 0x279   : > { %v18672_v36 = vadd.f32 %v3951_v15, %v18529_v54  ;;  %v3545_v37 = vadd.f32 %v15545_v0, %v18524_v17 }
 0x27a   : > { %v18675_v40 = vpop.f32.mrf.mxu1  ;;  %v18677_v7 = vpop.f32.mrf.mxu0 }
 0x27b   : > { %23188 = vst [vmem:[#allocation68_spill] sm:$0xff] %v18672_v36  ;;  %23189 = vst [vmem:[#allocation69_spill] sm:$0xff] %v18675_v40  ;;  %v3953_v26 = vadd.f32 %v15601_v22, %v3545_v37 }
 0x27c   : > { %23190 = vst [vmem:[#allocation70_spill] sm:$0xff] %v18677_v7  ;;  %v15548_v63 = vpop.f32.mrf.mxu1  ;;  %v15607_v31 = vpop.f32.mrf.mxu0 }
 0x27d   : > { %v18680_v46 = vadd.f32 %v3953_v26, %v18542_v34  ;;  %v3555_v47 = vadd.f32 %v15548_v63, %v18537_v24 }
 0x27e   : > { %v18683_v16 = vpop.f32.mrf.mxu1  ;;  %v18685_v21 = vpop.f32.mrf.mxu0 }
 0x27f   : > { %23191 = vst [vmem:[#allocation71_spill] sm:$0xff] %v18680_v46  ;;  %23192 = vst [vmem:[#allocation72_spill] sm:$0xff] %v18683_v16  ;;  %v3955_v27 = vadd.f32 %v15604_v20, %v3555_v47 }
 0x280   : > { %23193 = vst [vmem:[#allocation73_spill] sm:$0xff] %v18685_v21  ;;  %v15551_v54 = vpop.f32.mrf.mxu1  ;;  %v18693_v37 = vpop.f32.mrf.mxu0 }
 0x281   : > { %v18688_v17 = vadd.f32 %v3955_v27, %v18555_v56  ;;  %v3565_v15 = vadd.f32 %v15551_v54, %v18550_v44  ;;  %v5345_v44 = vld [vmem:[%s23038_s9 + $0x10] sm:$0xff]  ;;  %v5343_v27 = vld [vmem:[%s23038_s9] sm:$0xff] }
 0x282   : > { %v18691_v0 = vpop.f32.mrf.mxu1  ;;  %v18702_v20 = vpop.f32.mrf.mxu0  ;;  %15776 = vmatprep.subr.mxu0 %v5345_v44 }
 0x283   : > { %23194 = vst [vmem:[#allocation74_spill] sm:$0xff] %v18688_v17  ;;  %23195 = vst [vmem:[#allocation75_spill] sm:$0xff] %v18691_v0  ;;  %v3957_v22 = vadd.f32 %v15607_v31, %v3565_v15  ;;  %v5344_v31 = vld [vmem:[%s23038_s9 + $0x8] sm:$0xff]  ;;  %15777 = vmatpush3.msra.mxu0 %v5345_v44 }
 0x284   : > { %v18695_v34 = vpop.f32.mrf.mxu1  ;;  %v18714_v47 = vpop.f32.mrf.mxu0  ;;  %15778 = vmatprep.subr.mxu0 %v5344_v31 }
 0x285   : > { %v18698_v24 = vadd.f32 %v3957_v22, %v18564_v18  ;;  %15779 = vmatpush3.msra.mxu0 %v5344_v31 }
 0x286   : > { %v18700_v26 = vpop.f32.mrf.mxu1  ;;  %v18723_v15 = vpop.f32.mrf.mxu0  ;;  %15780 = vmatprep.subr.mxu0 %v5343_v27 }
 0x287   : > { %23196 = vst [vmem:[#allocation76_spill] sm:$0xff] %v18698_v24  ;;  %15781 = vmatpush3.msra.mxu0 %v5343_v27 }
 0x288   : > { %v18704_v63 = vpop.f32.mrf.mxu1  ;;  %v18729_v17 = vpop.f32.mrf.mxu0 }
 0x28a   : > { %v18706_v56 = vpop.f32.mrf.mxu1  ;;  %v18735_v46 = vpop.f32.mrf.mxu0 }
 0x28c   : > { %v18716_v18 = vpop.f32.mrf.mxu1  ;;  %v18741_v31 = vpop.f32.mrf.mxu0 }
 0x28d   : > { %23203 = vst [vmem:[#allocation83_spill] sm:$0xff] %v18741_v31 }
 0x28e   : > { %v18721_v54 = vpop.f32.mrf.mxu1  ;;  %v18747_v27 = vpop.f32.mrf.mxu0 }
 0x28f   : > { %23206 = vst [vmem:[#allocation86_spill] sm:$0xff] %v18747_v27 }
 0x290   : > { %v18725_v22 = vpop.f32.mrf.mxu1  ;;  %v18753_v57 = vpop.f32.mrf.mxu0 }
 0x291   : > { %23197 = vst [vmem:[#allocation77_spill] sm:$0xff] %v18725_v22  ;;  %23209 = vst [vmem:[#allocation89_spill] sm:$0xff] %v18753_v57 }
 0x292   : > { %v18727_v24 = vpop.f32.mrf.mxu1  ;;  %v18759_v51 = vpop.f32.mrf.mxu0 }
 0x293   : > { %23198 = vst [vmem:[#allocation78_spill] sm:$0xff] %v18727_v24  ;;  %23212 = vst [vmem:[#allocation92_spill] sm:$0xff] %v18759_v51 }
 0x294   : > { %v18731_v21 = vpop.f32.mrf.mxu1  ;;  %v18767_v59 = vpop.f32.mrf.mxu0 }
 0x295   : > { %23199 = vst [vmem:[#allocation79_spill] sm:$0xff] %v18731_v21  ;;  %23215 = vst [vmem:[#allocation95_spill] sm:$0xff] %v18767_v59  ;;  %v728_v59 = vadd.s32 160, %v18765_v6 }
 0x296   : > { %v18733_v44 = vpop.f32.mrf.mxu1 }
 0x297   : > { %23200 = vst [vmem:[#allocation80_spill] sm:$0xff] %v18733_v44  ;;  %v884_v27 = vand.u32 15, %v728_v59 }
 0x298   : > { %v18737_v0 = vpop.f32.mrf.mxu1 }
 0x299   : > { %23201 = vst [vmem:[#allocation81_spill] sm:$0xff] %v18737_v0  ;;  %v730_v0 = vadd.s32 176, %v18765_v6  ;;  %vm1144_vm12 = vcmp.ge.s32.totalorder %v884_v27, 1 }
 0x29a   : > { %v18739_v7 = vpop.f32.mrf.mxu1 }
 0x29b   : > { %23202 = vst [vmem:[#allocation82_spill] sm:$0xff] %v18739_v7  ;;  %v722_v7 = vadd.s32 112, %v18765_v6  ;;  %v898_v24 = vand.u32 15, %v730_v0 }
 0x29c   : > { %v18743_v36 = vpop.f32.mrf.mxu1 }
 0x29d   : > { %23204 = vst [vmem:[#allocation84_spill] sm:$0xff] %v18743_v36  ;;  %v842_v21 = vand.u32 15, %v722_v7  ;;  %vm1146_vm13 = vcmp.ge.s32.totalorder %v898_v24, 1 }
 0x29e   : > { %v18745_v16 = vpop.f32.mrf.mxu1 }
 0x29f   : > { %23205 = vst [vmem:[#allocation85_spill] sm:$0xff] %v18745_v16  ;;  %vm1138_vm9 = vcmp.ge.s32.totalorder %v842_v21, 1  ;;  %v711_v21 = vadd.s32 24, %v18765_v6 }
 0x2a0   : > { %v18749_v40 = vpop.f32.mrf.mxu1 }
 0x2a1   : > { %23207 = vst [vmem:[#allocation87_spill] sm:$0xff] %v18749_v40 }
 0x2a2   : > { %v18751_v49 = vpop.f32.mrf.mxu1 }
 0x2a3   : > { %23208 = vst [vmem:[#allocation88_spill] sm:$0xff] %v18751_v49  ;;  %v710_v49 = vadd.s32 16, %v18765_v6 }
 0x2a4   : > { %v18755_v50 = vpop.f32.mrf.mxu1 }
 0x2a5   : > { %23210 = vst [vmem:[#allocation90_spill] sm:$0xff] %v18755_v50  ;;  %v712_v50 = vadd.s32 32, %v18765_v6  ;;  %v758_v36 = vand.u32 15, %v710_v49 }
 0x2a6   : > { %v18757_v2 = vpop.f32.mrf.mxu1 }
 0x2a7   : > { %23211 = vst [vmem:[#allocation91_spill] sm:$0xff] %v18757_v2  ;;  %v18775_v2 = vpop.f32.mrf.mxu0  ;;  %vm18795_vm3 = vcmp.ge.s32.totalorder %v758_v36, 1 }
 0x2a8   : > { %v18761_v42 = vpop.f32.mrf.mxu1  ;;  %23218 = vst [vmem:[#allocation98_spill] sm:$0xff] %v18775_v2  ;;  %v724_v2 = vadd.s32 128, %v18765_v6 }
 0x2a9   : > { %23213 = vst [vmem:[#allocation93_spill] sm:$0xff] %v18761_v42  ;;  %v714_v42 = vadd.s32 48, %v18765_v6  ;;  %v18791_v19 = vpop.f32.mrf.mxu0 }
 0x2aa   : > { %v18763_v29 = vpop.f32.mrf.mxu1  ;;  %23221 = vst [vmem:[#allocation101_spill] sm:$0xff] %v18791_v19  ;;  %v856_v30 = vand.u32 15, %v724_v2 }
 0x2ab   : > { %23214 = vst [vmem:[#allocation94_spill] sm:$0xff] %v18763_v29  ;;  %v716_v29 = vadd.s32 64, %v18765_v6  ;;  %v786_v35 = vand.u32 15, %v714_v42  ;;  %v18801_v19 = vpop.f32.mrf.mxu0  ;;  %v23228_v42 = vmov 0.0  }
 0x2ac   : > { %v18769_v40 = vpop.f32.mrf.mxu1  ;;  %23226 = vst [vmem:[#allocation104_spill] sm:$0xff] %v18801_v19  ;;  %vm1140_vm10 = vcmp.ge.s32.totalorder %v856_v30, 1  ;;  %v23249_v19 = vld [vmem:[#allocation6_spill] sm:$0xff] }
 0x2ad   : > { %23216 = vst [vmem:[#allocation96_spill] sm:$0xff] %v18769_v40  ;;  %v720_v40 = vadd.s32 96, %v18765_v6  ;;  %v800_v51 = vand.u32 15, %v716_v29  ;;  %v18806_v29 = vsel %vm1124_vm2, 1.0, %v23228_v42  ;;  %vm1130_vm5 = vcmp.ge.s32.totalorder %v786_v35, 1 }
 0x2ae   : > { %v18772_v23 = vpop.f32.mrf.mxu1  ;;  %23229 = vst [vmem:[#allocation106_spill] sm:$0xff] %v18806_v29  ;;  %v732_v35 = vadd.s32 192, %v18765_v6  ;;  %v18841_v0 = vsel %vm1140_vm10, 1.0, %v23228_v42 }
 0x2af   : > { %23217 = vst [vmem:[#allocation97_spill] sm:$0xff] %v18772_v23  ;;  %v772_v23 = vand.u32 15, %v712_v50  ;;  %v814_v50 = vand.u32 15, %v718_v3  ;;  %v828_v44 = vand.u32 15, %v720_v40  ;;  %vm1132_vm6 = vcmp.ge.s32.totalorder %v800_v51, 1  ;;  %23240 = vst [vmem:[#allocation117_spill] sm:$0xff] %v18841_v0 }
 0x2b0   : > { %v18777_v16 = vpop.f32.mrf.mxu1  ;;  %v709_v3 = vadd.s32 8, %v18765_v6  ;;  %v18821_v51 = vsel %vm1130_vm5, 1.0, %v23228_v42  ;;  %v18824_v36 = vsel %vm1132_vm6, 1.0, %v23228_v42 }
 0x2b1   : > { %23219 = vst [vmem:[#allocation99_spill] sm:$0xff] %v18777_v16  ;;  %v726_v16 = vadd.s32 144, %v18765_v6  ;;  %vm1128_vm4 = vcmp.ge.s32.totalorder %v772_v23, 1  ;;  %v18812_v23 = vsel %vm18795_vm3, 1.0, %v23228_v42  ;;  %vm1134_vm7 = vcmp.ge.s32.totalorder %v814_v50, 1  ;;  %23233 = vst [vmem:[#allocation110_spill] sm:$0xff] %v18821_v51 }
 0x2b2   : > { %v18784_v25 = vpop.f32.mrf.mxu1  ;;  %23230 = vst [vmem:[#allocation107_spill] sm:$0xff] %v18812_v23  ;;  %v18815_v2 = vsel %vm1128_vm4, 1.0, %v23228_v42  ;;  %vm1136_vm8 = vcmp.ge.s32.totalorder %v828_v44, 1  ;;  %23234 = vst [vmem:[#allocation111_spill] sm:$0xff] %v18824_v36  ;;  %v18831_v7 = vsel %vm1134_vm7, 1.0, %v23228_v42  ;;  %v23242_v44 = vld [vmem:[#allocation19_spill] sm:$0xff] }
 0x2b3   : > { %23220 = vst [vmem:[#allocation100_spill] sm:$0xff] %v18784_v25  ;;  %v870_v32 = vand.u32 15, %v726_v16  ;;  %23231 = vst [vmem:[#allocation108_spill] sm:$0xff] %v18815_v2  ;;  %v18826_v25 = vpop.f32.mrf.mxu0  ;;  %v18834_v30 = vsel %vm1136_vm8, 1.0, %v23228_v42  ;;  %v18838_v16 = vsel %vm1138_vm9, 1.0, %v23228_v42  ;;  %v3410_v27 = vadd.f32 %v18571_v39, %v23242_v44  ;;  %v23252_v39 = vld [vmem:[#allocation8_spill] sm:$0xff] }
 0x2b4   : > { %v18793_v49 = vpop.f32.mrf.mxu1  ;;  %23235 = vst [vmem:[#allocation112_spill] sm:$0xff] %v18826_v25  ;;  %23237 = vst [vmem:[#allocation114_spill] sm:$0xff] %v18831_v7  ;;  %v18851_v50 = vsel %vm1144_vm12, 1.0, %v23228_v42  ;;  %v23253_v44 = vld [vmem:[#allocation7_spill] sm:$0xff] }
 0x2b5   : > { %23222 = vst [vmem:[#allocation102_spill] sm:$0xff] %v18793_v49  ;;  %vm1142_vm11 = vcmp.ge.s32.totalorder %v870_v32, 1  ;;  %23238 = vst [vmem:[#allocation115_spill] sm:$0xff] %v18834_v30  ;;  %v751_v32 = vand.u32 15, %v709_v3  ;;  %v18854_v3 = vsel %vm1146_vm13, 1.0, %v23228_v42  ;;  %v18869_v22 = vpop.f32.mrf.mxu0 }
 0x2b6   : > { %v18799_v57 = vpop.f32.mrf.mxu1  ;;  %23239 = vst [vmem:[#allocation116_spill] sm:$0xff] %v18838_v16  ;;  %v18844_v24 = vsel %vm1142_vm11, 1.0, %v23228_v42  ;;  %23244 = vst [vmem:[#allocation119_spill] sm:$0xff] %v18851_v50 }
 0x2b7   : > { %23225 = vst [vmem:[#allocation103_spill] sm:$0xff] %v18799_v57  ;;  %23241 = vst [vmem:[#allocation118_spill] sm:$0xff] %v18844_v24  ;;  %v23248_v57 = vld [vmem:[#allocation3_spill] sm:$0xff]  ;;  %v23250_v24 = vld [vmem:[#allocation5_spill] sm:$0xff]  ;;  %vm1221_vm14 = vcmp.lt.s32.totalorder %v751_v32, 15  ;;  %v2912_v32 = vmul.f32 %v18815_v2, %v18400_v8 }
 0x2b8   : > { %v18803_v49 = vpop.f32.mrf.mxu1  ;;  %23245 = vst [vmem:[#allocation120_spill] sm:$0xff] %v18854_v3  ;;  %v18863_v31 = vadd.f32 %v23250_v24, %v23249_v19  ;;  %23255 = vst [vmem:[#allocation6_spill] sm:$0xff] %v18869_v22  ;;  %v23257_v3 = vld [vmem:[#allocation10_spill] sm:$0xff]  ;;  %v765_v19 = vand.u32 15, %v711_v21  ;;  %v23264_v22 = vld [vmem:[#allocation15_spill] sm:$0xff]  ;;  %v18905_v21 = vmul.f32 %v18821_v51, %v18414_v28  ;;  %v4428_v28 = vadd.f32 %v18702_v20, %v18700_v26 }
 0x2b9   : > { %23227 = vst [vmem:[#allocation105_spill] sm:$0xff] %v18803_v49  ;;  %v23247_v49 = vld [vmem:[#allocation4_spill] sm:$0xff]  ;;  %v23261_v24 = vld [vmem:[#allocation14_spill] sm:$0xff]  ;;  %v4443_v26 = vadd.f32 %v18714_v47, %v18704_v63 }
 0x2ba   : > { %v18817_v59 = vpop.f32.mrf.mxu1  ;;  %v2440_v25 = vadd.f32 %v23248_v57, %v23247_v49  ;;  %23251 = vst [vmem:[#allocation4_spill] sm:$0xff] %v18863_v31  ;;  %v23260_v57 = vld [vmem:[#allocation11_spill] sm:$0xff]  ;;  %v23262_v31 = vld [vmem:[#allocation13_spill] sm:$0xff]  ;;  %vm1223_vm1 = vcmp.lt.s32.totalorder %v765_v19, 15 }
 0x2bb   : > { %23232 = vst [vmem:[#allocation109_spill] sm:$0xff] %v18817_v59  ;;  %v18857_v59 = vadd.s32 208, %v18765_v6  ;;  %v18880_v49 = vadd.f32 %v23260_v57, %v23259_v33  ;;  %v2910_v33 = vmul.f32 %v18812_v23, %v18386_v5  ;;  %v18914_v5 = vsel %vm1221_vm14, 1.0, %v23228_v42 }
 0x2bc   : > { %v18828_v40 = vpop.f32.mrf.mxu1  ;;  %23267 = vst [vmem:[#allocation8_spill] sm:$0xff] %v18914_v5 }
 0x2bd   : > { %23236 = vst [vmem:[#allocation113_spill] sm:$0xff] %v18828_v40  ;;  %v912_v40 = vand.u32 15, %v732_v35  ;;  %23246 = vst [vmem:[#allocation121_spill] sm:$0xff] %v18857_v59  ;;  %v713_v35 = vadd.s32 40, %v18765_v6  ;;  %v18876_v59 = vadd.f32 %v23258_v52, %v23257_v3  ;;  %v3926_v52 = vadd.f32 %v18568_v43, %v3410_v27  ;;  %v18911_v43 = vpop.f32.mrf.mxu0 }
 0x2be   : > { %v18848_v48 = vpop.f32.mrf.mxu1 }
 0x2bf   : > { %23243 = vst [vmem:[#allocation19_spill] sm:$0xff] %v18848_v48  ;;  %v18867_v48 = vadd.f32 %v23253_v44, %v23252_v39  ;;  %v18884_v39 = vadd.f32 %v23262_v31, %v23261_v24  ;;  %v23263_v44 = vld [vmem:[#allocation16_spill] sm:$0xff]  ;;  %v3420_v31 = vadd.f32 %v18579_v9, %v18369_v60  ;;  %vm18907_vm15 = vcmp.ge.s32.totalorder %v912_v40, 1 }
 0x2c0   : > { %v18871_v50 = vpop.f32.mrf.mxu1  ;;  %v779_v27 = vand.u32 15, %v713_v35  ;;  %v715_v60 = vadd.s32 56, %v18765_v6  ;;  %v18919_v9 = vmul.f32 %v18824_v36, %v18428_v1  ;;  %v18929_v40 = vmul.f32 %v18834_v30, %v18456_v11  ;;  %v23343_v30 = vld [vmem:[#allocation90_spill] sm:$0xff] }
 0x2c1   : > { %23254 = vst [vmem:[#allocation3_spill] sm:$0xff] %v18867_v48  ;;  %23256 = vst [vmem:[#allocation5_spill] sm:$0xff] %v18871_v50  ;;  %v18888_v48 = vadd.f32 %v23264_v22, %v23263_v44  ;;  %v2908_v50 = vmul.f32 %v18806_v29, %v18372_v45  ;;  %v4433_v22 = vadd.f32 %v18693_v37, %v18695_v34  ;;  %v18937_v44 = vpop.f32.mrf.mxu0 }
 0x2c2   : > { %v18893_v3 = vpop.f32.mrf.mxu1  ;;  %v18925_v34 = vmul.f32 %v18831_v7, %v18442_v12  ;;  %v3430_v35 = vadd.f32 %v18587_v14, %v18383_v4  ;;  %v3928_v1 = vadd.f32 %v18573_v58, %v3420_v31  ;;  %v18940_v12 = vsel %vm1223_vm1, 1.0, %v23228_v42 }
 0x2c3   : > { %v3958_v24 = vadd.f32 %v3926_v52, %v2908_v50  ;;  %23268 = vst [vmem:[#allocation7_spill] sm:$0xff] %v18940_v12  ;;  %vm18942_vm2 = vcmp.lt.s32.totalorder %v779_v27, 15  ;;  %v793_v4 = vand.u32 15, %v715_v60  ;;  %v717_v14 = vadd.s32 72, %v18765_v6 }
 0x2c4   : > { %v15730_v8 = vpop.f32.mrf.mxu1  ;;  %v4438_v58 = vadd.f32 %v18723_v15, %v18706_v56  ;;  %v18952_v52 = vmul.f32 %v18838_v16, %v18470_v55  ;;  %v2892_v31 = vadd.f32 %v18481_v53, %v2440_v25  ;;  %v3440_v27 = vadd.f32 %v18595_v41, %v18397_v62  ;;  %v18962_v55 = vpop.f32.mrf.mxu0 }
 0x2c5   : > { %v4945_v37 = vadd.f32 %v15730_v8, %v4433_v22  ;;  %v3930_v8 = vadd.f32 %v18581_v61, %v3430_v35  ;;  %v18967_v53 = vsel %vm18942_vm2, 1.0, %v23228_v42  ;;  %vm18969_vm3 = vcmp.lt.s32.totalorder %v793_v4, 15 }
 0x2c6   : > { %v4785_v57 = vpop.f32.mrf.mxu1  ;;  %23271 = vst [vmem:[#allocation10_spill] sm:$0xff] %v18967_v53  ;;  %v807_v41 = vand.u32 15, %v717_v14  ;;  %v18978_v35 = vmul.f32 %v18841_v0, %v2892_v31  ;;  %v23283_v31 = vld [vmem:[#allocation86_spill] sm:$0xff]  ;;  %v23300_v14 = vld [vmem:[#allocation43_spill] sm:$0xff]  ;;  %v23318_v0 = vld [vmem:[#allocation84_spill] sm:$0xff] }
 0x2c7   : > { %v4977_v20 = vmul.f32 %v18914_v5, %v4945_v37  ;;  %v4944_v19 = vadd.f32 %v4785_v57, %v4428_v28  ;;  %v4453_v28 = vadd.f32 %v18729_v17, %v18716_v18  ;;  %v719_v17 = vadd.s32 88, %v18765_v6 }
 0x2c8   : > { %v15733_v11 = vpop.f32.mrf.mxu1  ;;  %v4448_v18 = vadd.f32 %v18735_v46, %v18721_v54  ;;  %v3932_v57 = vadd.f32 %v18589_v38, %v3440_v27  ;;  %v23277_v46 = vld [vmem:[#allocation77_spill] sm:$0xff]  ;;  %v23278_v54 = vld [vmem:[#allocation83_spill] sm:$0xff]  ;;  %v18993_v38 = vpop.f32.mrf.mxu0  ;;  %vm19000_vm4 = vcmp.lt.s32.totalorder %v807_v41, 15 }
 0x2c9   : > { %v4947_v63 = vadd.f32 %v15733_v11, %v4443_v26  ;;  %v5008_v47 = vadd.f32 %v4944_v19, %v3958_v24  ;;  %v5009_v50 = vadd.f32 %v4977_v20, %v18576_v10  ;;  %v3960_v10 = vadd.f32 %v3928_v1, %v2910_v33  ;;  %v23274_v24 = vld [vmem:[#allocation20_spill] sm:$0xff]  ;;  %v23275_v1 = vld [vmem:[#allocation42_spill] sm:$0xff]  ;;  %v23289_v41 = vld [vmem:[#allocation45_spill] sm:$0xff] }
 0x2ca   : > { %v4795_v60 = vpop.f32.mrf.mxu1  ;;  %v3450_v26 = vadd.f32 %v23275_v1, %v23274_v24  ;;  %v3962_v20 = vadd.f32 %v3930_v8, %v2912_v32  ;;  %v18986_v11 = vsel %vm18907_vm15, 1.0, %v23228_v42  ;;  %v4463_v22 = vadd.f32 %v23278_v54, %v23277_v46  ;;  %v23290_v24 = vld [vmem:[#allocation121_spill] sm:$0xff] }
 0x2cb   : > { %v4979_v56 = vmul.f32 %v18940_v12, %v4947_v63  ;;  %v4946_v15 = vadd.f32 %v4795_v60, %v4438_v58  ;;  %5072 = vrot.lane.b32.xlu0 %v5008_v47, %s16915_s2  ;;  %23276 = vst [vmem:[#allocation9_spill] sm:$0xff] %v18986_v11  ;;  %v18998_v32 = vsel %vm18969_vm3, 1.0, %v23228_v42  ;;  %v821_v58 = vand.u32 15, %v719_v17  ;;  %v23282_v47 = vld [vmem:[#allocation78_spill] sm:$0xff]  ;;  %v23284_v60 = vld [vmem:[#allocation39_spill] sm:$0xff]  ;;  %v23292_v46 = vld [vmem:[#allocation89_spill] sm:$0xff] }
 0x2cc   : > { %v15736_v61 = vpop.f32.mrf.mxu1  ;;  %23279 = vst [vmem:[#allocation12_spill] sm:$0xff] %v18998_v32  ;;  %v721_v63 = vadd.s32 104, %v18765_v6  ;;  %v4458_v8 = vadd.f32 %v23283_v31, %v23282_v47  ;;  %v926_v1 = vand.u32 15, %v23290_v24  ;;  %v23296_v47 = vld [vmem:[#allocation80_spill] sm:$0xff] }
 0x2cd   : > { %v4949_v25 = vadd.f32 %v15736_v61, %v4453_v28  ;;  %v5010_v33 = vadd.f32 %v4946_v15, %v3960_v10  ;;  %v5011_v37 = vadd.f32 %v4979_v56, %v18584_v13  ;;  %v23285_v56 = vld [vmem:[#allocation4_spill] sm:$0xff]  ;;  %v23286_v15 = vld [vmem:[#allocation26_spill] sm:$0xff]  ;;  %vm19027_vm5 = vcmp.lt.s32.totalorder %v821_v58, 15 }
 0x2ce   : > { %v4805_v19 = vpop.f32.mrf.mxu1  ;;  %v2894_v10 = vadd.f32 %v23286_v15, %v23285_v56  ;;  %v23287_v61 = vld [vmem:[#allocation40_spill] sm:$0xff]  ;;  %v23299_v56 = vld [vmem:[#allocation118_spill] sm:$0xff]  ;;  %vm19042_vm6 = vcmp.ge.s32.totalorder %v926_v1, 1 }
 0x2cf   : > { %v4981_v13 = vmul.f32 %v18967_v53, %v4949_v25  ;;  %v4948_v4 = vadd.f32 %v4805_v19, %v4448_v18  ;;  %5076 = vrot.lane.b32.xlu1 %v5010_v33, %s16915_s2  ;;  %5074 = vrot.lane.b32.xlu0 %v5009_v50, %s16915_s2  ;;  %v3934_v62 = vadd.f32 %v23287_v61, %v3450_v26  ;;  %v23288_v18 = vld [vmem:[#allocation21_spill] sm:$0xff]  ;;  %v23291_v19 = vld [vmem:[#allocation79_spill] sm:$0xff]  ;;  %v19025_v26 = vsel %vm19000_vm4, 1.0, %v23228_v42  ;;  %v23297_v31 = vld [vmem:[#allocation92_spill] sm:$0xff] }
 0x2d0   : > { %v15739_v45 = vpop.f32.mrf.mxu1  ;;  %v3460_v25 = vadd.f32 %v23289_v41, %v23288_v18  ;;  %v3964_v33 = vadd.f32 %v3932_v57, %v18905_v21  ;;  %v4473_v54 = vadd.f32 %v23292_v46, %v23291_v19  ;;  %23293 = vst [vmem:[#allocation11_spill] sm:$0xff] %v19025_v26  ;;  %v19036_v15 = vmul.f32 %v23299_v56, %v2894_v10  ;;  %v23301_v18 = vld [vmem:[#allocation22_spill] sm:$0xff]  ;;  %v23302_v58 = vld [vmem:[#allocation48_spill] sm:$0xff]  ;;  %v23305_v19 = vld [vmem:[#allocation81_spill] sm:$0xff] }
 0x2d1   : > { %v5012_v27 = vadd.f32 %v4948_v4, %v3962_v20  ;;  %v4951_v50 = vadd.f32 %v15739_v45, %v4463_v22  ;;  %v5013_v28 = vadd.f32 %v4981_v13, %v23284_v60  ;;  %v19020_v13 = vpop.f32.mrf.mxu0  ;;  %v835_v4 = vand.u32 15, %v721_v63 }
 0x2d2   : > { %v4815_v17 = vpop.f32.mrf.mxu1  ;;  %v723_v45 = vadd.s32 120, %v18765_v6  ;;  %v3936_v61 = vadd.f32 %v23300_v14, %v3460_v25  ;;  %v3470_v41 = vadd.f32 %v23302_v58, %v23301_v18  ;;  %v23314_v14 = vld [vmem:[#allocation28_spill] sm:$0xff]  ;;  %v23315_v18 = vld [vmem:[#allocation46_spill] sm:$0xff]  ;;  %v19073_v56 = vadd.s32 224, %v18765_v6  ;;  %v23327_v25 = vld [vmem:[#allocation49_spill] sm:$0xff] }
 0x2d3   : > { %v4983_v20 = vmul.f32 %v18998_v32, %v4951_v50  ;;  %v4950_v22 = vadd.f32 %v4815_v17, %v4458_v8  ;;  %5078 = vrot.lane.b32.xlu1 %v5011_v37, %s16915_s2  ;;  %5080 = vrot.lane.b32.xlu0 %v5012_v27, %s16915_s2  ;;  %v4468_v37 = vadd.f32 %v23297_v31, %v23296_v47  ;;  %v23298_v50 = vld [vmem:[#allocation41_spill] sm:$0xff]  ;;  %v19051_v10 = vpop.f32.mrf.mxu0  ;;  %vm19058_vm7 = vcmp.lt.s32.totalorder %v835_v4, 15  ;;  %v23311_v47 = vld [vmem:[#allocation98_spill] sm:$0xff]  ;;  %v23317_v4 = vld [vmem:[#allocation51_spill] sm:$0xff] }
 0x2d4   : > { %v15742_v21 = vpop.f32.mrf.mxu1  ;;  %v3966_v17 = vadd.f32 %v3934_v62, %v18919_v9  ;;  %v19056_v9 = vsel %vm19027_vm5, 1.0, %v23228_v42  ;;  %v849_v1 = vand.u32 15, %v723_v45  ;;  %v3938_v58 = vadd.f32 %v23315_v18, %v3470_v41 }
 0x2d5   : > { %v5014_v8 = vadd.f32 %v4950_v22, %v3964_v33  ;;  %v4953_v27 = vadd.f32 %v15742_v21, %v4473_v54  ;;  %v5015_v60 = vadd.f32 %v4983_v20, %v23298_v50  ;;  %v23306_v33 = vld [vmem:[#allocation95_spill] sm:$0xff]  ;;  %23307 = vst [vmem:[#allocation14_spill] sm:$0xff] %v19056_v9  ;;  %v725_v22 = vadd.s32 136, %v18765_v6  ;;  %v23310_v21 = vld [vmem:[#allocation82_spill] sm:$0xff]  ;;  %v19080_v41 = vpop.f32.mrf.mxu0 }
 0x2d6   : > { %v4825_v63 = vpop.f32.mrf.mxu1  ;;  %v4483_v46 = vadd.f32 %v23306_v33, %v23305_v19  ;;  %v23313_v50 = vld [vmem:[#allocation3_spill] sm:$0xff]  ;;  %v3968_v33 = vadd.f32 %v3936_v61, %v18925_v34  ;;  %v19085_v34 = vsel %vm19058_vm7, 1.0, %v23228_v42  ;;  %vm19087_vm8 = vcmp.lt.s32.totalorder %v849_v1, 15  ;;  %v23329_v1 = vld [vmem:[#allocation54_spill] sm:$0xff] }
 0x2d7   : > { %v4985_v54 = vmul.f32 %v19025_v26, %v4953_v27  ;;  %v4952_v20 = vadd.f32 %v4825_v63, %v4468_v37  ;;  %5082 = vrot.lane.b32.xlu1 %v5013_v28, %s16915_s2  ;;  %5084 = vrot.lane.b32.xlu0 %v5014_v8, %s16915_s2  ;;  %v4478_v28 = vadd.f32 %v23311_v47, %v23310_v21  ;;  %v23312_v8 = vld [vmem:[#allocation44_spill] sm:$0xff]  ;;  %v23316_v63 = vld [vmem:[#allocation23_spill] sm:$0xff]  ;;  %v23319_v21 = vld [vmem:[#allocation101_spill] sm:$0xff]  ;;  %v19105_v16 = vsel %vm19042_vm6, 1.0, %v23228_v42 }
 0x2d8   : > { %v15745_v62 = vpop.f32.mrf.mxu1  ;;  %v2896_v57 = vadd.f32 %v23314_v14, %v23313_v50  ;;  %v3480_v19 = vadd.f32 %v23317_v4, %v23316_v63  ;;  %23320 = vst [vmem:[#allocation13_spill] sm:$0xff] %v19085_v34  ;;  %v23323_v47 = vld [vmem:[#allocation85_spill] sm:$0xff]  ;;  %v23326_v14 = vld [vmem:[#allocation119_spill] sm:$0xff]  ;;  %v23328_v4 = vld [vmem:[#allocation24_spill] sm:$0xff]  ;;  %vm5168_vm4 = vcmask 195712   ;;  %vm5346_vm5 = vcmask 195584  }
 0x2d9   : > { %v5016_v31 = vadd.f32 %v4952_v20, %v3966_v17  ;;  %v4955_v37 = vadd.f32 %v15745_v62, %v4483_v46  ;;  %v5017_v27 = vadd.f32 %v4985_v54, %v23312_v8  ;;  %v4493_v17 = vadd.f32 %v23319_v21, %v23318_v0  ;;  %v23325_v8 = vld [vmem:[#allocation47_spill] sm:$0xff]  ;;  %23330 = vst [vmem:[#allocation16_spill] sm:$0xff] %v19105_v16 }
 0x2da   : > { %v4835_v45 = vpop.f32.mrf.mxu1  ;;  %v863_v0 = vand.u32 15, %v725_v22  ;;  %v727_v62 = vadd.s32 152, %v18765_v6  ;;  %v19096_v18 = vmul.f32 %v23326_v14, %v2896_v57  ;;  %v3940_v63 = vadd.f32 %v23327_v25, %v3480_v19  ;;  %v19112_v19 = vpop.f32.mrf.mxu0 }
 0x2db   : > { %v4987_v46 = vmul.f32 %v19056_v9, %v4955_v37  ;;  %v4954_v54 = vadd.f32 %v4835_v45, %v4478_v28  ;;  %5086 = vrot.lane.b32.xlu1 %v5015_v60, %s16915_s2  ;;  %5088 = vrot.lane.b32.xlu0 %v5016_v31, %s16915_s2  ;;  %v23324_v28 = vld [vmem:[#allocation104_spill] sm:$0xff]  ;;  %v3490_v45 = vadd.f32 %v23329_v1, %v23328_v4  ;;  %v23339_v4 = vld [vmem:[#allocation30_spill] sm:$0xff]  ;;  %vm9055_vm6 = vcmask 261312  }
 0x2dc   : > { %v15748_v61 = vpop.f32.mrf.mxu1  ;;  %v4488_v60 = vadd.f32 %v23324_v28, %v23323_v47  ;;  %v3970_v21 = vadd.f32 %v3938_v58, %v18929_v40  ;;  %v19117_v40 = vsel %vm19087_vm8, 1.0, %v23228_v42  ;;  %vm19119_vm9 = vcmp.lt.s32.totalorder %v863_v0, 15  ;;  %v23336_v28 = vld [vmem:[#allocation88_spill] sm:$0xff]  ;;  %v23342_v0 = vld [vmem:[#allocation57_spill] sm:$0xff]  ;;  %v23350_v58 = vld [vmem:[#allocation55_spill] sm:$0xff] }
 0x2dd   : > { %v5018_v37 = vadd.f32 %v4954_v54, %v3968_v33  ;;  %v4957_v31 = vadd.f32 %v15748_v61, %v4493_v17  ;;  %v5019_v50 = vadd.f32 %v4987_v46, %v23325_v8  ;;  %v23331_v33 = vld [vmem:[#allocation87_spill] sm:$0xff]  ;;  %v23332_v17 = vld [vmem:[#allocation112_spill] sm:$0xff]  ;;  %23333 = vst [vmem:[#allocation15_spill] sm:$0xff] %v19117_v40  ;;  %v877_v61 = vand.u32 15, %v727_v62  ;;  %v23338_v8 = vld [vmem:[#allocation50_spill] sm:$0xff] }
 0x2de   : > { %v4845_v22 = vpop.f32.mrf.mxu1  ;;  %v4503_v54 = vadd.f32 %v23332_v17, %v23331_v33  ;;  %v729_v47 = vadd.s32 168, %v18765_v6  ;;  %v2898_v20 = vadd.f32 %v23339_v4, %v18876_v59  ;;  %v23340_v1 = vld [vmem:[#allocation52_spill] sm:$0xff]  ;;  %v23341_v33 = vld [vmem:[#allocation25_spill] sm:$0xff]  ;;  %v3972_v14 = vadd.f32 %v3940_v63, %v18952_v52  ;;  %v19139_v59 = vpop.f32.mrf.mxu0  ;;  %v23347_v63 = vld [vmem:[#allocation91_spill] sm:$0xff] }
 0x2df   : > { %v4989_v46 = vmul.f32 %v19085_v34, %v4957_v31  ;;  %v4956_v57 = vadd.f32 %v4845_v22, %v4488_v60  ;;  %5090 = vrot.lane.b32.xlu1 %v5017_v27, %s16915_s2  ;;  %5092 = vrot.lane.b32.xlu0 %v5018_v37, %s16915_s2  ;;  %v23337_v60 = vld [vmem:[#allocation6_spill] sm:$0xff]  ;;  %v3942_v22 = vadd.f32 %v23340_v1, %v3490_v45  ;;  %v940_v34 = vand.u32 15, %v19073_v56 }
 0x2e0   : > { %v15751_v24 = vpop.f32.mrf.mxu1  ;;  %v4498_v27 = vadd.f32 %v23337_v60, %v23336_v28  ;;  %v3500_v17 = vadd.f32 %v23342_v0, %v23341_v33  ;;  %v4513_v28 = vadd.f32 %v18911_v43, %v23343_v30  ;;  %v19144_v45 = vsel %vm19119_vm9, 1.0, %v23228_v42  ;;  %v23391_v33 = vld [vmem:[#allocation67_spill] sm:$0xff] }
 0x2e1   : > { %v5020_v31 = vadd.f32 %v4956_v57, %v3970_v21  ;;  %v4959_v37 = vadd.f32 %v15751_v24, %v4503_v54  ;;  %v5021_v25 = vadd.f32 %v4989_v46, %v23338_v8  ;;  %23344 = vst [vmem:[#allocation20_spill] sm:$0xff] %v19144_v45  ;;  %vm19146_vm10 = vcmp.lt.s32.totalorder %v877_v61, 15  ;;  %v23348_v24 = vld [vmem:[#allocation53_spill] sm:$0xff]  ;;  %v23351_v8 = vld [vmem:[#allocation27_spill] sm:$0xff]  ;;  %v23352_v61 = vld [vmem:[#allocation60_spill] sm:$0xff] }
 0x2e2   : > { %v4855_v62 = vpop.f32.mrf.mxu1  ;;  %v891_v30 = vand.u32 15, %v729_v47  ;;  %v731_v43 = vadd.s32 184, %v18765_v6  ;;  %v3510_v4 = vadd.f32 %v23352_v61, %v23351_v8  ;;  %v3974_v1 = vadd.f32 %v3942_v22, %v18978_v35  ;;  %v23371_v22 = vld [vmem:[#allocation61_spill] sm:$0xff] }
 0x2e3   : > { %v4991_v21 = vmul.f32 %v19117_v40, %v4959_v37  ;;  %v4958_v54 = vadd.f32 %v4855_v62, %v4498_v27  ;;  %5094 = vrot.lane.b32.xlu1 %v5019_v50, %s16915_s2  ;;  %5096 = vrot.lane.b32.xlu0 %v5020_v31, %s16915_s2  ;;  %v4508_v50 = vadd.f32 %v18937_v44, %v23347_v63  ;;  %v23349_v27 = vld [vmem:[#allocation120_spill] sm:$0xff]  ;;  %vm19161_vm11 = vcmp.ge.s32.totalorder %v940_v34, 1  ;;  %v23355_v44 = vld [vmem:[#allocation93_spill] sm:$0xff] }
 0x2e4   : > { %v15754_v52 = vpop.f32.mrf.mxu1  ;;  %v19155_v31 = vmul.f32 %v23349_v27, %v2898_v20  ;;  %v3944_v37 = vadd.f32 %v23350_v58, %v3500_v17  ;;  %v19170_v20 = vpop.f32.mrf.mxu0  ;;  %v19175_v35 = vsel %vm19146_vm10, 1.0, %v23228_v42  ;;  %vm19177_vm12 = vcmp.lt.s32.totalorder %v891_v30, 15  ;;  %v23364_v30 = vld [vmem:[#allocation63_spill] sm:$0xff] }
 0x2e5   : > { %v5022_v46 = vadd.f32 %v4958_v54, %v3972_v14  ;;  %v4961_v57 = vadd.f32 %v15754_v52, %v4513_v28  ;;  %v5023_v60 = vadd.f32 %v4991_v21, %v23348_v24  ;;  %v4523_v14 = vadd.f32 %v18962_v55, %v23355_v44  ;;  %23356 = vst [vmem:[#allocation42_spill] sm:$0xff] %v19175_v35  ;;  %v23359_v28 = vld [vmem:[#allocation94_spill] sm:$0xff]  ;;  %v23360_v52 = vld [vmem:[#allocation56_spill] sm:$0xff]  ;;  %v23363_v24 = vld [vmem:[#allocation29_spill] sm:$0xff] }
 0x2e6   : > { %v4865_v47 = vpop.f32.mrf.mxu1  ;;  %v905_v55 = vand.u32 15, %v731_v43  ;;  %v733_v17 = vadd.s32 200, %v18765_v6  ;;  %v3520_v58 = vadd.f32 %v23364_v30, %v23363_v24  ;;  %v3976_v8 = vadd.f32 %v3944_v37, %v19036_v15 }
 0x2e7   : > { %v4993_v0 = vmul.f32 %v19144_v45, %v4961_v57  ;;  %v4960_v62 = vadd.f32 %v4865_v47, %v4508_v50  ;;  %5098 = vrot.lane.b32.xlu1 %v5021_v25, %s16915_s2  ;;  %5100 = vrot.lane.b32.xlu0 %v5022_v46, %s16915_s2  ;;  %v4518_v25 = vadd.f32 %v18993_v38, %v23359_v28  ;;  %v23361_v50 = vld [vmem:[#allocation32_spill] sm:$0xff]  ;;  %v23362_v46 = vld [vmem:[#allocation58_spill] sm:$0xff]  ;;  %v19192_v61 = vadd.s32 240, %v18765_v6  ;;  %v23370_v28 = vld [vmem:[#allocation59_spill] sm:$0xff] }
 0x2e8   : > { %v15757_v34 = vpop.f32.mrf.mxu1  ;;  %v2900_v56 = vadd.f32 %v23361_v50, %v18880_v49  ;;  %v3946_v57 = vadd.f32 %v23362_v46, %v3510_v4  ;;  %v23365_v47 = vld [vmem:[#allocation96_spill] sm:$0xff]  ;;  %v15713_v49 = vpop.f32.mrf.mxu0  ;;  %v19202_v4 = vsel %vm19177_vm12, 1.0, %v23228_v42  ;;  %vm19204_vm13 = vcmp.lt.s32.totalorder %v905_v55, 15  ;;  %v23373_v50 = vld [vmem:[#allocation66_spill] sm:$0xff] }
 0x2e9   : > { %v5024_v21 = vadd.f32 %v4960_v62, %v3974_v1  ;;  %v4963_v54 = vadd.f32 %v15757_v34, %v4523_v14  ;;  %v5025_v63 = vadd.f32 %v4993_v0, %v23360_v52  ;;  %v4533_v38 = vadd.f32 %v19020_v13, %v23365_v47  ;;  %23366 = vst [vmem:[#allocation77_spill] sm:$0xff] %v19202_v4  ;;  %v23369_v0 = vld [vmem:[#allocation97_spill] sm:$0xff]  ;;  %v23372_v52 = vld [vmem:[#allocation31_spill] sm:$0xff]  ;;  %v23379_v47 = vld [vmem:[#allocation100_spill] sm:$0xff] }
 0x2ea   : > { %v4875_v43 = vpop.f32.mrf.mxu1  ;;  %v919_v14 = vand.u32 15, %v733_v17  ;;  %v735_v13 = vadd.s32 216, %v18765_v6  ;;  %v4528_v62 = vadd.f32 %v19051_v10, %v23369_v0  ;;  %v3530_v55 = vadd.f32 %v23373_v50, %v23372_v52  ;;  %v23375_v10 = vld [vmem:[#allocation99_spill] sm:$0xff]  ;;  %v23381_v0 = vld [vmem:[#allocation34_spill] sm:$0xff] }
 0x2eb   : > { %v4995_v1 = vmul.f32 %v19175_v35, %v4963_v54  ;;  %v4962_v44 = vadd.f32 %v4875_v43, %v4518_v25  ;;  %5102 = vrot.lane.b32.xlu1 %v5023_v60, %s16915_s2  ;;  %5104 = vrot.lane.b32.xlu0 %v5024_v21, %s16915_s2  ;;  %v2932_v21 = vmul.f32 %v18986_v11, %v2900_v56  ;;  %v19220_v17 = vsel %vm19161_vm11, 1.0, %v23228_v42  ;;  %v4557_v56 = vpop.f32.mrf.mxu0  ;;  %v23385_v50 = vld [vmem:[#allocation102_spill] sm:$0xff] }
 0x2ec   : > { %v15760_v15 = vpop.f32.mrf.mxu1  ;;  %v3948_v54 = vadd.f32 %v23371_v22, %v3520_v58  ;;  %v3978_v46 = vadd.f32 %v3946_v57, %v19096_v18  ;;  %23374 = vst [vmem:[#allocation83_spill] sm:$0xff] %v19220_v17  ;;  %v4543_v30 = vadd.f32 %v19080_v41, %v23375_v10  ;;  %v19230_v18 = vsel %vm19204_vm13, 1.0, %v23228_v42  ;;  %v23389_v10 = vld [vmem:[#allocation103_spill] sm:$0xff] }
 0x2ed   : > { %v5026_v60 = vadd.f32 %v4962_v44, %v3976_v8  ;;  %v4965_v34 = vadd.f32 %v15760_v15, %v4533_v38  ;;  %v5027_v25 = vadd.f32 %v4995_v1, %v23370_v28  ;;  %23376 = vst [vmem:[#allocation78_spill] sm:$0xff] %v19230_v18  ;;  %vm19232_vm14 = vcmp.lt.s32.totalorder %v919_v14, 15  ;;  %v23380_v44 = vld [vmem:[#allocation62_spill] sm:$0xff]  ;;  %v23384_v14 = vld [vmem:[#allocation69_spill] sm:$0xff] }
 0x2ee   : > { %v4885_v24 = vpop.f32.mrf.mxu1  ;;  %v933_v58 = vand.u32 15, %v735_v13  ;;  %v737_v41 = vadd.s32 232, %v18765_v6  ;;  %v4538_v38 = vadd.f32 %v19112_v19, %v23379_v47  ;;  %v2902_v37 = vadd.f32 %v23381_v0, %v18884_v39  ;;  %v15716_v39 = vpop.f32.mrf.mxu0 }
 0x2ef   : > { %v4997_v8 = vmul.f32 %v19202_v4, %v4965_v34  ;;  %v4964_v43 = vadd.f32 %v4885_v24, %v4528_v62  ;;  %5106 = vrot.lane.b32.xlu1 %v5025_v63, %s16915_s2  ;;  %5108 = vrot.lane.b32.xlu0 %v5026_v60, %s16915_s2  ;;  %v23382_v62 = vld [vmem:[#allocation64_spill] sm:$0xff]  ;;  %v23383_v34 = vld [vmem:[#allocation33_spill] sm:$0xff]  ;;  %v3980_v22 = vadd.f32 %v3948_v54, %v19155_v31  ;;  %v954_v52 = vand.u32 15, %v19192_v61 }
 0x2f0   : > { %v15763_v57 = vpop.f32.mrf.mxu1  ;;  %v3950_v60 = vadd.f32 %v23382_v62, %v3530_v55  ;;  %v3540_v28 = vadd.f32 %v23384_v14, %v23383_v34  ;;  %v4553_v19 = vadd.f32 %v19139_v59, %v23385_v50  ;;  %v19255_v55 = vsel %vm19232_vm14, 1.0, %v23228_v42  ;;  %v23406_v54 = vld [vmem:[#allocation37_spill] sm:$0xff] }
 0x2f1   : > { %v5028_v63 = vadd.f32 %v4964_v43, %v3978_v46  ;;  %v4967_v1 = vadd.f32 %v15763_v57, %v4543_v30  ;;  %v5029_v15 = vadd.f32 %v4997_v8, %v23380_v44  ;;  %23386 = vst [vmem:[#allocation86_spill] sm:$0xff] %v19255_v55  ;;  %vm19257_vm15 = vcmp.lt.s32.totalorder %v933_v58, 15  ;;  %v23390_v43 = vld [vmem:[#allocation65_spill] sm:$0xff] }
 0x2f2   : > { %v4895_v13 = vpop.f32.mrf.mxu1  ;;  %v947_v61 = vand.u32 15, %v737_v41  ;;  %v739_v59 = vadd.s32 248, %v18765_v6  ;;  %v4548_v30 = vadd.f32 %v19170_v20, %v23389_v10  ;;  %v2934_v47 = vmul.f32 %v19105_v16, %v2902_v37  ;;  %v23396_v6 = vld [vmem:[#allocation105_spill] sm:$0xff]  ;;  %v23397_v37 = vld [vmem:[#allocation36_spill] sm:$0xff]  ;;  %v23405_v10 = vld [vmem:[#allocation70_spill] sm:$0xff] }
 0x2f3   : > { %v4999_v46 = vmul.f32 %v19230_v18, %v4967_v1  ;;  %v4966_v24 = vadd.f32 %v4895_v13, %v4538_v38  ;;  %5110 = vrot.lane.b32.xlu1 %v5027_v25, %s16915_s2  ;;  %5112 = vrot.lane.b32.xlu0 %v5028_v63, %s16915_s2  ;;  %v3952_v38 = vadd.f32 %v23391_v33, %v3540_v28  ;;  %v23392_v63 = vld [vmem:[#allocation35_spill] sm:$0xff]  ;;  %v23393_v1 = vld [vmem:[#allocation72_spill] sm:$0xff]  ;;  %vm19269_vm1 = vcmp.ge.s32.totalorder %v954_v52, 1  ;;  %v4567_v28 = vpop.f32.mrf.mxu0  ;;  %v23401_v13 = vld [vmem:[#allocation109_spill] sm:$0xff] }
 0x2f4   : > { %v15766_v31 = vpop.f32.mrf.mxu1  ;;  %v3550_v58 = vadd.f32 %v23393_v1, %v23392_v63  ;;  %v3982_v44 = vadd.f32 %v3950_v60, %v2932_v21  ;;  %v4563_v62 = vadd.f32 %v15713_v49, %v23396_v6  ;;  %v2904_v14 = vadd.f32 %v23397_v37, %v18888_v48  ;;  %v23404_v48 = vld [vmem:[#allocation17_spill] sm:$0xff] }
 0x2f5   : > { %v5030_v25 = vadd.f32 %v4966_v24, %v3980_v22  ;;  %v4969_v8 = vadd.f32 %v15766_v31, %v4553_v19  ;;  %v5031_v57 = vadd.f32 %v4999_v46, %v23390_v43  ;;  %v19282_v21 = vsel %vm19257_vm15, 1.0, %v23228_v42  ;;  %v23402_v19 = vld [vmem:[#allocation68_spill] sm:$0xff]  ;;  %v23403_v24 = vld [vmem:[#allocation18_spill] sm:$0xff]  ;;  %v23414_v37 = vld [vmem:[#allocation73_spill] sm:$0xff] }
 0x2f6   : > { %v4905_v0 = vpop.f32.mrf.mxu1  ;;  %23398 = vst [vmem:[#allocation39_spill] sm:$0xff] %v19282_v21  ;;  %vm19284_vm2 = vcmp.lt.s32.totalorder %v947_v61, 15  ;;  %v961_v49 = vand.u32 15, %v739_v59  ;;  %v4558_v52 = vadd.f32 %v4557_v56, %v23401_v13  ;;  %v2510_v31 = vadd.f32 %v23404_v48, %v23403_v24  ;;  %v23409_v56 = vld [vmem:[#allocation113_spill] sm:$0xff] }
 0x2f7   : > { %v5001_v20 = vmul.f32 %v19255_v55, %v4969_v8  ;;  %v4968_v34 = vadd.f32 %v4905_v0, %v4548_v30  ;;  %5114 = vrot.lane.b32.xlu1 %v5029_v15, %s16915_s2  ;;  %5116 = vrot.lane.b32.xlu0 %v5030_v25, %s16915_s2  ;;  %v3954_v30 = vadd.f32 %v23405_v10, %v3550_v58  ;;  %v23407_v25 = vld [vmem:[#allocation75_spill] sm:$0xff]  ;;  %v19298_v59 = vsel %vm19269_vm1, 1.0, %v23228_v42 }
 0x2f8   : > { %v15769_v60 = vpop.f32.mrf.mxu1  ;;  %v3560_v8 = vadd.f32 %v23407_v25, %v23406_v54  ;;  %v3984_v43 = vadd.f32 %v3952_v38, %v2934_v47  ;;  %23408 = vst [vmem:[#allocation4_spill] sm:$0xff] %v19298_v59  ;;  %v4573_v33 = vadd.f32 %v15716_v39, %v23409_v56  ;;  %v2936_v58 = vmul.f32 %v19220_v17, %v2904_v14  ;;  %v15719_v47 = vpop.f32.mrf.mxu0  ;;  %v23412_v39 = vld [vmem:[#allocation19_spill] sm:$0xff]  ;;  %v23418_v56 = vld [vmem:[#allocation76_spill] sm:$0xff] }
 0x2f9   : > { %v5032_v15 = vadd.f32 %v4968_v34, %v3982_v44  ;;  %v4971_v50 = vadd.f32 %v15769_v60, %v4563_v62  ;;  %v5033_v46 = vadd.f32 %v5001_v20, %v23402_v19  ;;  %v23410_v44 = vld [vmem:[#allocation38_spill] sm:$0xff]  ;;  %v19309_v38 = vsel %vm19284_vm2, 1.0, %v23228_v42  ;;  %v23413_v34 = vld [vmem:[#allocation71_spill] sm:$0xff] }
 0x2fa   : > { %v4915_v61 = vpop.f32.mrf.mxu1  ;;  %v2906_v0 = vadd.f32 %v23410_v44, %v2510_v31  ;;  %23411 = vst [vmem:[#allocation26_spill] sm:$0xff] %v19309_v38  ;;  %vm1251_vm3 = vcmp.lt.s32.totalorder %v961_v49, 15  ;;  %v4568_v6 = vadd.f32 %v4567_v28, %v23412_v39  ;;  %v3956_v60 = vadd.f32 %v23414_v37, %v3560_v8  ;;  %v4577_v28 = vpop.f32.mrf.mxu0 }
 0x2fb   : > { %v5003_v63 = vmul.f32 %v19282_v21, %v4971_v50  ;;  %v4970_v1 = vadd.f32 %v4915_v61, %v4558_v52  ;;  %5118 = vrot.lane.b32.xlu1 %v5031_v57, %s16915_s2  ;;  %5120 = vrot.lane.b32.xlu0 %v5032_v15, %s16915_s2  ;;  %v3986_v13 = vadd.f32 %v3954_v30, %v2936_v58  ;;  %v23415_v52 = vld [vmem:[#allocation5_spill] sm:$0xff]  ;;  %v19320_v49 = vsel %vm1251_vm3, 1.0, %v23228_v42  ;;  %v23417_v30 = vld [vmem:[#allocation74_spill] sm:$0xff] }
 0x2fc   : > { %v15772_v41 = vpop.f32.mrf.mxu1  ;;  %v4583_v15 = vadd.f32 %v15719_v47, %v23415_v52  ;;  %v2938_v22 = vmul.f32 %v19298_v59, %v2906_v0  ;;  %23416 = vst [vmem:[#allocation40_spill] sm:$0xff] %v19320_v49  ;;  %v4578_v48 = vadd.f32 %v4577_v28, %v18893_v3  ;;  %v13466_v3 = vld [vmem:[%s23041_s12 + $0x78] sm:$0xff]  ;;  %v19349_v0 = vld [vmem:[%s23036_s7] ss:$0 sm:$0xff] }
 0x2fd   : > { %v5034_v62 = vadd.f32 %v4970_v1, %v3984_v43  ;;  %v4973_v20 = vadd.f32 %v15772_v41, %v4573_v33  ;;  %v5035_v57 = vadd.f32 %v5003_v63, %v23413_v34  ;;  %v13465_v33 = vld [vmem:[%s23041_s12 + $0x70] sm:$0xff]  ;;  %15830 = vmatprep.subr.mxu1 %v13466_v3  ;;  %v13464_v63 = vld [vmem:[%s23041_s12 + $0x68] sm:$0xff] }
 0x2fe   : > { %v4925_v14 = vpop.f32.mrf.mxu1  ;;  %v3988_v43 = vadd.f32 %v3956_v60, %v2938_v22  ;;  %15831 = vmatpush3.msra.mxu1 %v13466_v3 }
 0x2ff   : > { %v5005_v50 = vmul.f32 %v19309_v38, %v4973_v20  ;;  %v4972_v19 = vadd.f32 %v4925_v14, %v4568_v6  ;;  %5122 = vrot.lane.b32.xlu1 %v5033_v46, %s16915_s2  ;;  %5124 = vrot.lane.b32.xlu0 %v5034_v62, %s16915_s2  ;;  %v19355_v6 = vld [vmem:[%s23037_s8] ss:$0 sm:$0xff] }
 0x300   : > { %v15775_v24 = vpop.f32.mrf.mxu1  ;;  %15832 = vmatprep.subr.mxu1 %v13465_v33 }
 0x301   : > { %v5036_v31 = vadd.f32 %v4972_v19, %v3986_v13  ;;  %v4975_v10 = vadd.f32 %v15775_v24, %v4583_v15  ;;  %v5037_v54 = vadd.f32 %v5005_v50, %v23417_v30  ;;  %15833 = vmatpush3.msra.mxu1 %v13465_v33 }
 0x302   : > { %v4935_v25 = vpop.f32.mrf.mxu1  ;;  %15834 = vmatprep.subr.mxu1 %v13464_v63 }
 0x303   : > { %v5007_v8 = vmul.f32 %v19320_v49, %v4975_v10  ;;  %v4974_v46 = vadd.f32 %v4935_v25, %v4578_v48  ;;  %5126 = vrot.lane.b32.xlu1 %v5035_v57, %s16915_s2  ;;  %5128 = vrot.lane.b32.xlu0 %v5036_v31, %s16915_s2  ;;  %v6859_v49 = vld [vmem:[#allocation2 + $0x8] sm:$0xff] }
 0x304   : > { %15835 = vmatpush3.msra.mxu1 %v13464_v63 }
 0x305   : > { %v5038_v61 = vadd.f32 %v4974_v46, %v3988_v43  ;;  %v5039_v42 = vadd.f32 %v5007_v8, %v23418_v56 }
 0x307   : > { %5130 = vrot.lane.b32.xlu1 %v5037_v54, %s16915_s2  ;;  %5132 = vrot.lane.b32.xlu0 %v5038_v61, %s16915_s2 }
 0x30b   : > { %5134 = vrot.lane.b32.xlu1 %v5039_v42, %s16915_s2 }
 0x33d   : > { %v5073_v1 = vpop.permute.xlu0 %5072 }
 0x33e   : > { %5169 = vst.msk [vmem:[%s17119_s29] sm:$0xff] %vm5168_vm4, %v5073_v1 }
 0x341   : > { %v5077_v58 = vpop.permute.xlu1 %5076  ;;  %v5075_v44 = vpop.permute.xlu0 %5074 }
 0x342   : > { %5171 = vst.msk [vmem:[%s17119_s29 + $0x10] sm:$0xff] %vm5168_vm4, %v5077_v58  ;;  %5170 = vst.msk [vmem:[%s17119_s29 + $0x8] sm:$0xff] %vm5168_vm4, %v5075_v44 }
 0x345   : > { %v5079_v47 = vpop.permute.xlu1 %5078  ;;  %v5081_v41 = vpop.permute.xlu0 %5080  ;;  %v5201_v39 = vld [vmem:[%s17119_s29] sm:$0xff] }
 0x346   : > { %5172 = vst.msk [vmem:[%s17119_s29 + $0x18] sm:$0xff] %vm5168_vm4, %v5079_v47  ;;  %5173 = vst.msk [vmem:[%s17119_s29 + $0x20] sm:$0xff] %vm5168_vm4, %v5081_v41  ;;  %v5240_v62 = vmul.f32 %v19349_v0, %v5201_v39 }
 0x348   : > { %v5279_v20 = vadd.f32 %v19355_v6, %v5240_v62 }
 0x349   : > { %v5083_v34 = vpop.permute.xlu1 %5082  ;;  %v5085_v57 = vpop.permute.xlu0 %5084  ;;  %v5202_v37 = vld [vmem:[%s17119_s29 + $0x8] sm:$0xff]  ;;  %v5203_v60 = vld [vmem:[%s17119_s29 + $0x10] sm:$0xff] }
 0x34a   : > { %5174 = vst.msk [vmem:[%s17119_s29 + $0x28] sm:$0xff] %vm5168_vm4, %v5083_v34  ;;  %5175 = vst.msk [vmem:[%s17119_s29 + $0x30] sm:$0xff] %vm5168_vm4, %v5085_v57  ;;  %v5311_v13 = vmax.f32 %v5279_v20, 0.0  ;;  %v5241_v14 = vmul.f32 %v19349_v0, %v5202_v37  ;;  %v5242_v52 = vmul.f32 %v19349_v0, %v5203_v60 }
 0x34c   : > { %15782 = vmatprep.mubr.msk.f32.mxu0 %vm5346_vm5, %v5311_v13  ;;  %v5280_v15 = vadd.f32 %v19355_v6, %v5241_v14  ;;  %v5281_v50 = vadd.f32 %v19355_v6, %v5242_v52 }
 0x34d   : > { %v5087_v19 = vpop.permute.xlu1 %5086  ;;  %v5089_v22 = vpop.permute.xlu0 %5088  ;;  %v5204_v28 = vld [vmem:[%s17119_s29 + $0x18] sm:$0xff]  ;;  %v5205_v24 = vld [vmem:[%s17119_s29 + $0x20] sm:$0xff] }
 0x34e   : > { %5176 = vst.msk [vmem:[%s17119_s29 + $0x38] sm:$0xff] %vm5168_vm4, %v5087_v19  ;;  %5177 = vst.msk [vmem:[%s17119_s29 + $0x40] sm:$0xff] %vm5168_vm4, %v5089_v22  ;;  %v5312_v48 = vmax.f32 %v5280_v15, 0.0  ;;  %v5313_v31 = vmax.f32 %v5281_v50, 0.0  ;;  %v5243_v10 = vmul.f32 %v19349_v0, %v5204_v28  ;;  %v5244_v30 = vmul.f32 %v19349_v0, %v5205_v24 }
 0x350   : > { %15783 = vmatmul.mubr.msk.f32.vlgmr.msra.gmra.mxu0 %vm5346_vm5, %v5312_v48  ;;  %v5282_v54 = vadd.f32 %v19355_v6, %v5243_v10  ;;  %v5283_v25 = vadd.f32 %v19355_v6, %v5244_v30 }
 0x351   : > { %v5091_v8 = vpop.permute.xlu1 %5090  ;;  %15785 = vmatprep.mubr.msk.f32.mxu0 %vm5346_vm5, %v5313_v31  ;;  %v5093_v43 = vpop.permute.xlu0 %5092  ;;  %v5206_v46 = vld [vmem:[%s17119_s29 + $0x28] sm:$0xff]  ;;  %v5207_v61 = vld [vmem:[%s17119_s29 + $0x30] sm:$0xff] }
 0x352   : > { %5178 = vst.msk [vmem:[%s17119_s29 + $0x48] sm:$0xff] %vm5168_vm4, %v5091_v8  ;;  %5179 = vst.msk [vmem:[%s17119_s29 + $0x50] sm:$0xff] %vm5168_vm4, %v5093_v43  ;;  %v5314_v56 = vmax.f32 %v5282_v54, 0.0  ;;  %v5315_v42 = vmax.f32 %v5283_v25, 0.0  ;;  %v5245_v3 = vmul.f32 %v19349_v0, %v5206_v46  ;;  %v5246_v33 = vmul.f32 %v19349_v0, %v5207_v61 }
 0x354   : > { %15786 = vmatmul.mubr.msk.f32.gmra.mxu0 %vm5346_vm5, %v5314_v56  ;;  %v5284_v63 = vadd.f32 %v19355_v6, %v5245_v3  ;;  %v5285_v1 = vadd.f32 %v19355_v6, %v5246_v33 }
 0x355   : > { %v5095_v58 = vpop.permute.xlu1 %5094  ;;  %15788 = vmatprep.mubr.msk.f32.mxu0 %vm5346_vm5, %v5315_v42  ;;  %v5097_v44 = vpop.permute.xlu0 %5096  ;;  %v5208_v47 = vld [vmem:[%s17119_s29 + $0x38] sm:$0xff]  ;;  %v5209_v41 = vld [vmem:[%s17119_s29 + $0x40] sm:$0xff] }
 0x356   : > { %5180 = vst.msk [vmem:[%s17119_s29 + $0x58] sm:$0xff] %vm5168_vm4, %v5095_v58  ;;  %5181 = vst.msk [vmem:[%s17119_s29 + $0x60] sm:$0xff] %vm5168_vm4, %v5097_v44  ;;  %v5316_v39 = vmax.f32 %v5284_v63, 0.0  ;;  %v5317_v62 = vmax.f32 %v5285_v1, 0.0  ;;  %v5247_v20 = vmul.f32 %v19349_v0, %v5208_v47  ;;  %v5248_v34 = vmul.f32 %v19349_v0, %v5209_v41 }
 0x358   : > { %15789 = vmatmul.mubr.msk.f32.gmra.mxu0 %vm5346_vm5, %v5316_v39  ;;  %v5286_v57 = vadd.f32 %v19355_v6, %v5247_v20  ;;  %v5287_v37 = vadd.f32 %v19355_v6, %v5248_v34 }
 0x359   : > { %v5099_v60 = vpop.permute.xlu1 %5098  ;;  %15791 = vmatprep.mubr.msk.f32.mxu0 %vm5346_vm5, %v5317_v62  ;;  %v5101_v13 = vpop.permute.xlu0 %5100  ;;  %v5210_v14 = vld [vmem:[%s17119_s29 + $0x48] sm:$0xff]  ;;  %v5211_v52 = vld [vmem:[%s17119_s29 + $0x50] sm:$0xff] }
 0x35a   : > { %5182 = vst.msk [vmem:[%s17119_s29 + $0x68] sm:$0xff] %vm5168_vm4, %v5099_v60  ;;  %5183 = vst.msk [vmem:[%s17119_s29 + $0x70] sm:$0xff] %vm5168_vm4, %v5101_v13  ;;  %v5318_v15 = vmax.f32 %v5286_v57, 0.0  ;;  %v5319_v50 = vmax.f32 %v5287_v37, 0.0  ;;  %v5249_v19 = vmul.f32 %v19349_v0, %v5210_v14  ;;  %v5250_v22 = vmul.f32 %v19349_v0, %v5211_v52 }
 0x35c   : > { %15792 = vmatmul.mubr.msk.f32.gmra.mxu0 %vm5346_vm5, %v5318_v15  ;;  %v5288_v28 = vadd.f32 %v19355_v6, %v5249_v19  ;;  %v5289_v24 = vadd.f32 %v19355_v6, %v5250_v22 }
 0x35d   : > { %v5103_v48 = vpop.permute.xlu1 %5102  ;;  %15794 = vmatprep.mubr.msk.f32.mxu0 %vm5346_vm5, %v5319_v50  ;;  %v5105_v31 = vpop.permute.xlu0 %5104  ;;  %v5212_v10 = vld [vmem:[%s17119_s29 + $0x58] sm:$0xff]  ;;  %v5213_v30 = vld [vmem:[%s17119_s29 + $0x60] sm:$0xff] }
 0x35e   : > { %5184 = vst.msk [vmem:[%s17119_s29 + $0x78] sm:$0xff] %vm5168_vm4, %v5103_v48  ;;  %5185 = vst.msk [vmem:[%s17119_s29 + $0x80] sm:$0xff] %vm5168_vm4, %v5105_v31  ;;  %v5320_v54 = vmax.f32 %v5288_v28, 0.0  ;;  %v5321_v25 = vmax.f32 %v5289_v24, 0.0  ;;  %v5251_v8 = vmul.f32 %v19349_v0, %v5212_v10  ;;  %v5252_v43 = vmul.f32 %v19349_v0, %v5213_v30 }
 0x360   : > { %15795 = vmatmul.mubr.msk.f32.gmra.mxu0 %vm5346_vm5, %v5320_v54  ;;  %v5290_v46 = vadd.f32 %v19355_v6, %v5251_v8  ;;  %v5291_v61 = vadd.f32 %v19355_v6, %v5252_v43 }
 0x361   : > { %v5107_v56 = vpop.permute.xlu1 %5106  ;;  %15797 = vmatprep.mubr.msk.f32.mxu0 %vm5346_vm5, %v5321_v25  ;;  %v5109_v42 = vpop.permute.xlu0 %5108  ;;  %v5214_v3 = vld [vmem:[%s17119_s29 + $0x68] sm:$0xff]  ;;  %v5215_v33 = vld [vmem:[%s17119_s29 + $0x70] sm:$0xff] }
 0x362   : > { %5186 = vst.msk [vmem:[%s17119_s29 + $0x88] sm:$0xff] %vm5168_vm4, %v5107_v56  ;;  %5187 = vst.msk [vmem:[%s17119_s29 + $0x90] sm:$0xff] %vm5168_vm4, %v5109_v42  ;;  %v5322_v63 = vmax.f32 %v5290_v46, 0.0  ;;  %v5323_v1 = vmax.f32 %v5291_v61, 0.0  ;;  %v5253_v58 = vmul.f32 %v19349_v0, %v5214_v3  ;;  %v5254_v44 = vmul.f32 %v19349_v0, %v5215_v33 }
 0x364   : > { %15798 = vmatmul.mubr.msk.f32.gmra.mxu0 %vm5346_vm5, %v5322_v63  ;;  %v5292_v47 = vadd.f32 %v19355_v6, %v5253_v58  ;;  %v5293_v41 = vadd.f32 %v19355_v6, %v5254_v44 }
 0x365   : > { %v5111_v39 = vpop.permute.xlu1 %5110  ;;  %15800 = vmatprep.mubr.msk.f32.mxu0 %vm5346_vm5, %v5323_v1  ;;  %v5113_v62 = vpop.permute.xlu0 %5112  ;;  %v5216_v20 = vld [vmem:[%s17119_s29 + $0x78] sm:$0xff]  ;;  %v5217_v34 = vld [vmem:[%s17119_s29 + $0x80] sm:$0xff] }
 0x366   : > { %5188 = vst.msk [vmem:[%s17119_s29 + $0x98] sm:$0xff] %vm5168_vm4, %v5111_v39  ;;  %5189 = vst.msk [vmem:[%s17119_s29 + $0xa0] sm:$0xff] %vm5168_vm4, %v5113_v62  ;;  %v5324_v57 = vmax.f32 %v5292_v47, 0.0  ;;  %v5325_v37 = vmax.f32 %v5293_v41, 0.0  ;;  %v5255_v60 = vmul.f32 %v19349_v0, %v5216_v20  ;;  %v5256_v13 = vmul.f32 %v19349_v0, %v5217_v34 }
 0x368   : > { %15801 = vmatmul.mubr.msk.f32.gmra.mxu0 %vm5346_vm5, %v5324_v57  ;;  %v5294_v14 = vadd.f32 %v19355_v6, %v5255_v60  ;;  %v5295_v52 = vadd.f32 %v19355_v6, %v5256_v13 }
 0x369   : > { %v5115_v15 = vpop.permute.xlu1 %5114  ;;  %15803 = vmatprep.mubr.msk.f32.mxu0 %vm5346_vm5, %v5325_v37  ;;  %v5117_v50 = vpop.permute.xlu0 %5116  ;;  %v5218_v19 = vld [vmem:[%s17119_s29 + $0x88] sm:$0xff]  ;;  %v5219_v22 = vld [vmem:[%s17119_s29 + $0x90] sm:$0xff] }
 0x36a   : > { %5190 = vst.msk [vmem:[%s17119_s29 + $0xa8] sm:$0xff] %vm5168_vm4, %v5115_v15  ;;  %5191 = vst.msk [vmem:[%s17119_s29 + $0xb0] sm:$0xff] %vm5168_vm4, %v5117_v50  ;;  %v5326_v28 = vmax.f32 %v5294_v14, 0.0  ;;  %v5327_v24 = vmax.f32 %v5295_v52, 0.0  ;;  %v5257_v48 = vmul.f32 %v19349_v0, %v5218_v19  ;;  %v5258_v31 = vmul.f32 %v19349_v0, %v5219_v22 }
 0x36c   : > { %15804 = vmatmul.mubr.msk.f32.gmra.mxu0 %vm5346_vm5, %v5326_v28  ;;  %v5296_v10 = vadd.f32 %v19355_v6, %v5257_v48  ;;  %v5297_v30 = vadd.f32 %v19355_v6, %v5258_v31 }
 0x36d   : > { %v5119_v54 = vpop.permute.xlu1 %5118  ;;  %15806 = vmatprep.mubr.msk.f32.mxu0 %vm5346_vm5, %v5327_v24  ;;  %v5121_v25 = vpop.permute.xlu0 %5120  ;;  %v5220_v8 = vld [vmem:[%s17119_s29 + $0x98] sm:$0xff]  ;;  %v5221_v43 = vld [vmem:[%s17119_s29 + $0xa0] sm:$0xff] }
 0x36e   : > { %5192 = vst.msk [vmem:[%s17119_s29 + $0xb8] sm:$0xff] %vm5168_vm4, %v5119_v54  ;;  %5193 = vst.msk [vmem:[%s17119_s29 + $0xc0] sm:$0xff] %vm5168_vm4, %v5121_v25  ;;  %v5328_v46 = vmax.f32 %v5296_v10, 0.0  ;;  %v5329_v61 = vmax.f32 %v5297_v30, 0.0  ;;  %v5259_v56 = vmul.f32 %v19349_v0, %v5220_v8  ;;  %v5260_v42 = vmul.f32 %v19349_v0, %v5221_v43 }
 0x370   : > { %15807 = vmatmul.mubr.msk.f32.gmra.mxu0 %vm5346_vm5, %v5328_v46  ;;  %v5298_v3 = vadd.f32 %v19355_v6, %v5259_v56  ;;  %v5299_v33 = vadd.f32 %v19355_v6, %v5260_v42 }
 0x371   : > { %v5123_v63 = vpop.permute.xlu1 %5122  ;;  %15809 = vmatprep.mubr.msk.f32.mxu0 %vm5346_vm5, %v5329_v61  ;;  %v5125_v1 = vpop.permute.xlu0 %5124  ;;  %v5222_v58 = vld [vmem:[%s17119_s29 + $0xa8] sm:$0xff]  ;;  %v5223_v44 = vld [vmem:[%s17119_s29 + $0xb0] sm:$0xff] }
 0x372   : > { %5194 = vst.msk [vmem:[%s17119_s29 + $0xc8] sm:$0xff] %vm5168_vm4, %v5123_v63  ;;  %5195 = vst.msk [vmem:[%s17119_s29 + $0xd0] sm:$0xff] %vm5168_vm4, %v5125_v1  ;;  %v5330_v47 = vmax.f32 %v5298_v3, 0.0  ;;  %v5331_v41 = vmax.f32 %v5299_v33, 0.0  ;;  %v5261_v39 = vmul.f32 %v19349_v0, %v5222_v58  ;;  %v5262_v62 = vmul.f32 %v19349_v0, %v5223_v44 }
 0x374   : > { %15810 = vmatmul.mubr.msk.f32.gmra.mxu0 %vm5346_vm5, %v5330_v47  ;;  %v5300_v20 = vadd.f32 %v19355_v6, %v5261_v39  ;;  %v5301_v34 = vadd.f32 %v19355_v6, %v5262_v62 }
 0x375   : > { %v5127_v57 = vpop.permute.xlu1 %5126  ;;  %15812 = vmatprep.mubr.msk.f32.mxu0 %vm5346_vm5, %v5331_v41  ;;  %v5129_v37 = vpop.permute.xlu0 %5128  ;;  %v5224_v60 = vld [vmem:[%s17119_s29 + $0xb8] sm:$0xff]  ;;  %v5225_v13 = vld [vmem:[%s17119_s29 + $0xc0] sm:$0xff] }
 0x376   : > { %5196 = vst.msk [vmem:[%s17119_s29 + $0xd8] sm:$0xff] %vm5168_vm4, %v5127_v57  ;;  %5197 = vst.msk [vmem:[%s17119_s29 + $0xe0] sm:$0xff] %vm5168_vm4, %v5129_v37  ;;  %v5332_v14 = vmax.f32 %v5300_v20, 0.0  ;;  %v5333_v52 = vmax.f32 %v5301_v34, 0.0  ;;  %v5263_v15 = vmul.f32 %v19349_v0, %v5224_v60  ;;  %v5264_v50 = vmul.f32 %v19349_v0, %v5225_v13 }
 0x378   : > { %15813 = vmatmul.mubr.msk.f32.gmra.mxu0 %vm5346_vm5, %v5332_v14  ;;  %v5302_v19 = vadd.f32 %v19355_v6, %v5263_v15  ;;  %v5303_v22 = vadd.f32 %v19355_v6, %v5264_v50  ;;  %v13463_v50 = vld [vmem:[%s23041_s12 + $0x60] sm:$0xff] }
 0x379   : > { %v5131_v28 = vpop.permute.xlu1 %5130  ;;  %15815 = vmatprep.mubr.msk.f32.mxu0 %vm5346_vm5, %v5333_v52  ;;  %v5133_v24 = vpop.permute.xlu0 %5132  ;;  %v5226_v48 = vld [vmem:[%s17119_s29 + $0xc8] sm:$0xff]  ;;  %v5227_v31 = vld [vmem:[%s17119_s29 + $0xd0] sm:$0xff]  ;;  %15836 = vmatprep.subr.mxu1 %v13463_v50 }
 0x37a   : > { %5198 = vst.msk [vmem:[%s17119_s29 + $0xe8] sm:$0xff] %vm5168_vm4, %v5131_v28  ;;  %5199 = vst.msk [vmem:[%s17119_s29 + $0xf0] sm:$0xff] %vm5168_vm4, %v5133_v24  ;;  %v5334_v10 = vmax.f32 %v5302_v19, 0.0  ;;  %v5335_v30 = vmax.f32 %v5303_v22, 0.0  ;;  %v5265_v54 = vmul.f32 %v19349_v0, %v5226_v48  ;;  %v5266_v25 = vmul.f32 %v19349_v0, %v5227_v31  ;;  %v5845_v19 = vld [vmem:[%s23041_s12 + $0x18] sm:$0xff]  ;;  %15837 = vmatpush3.msra.mxu1 %v13463_v50  ;;  %v5842_v22 = vld [vmem:[%s23041_s12] sm:$0xff] }
 0x37b   : > { %15886 = vmatprep.subr.mxu0 %v5845_v19  ;;  %v5810_v28 = vld [vmem:[#allocation2 + $0x7] sm:$0xff]  ;;  %v5811_v24 = vld [vmem:[#allocation2 + $0xf] sm:$0xff]  ;;  %v19562_v48 = vld [vmem:[%s23041_s12 + $0xd8] sm:$0xff] }
 0x37c   : > { %15816 = vmatmul.mubr.msk.f32.gmra.mxu0 %vm5346_vm5, %v5334_v10  ;;  %v5304_v8 = vadd.f32 %v19355_v6, %v5265_v54  ;;  %v5305_v43 = vadd.f32 %v19355_v6, %v5266_v25  ;;  %15942 = vmatprep.subr.mxu1 %v19562_v48  ;;  %v13574_v31 = vld [vmem:[%s23041_s12 + $0x98] sm:$0xff]  ;;  %v13573_v10 = vld [vmem:[%s23041_s12 + $0x90] sm:$0xff]  ;;  %v13571_v54 = vld [vmem:[%s23041_s12 + $0x80] sm:$0xff] }
 0x37d   : > { %v5135_v46 = vpop.permute.xlu1 %5134  ;;  %15818 = vmatprep.mubr.msk.f32.mxu0 %vm5346_vm5, %v5335_v30  ;;  %v5228_v61 = vld [vmem:[%s17119_s29 + $0xd8] sm:$0xff]  ;;  %v5229_v56 = vld [vmem:[%s17119_s29 + $0xe0] sm:$0xff]  ;;  %15887 = vmatpush3.msra.mxu0 %v5845_v19  ;;  %v13572_v30 = vld [vmem:[%s23041_s12 + $0x88] sm:$0xff] }
 0x37e   : > { %5200 = vst.msk [vmem:[%s17119_s29 + $0xf8] sm:$0xff] %vm5168_vm4, %v5135_v46  ;;  %v5336_v42 = vmax.f32 %v5304_v8, 0.0  ;;  %v5337_v3 = vmax.f32 %v5305_v43, 0.0  ;;  %v5267_v33 = vmul.f32 %v19349_v0, %v5228_v61  ;;  %v5268_v63 = vmul.f32 %v19349_v0, %v5229_v56  ;;  %v19580_v25 = vld [vmem:[%s23039_s10] ss:$0 sm:$0xff] }
 0x37f   : > { %v19585_v43 = vld [vmem:[%s23040_s11] ss:$0 sm:$0xff] }
 0x380   : > { %15819 = vmatmul.mubr.msk.f32.gmra.mxu0 %vm5346_vm5, %v5336_v42  ;;  %v5306_v1 = vadd.f32 %v19355_v6, %v5267_v33  ;;  %v5307_v58 = vadd.f32 %v19355_v6, %v5268_v63 }
 0x381   : > { %15821 = vmatprep.mubr.msk.f32.mxu0 %vm5346_vm5, %v5337_v3  ;;  %v5230_v44 = vld [vmem:[%s17119_s29 + $0xe8] sm:$0xff]  ;;  %v5231_v47 = vld [vmem:[%s17119_s29 + $0xf0] sm:$0xff] }
 0x382   : > { %v5338_v41 = vmax.f32 %v5306_v1, 0.0  ;;  %v5339_v39 = vmax.f32 %v5307_v58, 0.0  ;;  %v5269_v62 = vmul.f32 %v19349_v0, %v5230_v44  ;;  %v5270_v20 = vmul.f32 %v19349_v0, %v5231_v47  ;;  %v19595_v44 = vld [vmem:[%s23041_s12 + $0xf8] sm:$0xff] }
 0x384   : > { %15822 = vmatmul.mubr.msk.f32.gmra.mxu0 %vm5346_vm5, %v5338_v41  ;;  %v5308_v34 = vadd.f32 %v19355_v6, %v5269_v62  ;;  %v5309_v57 = vadd.f32 %v19355_v6, %v5270_v20 }
 0x385   : > { %15824 = vmatprep.mubr.msk.f32.mxu0 %vm5346_vm5, %v5339_v39  ;;  %v5232_v37 = vld [vmem:[%s17119_s29 + $0xf8] sm:$0xff] }
 0x386   : > { %v5340_v60 = vmax.f32 %v5308_v34, 0.0  ;;  %v5341_v13 = vmax.f32 %v5309_v57, 0.0  ;;  %v5271_v14 = vmul.f32 %v19349_v0, %v5232_v37  ;;  %v5844_v0 = vld [vmem:[%s23041_s12 + $0x10] sm:$0xff] }
 0x387   : > { %15888 = vmatprep.subr.mxu0 %v5844_v0 }
 0x388   : > { %15825 = vmatmul.mubr.msk.f32.gmra.mxu0 %vm5346_vm5, %v5340_v60  ;;  %v5310_v52 = vadd.f32 %v19355_v6, %v5271_v14  ;;  %v5843_v6 = vld [vmem:[%s23041_s12 + $0x8] sm:$0xff] }
 0x389   : > { %15827 = vmatprep.mubr.msk.f32.mxu0 %vm5346_vm5, %v5341_v13  ;;  %15889 = vmatpush3.msra.mxu0 %v5844_v0 }
 0x38a   : > { %v5342_v15 = vmax.f32 %v5310_v52, 0.0  ;;  %15890 = vmatprep.subr.mxu0 %v5843_v6 }
 0x38b   : > { %15891 = vmatpush3.msra.mxu0 %v5843_v6 }
 0x38c   : > { %15828 = vmatmul.mubr.msk.f32.gmra.mxu0 %vm5346_vm5, %v5342_v15  ;;  %15892 = vmatprep.subr.mxu0 %v5842_v22 }
 0x38d   : > { %15893 = vmatpush3.msra.mxu0 %v5842_v22  ;;  %15894 = vmatprep.mubr.msk.f32.mxu0 %vm668_vm0, %v5810_v28 }
 0x38e   : > { %15998 = vmatprep.subr.mxu0 %v13574_v31 }
 0x390   : > { %15895 = vmatmul.mubr.msk.f32.vlgmr.msra.gmra.mxu0 %vm668_vm0, %v5811_v24 }
 0x391   : > { %15999 = vmatpush3.msra.mxu0 %v13574_v31 }
 0x392   : > { %16000 = vmatprep.subr.mxu0 %v13573_v10 }
 0x393   : > { %16001 = vmatpush3.msra.mxu0 %v13573_v10 }
 0x394   : > { %16002 = vmatprep.subr.mxu0 %v13572_v30 }
 0x395   : > { %16003 = vmatpush3.msra.mxu0 %v13572_v30 }
 0x396   : > { %16004 = vmatprep.subr.mxu0 %v13571_v54 }
 0x397   : > { %16005 = vmatpush3.msra.mxu0 %v13571_v54 }
 0x398   : > { %16110 = vmatprep.subr.mxu0 %v19595_v44 }
 0x410   : > { %v15784_v8 = vpop.f32.mrf.mxu0 }
 0x411   : > { %v5676_v46 = vmul.f32 %v15784_v8, %v19580_v25 }
 0x412   : > { %v5509_v61 = vpop.f32.mrf.mxu0 }
 0x413   : > { %v5715_v56 = vadd.f32 %v19585_v43, %v5676_v46  ;;  %v5675_v42 = vmul.f32 %v19580_v25, %v5509_v61  ;;  %v13533_v46 = vld [vmem:[%s23041_s12 + $0xd0] sm:$0xff] }
 0x414   : > { %v15787_v3 = vpop.f32.mrf.mxu0 }
 0x415   : > { %v5747_v33 = vmax.f32 %v5715_v56, 0.0  ;;  %v5714_v63 = vadd.f32 %v19585_v43, %v5675_v42  ;;  %v5678_v1 = vmul.f32 %v15787_v3, %v19580_v25 }
 0x416   : > { %v5519_v58 = vpop.f32.mrf.mxu0 }
 0x417   : > { %5779 = vst.msk [vmem:[#allocation2 + $0x20] sm:$0xff] %vm668_vm0, %v5747_v33  ;;  %v5746_v47 = vmax.f32 %v5714_v63, 0.0  ;;  %v5717_v41 = vadd.f32 %v19585_v43, %v5678_v1  ;;  %v5677_v39 = vmul.f32 %v19580_v25, %v5519_v58 }
 0x418   : > { %v15790_v62 = vpop.f32.mrf.mxu0 }
 0x419   : > { %5778 = vst.msk [vmem:[#allocation2 + $0x18] sm:$0xff] %vm668_vm0, %v5746_v47  ;;  %v5749_v20 = vmax.f32 %v5717_v41, 0.0  ;;  %v5716_v34 = vadd.f32 %v19585_v43, %v5677_v39  ;;  %v5680_v57 = vmul.f32 %v15790_v62, %v19580_v25 }
 0x41a   : > { %v5529_v37 = vpop.f32.mrf.mxu0 }
 0x41b   : > { %5781 = vst.msk [vmem:[#allocation2 + $0x30] sm:$0xff] %vm668_vm0, %v5749_v20  ;;  %v5748_v60 = vmax.f32 %v5716_v34, 0.0  ;;  %v5719_v13 = vadd.f32 %v19585_v43, %v5680_v57  ;;  %v5679_v14 = vmul.f32 %v19580_v25, %v5529_v37 }
 0x41c   : > { %v15793_v52 = vpop.f32.mrf.mxu0 }
 0x41d   : > { %5780 = vst.msk [vmem:[#allocation2 + $0x28] sm:$0xff] %vm668_vm0, %v5748_v60  ;;  %v5751_v15 = vmax.f32 %v5719_v13, 0.0  ;;  %v5718_v50 = vadd.f32 %v19585_v43, %v5679_v14  ;;  %v5682_v19 = vmul.f32 %v15793_v52, %v19580_v25 }
 0x41e   : > { %v5539_v0 = vpop.f32.mrf.mxu0 }
 0x41f   : > { %5783 = vst.msk [vmem:[#allocation2 + $0x40] sm:$0xff] %vm668_vm0, %v5751_v15  ;;  %v5750_v6 = vmax.f32 %v5718_v50, 0.0  ;;  %v5721_v22 = vadd.f32 %v19585_v43, %v5682_v19  ;;  %v5681_v28 = vmul.f32 %v19580_v25, %v5539_v0  ;;  %v13531_v15 = vld [vmem:[%s23041_s12 + $0xc0] sm:$0xff] }
 0x420   : > { %v15796_v24 = vpop.f32.mrf.mxu0  ;;  %v5812_v31 = vld [vmem:[#allocation2 + $0x17] sm:$0xff]  ;;  %v5813_v10 = vld [vmem:[#allocation2 + $0x1f] sm:$0xff] }
 0x421   : > { %5782 = vst.msk [vmem:[#allocation2 + $0x38] sm:$0xff] %vm668_vm0, %v5750_v6  ;;  %v5753_v30 = vmax.f32 %v5721_v22, 0.0  ;;  %v5720_v54 = vadd.f32 %v19585_v43, %v5681_v28  ;;  %v5684_v8 = vmul.f32 %v15796_v24, %v19580_v25  ;;  %15838 = vmatprep.mubr.msk.f32.mxu1 %vm668_vm0, %v5812_v31  ;;  %15897 = vmatprep.mubr.msk.f32.mxu0 %vm668_vm0, %v5812_v31 }
 0x422   : > { %v5549_v61 = vpop.f32.mrf.mxu0  ;;  %15839 = vmatmul.mubr.msk.f32.vlgmr.msra.gmra.mxu1 %vm668_vm0, %v5813_v10  ;;  %15898 = vmatmul.mubr.msk.f32.gmra.mxu0 %vm668_vm0, %v5813_v10 }
 0x423   : > { %5785 = vst.msk [vmem:[#allocation2 + $0x50] sm:$0xff] %vm668_vm0, %v5753_v30  ;;  %v5752_v56 = vmax.f32 %v5720_v54, 0.0  ;;  %v5723_v42 = vadd.f32 %v19585_v43, %v5684_v8  ;;  %v5683_v3 = vmul.f32 %v19580_v25, %v5549_v61  ;;  %15943 = vmatpush3.msra.mxu1 %v19562_v48  ;;  %v13532_v48 = vld [vmem:[%s23041_s12 + $0xc8] sm:$0xff]  ;;  %v19683_v54 = vld [vmem:[%s23041_s12 + $0x38] sm:$0xff] }
 0x424   : > { %v15799_v33 = vpop.f32.mrf.mxu0  ;;  %v19627_v63 = vld [vmem:[#allocation2 + $0x27] sm:$0xff]  ;;  %v19629_v1 = vld [vmem:[#allocation2 + $0x2f] sm:$0xff]  ;;  %15944 = vmatprep.subr.mxu1 %v13533_v46 }
 0x425   : > { %5784 = vst.msk [vmem:[#allocation2 + $0x48] sm:$0xff] %vm668_vm0, %v5752_v56  ;;  %v5755_v58 = vmax.f32 %v5723_v42, 0.0  ;;  %v5722_v47 = vadd.f32 %v19585_v43, %v5683_v3  ;;  %v5686_v41 = vmul.f32 %v15799_v33, %v19580_v25  ;;  %15841 = vmatprep.mubr.msk.f32.mxu1 %vm668_vm0, %v19627_v63  ;;  %15900 = vmatprep.mubr.msk.f32.mxu0 %vm668_vm0, %v19627_v63 }
 0x426   : > { %v5559_v39 = vpop.f32.mrf.mxu0  ;;  %15842 = vmatmul.mubr.msk.f32.gmra.mxu1 %vm668_vm0, %v19629_v1  ;;  %15901 = vmatmul.mubr.msk.f32.gmra.mxu0 %vm668_vm0, %v19629_v1 }
 0x427   : > { %5787 = vst.msk [vmem:[#allocation2 + $0x60] sm:$0xff] %vm668_vm0, %v5755_v58  ;;  %v5754_v62 = vmax.f32 %v5722_v47, 0.0  ;;  %v5725_v20 = vadd.f32 %v19585_v43, %v5686_v41  ;;  %v5685_v34 = vmul.f32 %v19580_v25, %v5559_v39  ;;  %15945 = vmatpush3.msra.mxu1 %v13533_v46 }
 0x428   : > { %v15802_v57 = vpop.f32.mrf.mxu0  ;;  %v19648_v37 = vld [vmem:[#allocation2 + $0x37] sm:$0xff]  ;;  %v19650_v60 = vld [vmem:[#allocation2 + $0x3f] sm:$0xff]  ;;  %15946 = vmatprep.subr.mxu1 %v13532_v48 }
 0x429   : > { %5786 = vst.msk [vmem:[#allocation2 + $0x58] sm:$0xff] %vm668_vm0, %v5754_v62  ;;  %v5757_v13 = vmax.f32 %v5725_v20, 0.0  ;;  %v5724_v14 = vadd.f32 %v19585_v43, %v5685_v34  ;;  %v5688_v52 = vmul.f32 %v15802_v57, %v19580_v25  ;;  %15844 = vmatprep.mubr.msk.f32.mxu1 %vm668_vm0, %v19648_v37  ;;  %15903 = vmatprep.mubr.msk.f32.mxu0 %vm668_vm0, %v19648_v37 }
 0x42a   : > { %v5569_v50 = vpop.f32.mrf.mxu0  ;;  %15845 = vmatmul.mubr.msk.f32.gmra.mxu1 %vm668_vm0, %v19650_v60  ;;  %15904 = vmatmul.mubr.msk.f32.gmra.mxu0 %vm668_vm0, %v19650_v60 }
 0x42b   : > { %5789 = vst.msk [vmem:[#allocation2 + $0x70] sm:$0xff] %vm668_vm0, %v5757_v13  ;;  %v5756_v19 = vmax.f32 %v5724_v14, 0.0  ;;  %v5727_v0 = vadd.f32 %v19585_v43, %v5688_v52  ;;  %v5687_v6 = vmul.f32 %v19580_v25, %v5569_v50  ;;  %15947 = vmatpush3.msra.mxu1 %v13532_v48 }
 0x42c   : > { %v15805_v22 = vpop.f32.mrf.mxu0  ;;  %v19669_v28 = vld [vmem:[#allocation2 + $0x47] sm:$0xff]  ;;  %v19671_v24 = vld [vmem:[#allocation2 + $0x4f] sm:$0xff]  ;;  %15948 = vmatprep.subr.mxu1 %v13531_v15 }
 0x42d   : > { %5788 = vst.msk [vmem:[#allocation2 + $0x68] sm:$0xff] %vm668_vm0, %v5756_v19  ;;  %v5759_v31 = vmax.f32 %v5727_v0, 0.0  ;;  %v5726_v10 = vadd.f32 %v19585_v43, %v5687_v6  ;;  %v5690_v30 = vmul.f32 %v15805_v22, %v19580_v25  ;;  %15847 = vmatprep.mubr.msk.f32.mxu1 %vm668_vm0, %v19669_v28  ;;  %15906 = vmatprep.mubr.msk.f32.mxu0 %vm668_vm0, %v19669_v28 }
 0x42e   : > { %v5579_v8 = vpop.f32.mrf.mxu0  ;;  %15848 = vmatmul.mubr.msk.f32.gmra.mxu1 %vm668_vm0, %v19671_v24  ;;  %15907 = vmatmul.mubr.msk.f32.gmra.mxu0 %vm668_vm0, %v19671_v24 }
 0x42f   : > { %5791 = vst.msk [vmem:[#allocation2 + $0x80] sm:$0xff] %vm668_vm0, %v5759_v31  ;;  %v5758_v46 = vmax.f32 %v5726_v10, 0.0  ;;  %v5729_v61 = vadd.f32 %v19585_v43, %v5690_v30  ;;  %v5689_v56 = vmul.f32 %v19580_v25, %v5579_v8  ;;  %15949 = vmatpush3.msra.mxu1 %v13531_v15 }
 0x430   : > { %v15808_v42 = vpop.f32.mrf.mxu0  ;;  %v19692_v3 = vld [vmem:[#allocation2 + $0x57] sm:$0xff]  ;;  %v19694_v33 = vld [vmem:[#allocation2 + $0x5f] sm:$0xff]  ;;  %16054 = vmatprep.subr.mxu1 %v19683_v54 }
 0x431   : > { %5790 = vst.msk [vmem:[#allocation2 + $0x78] sm:$0xff] %vm668_vm0, %v5758_v46  ;;  %v5761_v58 = vmax.f32 %v5729_v61, 0.0  ;;  %v5728_v47 = vadd.f32 %v19585_v43, %v5689_v56  ;;  %v5692_v41 = vmul.f32 %v15808_v42, %v19580_v25  ;;  %15850 = vmatprep.mubr.msk.f32.mxu1 %vm668_vm0, %v19692_v3  ;;  %15909 = vmatprep.mubr.msk.f32.mxu0 %vm668_vm0, %v19692_v3 }
 0x432   : > { %v5589_v48 = vpop.f32.mrf.mxu0  ;;  %15851 = vmatmul.mubr.msk.f32.gmra.mxu1 %vm668_vm0, %v19694_v33  ;;  %15910 = vmatmul.mubr.msk.f32.gmra.mxu0 %vm668_vm0, %v19694_v33 }
 0x433   : > { %5793 = vst.msk [vmem:[#allocation2 + $0x90] sm:$0xff] %vm668_vm0, %v5761_v58  ;;  %v5760_v39 = vmax.f32 %v5728_v47, 0.0  ;;  %v5731_v62 = vadd.f32 %v19585_v43, %v5692_v41  ;;  %v5691_v20 = vmul.f32 %v19580_v25, %v5589_v48 }
 0x434   : > { %v15811_v34 = vpop.f32.mrf.mxu0  ;;  %v19711_v57 = vld [vmem:[#allocation2 + $0x67] sm:$0xff]  ;;  %v19713_v13 = vld [vmem:[#allocation2 + $0x6f] sm:$0xff] }
 0x435   : > { %5792 = vst.msk [vmem:[#allocation2 + $0x88] sm:$0xff] %vm668_vm0, %v5760_v39  ;;  %v5763_v14 = vmax.f32 %v5731_v62, 0.0  ;;  %v5730_v52 = vadd.f32 %v19585_v43, %v5691_v20  ;;  %v5694_v15 = vmul.f32 %v15811_v34, %v19580_v25  ;;  %15853 = vmatprep.mubr.msk.f32.mxu1 %vm668_vm0, %v19711_v57  ;;  %15912 = vmatprep.mubr.msk.f32.mxu0 %vm668_vm0, %v19711_v57 }
 0x436   : > { %v5599_v50 = vpop.f32.mrf.mxu0  ;;  %15854 = vmatmul.mubr.msk.f32.gmra.mxu1 %vm668_vm0, %v19713_v13  ;;  %15913 = vmatmul.mubr.msk.f32.gmra.mxu0 %vm668_vm0, %v19713_v13 }
 0x437   : > { %5795 = vst.msk [vmem:[#allocation2 + $0xa0] sm:$0xff] %vm668_vm0, %v5763_v14  ;;  %v5762_v19 = vmax.f32 %v5730_v52, 0.0  ;;  %v5733_v0 = vadd.f32 %v19585_v43, %v5694_v15  ;;  %v5693_v6 = vmul.f32 %v19580_v25, %v5599_v50 }
 0x438   : > { %v15814_v22 = vpop.f32.mrf.mxu0  ;;  %v19729_v31 = vld [vmem:[#allocation2 + $0x77] sm:$0xff]  ;;  %v19731_v10 = vld [vmem:[#allocation2 + $0x7f] sm:$0xff] }
 0x439   : > { %5794 = vst.msk [vmem:[#allocation2 + $0x98] sm:$0xff] %vm668_vm0, %v5762_v19  ;;  %v5765_v30 = vmax.f32 %v5733_v0, 0.0  ;;  %v5732_v8 = vadd.f32 %v19585_v43, %v5693_v6  ;;  %v5696_v46 = vmul.f32 %v15814_v22, %v19580_v25  ;;  %15856 = vmatprep.mubr.msk.f32.mxu1 %vm668_vm0, %v19729_v31  ;;  %15915 = vmatprep.mubr.msk.f32.mxu0 %vm668_vm0, %v19729_v31 }
 0x43a   : > { %v5609_v61 = vpop.f32.mrf.mxu0  ;;  %15857 = vmatmul.mubr.msk.f32.gmra.mxu1 %vm668_vm0, %v19731_v10  ;;  %15916 = vmatmul.mubr.msk.f32.gmra.mxu0 %vm668_vm0, %v19731_v10 }
 0x43b   : > { %5797 = vst.msk [vmem:[#allocation2 + $0xb0] sm:$0xff] %vm668_vm0, %v5765_v30  ;;  %v5764_v56 = vmax.f32 %v5732_v8, 0.0  ;;  %v5735_v42 = vadd.f32 %v19585_v43, %v5696_v46  ;;  %v5695_v58 = vmul.f32 %v19580_v25, %v5609_v61 }
 0x43c   : > { %v15817_v47 = vpop.f32.mrf.mxu0  ;;  %v19747_v41 = vld [vmem:[#allocation2 + $0x87] sm:$0xff]  ;;  %v19749_v48 = vld [vmem:[#allocation2 + $0x8f] sm:$0xff] }
 0x43d   : > { %5796 = vst.msk [vmem:[#allocation2 + $0xa8] sm:$0xff] %vm668_vm0, %v5764_v56  ;;  %v5767_v39 = vmax.f32 %v5735_v42, 0.0  ;;  %v5734_v62 = vadd.f32 %v19585_v43, %v5695_v58  ;;  %v5698_v20 = vmul.f32 %v15817_v47, %v19580_v25  ;;  %15859 = vmatprep.mubr.msk.f32.mxu1 %vm668_vm0, %v19747_v41  ;;  %15918 = vmatprep.mubr.msk.f32.mxu0 %vm668_vm0, %v19747_v41 }
 0x43e   : > { %v5619_v34 = vpop.f32.mrf.mxu0  ;;  %15860 = vmatmul.mubr.msk.f32.gmra.mxu1 %vm668_vm0, %v19749_v48  ;;  %15919 = vmatmul.mubr.msk.f32.gmra.mxu0 %vm668_vm0, %v19749_v48 }
 0x43f   : > { %5799 = vst.msk [vmem:[#allocation2 + $0xc0] sm:$0xff] %vm668_vm0, %v5767_v39  ;;  %v5766_v14 = vmax.f32 %v5734_v62, 0.0  ;;  %v5737_v52 = vadd.f32 %v19585_v43, %v5698_v20  ;;  %v5697_v15 = vmul.f32 %v19580_v25, %v5619_v34 }
 0x440   : > { %v15820_v50 = vpop.f32.mrf.mxu0  ;;  %v19765_v19 = vld [vmem:[#allocation2 + $0x97] sm:$0xff]  ;;  %v19767_v0 = vld [vmem:[#allocation2 + $0x9f] sm:$0xff] }
 0x441   : > { %5798 = vst.msk [vmem:[#allocation2 + $0xb8] sm:$0xff] %vm668_vm0, %v5766_v14  ;;  %v5769_v6 = vmax.f32 %v5737_v52, 0.0  ;;  %v5736_v22 = vadd.f32 %v19585_v43, %v5697_v15  ;;  %v5700_v30 = vmul.f32 %v15820_v50, %v19580_v25  ;;  %15862 = vmatprep.mubr.msk.f32.mxu1 %vm668_vm0, %v19765_v19  ;;  %15921 = vmatprep.mubr.msk.f32.mxu0 %vm668_vm0, %v19765_v19 }
 0x442   : > { %v5629_v8 = vpop.f32.mrf.mxu0  ;;  %15863 = vmatmul.mubr.msk.f32.gmra.mxu1 %vm668_vm0, %v19767_v0  ;;  %15922 = vmatmul.mubr.msk.f32.gmra.mxu0 %vm668_vm0, %v19767_v0 }
 0x443   : > { %5801 = vst.msk [vmem:[#allocation2 + $0xd0] sm:$0xff] %vm668_vm0, %v5769_v6  ;;  %v5768_v46 = vmax.f32 %v5736_v22, 0.0  ;;  %v5739_v61 = vadd.f32 %v19585_v43, %v5700_v30  ;;  %v5699_v56 = vmul.f32 %v19580_v25, %v5629_v8 }
 0x444   : > { %v15823_v42 = vpop.f32.mrf.mxu0  ;;  %v19783_v58 = vld [vmem:[#allocation2 + $0xa7] sm:$0xff]  ;;  %v19785_v47 = vld [vmem:[#allocation2 + $0xaf] sm:$0xff] }
 0x445   : > { %5800 = vst.msk [vmem:[#allocation2 + $0xc8] sm:$0xff] %vm668_vm0, %v5768_v46  ;;  %v5771_v39 = vmax.f32 %v5739_v61, 0.0  ;;  %v5738_v62 = vadd.f32 %v19585_v43, %v5699_v56  ;;  %v5702_v20 = vmul.f32 %v15823_v42, %v19580_v25  ;;  %15865 = vmatprep.mubr.msk.f32.mxu1 %vm668_vm0, %v19783_v58  ;;  %15924 = vmatprep.mubr.msk.f32.mxu0 %vm668_vm0, %v19783_v58 }
 0x446   : > { %v5639_v34 = vpop.f32.mrf.mxu0  ;;  %15866 = vmatmul.mubr.msk.f32.gmra.mxu1 %vm668_vm0, %v19785_v47  ;;  %15925 = vmatmul.mubr.msk.f32.gmra.mxu0 %vm668_vm0, %v19785_v47 }
 0x447   : > { %5803 = vst.msk [vmem:[#allocation2 + $0xe0] sm:$0xff] %vm668_vm0, %v5771_v39  ;;  %v5770_v14 = vmax.f32 %v5738_v62, 0.0  ;;  %v5741_v52 = vadd.f32 %v19585_v43, %v5702_v20  ;;  %v5701_v15 = vmul.f32 %v19580_v25, %v5639_v34 }
 0x448   : > { %v15826_v50 = vpop.f32.mrf.mxu0  ;;  %v19801_v6 = vld [vmem:[#allocation2 + $0xb7] sm:$0xff]  ;;  %v19803_v22 = vld [vmem:[#allocation2 + $0xbf] sm:$0xff] }
 0x449   : > { %5802 = vst.msk [vmem:[#allocation2 + $0xd8] sm:$0xff] %vm668_vm0, %v5770_v14  ;;  %v5773_v30 = vmax.f32 %v5741_v52, 0.0  ;;  %v5740_v8 = vadd.f32 %v19585_v43, %v5701_v15  ;;  %v5704_v46 = vmul.f32 %v15826_v50, %v19580_v25  ;;  %15868 = vmatprep.mubr.msk.f32.mxu1 %vm668_vm0, %v19801_v6  ;;  %15927 = vmatprep.mubr.msk.f32.mxu0 %vm668_vm0, %v19801_v6  ;;  %v20417_v17 = vld [vmem:[#allocation2 + $0xb1] sm:$0xff] }
 0x44a   : > { %v5649_v61 = vpop.f32.mrf.mxu0  ;;  %15869 = vmatmul.mubr.msk.f32.gmra.mxu1 %vm668_vm0, %v19803_v22  ;;  %15928 = vmatmul.mubr.msk.f32.gmra.mxu0 %vm668_vm0, %v19803_v22 }
 0x44b   : > { %5805 = vst.msk [vmem:[#allocation2 + $0xf0] sm:$0xff] %vm668_vm0, %v5773_v30  ;;  %v5772_v56 = vmax.f32 %v5740_v8, 0.0  ;;  %v5743_v42 = vadd.f32 %v19585_v43, %v5704_v46  ;;  %v5703_v39 = vmul.f32 %v19580_v25, %v5649_v61 }
 0x44c   : > { %v15829_v62 = vpop.f32.mrf.mxu0  ;;  %v19819_v20 = vld [vmem:[#allocation2 + $0xc7] sm:$0xff]  ;;  %v19821_v34 = vld [vmem:[#allocation2 + $0xcf] sm:$0xff] }
 0x44d   : > { %5804 = vst.msk [vmem:[#allocation2 + $0xe8] sm:$0xff] %vm668_vm0, %v5772_v56  ;;  %v5775_v14 = vmax.f32 %v5743_v42, 0.0  ;;  %v5742_v52 = vadd.f32 %v19585_v43, %v5703_v39  ;;  %v5706_v15 = vmul.f32 %v15829_v62, %v19580_v25  ;;  %15871 = vmatprep.mubr.msk.f32.mxu1 %vm668_vm0, %v19819_v20  ;;  %15930 = vmatprep.mubr.msk.f32.mxu0 %vm668_vm0, %v19819_v20  ;;  %v20435_v18 = vld [vmem:[#allocation2 + $0xc1] sm:$0xff] }
 0x44e   : > { %v5659_v50 = vpop.f32.mrf.mxu0  ;;  %15872 = vmatmul.mubr.msk.f32.gmra.mxu1 %vm668_vm0, %v19821_v34  ;;  %15931 = vmatmul.mubr.msk.f32.gmra.mxu0 %vm668_vm0, %v19821_v34 }
 0x44f   : > { %5807 = vst.msk [vmem:[#allocation2 + $0x100] sm:$0xff] %vm668_vm0, %v5775_v14  ;;  %v5774_v30 = vmax.f32 %v5742_v52, 0.0  ;;  %v5745_v8 = vadd.f32 %v19585_v43, %v5706_v15  ;;  %v5705_v46 = vmul.f32 %v19580_v25, %v5659_v50  ;;  %v19877_v15 = vld [vmem:[#allocation2 + $0x18] sm:$0xff] }
 0x450   : > { %v19837_v61 = vld [vmem:[#allocation2 + $0xd7] sm:$0xff]  ;;  %v19839_v56 = vld [vmem:[#allocation2 + $0xdf] sm:$0xff] }
 0x451   : > { %5806 = vst.msk [vmem:[#allocation2 + $0xf8] sm:$0xff] %vm668_vm0, %v5774_v30  ;;  %v5777_v42 = vmax.f32 %v5745_v8, 0.0  ;;  %v5744_v39 = vadd.f32 %v19585_v43, %v5705_v46  ;;  %15874 = vmatprep.mubr.msk.f32.mxu1 %vm668_vm0, %v19837_v61  ;;  %15933 = vmatprep.mubr.msk.f32.mxu0 %vm668_vm0, %v19837_v61  ;;  %v19887_v8 = vld [vmem:[#allocation2 + $0x20] sm:$0xff]  ;;  %v19893_v46 = vld [vmem:[#allocation2 + $0x28] sm:$0xff] }
 0x452   : > { %15875 = vmatmul.mubr.msk.f32.gmra.mxu1 %vm668_vm0, %v19839_v56  ;;  %15934 = vmatmul.mubr.msk.f32.gmra.mxu0 %vm668_vm0, %v19839_v56 }
 0x453   : > { %5809 = vst.msk [vmem:[#allocation2 + $0x110] sm:$0xff] %vm668_vm0, %v5777_v42  ;;  %v5776_v25 = vmax.f32 %v5744_v39, 0.0  ;;  %v13641_v42 = vld [vmem:[%s23041_s12 + $0xf0] sm:$0xff] }
 0x454   : > { %v19852_v62 = vld [vmem:[#allocation2 + $0xe7] sm:$0xff]  ;;  %v19854_v14 = vld [vmem:[#allocation2 + $0xef] sm:$0xff] }
 0x455   : > { %5808 = vst.msk [vmem:[#allocation2 + $0x108] sm:$0xff] %vm668_vm0, %v5776_v25  ;;  %15877 = vmatprep.mubr.msk.f32.mxu1 %vm668_vm0, %v19852_v62  ;;  %15936 = vmatprep.mubr.msk.f32.mxu0 %vm668_vm0, %v19852_v62  ;;  %v19903_v39 = vld [vmem:[#allocation2 + $0x30] sm:$0xff] }
 0x456   : > { %15878 = vmatmul.mubr.msk.f32.gmra.mxu1 %vm668_vm0, %v19854_v14  ;;  %15937 = vmatmul.mubr.msk.f32.gmra.mxu0 %vm668_vm0, %v19854_v14  ;;  %v13569_v25 = vld [vmem:[%s23041_s12 + $0x30] sm:$0xff] }
 0x458   : > { %v19865_v43 = vld [vmem:[#allocation2 + $0xf7] sm:$0xff]  ;;  %v19867_v52 = vld [vmem:[#allocation2 + $0xff] sm:$0xff] }
 0x459   : > { %15880 = vmatprep.mubr.msk.f32.mxu1 %vm668_vm0, %v19865_v43  ;;  %15939 = vmatprep.mubr.msk.f32.mxu0 %vm668_vm0, %v19865_v43  ;;  %v20489_v9 = vld [vmem:[#allocation2 + $0xf1] sm:$0xff] }
 0x45a   : > { %15881 = vmatmul.mubr.msk.f32.gmra.mxu1 %vm668_vm0, %v19867_v52  ;;  %15940 = vmatmul.mubr.msk.f32.gmra.mxu0 %vm668_vm0, %v19867_v52  ;;  %v20523_v53 = vld [vmem:[#allocation2 + $0x111] sm:$0xff] }
 0x45b   : > { %16006 = vmatprep.mubr.msk.f32.mxu0 %vm668_vm0, %v19877_v15 }
 0x45c   : > { %v19881_v50 = vld [vmem:[#allocation2 + $0x107] sm:$0xff]  ;;  %v19883_v30 = vld [vmem:[#allocation2 + $0x10f] sm:$0xff] }
 0x45d   : > { %15883 = vmatprep.mubr.msk.f32.mxu1 %vm668_vm0, %v19881_v50  ;;  %v20507_v36 = vld [vmem:[#allocation2 + $0x101] sm:$0xff] }
 0x45e   : > { %15884 = vmatmul.mubr.msk.f32.gmra.mxu1 %vm668_vm0, %v19883_v30  ;;  %16007 = vmatmul.mubr.msk.f32.vlgmr.msra.gmra.mxu0 %vm668_vm0, %v19887_v8 }
 0x45f   : > { %15950 = vmatprep.mubr.msk.f32.mxu1 %vm668_vm0, %v19627_v63  ;;  %16009 = vmatprep.mubr.msk.f32.mxu0 %vm668_vm0, %v19893_v46  ;;  %v19915_v63 = vld [vmem:[#allocation2 + $0x38] sm:$0xff] }
 0x460   : > { %16111 = vmatpush3.msra.mxu0 %v19595_v44  ;;  %v19919_v44 = vld [vmem:[#allocation2 + $0x40] sm:$0xff] }
 0x461   : > { %16112 = vmatprep.subr.mxu0 %v13641_v42 }
 0x462   : > { %15951 = vmatmul.mubr.msk.f32.vlgmr.msra.gmra.mxu1 %vm668_vm0, %v19629_v1  ;;  %16010 = vmatmul.mubr.msk.f32.gmra.mxu0 %vm668_vm0, %v19903_v39  ;;  %v13568_v1 = vld [vmem:[%s23041_s12 + $0x28] sm:$0xff] }
 0x463   : > { %16055 = vmatpush3.msra.mxu1 %v19683_v54  ;;  %15953 = vmatprep.mubr.msk.f32.mxu1 %vm668_vm0, %v19648_v37  ;;  %v13640_v54 = vld [vmem:[%s23041_s12 + $0xe8] sm:$0xff] }
 0x464   : > { %16012 = vmatprep.mubr.msk.f32.mxu0 %vm668_vm0, %v19915_v63  ;;  %16056 = vmatprep.subr.mxu1 %v13569_v25  ;;  %v19931_v37 = vld [vmem:[#allocation2 + $0x48] sm:$0xff] }
 0x465   : > { %16057 = vmatpush3.msra.mxu1 %v13569_v25  ;;  %16113 = vmatpush3.msra.mxu0 %v13641_v42  ;;  %v19937_v42 = vld [vmem:[#allocation2 + $0x50] sm:$0xff]  ;;  %v13639_v25 = vld [vmem:[%s23041_s12 + $0xe0] sm:$0xff] }
 0x466   : > { %15954 = vmatmul.mubr.msk.f32.gmra.mxu1 %vm668_vm0, %v19650_v60  ;;  %16013 = vmatmul.mubr.msk.f32.gmra.mxu0 %vm668_vm0, %v19919_v44  ;;  %v13567_v60 = vld [vmem:[%s23041_s12 + $0x20] sm:$0xff] }
 0x467   : > { %15956 = vmatprep.mubr.msk.f32.mxu1 %vm668_vm0, %v19669_v28  ;;  %16015 = vmatprep.mubr.msk.f32.mxu0 %vm668_vm0, %v19931_v37  ;;  %v19949_v28 = vld [vmem:[#allocation2 + $0x58] sm:$0xff] }
 0x468   : > { %16058 = vmatprep.subr.mxu1 %v13568_v1  ;;  %16114 = vmatprep.subr.mxu0 %v13640_v54 }
 0x469   : > { %16059 = vmatpush3.msra.mxu1 %v13568_v1  ;;  %16115 = vmatpush3.msra.mxu0 %v13640_v54  ;;  %v19955_v1 = vld [vmem:[#allocation2 + $0x60] sm:$0xff]  ;;  %v19965_v54 = vld [vmem:[%s23041_s12 + $0x58] sm:$0xff] }
 0x46a   : > { %15957 = vmatmul.mubr.msk.f32.gmra.mxu1 %vm668_vm0, %v19671_v24  ;;  %16016 = vmatmul.mubr.msk.f32.gmra.mxu0 %vm668_vm0, %v19937_v42  ;;  %v19960_v24 = vld [vmem:[%s23041_s12 + $0xb8] sm:$0xff] }
 0x46b   : > { %15959 = vmatprep.mubr.msk.f32.mxu1 %vm668_vm0, %v19692_v3  ;;  %16018 = vmatprep.mubr.msk.f32.mxu0 %vm668_vm0, %v19949_v28  ;;  %v19971_v3 = vld [vmem:[#allocation2 + $0x68] sm:$0xff] }
 0x46c   : > { %16060 = vmatprep.subr.mxu1 %v13567_v60  ;;  %16116 = vmatprep.subr.mxu0 %v13639_v25 }
 0x46d   : > { %16061 = vmatpush3.msra.mxu1 %v13567_v60  ;;  %16117 = vmatpush3.msra.mxu0 %v13639_v25  ;;  %v19979_v60 = vld [vmem:[#allocation2 + $0x70] sm:$0xff]  ;;  %v6436_v25 = vld [vmem:[#allocation2 + $0x11f] sm:$0xff] }
 0x46e   : > { %15960 = vmatmul.mubr.msk.f32.gmra.mxu1 %vm668_vm0, %v19694_v33  ;;  %16019 = vmatmul.mubr.msk.f32.gmra.mxu0 %vm668_vm0, %v19955_v1  ;;  %v19985_v33 = vld [vmem:[#allocation2 + $0x78] sm:$0xff] }
 0x46f   : > { %15962 = vmatprep.mubr.msk.f32.mxu1 %vm668_vm0, %v19711_v57  ;;  %16021 = vmatprep.mubr.msk.f32.mxu0 %vm668_vm0, %v19971_v3  ;;  %v19991_v57 = vld [vmem:[#allocation2 + $0x80] sm:$0xff] }
 0x470   : > { %16166 = vmatprep.subr.mxu1 %v19960_v24  ;;  %16222 = vmatprep.subr.mxu0 %v19965_v54 }
 0x472   : > { %15963 = vmatmul.mubr.msk.f32.gmra.mxu1 %vm668_vm0, %v19713_v13  ;;  %16022 = vmatmul.mubr.msk.f32.gmra.mxu0 %vm668_vm0, %v19979_v60  ;;  %v19997_v13 = vld [vmem:[#allocation2 + $0x88] sm:$0xff] }
 0x473   : > { %15965 = vmatprep.mubr.msk.f32.mxu1 %vm668_vm0, %v19729_v31  ;;  %16024 = vmatprep.mubr.msk.f32.mxu0 %vm668_vm0, %v19985_v33  ;;  %v20003_v31 = vld [vmem:[#allocation2 + $0x90] sm:$0xff] }
 0x476   : > { %15966 = vmatmul.mubr.msk.f32.gmra.mxu1 %vm668_vm0, %v19731_v10  ;;  %16025 = vmatmul.mubr.msk.f32.gmra.mxu0 %vm668_vm0, %v19991_v57  ;;  %v20009_v10 = vld [vmem:[#allocation2 + $0x98] sm:$0xff] }
 0x477   : > { %15968 = vmatprep.mubr.msk.f32.mxu1 %vm668_vm0, %v19747_v41  ;;  %16027 = vmatprep.mubr.msk.f32.mxu0 %vm668_vm0, %v19997_v13  ;;  %v20015_v41 = vld [vmem:[#allocation2 + $0xa0] sm:$0xff] }
 0x47a   : > { %15969 = vmatmul.mubr.msk.f32.gmra.mxu1 %vm668_vm0, %v19749_v48  ;;  %16028 = vmatmul.mubr.msk.f32.gmra.mxu0 %vm668_vm0, %v20003_v31  ;;  %v20021_v48 = vld [vmem:[#allocation2 + $0xa8] sm:$0xff] }
 0x47b   : > { %15971 = vmatprep.mubr.msk.f32.mxu1 %vm668_vm0, %v19765_v19  ;;  %16030 = vmatprep.mubr.msk.f32.mxu0 %vm668_vm0, %v20009_v10  ;;  %v20027_v19 = vld [vmem:[#allocation2 + $0xb0] sm:$0xff] }
 0x47e   : > { %15972 = vmatmul.mubr.msk.f32.gmra.mxu1 %vm668_vm0, %v19767_v0  ;;  %16031 = vmatmul.mubr.msk.f32.gmra.mxu0 %vm668_vm0, %v20015_v41  ;;  %v20033_v0 = vld [vmem:[#allocation2 + $0xb8] sm:$0xff] }
 0x47f   : > { %15974 = vmatprep.mubr.msk.f32.mxu1 %vm668_vm0, %v19783_v58  ;;  %16033 = vmatprep.mubr.msk.f32.mxu0 %vm668_vm0, %v20021_v48  ;;  %v20039_v58 = vld [vmem:[#allocation2 + $0xc0] sm:$0xff] }
 0x482   : > { %15975 = vmatmul.mubr.msk.f32.gmra.mxu1 %vm668_vm0, %v19785_v47  ;;  %16034 = vmatmul.mubr.msk.f32.gmra.mxu0 %vm668_vm0, %v20027_v19  ;;  %v20045_v47 = vld [vmem:[#allocation2 + $0xc8] sm:$0xff] }
 0x483   : > { %15977 = vmatprep.mubr.msk.f32.mxu1 %vm668_vm0, %v19801_v6  ;;  %16036 = vmatprep.mubr.msk.f32.mxu0 %vm668_vm0, %v20033_v0  ;;  %v20051_v6 = vld [vmem:[#allocation2 + $0xd0] sm:$0xff] }
 0x486   : > { %15978 = vmatmul.mubr.msk.f32.gmra.mxu1 %vm668_vm0, %v19803_v22  ;;  %16037 = vmatmul.mubr.msk.f32.gmra.mxu0 %vm668_vm0, %v20039_v58  ;;  %v20057_v22 = vld [vmem:[#allocation2 + $0xd8] sm:$0xff] }
 0x487   : > { %15980 = vmatprep.mubr.msk.f32.mxu1 %vm668_vm0, %v19819_v20  ;;  %16039 = vmatprep.mubr.msk.f32.mxu0 %vm668_vm0, %v20045_v47  ;;  %v20063_v20 = vld [vmem:[#allocation2 + $0xe0] sm:$0xff] }
 0x48a   : > { %15981 = vmatmul.mubr.msk.f32.gmra.mxu1 %vm668_vm0, %v19821_v34  ;;  %16040 = vmatmul.mubr.msk.f32.gmra.mxu0 %vm668_vm0, %v20051_v6  ;;  %v20069_v34 = vld [vmem:[#allocation2 + $0xe8] sm:$0xff] }
 0x48b   : > { %15983 = vmatprep.mubr.msk.f32.mxu1 %vm668_vm0, %v19837_v61  ;;  %16042 = vmatprep.mubr.msk.f32.mxu0 %vm668_vm0, %v20057_v22  ;;  %v20075_v61 = vld [vmem:[#allocation2 + $0xf0] sm:$0xff] }
 0x48e   : > { %15984 = vmatmul.mubr.msk.f32.gmra.mxu1 %vm668_vm0, %v19839_v56  ;;  %16043 = vmatmul.mubr.msk.f32.gmra.mxu0 %vm668_vm0, %v20063_v20  ;;  %v20081_v56 = vld [vmem:[#allocation2 + $0xf8] sm:$0xff] }
 0x48f   : > { %15986 = vmatprep.mubr.msk.f32.mxu1 %vm668_vm0, %v19852_v62  ;;  %16045 = vmatprep.mubr.msk.f32.mxu0 %vm668_vm0, %v20069_v34  ;;  %v20087_v62 = vld [vmem:[#allocation2 + $0x100] sm:$0xff] }
 0x492   : > { %15987 = vmatmul.mubr.msk.f32.gmra.mxu1 %vm668_vm0, %v19854_v14  ;;  %16046 = vmatmul.mubr.msk.f32.gmra.mxu0 %vm668_vm0, %v20075_v61  ;;  %v20093_v14 = vld [vmem:[#allocation2 + $0x108] sm:$0xff] }
 0x493   : > { %15989 = vmatprep.mubr.msk.f32.mxu1 %vm668_vm0, %v19865_v43  ;;  %16048 = vmatprep.mubr.msk.f32.mxu0 %vm668_vm0, %v20081_v56  ;;  %v20099_v43 = vld [vmem:[#allocation2 + $0x110] sm:$0xff] }
 0x496   : > { %15990 = vmatmul.mubr.msk.f32.gmra.mxu1 %vm668_vm0, %v19867_v52  ;;  %16049 = vmatmul.mubr.msk.f32.gmra.mxu0 %vm668_vm0, %v20087_v62  ;;  %v6435_v52 = vld [vmem:[#allocation2 + $0x117] sm:$0xff] }
 0x497   : > { %15992 = vmatprep.mubr.msk.f32.mxu1 %vm668_vm0, %v19881_v50  ;;  %16051 = vmatprep.mubr.msk.f32.mxu0 %vm668_vm0, %v20093_v14  ;;  %v13677_v50 = vld [vmem:[%s23041_s12 + $0x50] sm:$0xff] }
 0x49a   : > { %15993 = vmatmul.mubr.msk.f32.gmra.mxu1 %vm668_vm0, %v19883_v30  ;;  %16052 = vmatmul.mubr.msk.f32.gmra.mxu0 %vm668_vm0, %v20099_v43  ;;  %v6860_v30 = vld [vmem:[#allocation2 + $0x10] sm:$0xff] }
 0x49b   : > { %15995 = vmatprep.mubr.msk.f32.mxu1 %vm668_vm0, %v6435_v52  ;;  %16118 = vmatprep.mubr.msk.f32.mxu0 %vm668_vm0, %v19893_v46  ;;  %v13681_v52 = vld [vmem:[%s23041_s12 + $0xb0] sm:$0xff] }
 0x49e   : > { %15996 = vmatmul.mubr.msk.f32.gmra.mxu1 %vm668_vm0, %v6436_v25  ;;  %16119 = vmatmul.mubr.msk.f32.vlgmr.msra.gmra.mxu0 %vm668_vm0, %v19903_v39 }
 0x49f   : > { %16121 = vmatprep.mubr.msk.f32.mxu0 %vm668_vm0, %v19915_v63  ;;  %16062 = vmatprep.mubr.msk.f32.mxu1 %vm668_vm0, %v6859_v49  ;;  %v13680_v49 = vld [vmem:[%s23041_s12 + $0xa8] sm:$0xff] }
 0x4a0   : > { %16223 = vmatpush3.msra.mxu0 %v19965_v54  ;;  %v13676_v54 = vld [vmem:[%s23041_s12 + $0x48] sm:$0xff] }
 0x4a1   : > { %16224 = vmatprep.subr.mxu0 %v13677_v50 }
 0x4a2   : > { %16063 = vmatmul.mubr.msk.f32.vlgmr.msra.gmra.mxu1 %vm668_vm0, %v6860_v30  ;;  %16122 = vmatmul.mubr.msk.f32.gmra.mxu0 %vm668_vm0, %v19919_v44 }
 0x4a3   : > { %16167 = vmatpush3.msra.mxu1 %v19960_v24  ;;  %16065 = vmatprep.mubr.msk.f32.mxu1 %vm668_vm0, %v19877_v15  ;;  %v13679_v15 = vld [vmem:[%s23041_s12 + $0xa0] sm:$0xff] }
 0x4a4   : > { %16124 = vmatprep.mubr.msk.f32.mxu0 %vm668_vm0, %v19931_v37  ;;  %16168 = vmatprep.subr.mxu1 %v13681_v52  ;;  %v7880_v24 = vld [vmem:[#allocation2 + $0x21] sm:$0xff] }
 0x4a5   : > { %16169 = vmatpush3.msra.mxu1 %v13681_v52  ;;  %16225 = vmatpush3.msra.mxu0 %v13677_v50  ;;  %v20317_v52 = vld [vmem:[#allocation2 + $0x51] sm:$0xff] }
 0x4a6   : > { %16066 = vmatmul.mubr.msk.f32.gmra.mxu1 %vm668_vm0, %v19887_v8  ;;  %16125 = vmatmul.mubr.msk.f32.gmra.mxu0 %vm668_vm0, %v19937_v42  ;;  %v13675_v8 = vld [vmem:[%s23041_s12 + $0x40] sm:$0xff] }
 0x4a7   : > { %16068 = vmatprep.mubr.msk.f32.mxu1 %vm668_vm0, %v19893_v46  ;;  %16127 = vmatprep.mubr.msk.f32.mxu0 %vm668_vm0, %v19949_v28  ;;  %v20160_v46 = vld [vmem:[%s23041_s12 + $0x118] sm:$0xff] }
 0x4a8   : > { %16170 = vmatprep.subr.mxu1 %v13680_v49  ;;  %16226 = vmatprep.subr.mxu0 %v13676_v54 }
 0x4a9   : > { %16171 = vmatpush3.msra.mxu1 %v13680_v49  ;;  %16227 = vmatpush3.msra.mxu0 %v13676_v54 }
 0x4aa   : > { %16069 = vmatmul.mubr.msk.f32.gmra.mxu1 %vm668_vm0, %v19903_v39  ;;  %16128 = vmatmul.mubr.msk.f32.gmra.mxu0 %vm668_vm0, %v19955_v1  ;;  %v7485_v39 = vld [vmem:[#allocation2 + $0x118] sm:$0xff] }
 0x4ab   : > { %16071 = vmatprep.mubr.msk.f32.mxu1 %vm668_vm0, %v19915_v63  ;;  %16130 = vmatprep.mubr.msk.f32.mxu0 %vm668_vm0, %v19971_v3  ;;  %v7486_v63 = vld [vmem:[#allocation2 + $0x120] sm:$0xff] }
 0x4ac   : > { %16172 = vmatprep.subr.mxu1 %v13679_v15  ;;  %16228 = vmatprep.subr.mxu0 %v13675_v8 }
 0x4ad   : > { %16173 = vmatpush3.msra.mxu1 %v13679_v15  ;;  %16229 = vmatpush3.msra.mxu0 %v13675_v8  ;;  %v20323_v15 = vld [vmem:[#allocation2 + $0x59] sm:$0xff] }
 0x4ae   : > { %16072 = vmatmul.mubr.msk.f32.gmra.mxu1 %vm668_vm0, %v19919_v44  ;;  %16131 = vmatmul.mubr.msk.f32.gmra.mxu0 %vm668_vm0, %v19979_v60  ;;  %v7877_v44 = vld [vmem:[#allocation2 + $0x9] sm:$0xff] }
 0x4af   : > { %16074 = vmatprep.mubr.msk.f32.mxu1 %vm668_vm0, %v19931_v37  ;;  %16133 = vmatprep.mubr.msk.f32.mxu0 %vm668_vm0, %v19985_v33  ;;  %v20253_v37 = vpop.f32.mrf.mxu0 }
 0x4b0   : > { %16278 = vmatprep.subr.mxu1 %v20160_v46 }
 0x4b2   : > { %16075 = vmatmul.mubr.msk.f32.gmra.mxu1 %vm668_vm0, %v19937_v42  ;;  %16134 = vmatmul.mubr.msk.f32.gmra.mxu0 %vm668_vm0, %v19991_v57  ;;  %v7878_v42 = vld [vmem:[#allocation2 + $0x11] sm:$0xff] }
 0x4b3   : > { %16077 = vmatprep.mubr.msk.f32.mxu1 %vm668_vm0, %v19949_v28  ;;  %16136 = vmatprep.mubr.msk.f32.mxu0 %vm668_vm0, %v19997_v13  ;;  %v7879_v28 = vld [vmem:[#allocation2 + $0x19] sm:$0xff] }
 0x4b6   : > { %16078 = vmatmul.mubr.msk.f32.gmra.mxu1 %vm668_vm0, %v19955_v1  ;;  %16137 = vmatmul.mubr.msk.f32.gmra.mxu0 %vm668_vm0, %v20003_v31  ;;  %v6246_v1 = vpop.f32.mrf.mxu0 }
 0x4b7   : > { %16080 = vmatprep.mubr.msk.f32.mxu1 %vm668_vm0, %v19971_v3  ;;  %16139 = vmatprep.mubr.msk.f32.mxu0 %vm668_vm0, %v20009_v10  ;;  %v13749_v3 = vld [vmem:[%s23041_s12 + $0x110] sm:$0xff] }
 0x4ba   : > { %16081 = vmatmul.mubr.msk.f32.gmra.mxu1 %vm668_vm0, %v19979_v60  ;;  %16140 = vmatmul.mubr.msk.f32.gmra.mxu0 %vm668_vm0, %v20015_v41 }
 0x4bb   : > { %16083 = vmatprep.mubr.msk.f32.mxu1 %vm668_vm0, %v19985_v33  ;;  %16142 = vmatprep.mubr.msk.f32.mxu0 %vm668_vm0, %v20021_v48 }
 0x4be   : > { %16084 = vmatmul.mubr.msk.f32.gmra.mxu1 %vm668_vm0, %v19991_v57  ;;  %16143 = vmatmul.mubr.msk.f32.gmra.mxu0 %vm668_vm0, %v20027_v19  ;;  %v20270_v57 = vld [vmem:[#allocation2 + $0x29] sm:$0xff] }
 0x4bf   : > { %16086 = vmatprep.mubr.msk.f32.mxu1 %vm668_vm0, %v19997_v13  ;;  %16145 = vmatprep.mubr.msk.f32.mxu0 %vm668_vm0, %v20033_v0 }
 0x4c2   : > { %16087 = vmatmul.mubr.msk.f32.gmra.mxu1 %vm668_vm0, %v20003_v31  ;;  %16146 = vmatmul.mubr.msk.f32.gmra.mxu0 %vm668_vm0, %v20039_v58 }
 0x4c3   : > { %16089 = vmatprep.mubr.msk.f32.mxu1 %vm668_vm0, %v20009_v10  ;;  %16148 = vmatprep.mubr.msk.f32.mxu0 %vm668_vm0, %v20045_v47 }
 0x4c6   : > { %16090 = vmatmul.mubr.msk.f32.gmra.mxu1 %vm668_vm0, %v20015_v41  ;;  %16149 = vmatmul.mubr.msk.f32.gmra.mxu0 %vm668_vm0, %v20051_v6  ;;  %v20279_v41 = vld [vmem:[#allocation2 + $0x31] sm:$0xff] }
 0x4c7   : > { %16092 = vmatprep.mubr.msk.f32.mxu1 %vm668_vm0, %v20021_v48  ;;  %16151 = vmatprep.mubr.msk.f32.mxu0 %vm668_vm0, %v20057_v22  ;;  %v13748_v48 = vld [vmem:[%s23041_s12 + $0x108] sm:$0xff] }
 0x4ca   : > { %16093 = vmatmul.mubr.msk.f32.gmra.mxu1 %vm668_vm0, %v20027_v19  ;;  %16152 = vmatmul.mubr.msk.f32.gmra.mxu0 %vm668_vm0, %v20063_v20 }
 0x4cb   : > { %16095 = vmatprep.mubr.msk.f32.mxu1 %vm668_vm0, %v20033_v0  ;;  %16154 = vmatprep.mubr.msk.f32.mxu0 %vm668_vm0, %v20069_v34 }
 0x4ce   : > { %16096 = vmatmul.mubr.msk.f32.gmra.mxu1 %vm668_vm0, %v20039_v58  ;;  %16155 = vmatmul.mubr.msk.f32.gmra.mxu0 %vm668_vm0, %v20075_v61  ;;  %v20288_v58 = vld [vmem:[#allocation2 + $0x39] sm:$0xff] }
 0x4cf   : > { %16098 = vmatprep.mubr.msk.f32.mxu1 %vm668_vm0, %v20045_v47  ;;  %16157 = vmatprep.mubr.msk.f32.mxu0 %vm668_vm0, %v20081_v56 }
 0x4d2   : > { %16099 = vmatmul.mubr.msk.f32.gmra.mxu1 %vm668_vm0, %v20051_v6  ;;  %16158 = vmatmul.mubr.msk.f32.gmra.mxu0 %vm668_vm0, %v20087_v62 }
 0x4d3   : > { %16101 = vmatprep.mubr.msk.f32.mxu1 %vm668_vm0, %v20057_v22  ;;  %16160 = vmatprep.mubr.msk.f32.mxu0 %vm668_vm0, %v20093_v14  ;;  %v20307_v14 = vld [vmem:[#allocation2 + $0x49] sm:$0xff] }
 0x4d6   : > { %16102 = vmatmul.mubr.msk.f32.gmra.mxu1 %vm668_vm0, %v20063_v20  ;;  %16161 = vmatmul.mubr.msk.f32.gmra.mxu0 %vm668_vm0, %v20099_v43 }
 0x4d7   : > { %16104 = vmatprep.mubr.msk.f32.mxu1 %vm668_vm0, %v20069_v34  ;;  %16163 = vmatprep.mubr.msk.f32.mxu0 %vm668_vm0, %v7485_v39  ;;  %v20298_v34 = vld [vmem:[#allocation2 + $0x41] sm:$0xff] }
 0x4da   : > { %16105 = vmatmul.mubr.msk.f32.gmra.mxu1 %vm668_vm0, %v20075_v61  ;;  %16164 = vmatmul.mubr.msk.f32.gmra.mxu0 %vm668_vm0, %v7486_v63  ;;  %v13747_v61 = vld [vmem:[%s23041_s12 + $0x100] sm:$0xff] }
 0x4db   : > { %16107 = vmatprep.mubr.msk.f32.mxu1 %vm668_vm0, %v20081_v56  ;;  %16230 = vmatprep.mubr.msk.f32.mxu0 %vm668_vm0, %v7877_v44  ;;  %v20333_v44 = vld [vmem:[#allocation2 + $0x61] sm:$0xff] }
 0x4de   : > { %16108 = vmatmul.mubr.msk.f32.gmra.mxu1 %vm668_vm0, %v20087_v62  ;;  %16231 = vmatmul.mubr.msk.f32.vlgmr.msra.gmra.mxu0 %vm668_vm0, %v7878_v42 }
 0x4df   : > { %16174 = vmatprep.mubr.msk.f32.mxu1 %vm668_vm0, %v7879_v28  ;;  %16233 = vmatprep.mubr.msk.f32.mxu0 %vm668_vm0, %v7879_v28 }
 0x4e2   : > { %v20266_v60 = vpop.f32.mrf.mxu1  ;;  %v15899_v33 = vpop.f32.mrf.mxu0  ;;  %16175 = vmatmul.mubr.msk.f32.vlgmr.msra.gmra.mxu1 %vm668_vm0, %v7880_v24  ;;  %16234 = vmatmul.mubr.msk.f32.gmra.mxu0 %vm668_vm0, %v7880_v24 }
 0x4e3   : > { %16279 = vmatpush3.msra.mxu1 %v20160_v46  ;;  %16177 = vmatprep.mubr.msk.f32.mxu1 %vm668_vm0, %v20270_v57 }
 0x4e4   : > { %16236 = vmatprep.mubr.msk.f32.mxu0 %vm668_vm0, %v20270_v57  ;;  %v6015_v13 = vpop.f32.mrf.mxu1  ;;  %v6256_v31 = vpop.f32.mrf.mxu0  ;;  %16280 = vmatprep.subr.mxu1 %v13749_v3 }
 0x4e5   : > { %v20277_v10 = vadd.f32 %v6246_v1, %v6015_v13  ;;  %16281 = vmatpush3.msra.mxu1 %v13749_v3  ;;  %v20339_v1 = vld [vmem:[#allocation2 + $0x69] sm:$0xff] }
 0x4e6   : > { %v15843_v19 = vpop.f32.mrf.mxu1  ;;  %v15902_v0 = vpop.f32.mrf.mxu0  ;;  %16178 = vmatmul.mubr.msk.f32.gmra.mxu1 %vm668_vm0, %v20279_v41  ;;  %16237 = vmatmul.mubr.msk.f32.gmra.mxu0 %vm668_vm0, %v20279_v41 }
 0x4e7   : > { %v20290_v47 = vadd.f32 %v15899_v33, %v15843_v19  ;;  %16180 = vmatprep.mubr.msk.f32.mxu1 %vm668_vm0, %v20288_v58  ;;  %16239 = vmatprep.mubr.msk.f32.mxu0 %vm668_vm0, %v20288_v58 }
 0x4e8   : > { %v6025_v6 = vpop.f32.mrf.mxu1  ;;  %v6266_v22 = vpop.f32.mrf.mxu0  ;;  %16282 = vmatprep.subr.mxu1 %v13748_v48 }
 0x4e9   : > { %v20296_v20 = vadd.f32 %v6256_v31, %v6025_v6  ;;  %16283 = vmatpush3.msra.mxu1 %v13748_v48  ;;  %v20349_v31 = vld [vmem:[#allocation2 + $0x71] sm:$0xff] }
 0x4ea   : > { %v15846_v56 = vpop.f32.mrf.mxu1  ;;  %v15905_v62 = vpop.f32.mrf.mxu0  ;;  %16181 = vmatmul.mubr.msk.f32.gmra.mxu1 %vm668_vm0, %v20298_v34  ;;  %16240 = vmatmul.mubr.msk.f32.gmra.mxu0 %vm668_vm0, %v20298_v34 }
 0x4eb   : > { %v20309_v43 = vadd.f32 %v15902_v0, %v15846_v56  ;;  %16183 = vmatprep.mubr.msk.f32.mxu1 %vm668_vm0, %v20307_v14  ;;  %16242 = vmatprep.mubr.msk.f32.mxu0 %vm668_vm0, %v20307_v14  ;;  %v20355_v0 = vld [vmem:[#allocation2 + $0x79] sm:$0xff] }
 0x4ec   : > { %v6035_v25 = vpop.f32.mrf.mxu1  ;;  %v6276_v50 = vpop.f32.mrf.mxu0  ;;  %16284 = vmatprep.subr.mxu1 %v13747_v61 }
 0x4ed   : > { %v20315_v30 = vadd.f32 %v6266_v22, %v6035_v25  ;;  %16285 = vmatpush3.msra.mxu1 %v13747_v61 }
 0x4ee   : > { %v15849_v49 = vpop.f32.mrf.mxu1  ;;  %v15908_v54 = vpop.f32.mrf.mxu0  ;;  %16184 = vmatmul.mubr.msk.f32.gmra.mxu1 %vm668_vm0, %v20317_v52  ;;  %16243 = vmatmul.mubr.msk.f32.gmra.mxu0 %vm668_vm0, %v20317_v52 }
 0x4ef   : > { %v20325_v8 = vadd.f32 %v15905_v62, %v15849_v49  ;;  %16186 = vmatprep.mubr.msk.f32.mxu1 %vm668_vm0, %v20323_v15  ;;  %16245 = vmatprep.mubr.msk.f32.mxu0 %vm668_vm0, %v20323_v15  ;;  %v20365_v62 = vld [vmem:[#allocation2 + $0x81] sm:$0xff]  ;;  %v20371_v49 = vld [vmem:[#allocation2 + $0x89] sm:$0xff] }
 0x4f0   : > { %v6045_v46 = vpop.f32.mrf.mxu1  ;;  %v6286_v39 = vpop.f32.mrf.mxu0 }
 0x4f1   : > { %v20331_v63 = vadd.f32 %v6276_v50, %v6045_v46 }
 0x4f2   : > { %v15852_v42 = vpop.f32.mrf.mxu1  ;;  %v15911_v28 = vpop.f32.mrf.mxu0  ;;  %16187 = vmatmul.mubr.msk.f32.gmra.mxu1 %vm668_vm0, %v20333_v44  ;;  %16246 = vmatmul.mubr.msk.f32.gmra.mxu0 %vm668_vm0, %v20333_v44 }
 0x4f3   : > { %v20341_v24 = vadd.f32 %v15908_v54, %v15852_v42  ;;  %16189 = vmatprep.mubr.msk.f32.mxu1 %vm668_vm0, %v20339_v1  ;;  %16248 = vmatprep.mubr.msk.f32.mxu0 %vm668_vm0, %v20339_v1 }
 0x4f4   : > { %v6055_v3 = vpop.f32.mrf.mxu1  ;;  %v6296_v33 = vpop.f32.mrf.mxu0 }
 0x4f5   : > { %v20347_v13 = vadd.f32 %v6286_v39, %v6055_v3 }
 0x4f6   : > { %v15855_v48 = vpop.f32.mrf.mxu1  ;;  %v15914_v19 = vpop.f32.mrf.mxu0  ;;  %16190 = vmatmul.mubr.msk.f32.gmra.mxu1 %vm668_vm0, %v20349_v31  ;;  %16249 = vmatmul.mubr.msk.f32.gmra.mxu0 %vm668_vm0, %v20349_v31 }
 0x4f7   : > { %v20357_v6 = vadd.f32 %v15911_v28, %v15855_v48  ;;  %16192 = vmatprep.mubr.msk.f32.mxu1 %vm668_vm0, %v20355_v0  ;;  %16251 = vmatprep.mubr.msk.f32.mxu0 %vm668_vm0, %v20355_v0  ;;  %v20381_v28 = vld [vmem:[#allocation2 + $0x91] sm:$0xff]  ;;  %v20387_v48 = vld [vmem:[#allocation2 + $0x99] sm:$0xff] }
 0x4f8   : > { %v6065_v22 = vpop.f32.mrf.mxu1  ;;  %v6306_v61 = vpop.f32.mrf.mxu0 }
 0x4f9   : > { %v20363_v56 = vadd.f32 %v6296_v33, %v6065_v22 }
 0x4fa   : > { %v15858_v25 = vpop.f32.mrf.mxu1  ;;  %v15917_v50 = vpop.f32.mrf.mxu0  ;;  %16193 = vmatmul.mubr.msk.f32.gmra.mxu1 %vm668_vm0, %v20365_v62  ;;  %16252 = vmatmul.mubr.msk.f32.gmra.mxu0 %vm668_vm0, %v20365_v62 }
 0x4fb   : > { %v20373_v54 = vadd.f32 %v15914_v19, %v15858_v25  ;;  %16195 = vmatprep.mubr.msk.f32.mxu1 %vm668_vm0, %v20371_v49  ;;  %16254 = vmatprep.mubr.msk.f32.mxu0 %vm668_vm0, %v20371_v49 }
 0x4fc   : > { %v6075_v46 = vpop.f32.mrf.mxu1  ;;  %v6316_v39 = vpop.f32.mrf.mxu0 }
 0x4fd   : > { %v20379_v42 = vadd.f32 %v6306_v61, %v6075_v46  ;;  %v20399_v46 = vld [vmem:[#allocation2 + $0xa1] sm:$0xff] }
 0x4fe   : > { %v15861_v3 = vpop.f32.mrf.mxu1  ;;  %v15920_v33 = vpop.f32.mrf.mxu0  ;;  %16196 = vmatmul.mubr.msk.f32.gmra.mxu1 %vm668_vm0, %v20381_v28  ;;  %16255 = vmatmul.mubr.msk.f32.gmra.mxu0 %vm668_vm0, %v20381_v28 }
 0x4ff   : > { %v20389_v19 = vadd.f32 %v15917_v50, %v15861_v3  ;;  %16198 = vmatprep.mubr.msk.f32.mxu1 %vm668_vm0, %v20387_v48  ;;  %16257 = vmatprep.mubr.msk.f32.mxu0 %vm668_vm0, %v20387_v48  ;;  %v20405_v50 = vld [vmem:[#allocation2 + $0xa9] sm:$0xff] }
 0x500   : > { %v6085_v22 = vpop.f32.mrf.mxu1  ;;  %v20395_v61 = vpop.f32.mrf.mxu0 }
 0x501   : > { %23419 = vst [vmem:[#allocation21_spill] sm:$0xff] %v20395_v61  ;;  %v20397_v25 = vadd.f32 %v6316_v39, %v6085_v22 }
 0x502   : > { %v15864_v59 = vpop.f32.mrf.mxu1  ;;  %v15923_v38 = vpop.f32.mrf.mxu0  ;;  %16199 = vmatmul.mubr.msk.f32.gmra.mxu1 %vm668_vm0, %v20399_v46  ;;  %16258 = vmatmul.mubr.msk.f32.gmra.mxu0 %vm668_vm0, %v20399_v46 }
 0x503   : > { %v20407_v3 = vadd.f32 %v15920_v33, %v15864_v59  ;;  %16201 = vmatprep.mubr.msk.f32.mxu1 %vm668_vm0, %v20405_v50  ;;  %16260 = vmatprep.mubr.msk.f32.mxu0 %vm668_vm0, %v20405_v50  ;;  %v20423_v59 = vld [vmem:[#allocation2 + $0xb9] sm:$0xff] }
 0x504   : > { %v20413_v39 = vpop.f32.mrf.mxu1  ;;  %v20415_v22 = vpop.f32.mrf.mxu0 }
 0x505   : > { %23420 = vst [vmem:[#allocation45_spill] sm:$0xff] %v20413_v39  ;;  %23421 = vst [vmem:[#allocation121_spill] sm:$0xff] %v20415_v22 }
 0x506   : > { %v15867_v21 = vpop.f32.mrf.mxu1  ;;  %v15926_v16 = vpop.f32.mrf.mxu0  ;;  %16202 = vmatmul.mubr.msk.f32.gmra.mxu1 %vm668_vm0, %v20417_v17  ;;  %16261 = vmatmul.mubr.msk.f32.gmra.mxu0 %vm668_vm0, %v20417_v17 }
 0x507   : > { %v20425_v33 = vadd.f32 %v15923_v38, %v15867_v21  ;;  %16204 = vmatprep.mubr.msk.f32.mxu1 %vm668_vm0, %v20423_v59  ;;  %16263 = vmatprep.mubr.msk.f32.mxu0 %vm668_vm0, %v20423_v59  ;;  %v20441_v21 = vld [vmem:[#allocation2 + $0xc9] sm:$0xff] }
 0x508   : > { %v20431_v55 = vpop.f32.mrf.mxu1  ;;  %v20433_v11 = vpop.f32.mrf.mxu0 }
 0x509   : > { %23422 = vst [vmem:[#allocation79_spill] sm:$0xff] %v20431_v55  ;;  %23423 = vst [vmem:[#allocation89_spill] sm:$0xff] %v20433_v11  ;;  %v20453_v11 = vld [vmem:[#allocation2 + $0xd1] sm:$0xff]  ;;  %v20471_v55 = vld [vmem:[#allocation2 + $0xe1] sm:$0xff] }
 0x50a   : > { %v15870_v27 = vpop.f32.mrf.mxu1  ;;  %v15929_v4 = vpop.f32.mrf.mxu0  ;;  %16205 = vmatmul.mubr.msk.f32.gmra.mxu1 %vm668_vm0, %v20435_v18  ;;  %16264 = vmatmul.mubr.msk.f32.gmra.mxu0 %vm668_vm0, %v20435_v18 }
 0x50b   : > { %v20443_v38 = vadd.f32 %v15926_v16, %v15870_v27  ;;  %16207 = vmatprep.mubr.msk.f32.mxu1 %vm668_vm0, %v20441_v21  ;;  %16266 = vmatprep.mubr.msk.f32.mxu0 %vm668_vm0, %v20441_v21  ;;  %v20459_v16 = vld [vmem:[#allocation2 + $0xd9] sm:$0xff] }
 0x50c   : > { %v20449_v35 = vpop.f32.mrf.mxu1  ;;  %v20451_v45 = vpop.f32.mrf.mxu0 }
 0x50d   : > { %23424 = vst [vmem:[#allocation80_spill] sm:$0xff] %v20449_v35  ;;  %23425 = vst [vmem:[#allocation92_spill] sm:$0xff] %v20451_v45 }
 0x50e   : > { %v15873_v40 = vpop.f32.mrf.mxu1  ;;  %v15932_v22 = vpop.f32.mrf.mxu0  ;;  %16208 = vmatmul.mubr.msk.f32.gmra.mxu1 %vm668_vm0, %v20453_v11  ;;  %16267 = vmatmul.mubr.msk.f32.gmra.mxu0 %vm668_vm0, %v20453_v11 }
 0x50f   : > { %v20461_v27 = vadd.f32 %v15929_v4, %v15873_v40  ;;  %16210 = vmatprep.mubr.msk.f32.mxu1 %vm668_vm0, %v20459_v16  ;;  %16269 = vmatprep.mubr.msk.f32.mxu0 %vm668_vm0, %v20459_v16  ;;  %v20477_v40 = vld [vmem:[#allocation2 + $0xe9] sm:$0xff] }
 0x510   : > { %v20467_v45 = vpop.f32.mrf.mxu1  ;;  %v20469_v35 = vpop.f32.mrf.mxu0 }
 0x511   : > { %23426 = vst [vmem:[#allocation41_spill] sm:$0xff] %v20467_v45  ;;  %23427 = vst [vmem:[#allocation43_spill] sm:$0xff] %v20469_v35 }
 0x512   : > { %v15876_v61 = vpop.f32.mrf.mxu1  ;;  %v15935_v39 = vpop.f32.mrf.mxu0  ;;  %16211 = vmatmul.mubr.msk.f32.gmra.mxu1 %vm668_vm0, %v20471_v55  ;;  %16270 = vmatmul.mubr.msk.f32.gmra.mxu0 %vm668_vm0, %v20471_v55 }
 0x513   : > { %v20479_v4 = vadd.f32 %v15932_v22, %v15876_v61  ;;  %16213 = vmatprep.mubr.msk.f32.mxu1 %vm668_vm0, %v20477_v40  ;;  %16272 = vmatprep.mubr.msk.f32.mxu0 %vm668_vm0, %v20477_v40  ;;  %v20495_v61 = vld [vmem:[#allocation2 + $0xf9] sm:$0xff] }
 0x514   : > { %v20485_v35 = vpop.f32.mrf.mxu1  ;;  %v20487_v45 = vpop.f32.mrf.mxu0 }
 0x515   : > { %23428 = vst [vmem:[#allocation22_spill] sm:$0xff] %v20485_v35  ;;  %23429 = vst [vmem:[#allocation48_spill] sm:$0xff] %v20487_v45 }
 0x516   : > { %v15879_v7 = vpop.f32.mrf.mxu1  ;;  %v15938_v26 = vpop.f32.mrf.mxu0  ;;  %16214 = vmatmul.mubr.msk.f32.gmra.mxu1 %vm668_vm0, %v20489_v9  ;;  %16273 = vmatmul.mubr.msk.f32.gmra.mxu0 %vm668_vm0, %v20489_v9 }
 0x517   : > { %v20497_v22 = vadd.f32 %v15935_v39, %v15879_v7  ;;  %16216 = vmatprep.mubr.msk.f32.mxu1 %vm668_vm0, %v20495_v61  ;;  %16275 = vmatprep.mubr.msk.f32.mxu0 %vm668_vm0, %v20495_v61  ;;  %v20513_v7 = vld [vmem:[#allocation2 + $0x109] sm:$0xff] }
 0x518   : > { %v20503_v45 = vpop.f32.mrf.mxu1  ;;  %v20505_v35 = vpop.f32.mrf.mxu0 }
 0x519   : > { %23430 = vst [vmem:[#allocation81_spill] sm:$0xff] %v20503_v45  ;;  %23431 = vst [vmem:[#allocation95_spill] sm:$0xff] %v20505_v35 }
 0x51a   : > { %v15882_v32 = vpop.f32.mrf.mxu1  ;;  %v15941_v51 = vpop.f32.mrf.mxu0  ;;  %16217 = vmatmul.mubr.msk.f32.gmra.mxu1 %vm668_vm0, %v20507_v36  ;;  %16276 = vmatmul.mubr.msk.f32.gmra.mxu0 %vm668_vm0, %v20507_v36 }
 0x51b   : > { %v20515_v39 = vadd.f32 %v15938_v26, %v15882_v32  ;;  %16219 = vmatprep.mubr.msk.f32.mxu1 %vm668_vm0, %v20513_v7 }
 0x51c   : > { %v20519_v45 = vpop.f32.mrf.mxu1  ;;  %v20521_v35 = vpop.f32.mrf.mxu0 }
 0x51d   : > { %23432 = vst [vmem:[#allocation82_spill] sm:$0xff] %v20519_v45  ;;  %23433 = vst [vmem:[#allocation98_spill] sm:$0xff] %v20521_v35  ;;  %v6252_v35 = vadd.f32 %v20253_v37, %v20266_v60 }
 0x51e   : > { %v15885_v2 = vpop.f32.mrf.mxu1  ;;  %v20525_v12 = vpop.f32.mrf.mxu0  ;;  %16220 = vmatmul.mubr.msk.f32.gmra.mxu1 %vm668_vm0, %v20523_v53 }
 0x51f   : > { %v20529_v23 = vadd.f32 %v15941_v51, %v15885_v2  ;;  %16286 = vmatprep.mubr.msk.f32.mxu1 %vm668_vm0, %v20270_v57 }
 0x520   : > { %v20533_v32 = vpop.f32.mrf.mxu1  ;;  %v20535_v26 = vpop.f32.mrf.mxu0 }
 0x521   : > { %23434 = vst [vmem:[#allocation44_spill] sm:$0xff] %v20533_v32  ;;  %23435 = vst [vmem:[#allocation3_spill] sm:$0xff] %v20535_v26 }
 0x522   : > { %v15952_v45 = vpop.f32.mrf.mxu1  ;;  %v20539_v5 = vpop.f32.mrf.mxu0  ;;  %16287 = vmatmul.mubr.msk.f32.vlgmr.msra.gmra.mxu1 %vm668_vm0, %v20279_v41 }
 0x523   : > { %v20543_v29 = vadd.f32 %v15952_v45, %v6252_v35  ;;  %16289 = vmatprep.mubr.msk.f32.mxu1 %vm668_vm0, %v20288_v58 }
 0x524   : > { %v6604_v2 = vpop.f32.mrf.mxu1  ;;  %v20547_v51 = vpop.f32.mrf.mxu0 }
 0x525   : > { %v20550_v57 = vadd.f32 %v6604_v2, %v20277_v10 }
 0x526   : > { %v15955_v32 = vpop.f32.mrf.mxu1  ;;  %v20552_v26 = vpop.f32.mrf.mxu0  ;;  %16290 = vmatmul.mubr.msk.f32.gmra.mxu1 %vm668_vm0, %v20298_v34 }
 0x527   : > { %v20557_v37 = vadd.f32 %v15955_v32, %v20290_v47  ;;  %16292 = vmatprep.mubr.msk.f32.mxu1 %vm668_vm0, %v20307_v14 }
 0x528   : > { %v6614_v45 = vpop.f32.mrf.mxu1  ;;  %v20561_v35 = vpop.f32.mrf.mxu0 }
 0x529   : > { %v20564_v60 = vadd.f32 %v6614_v45, %v20296_v20 }
 0x52a   : > { %v15958_v10 = vpop.f32.mrf.mxu1  ;;  %v20566_v41 = vpop.f32.mrf.mxu0  ;;  %16293 = vmatmul.mubr.msk.f32.gmra.mxu1 %vm668_vm0, %v20317_v52 }
 0x52b   : > { %v20571_v58 = vadd.f32 %v15958_v10, %v20309_v43  ;;  %16295 = vmatprep.mubr.msk.f32.mxu1 %vm668_vm0, %v20323_v15 }
 0x52c   : > { %v6624_v47 = vpop.f32.mrf.mxu1  ;;  %v20575_v34 = vpop.f32.mrf.mxu0 }
 0x52d   : > { %v20578_v14 = vadd.f32 %v6624_v47, %v20315_v30 }
 0x52e   : > { %v15961_v20 = vpop.f32.mrf.mxu1  ;;  %v20580_v32 = vpop.f32.mrf.mxu0  ;;  %16296 = vmatmul.mubr.msk.f32.gmra.mxu1 %vm668_vm0, %v20333_v44 }
 0x52f   : > { %v20585_v52 = vadd.f32 %v15961_v20, %v20325_v8  ;;  %16298 = vmatprep.mubr.msk.f32.mxu1 %vm668_vm0, %v20339_v1 }
 0x530   : > { %v6634_v43 = vpop.f32.mrf.mxu1  ;;  %v20589_v15 = vpop.f32.mrf.mxu0 }
 0x531   : > { %v20592_v2 = vadd.f32 %v6634_v43, %v20331_v63 }
 0x532   : > { %v15964_v30 = vpop.f32.mrf.mxu1  ;;  %v20594_v45 = vpop.f32.mrf.mxu0  ;;  %16299 = vmatmul.mubr.msk.f32.gmra.mxu1 %vm668_vm0, %v20349_v31 }
 0x533   : > { %v20599_v44 = vadd.f32 %v15964_v30, %v20341_v24  ;;  %16301 = vmatprep.mubr.msk.f32.mxu1 %vm668_vm0, %v20355_v0 }
 0x534   : > { %v6644_v8 = vpop.f32.mrf.mxu1  ;;  %v20603_v1 = vpop.f32.mrf.mxu0 }
 0x535   : > { %v20606_v10 = vadd.f32 %v6644_v8, %v20347_v13 }
 0x536   : > { %v15967_v63 = vpop.f32.mrf.mxu1  ;;  %v20608_v47 = vpop.f32.mrf.mxu0  ;;  %16302 = vmatmul.mubr.msk.f32.gmra.mxu1 %vm668_vm0, %v20365_v62 }
 0x537   : > { %v20613_v31 = vadd.f32 %v15967_v63, %v20357_v6  ;;  %16304 = vmatprep.mubr.msk.f32.mxu1 %vm668_vm0, %v20371_v49 }
 0x538   : > { %v6654_v24 = vpop.f32.mrf.mxu1  ;;  %v20617_v0 = vpop.f32.mrf.mxu0 }
 0x539   : > { %v20620_v20 = vadd.f32 %v6654_v24, %v20363_v56 }
 0x53a   : > { %v15970_v13 = vpop.f32.mrf.mxu1  ;;  %v20622_v43 = vpop.f32.mrf.mxu0  ;;  %16305 = vmatmul.mubr.msk.f32.gmra.mxu1 %vm668_vm0, %v20381_v28 }
 0x53b   : > { %23436 = vst [vmem:[#allocation28_spill] sm:$0xff] %v20620_v20  ;;  %v20627_v62 = vadd.f32 %v15970_v13, %v20373_v54  ;;  %16307 = vmatprep.mubr.msk.f32.mxu1 %vm668_vm0, %v20387_v48 }
 0x53c   : > { %v6664_v6 = vpop.f32.mrf.mxu1  ;;  %v20631_v49 = vpop.f32.mrf.mxu0 }
 0x53d   : > { %23437 = vst [vmem:[#allocation46_spill] sm:$0xff] %v20631_v49  ;;  %v20634_v30 = vadd.f32 %v6664_v6, %v20379_v42 }
 0x53e   : > { %v15973_v56 = vpop.f32.mrf.mxu1  ;;  %v20636_v8 = vpop.f32.mrf.mxu0  ;;  %16308 = vmatmul.mubr.msk.f32.gmra.mxu1 %vm668_vm0, %v20399_v46 }
 0x53f   : > { %23438 = vst [vmem:[#allocation23_spill] sm:$0xff] %v20634_v30  ;;  %v20641_v28 = vadd.f32 %v15973_v56, %v20389_v19  ;;  %16310 = vmatprep.mubr.msk.f32.mxu1 %vm668_vm0, %v20405_v50 }
 0x540   : > { %v6674_v54 = vpop.f32.mrf.mxu1  ;;  %v20645_v48 = vpop.f32.mrf.mxu0 }
 0x541   : > { %23439 = vst [vmem:[#allocation51_spill] sm:$0xff] %v20645_v48  ;;  %v20648_v63 = vadd.f32 %v6674_v54, %v20397_v25 }
 0x542   : > { %v15976_v42 = vpop.f32.mrf.mxu1  ;;  %v20650_v24 = vpop.f32.mrf.mxu0  ;;  %16311 = vmatmul.mubr.msk.f32.gmra.mxu1 %vm668_vm0, %v20417_v17 }
 0x543   : > { %23440 = vst [vmem:[#allocation84_spill] sm:$0xff] %v20648_v63  ;;  %v20655_v46 = vadd.f32 %v15976_v42, %v20407_v3  ;;  %16313 = vmatprep.mubr.msk.f32.mxu1 %vm668_vm0, %v20423_v59 }
 0x544   : > { %v20659_v19 = vpop.f32.mrf.mxu1  ;;  %v20661_v50 = vpop.f32.mrf.mxu0 }
 0x545   : > { %23441 = vst [vmem:[#allocation101_spill] sm:$0xff] %v20659_v19  ;;  %23442 = vst [vmem:[#allocation85_spill] sm:$0xff] %v20661_v50 }
 0x546   : > { %v15979_v13 = vpop.f32.mrf.mxu1  ;;  %v20663_v6 = vpop.f32.mrf.mxu0  ;;  %16314 = vmatmul.mubr.msk.f32.gmra.mxu1 %vm668_vm0, %v20435_v18 }
 0x547   : > { %v20668_v25 = vadd.f32 %v15979_v13, %v20425_v33  ;;  %16316 = vmatprep.mubr.msk.f32.mxu1 %vm668_vm0, %v20441_v21 }
 0x548   : > { %v20672_v17 = vpop.f32.mrf.mxu1  ;;  %v20674_v3 = vpop.f32.mrf.mxu0 }
 0x549   : > { %23443 = vst [vmem:[#allocation104_spill] sm:$0xff] %v20672_v17  ;;  %23444 = vst [vmem:[#allocation47_spill] sm:$0xff] %v20674_v3 }
 0x54a   : > { %v15982_v59 = vpop.f32.mrf.mxu1  ;;  %v20676_v56 = vpop.f32.mrf.mxu0  ;;  %16317 = vmatmul.mubr.msk.f32.gmra.mxu1 %vm668_vm0, %v20453_v11 }
 0x54b   : > { %v20681_v54 = vadd.f32 %v15982_v59, %v20443_v38  ;;  %16319 = vmatprep.mubr.msk.f32.mxu1 %vm668_vm0, %v20459_v16 }
 0x54c   : > { %v20685_v18 = vpop.f32.mrf.mxu1  ;;  %v20687_v33 = vpop.f32.mrf.mxu0 }
 0x54d   : > { %23445 = vst [vmem:[#allocation49_spill] sm:$0xff] %v20685_v18  ;;  %23446 = vst [vmem:[#allocation24_spill] sm:$0xff] %v20687_v33 }
 0x54e   : > { %v15985_v21 = vpop.f32.mrf.mxu1  ;;  %v20689_v42 = vpop.f32.mrf.mxu0  ;;  %16320 = vmatmul.mubr.msk.f32.gmra.mxu1 %vm668_vm0, %v20471_v55 }
 0x54f   : > { %v20694_v13 = vadd.f32 %v15985_v21, %v20461_v27  ;;  %16322 = vmatprep.mubr.msk.f32.mxu1 %vm668_vm0, %v20477_v40 }
 0x550   : > { %v20698_v11 = vpop.f32.mrf.mxu1  ;;  %v20700_v38 = vpop.f32.mrf.mxu0 }
 0x551   : > { %23447 = vst [vmem:[#allocation54_spill] sm:$0xff] %v20698_v11  ;;  %23448 = vst [vmem:[#allocation87_spill] sm:$0xff] %v20700_v38 }
 0x552   : > { %v15988_v16 = vpop.f32.mrf.mxu1  ;;  %v20702_v59 = vpop.f32.mrf.mxu0  ;;  %16323 = vmatmul.mubr.msk.f32.gmra.mxu1 %vm668_vm0, %v20489_v9 }
 0x553   : > { %v20707_v33 = vadd.f32 %v15988_v16, %v20479_v4  ;;  %16325 = vmatprep.mubr.msk.f32.mxu1 %vm668_vm0, %v20495_v61  ;;  %v8503_v61 = vld [vmem:[#allocation2 + $0x119] sm:$0xff] }
 0x554   : > { %v20711_v55 = vpop.f32.mrf.mxu1  ;;  %v20713_v27 = vpop.f32.mrf.mxu0 }
 0x555   : > { %23449 = vst [vmem:[#allocation112_spill] sm:$0xff] %v20711_v55  ;;  %23450 = vst [vmem:[#allocation88_spill] sm:$0xff] %v20713_v27 }
 0x556   : > { %v15991_v40 = vpop.f32.mrf.mxu1  ;;  %v20715_v21 = vpop.f32.mrf.mxu0  ;;  %16326 = vmatmul.mubr.msk.f32.gmra.mxu1 %vm668_vm0, %v20507_v36  ;;  %v8504_v36 = vld [vmem:[#allocation2 + $0x121] sm:$0xff] }
 0x557   : > { %v20720_v38 = vadd.f32 %v15991_v40, %v20497_v22  ;;  %16328 = vmatprep.mubr.msk.f32.mxu1 %vm668_vm0, %v20513_v7 }
 0x558   : > { %v20724_v9 = vpop.f32.mrf.mxu1  ;;  %v20726_v4 = vpop.f32.mrf.mxu0 }
 0x559   : > { %23451 = vst [vmem:[#allocation6_spill] sm:$0xff] %v20724_v9  ;;  %23452 = vst [vmem:[#allocation50_spill] sm:$0xff] %v20726_v4 }
 0x55a   : > { %v15994_v16 = vpop.f32.mrf.mxu1  ;;  %v20728_v55 = vpop.f32.mrf.mxu0  ;;  %16329 = vmatmul.mubr.msk.f32.gmra.mxu1 %vm668_vm0, %v20523_v53 }
 0x55b   : > { %v20733_v27 = vadd.f32 %v15994_v16, %v20515_v39  ;;  %16331 = vmatprep.mubr.msk.f32.mxu1 %vm668_vm0, %v8503_v61 }
 0x55c   : > { %v20736_v22 = vpop.f32.mrf.mxu1  ;;  %v20738_v7 = vpop.f32.mrf.mxu0 }
 0x55d   : > { %23453 = vst [vmem:[#allocation30_spill] sm:$0xff] %v20736_v22  ;;  %23454 = vst [vmem:[#allocation52_spill] sm:$0xff] %v20738_v7 }
 0x55e   : > { %v15997_v40 = vpop.f32.mrf.mxu1  ;;  %v16120_v9 = vpop.f32.mrf.mxu0  ;;  %16332 = vmatmul.mubr.msk.f32.gmra.mxu1 %vm668_vm0, %v8504_v36 }
 0x55f   : > { %v20742_v4 = vadd.f32 %v15997_v40, %v20529_v23 }
 0x560   : > { %v20744_v11 = vpop.f32.mrf.mxu1  ;;  %v20746_v53 = vpop.f32.mrf.mxu0 }
 0x561   : > { %23455 = vst [vmem:[#allocation25_spill] sm:$0xff] %v20744_v11 }
 0x562   : > { %v16064_v39 = vpop.f32.mrf.mxu1  ;;  %v16123_v16 = vpop.f32.mrf.mxu0 }
 0x563   : > { %v7302_v61 = vadd.f32 %v16064_v39, %v20525_v12 }
 0x564   : > { %v20749_v18 = vpop.f32.mrf.mxu1  ;;  %v20751_v22 = vpop.f32.mrf.mxu0 }
 0x565   : > { %v7814_v7 = vadd.f32 %v16120_v9, %v7302_v61 }
 0x566   : > { %v16067_v3 = vpop.f32.mrf.mxu1  ;;  %v16126_v17 = vpop.f32.mrf.mxu0 }
 0x567   : > { %v20754_v36 = vadd.f32 %v7814_v7, %v20543_v29  ;;  %v7312_v23 = vadd.f32 %v16067_v3, %v20539_v5 }
 0x568   : > { %v20757_v40 = vpop.f32.mrf.mxu1  ;;  %v20759_v11 = vpop.f32.mrf.mxu0 }
 0x569   : > { %v7816_v50 = vadd.f32 %v16123_v16, %v7312_v23 }
 0x56a   : > { %v16070_v19 = vpop.f32.mrf.mxu1  ;;  %v16129_v63 = vpop.f32.mrf.mxu0 }
 0x56b   : > { %v20762_v12 = vadd.f32 %v7816_v50, %v20557_v37  ;;  %v7322_v39 = vadd.f32 %v16070_v19, %v20552_v26 }
 0x56c   : > { %v20765_v9 = vpop.f32.mrf.mxu1  ;;  %v20767_v61 = vpop.f32.mrf.mxu0 }
 0x56d   : > { %v7818_v29 = vadd.f32 %v16126_v17, %v7322_v39 }
 0x56e   : > { %v16073_v7 = vpop.f32.mrf.mxu1  ;;  %v16132_v48 = vpop.f32.mrf.mxu0 }
 0x56f   : > { %v20770_v5 = vadd.f32 %v7818_v29, %v20571_v58  ;;  %v7332_v3 = vadd.f32 %v16073_v7, %v20566_v41 }
 0x570   : > { %v20773_v16 = vpop.f32.mrf.mxu1  ;;  %v20775_v23 = vpop.f32.mrf.mxu0 }
 0x571   : > { %v7820_v37 = vadd.f32 %v16129_v63, %v7332_v3 }
 0x572   : > { %v16076_v50 = vpop.f32.mrf.mxu1  ;;  %v16135_v30 = vpop.f32.mrf.mxu0 }
 0x573   : > { %v20778_v26 = vadd.f32 %v7820_v37, %v20585_v52  ;;  %v7342_v19 = vadd.f32 %v16076_v50, %v20580_v32 }
 0x574   : > { %v20781_v17 = vpop.f32.mrf.mxu1  ;;  %v20783_v39 = vpop.f32.mrf.mxu0 }
 0x575   : > { %v7822_v58 = vadd.f32 %v16132_v48, %v7342_v19 }
 0x576   : > { %v16079_v29 = vpop.f32.mrf.mxu1  ;;  %v16138_v49 = vpop.f32.mrf.mxu0 }
 0x577   : > { %v20786_v41 = vadd.f32 %v7822_v58, %v20599_v44  ;;  %v7352_v7 = vadd.f32 %v16079_v29, %v20594_v45 }
 0x578   : > { %v20789_v63 = vpop.f32.mrf.mxu1  ;;  %v20791_v3 = vpop.f32.mrf.mxu0 }
 0x579   : > { %23456 = vst [vmem:[#allocation57_spill] sm:$0xff] %v20786_v41  ;;  %23457 = vst [vmem:[#allocation90_spill] sm:$0xff] %v20791_v3  ;;  %v7824_v52 = vadd.f32 %v16135_v30, %v7352_v7 }
 0x57a   : > { %v16082_v37 = vpop.f32.mrf.mxu1  ;;  %v16141_v20 = vpop.f32.mrf.mxu0 }
 0x57b   : > { %v20794_v32 = vadd.f32 %v7824_v52, %v20613_v31  ;;  %v7362_v50 = vadd.f32 %v16082_v37, %v20608_v47 }
 0x57c   : > { %v20797_v48 = vpop.f32.mrf.mxu1  ;;  %v20799_v19 = vpop.f32.mrf.mxu0 }
 0x57d   : > { %23458 = vst [vmem:[#allocation91_spill] sm:$0xff] %v20794_v32  ;;  %23459 = vst [vmem:[#allocation53_spill] sm:$0xff] %v20799_v19  ;;  %v7826_v44 = vadd.f32 %v16138_v49, %v7362_v50 }
 0x57e   : > { %v16085_v58 = vpop.f32.mrf.mxu1  ;;  %v16144_v41 = vpop.f32.mrf.mxu0 }
 0x57f   : > { %v20802_v45 = vadd.f32 %v7826_v44, %v20627_v62  ;;  %v7372_v29 = vadd.f32 %v16085_v58, %v20622_v43 }
 0x580   : > { %v20805_v30 = vpop.f32.mrf.mxu1  ;;  %v20807_v7 = vpop.f32.mrf.mxu0 }
 0x581   : > { %23460 = vst [vmem:[#allocation55_spill] sm:$0xff] %v20802_v45  ;;  %23461 = vst [vmem:[#allocation27_spill] sm:$0xff] %v20805_v30  ;;  %v7828_v31 = vadd.f32 %v16141_v20, %v7372_v29 }
 0x582   : > { %23462 = vst [vmem:[#allocation60_spill] sm:$0xff] %v20807_v7  ;;  %v16088_v52 = vpop.f32.mrf.mxu1  ;;  %v16147_v32 = vpop.f32.mrf.mxu0 }
 0x583   : > { %v20810_v47 = vadd.f32 %v7828_v31, %v20641_v28  ;;  %v7382_v37 = vadd.f32 %v16088_v52, %v20636_v8 }
 0x584   : > { %v20813_v49 = vpop.f32.mrf.mxu1  ;;  %v20815_v50 = vpop.f32.mrf.mxu0 }
 0x585   : > { %23463 = vst [vmem:[#allocation93_spill] sm:$0xff] %v20810_v47  ;;  %23464 = vst [vmem:[#allocation94_spill] sm:$0xff] %v20813_v49  ;;  %v7830_v62 = vadd.f32 %v16144_v41, %v7382_v37 }
 0x586   : > { %23465 = vst [vmem:[#allocation56_spill] sm:$0xff] %v20815_v50  ;;  %v16091_v44 = vpop.f32.mrf.mxu1  ;;  %v16150_v45 = vpop.f32.mrf.mxu0 }
 0x587   : > { %v20818_v43 = vadd.f32 %v7830_v62, %v20655_v46  ;;  %v7392_v58 = vadd.f32 %v16091_v44, %v20650_v24 }
 0x588   : > { %v20821_v20 = vpop.f32.mrf.mxu1  ;;  %v20823_v29 = vpop.f32.mrf.mxu0 }
 0x589   : > { %23466 = vst [vmem:[#allocation32_spill] sm:$0xff] %v20818_v43  ;;  %23467 = vst [vmem:[#allocation58_spill] sm:$0xff] %v20821_v20  ;;  %v7832_v28 = vadd.f32 %v16147_v32, %v7392_v58 }
 0x58a   : > { %23468 = vst [vmem:[#allocation29_spill] sm:$0xff] %v20823_v29  ;;  %v16094_v31 = vpop.f32.mrf.mxu1  ;;  %v16153_v47 = vpop.f32.mrf.mxu0 }
 0x58b   : > { %v20826_v8 = vadd.f32 %v7832_v28, %v20668_v25  ;;  %v7402_v52 = vadd.f32 %v16094_v31, %v20663_v6 }
 0x58c   : > { %v20829_v41 = vpop.f32.mrf.mxu1  ;;  %v20831_v37 = vpop.f32.mrf.mxu0 }
 0x58d   : > { %23469 = vst [vmem:[#allocation63_spill] sm:$0xff] %v20826_v8  ;;  %23470 = vst [vmem:[#allocation96_spill] sm:$0xff] %v20829_v41  ;;  %v7834_v46 = vadd.f32 %v16150_v45, %v7402_v52 }
 0x58e   : > { %23471 = vst [vmem:[#allocation97_spill] sm:$0xff] %v20831_v37  ;;  %v16097_v62 = vpop.f32.mrf.mxu1  ;;  %v16156_v43 = vpop.f32.mrf.mxu0 }
 0x58f   : > { %v20834_v24 = vadd.f32 %v7834_v46, %v20681_v54  ;;  %v7412_v44 = vadd.f32 %v16097_v62, %v20676_v56 }
 0x590   : > { %v20837_v32 = vpop.f32.mrf.mxu1  ;;  %v20839_v58 = vpop.f32.mrf.mxu0 }
 0x591   : > { %23472 = vst [vmem:[#allocation59_spill] sm:$0xff] %v20834_v24  ;;  %23473 = vst [vmem:[#allocation61_spill] sm:$0xff] %v20837_v32  ;;  %v7836_v25 = vadd.f32 %v16153_v47, %v7412_v44 }
 0x592   : > { %23474 = vst [vmem:[#allocation31_spill] sm:$0xff] %v20839_v58  ;;  %v16100_v28 = vpop.f32.mrf.mxu1  ;;  %v16159_v8 = vpop.f32.mrf.mxu0 }
 0x593   : > { %v20842_v6 = vadd.f32 %v7836_v25, %v20694_v13  ;;  %v7422_v31 = vadd.f32 %v16100_v28, %v20689_v42 }
 0x594   : > { %v20845_v45 = vpop.f32.mrf.mxu1  ;;  %v20847_v52 = vpop.f32.mrf.mxu0 }
 0x595   : > { %23475 = vst [vmem:[#allocation66_spill] sm:$0xff] %v20842_v6  ;;  %23476 = vst [vmem:[#allocation99_spill] sm:$0xff] %v20845_v45  ;;  %v7838_v54 = vadd.f32 %v16156_v43, %v7422_v31 }
 0x596   : > { %23477 = vst [vmem:[#allocation100_spill] sm:$0xff] %v20847_v52  ;;  %v16103_v46 = vpop.f32.mrf.mxu1  ;;  %v16162_v24 = vpop.f32.mrf.mxu0 }
 0x597   : > { %v20850_v56 = vadd.f32 %v7838_v54, %v20707_v33  ;;  %v7432_v62 = vadd.f32 %v16103_v46, %v20702_v59 }
 0x598   : > { %v20853_v47 = vpop.f32.mrf.mxu1  ;;  %v20855_v44 = vpop.f32.mrf.mxu0 }
 0x599   : > { %23478 = vst [vmem:[#allocation62_spill] sm:$0xff] %v20850_v56  ;;  %23479 = vst [vmem:[#allocation34_spill] sm:$0xff] %v20853_v47  ;;  %v7840_v13 = vadd.f32 %v16159_v8, %v7432_v62 }
 0x59a   : > { %23480 = vst [vmem:[#allocation64_spill] sm:$0xff] %v20855_v44  ;;  %v16106_v25 = vpop.f32.mrf.mxu1  ;;  %v16165_v6 = vpop.f32.mrf.mxu0 }
 0x59b   : > { %v20858_v42 = vadd.f32 %v7840_v13, %v20720_v38  ;;  %v7442_v28 = vadd.f32 %v16106_v25, %v20715_v21 }
 0x59c   : > { %v20861_v43 = vpop.f32.mrf.mxu1  ;;  %v20863_v52 = vpop.f32.mrf.mxu0 }
 0x59d   : > { %23481 = vst [vmem:[#allocation33_spill] sm:$0xff] %v20858_v42  ;;  %23482 = vst [vmem:[#allocation69_spill] sm:$0xff] %v20861_v43  ;;  %v7842_v31 = vadd.f32 %v16162_v24, %v7442_v28  ;;  %v9233_v24 = vld [vmem:[%s23044_s15 + $0x18] sm:$0xff]  ;;  %v9230_v28 = vld [vmem:[%s23044_s15] sm:$0xff] }
 0x59e   : > { %23483 = vst [vmem:[#allocation102_spill] sm:$0xff] %v20863_v52  ;;  %v16109_v33 = vpop.f32.mrf.mxu1  ;;  %v20871_v62 = vpop.f32.mrf.mxu0  ;;  %16334 = vmatprep.subr.mxu0 %v9233_v24 }
 0x59f   : > { %v20866_v59 = vadd.f32 %v7842_v31, %v20733_v27  ;;  %v7452_v54 = vadd.f32 %v16109_v33, %v20728_v55  ;;  %v9232_v55 = vld [vmem:[%s23044_s15 + $0x10] sm:$0xff]  ;;  %16335 = vmatpush3.msra.mxu0 %v9233_v24 }
 0x5a0   : > { %v20869_v46 = vpop.f32.mrf.mxu1  ;;  %v8314_v27 = vpop.f32.mrf.mxu0  ;;  %16336 = vmatprep.subr.mxu0 %v9232_v55 }
 0x5a1   : > { %23484 = vst [vmem:[#allocation103_spill] sm:$0xff] %v20866_v59  ;;  %23485 = vst [vmem:[#allocation65_spill] sm:$0xff] %v20869_v46  ;;  %v7844_v8 = vadd.f32 %v16165_v6, %v7452_v54  ;;  %16337 = vmatpush3.msra.mxu0 %v9232_v55 }
 0x5a2   : > { %v20873_v38 = vpop.f32.mrf.mxu1  ;;  %v16235_v31 = vpop.f32.mrf.mxu0 }
 0x5a3   : > { %v20876_v21 = vadd.f32 %v7844_v8, %v20742_v4  ;;  %v9231_v4 = vld [vmem:[%s23044_s15 + $0x8] sm:$0xff] }
 0x5a4   : > { %v20878_v13 = vpop.f32.mrf.mxu1  ;;  %16338 = vmatprep.subr.mxu0 %v9231_v4  ;;  %v8324_v8 = vpop.f32.mrf.mxu0 }
 0x5a5   : > { %23486 = vst [vmem:[#allocation67_spill] sm:$0xff] %v20876_v21  ;;  %16339 = vmatpush3.msra.mxu0 %v9231_v4 }
 0x5a6   : > { %v20886_v25 = vpop.f32.mrf.mxu1  ;;  %16340 = vmatprep.subr.mxu0 %v9230_v28  ;;  %v20904_v59 = vpop.f32.mrf.mxu0 }
 0x5a7   : > { %16341 = vmatpush3.msra.mxu0 %v9230_v28 }
 0x5a8   : > { %v20891_v6 = vpop.f32.mrf.mxu1  ;;  %v20910_v42 = vpop.f32.mrf.mxu0 }
 0x5aa   : > { %v20896_v33 = vpop.f32.mrf.mxu1  ;;  %v20916_v44 = vpop.f32.mrf.mxu0 }
 0x5ac   : > { %v20898_v54 = vpop.f32.mrf.mxu1  ;;  %v20922_v43 = vpop.f32.mrf.mxu0 }
 0x5ae   : > { %v20900_v24 = vpop.f32.mrf.mxu1  ;;  %v20928_v45 = vpop.f32.mrf.mxu0 }
 0x5b0   : > { %v20902_v21 = vpop.f32.mrf.mxu1  ;;  %v20934_v29 = vpop.f32.mrf.mxu0 }
 0x5b2   : > { %v20906_v55 = vpop.f32.mrf.mxu1  ;;  %v20940_v20 = vpop.f32.mrf.mxu0 }
 0x5b4   : > { %v20908_v52 = vpop.f32.mrf.mxu1 }
 0x5b6   : > { %v20912_v46 = vpop.f32.mrf.mxu1 }
 0x5b8   : > { %v20914_v4 = vpop.f32.mrf.mxu1 }
 0x5ba   : > { %v20918_v28 = vpop.f32.mrf.mxu1 }
 0x5bb   : > { %23487 = vst [vmem:[#allocation35_spill] sm:$0xff] %v20918_v28 }
 0x5bc   : > { %v20920_v56 = vpop.f32.mrf.mxu1 }
 0x5bd   : > { %23488 = vst [vmem:[#allocation72_spill] sm:$0xff] %v20920_v56 }
 0x5be   : > { %v20924_v47 = vpop.f32.mrf.mxu1 }
 0x5bf   : > { %23489 = vst [vmem:[#allocation105_spill] sm:$0xff] %v20924_v47  ;;  %v20946_v47 = vpop.f32.mrf.mxu0 }
 0x5c0   : > { %v20926_v58 = vpop.f32.mrf.mxu1  ;;  %23497 = vst [vmem:[#allocation75_spill] sm:$0xff] %v20946_v47 }
 0x5c1   : > { %23490 = vst [vmem:[#allocation36_spill] sm:$0xff] %v20926_v58 }
 0x5c2   : > { %v20930_v37 = vpop.f32.mrf.mxu1 }
 0x5c3   : > { %23491 = vst [vmem:[#allocation109_spill] sm:$0xff] %v20930_v37  ;;  %v20952_v37 = vpop.f32.mrf.mxu0 }
 0x5c4   : > { %v20932_v32 = vpop.f32.mrf.mxu1  ;;  %23500 = vst [vmem:[#allocation19_spill] sm:$0xff] %v20952_v37 }
 0x5c5   : > { %23492 = vst [vmem:[#allocation68_spill] sm:$0xff] %v20932_v32 }
 0x5c6   : > { %v20936_v41 = vpop.f32.mrf.mxu1 }
 0x5c7   : > { %23493 = vst [vmem:[#allocation18_spill] sm:$0xff] %v20936_v41  ;;  %v20958_v41 = vpop.f32.mrf.mxu0 }
 0x5c8   : > { %v20938_v50 = vpop.f32.mrf.mxu1  ;;  %23503 = vst [vmem:[#allocation5_spill] sm:$0xff] %v20958_v41 }
 0x5c9   : > { %23494 = vst [vmem:[#allocation17_spill] sm:$0xff] %v20938_v50 }
 0x5ca   : > { %v20942_v7 = vpop.f32.mrf.mxu1 }
 0x5cb   : > { %23495 = vst [vmem:[#allocation70_spill] sm:$0xff] %v20942_v7  ;;  %v20964_v7 = vpop.f32.mrf.mxu0 }
 0x5cc   : > { %v20944_v49 = vpop.f32.mrf.mxu1  ;;  %23506 = vst [vmem:[#allocation122_spill] sm:$0xff] %v20964_v7  ;;  %v23514_v7 = vld [vmem:[#allocation106_spill] sm:$0xff] }
 0x5cd   : > { %23496 = vst [vmem:[#allocation37_spill] sm:$0xff] %v20944_v49  ;;  %v20972_v37 = vpop.f32.mrf.mxu0 }
 0x5ce   : > { %v20948_v58 = vpop.f32.mrf.mxu1 }
 0x5cf   : > { %23498 = vst [vmem:[#allocation113_spill] sm:$0xff] %v20948_v58  ;;  %v23509_v58 = vld [vmem:[#allocation3_spill] sm:$0xff] }
 0x5d0   : > { %v20950_v19 = vpop.f32.mrf.mxu1  ;;  %23510 = vst [vmem:[#allocation3_spill] sm:$0xff] %v20972_v37 }
 0x5d1   : > { %23499 = vst [vmem:[#allocation38_spill] sm:$0xff] %v20950_v19  ;;  %v7297_v19 = vadd.f32 %v20749_v18, %v23509_v58  ;;  %v6795_v18 = vmul.f32 %v23514_v7, %v20550_v57  ;;  %v8315_v58 = vadd.f32 %v8314_v27, %v20878_v13  ;;  %v8340_v27 = vadd.f32 %v20904_v59, %v20896_v33 }
 0x5d2   : > { %v20954_v32 = vpop.f32.mrf.mxu1  ;;  %v7337_v33 = vadd.f32 %v20781_v17, %v20589_v15  ;;  %v8345_v15 = vadd.f32 %v20922_v43, %v20902_v21  ;;  %v23522_v43 = vld [vmem:[#allocation111_spill] sm:$0xff] }
 0x5d3   : > { %23501 = vst [vmem:[#allocation71_spill] sm:$0xff] %v20954_v32 }
 0x5d4   : > { %v20956_v56 = vpop.f32.mrf.mxu1 }
 0x5d5   : > { %23502 = vst [vmem:[#allocation73_spill] sm:$0xff] %v20956_v56  ;;  %v7307_v56 = vadd.f32 %v20757_v40, %v20547_v51  ;;  %v7317_v51 = vadd.f32 %v20765_v9, %v20561_v35  ;;  %v7327_v9 = vadd.f32 %v20773_v16, %v20575_v34  ;;  %v8335_v34 = vadd.f32 %v20910_v42, %v20898_v54  ;;  %v23520_v42 = vld [vmem:[#allocation110_spill] sm:$0xff] }
 0x5d6   : > { %v20960_v50 = vpop.f32.mrf.mxu1 }
 0x5d7   : > { %23504 = vst [vmem:[#allocation74_spill] sm:$0xff] %v20960_v50  ;;  %v8320_v50 = vadd.f32 %v20871_v62, %v20873_v38  ;;  %v7817_v35 = vadd.f32 %v20759_v11, %v7317_v51  ;;  %v7819_v59 = vadd.f32 %v20767_v61, %v7327_v9 }
 0x5d8   : > { %v20962_v28 = vpop.f32.mrf.mxu1 }
 0x5d9   : > { %23505 = vst [vmem:[#allocation76_spill] sm:$0xff] %v20962_v28  ;;  %v7813_v28 = vadd.f32 %v20746_v53, %v7297_v19  ;;  %v8330_v53 = vadd.f32 %v16235_v31, %v20886_v25  ;;  %v23515_v19 = vld [vmem:[#allocation8_spill] sm:$0xff] }
 0x5da   : > { %v20966_v49 = vpop.f32.mrf.mxu1 }
 0x5db   : > { %23507 = vst [vmem:[#allocation123_spill] sm:$0xff] %v20966_v49  ;;  %v20983_v49 = vpop.f32.mrf.mxu0  ;;  %v7845_v62 = vadd.f32 %v7813_v28, %v6795_v18  ;;  %v23519_v18 = vld [vmem:[#allocation10_spill] sm:$0xff] }
 0x5dc   : > { %v20968_v30 = vpop.f32.mrf.mxu1  ;;  %23513 = vst [vmem:[#allocation127_spill] sm:$0xff] %v20983_v49  ;;  %v23516_v49 = vld [vmem:[#allocation107_spill] sm:$0xff] }
 0x5dd   : > { %23508 = vst [vmem:[#allocation124_spill] sm:$0xff] %v20968_v30  ;;  %v6797_v3 = vmul.f32 %v23516_v49, %v20564_v60  ;;  %v20995_v47 = vpop.f32.mrf.mxu0  ;;  %v23517_v60 = vld [vmem:[#allocation7_spill] sm:$0xff] }
 0x5de   : > { %v20974_v32 = vpop.f32.mrf.mxu1 }
 0x5df   : > { %23511 = vst [vmem:[#allocation125_spill] sm:$0xff] %v20974_v32  ;;  %v7815_v32 = vadd.f32 %v20751_v22, %v7307_v56  ;;  %v21009_v11 = vpop.f32.mrf.mxu0 }
 0x5e0   : > { %v20978_v41 = vpop.f32.mrf.mxu1 }
 0x5e1   : > { %23512 = vst [vmem:[#allocation126_spill] sm:$0xff] %v20978_v41  ;;  %v21024_v54 = vpop.f32.mrf.mxu0 }
 0x5e2   : > { %v16288_v30 = vpop.f32.mrf.mxu1 }
 0x5e3   : > { %v8832_v37 = vadd.f32 %v16288_v30, %v8320_v50  ;;  %v8325_v30 = vadd.f32 %v8324_v8, %v20891_v6  ;;  %v21039_v21 = vpop.f32.mrf.mxu0 }
 0x5e4   : > { %v8672_v40 = vpop.f32.mrf.mxu1 }
 0x5e5   : > { %v8864_v41 = vmul.f32 %v23515_v19, %v8832_v37  ;;  %v8831_v38 = vadd.f32 %v8672_v40, %v8315_v58  ;;  %v7847_v37 = vadd.f32 %v7815_v32, %v6797_v3 }
 0x5e6   : > { %v16291_v57 = vpop.f32.mrf.mxu1 }
 0x5e7   : > { %v8895_v50 = vadd.f32 %v8831_v38, %v7845_v62  ;;  %v8834_v22 = vadd.f32 %v16291_v57, %v8330_v53  ;;  %v8896_v56 = vadd.f32 %v8864_v41, %v20754_v36  ;;  %v23518_v36 = vld [vmem:[#allocation108_spill] sm:$0xff]  ;;  %v7347_v53 = vadd.f32 %v20789_v63, %v20603_v1 }
 0x5e8   : > { %v8682_v13 = vpop.f32.mrf.mxu1  ;;  %v6799_v41 = vmul.f32 %v23518_v36, %v20578_v14  ;;  %v8350_v14 = vadd.f32 %v20916_v44, %v20900_v24  ;;  %v7821_v24 = vadd.f32 %v20775_v23, %v7337_v33  ;;  %v23521_v57 = vld [vmem:[#allocation12_spill] sm:$0xff]  ;;  %v8355_v1 = vadd.f32 %v20934_v29, %v20908_v52  ;;  %v23525_v52 = vld [vmem:[#allocation114_spill] sm:$0xff] }
 0x5e9   : > { %v8866_v25 = vmul.f32 %v23517_v60, %v8834_v22  ;;  %v8833_v31 = vadd.f32 %v8682_v13, %v8325_v30  ;;  %8961 = vrot.lane.b32.xlu1 %v8896_v56, %s16916_s26  ;;  %8959 = vrot.lane.b32.xlu0 %v8895_v50, %s16916_s26  ;;  %v7357_v56 = vadd.f32 %v20797_v48, %v20617_v0  ;;  %v23524_v29 = vld [vmem:[#allocation28_spill] sm:$0xff]  ;;  %v23526_v0 = vld [vmem:[#allocation75_spill] sm:$0xff] }
 0x5ea   : > { %v16294_v6 = vpop.f32.mrf.mxu1  ;;  %v7849_v8 = vadd.f32 %v7817_v35, %v6799_v41  ;;  %v8365_v48 = vadd.f32 %v23526_v0, %v20914_v4  ;;  %v23534_v4 = vld [vmem:[#allocation23_spill] sm:$0xff]  ;;  %v23548_v0 = vld [vmem:[#allocation116_spill] sm:$0xff] }
 0x5eb   : > { %v8897_v16 = vadd.f32 %v8833_v31, %v7847_v37  ;;  %v8836_v3 = vadd.f32 %v16294_v6, %v8340_v27  ;;  %v8898_v32 = vadd.f32 %v8866_v25, %v20762_v12  ;;  %v6801_v12 = vmul.f32 %v23520_v42, %v20592_v2  ;;  %v23523_v37 = vld [vmem:[#allocation11_spill] sm:$0xff]  ;;  %v21054_v25 = vpop.f32.mrf.mxu0  ;;  %v23527_v6 = vld [vmem:[#allocation57_spill] sm:$0xff] }
 0x5ec   : > { %v8692_v28 = vpop.f32.mrf.mxu1  ;;  %v8360_v2 = vadd.f32 %v20928_v45, %v20906_v55  ;;  %v7823_v55 = vadd.f32 %v20783_v39, %v7347_v53 }
 0x5ed   : > { %v8868_v58 = vmul.f32 %v23519_v18, %v8836_v3  ;;  %v8835_v51 = vadd.f32 %v8692_v28, %v8335_v34  ;;  %8965 = vrot.lane.b32.xlu1 %v8898_v32, %s16916_s26  ;;  %8963 = vrot.lane.b32.xlu0 %v8897_v16, %s16916_s26  ;;  %v7851_v62 = vadd.f32 %v7819_v59, %v6801_v12  ;;  %v23529_v16 = vld [vmem:[#allocation46_spill] sm:$0xff]  ;;  %v23530_v3 = vld [vmem:[#allocation27_spill] sm:$0xff] }
 0x5ee   : > { %v16297_v61 = vpop.f32.mrf.mxu1  ;;  %v7367_v32 = vadd.f32 %v23530_v3, %v23529_v16  ;;  %v23532_v28 = vld [vmem:[#allocation19_spill] sm:$0xff] }
 0x5ef   : > { %v8899_v17 = vadd.f32 %v8835_v51, %v7849_v8  ;;  %v8838_v40 = vadd.f32 %v16297_v61, %v8350_v14  ;;  %v8900_v44 = vadd.f32 %v8868_v58, %v20770_v5  ;;  %v6803_v5 = vmul.f32 %v23522_v43, %v20606_v10  ;;  %v23531_v8 = vld [vmem:[#allocation35_spill] sm:$0xff]  ;;  %v23533_v58 = vld [vmem:[#allocation14_spill] sm:$0xff] }
 0x5f0   : > { %v8702_v38 = vpop.f32.mrf.mxu1  ;;  %v8370_v10 = vadd.f32 %v20940_v20, %v20912_v46  ;;  %v23528_v46 = vld [vmem:[#allocation90_spill] sm:$0xff]  ;;  %v8380_v14 = vadd.f32 %v23532_v28, %v23531_v8  ;;  %v23535_v61 = vld [vmem:[#allocation115_spill] sm:$0xff]  ;;  %v23554_v28 = vld [vmem:[#allocation121_spill] sm:$0xff] }
 0x5f1   : > { %v8870_v30 = vmul.f32 %v23521_v57, %v8838_v40  ;;  %v8837_v50 = vadd.f32 %v8702_v38, %v8345_v15  ;;  %8969 = vrot.lane.b32.xlu1 %v8900_v44, %s16916_s26  ;;  %8967 = vrot.lane.b32.xlu0 %v8899_v17, %s16916_s26  ;;  %v7853_v35 = vadd.f32 %v7821_v24, %v6803_v5  ;;  %v21069_v17 = vpop.f32.mrf.mxu0  ;;  %v23536_v44 = vld [vmem:[#allocation72_spill] sm:$0xff]  ;;  %v23537_v24 = vld [vmem:[#allocation5_spill] sm:$0xff]  ;;  %v23553_v8 = vld [vmem:[#allocation79_spill] sm:$0xff] }
 0x5f2   : > { %v16300_v23 = vpop.f32.mrf.mxu1  ;;  %v7825_v34 = vadd.f32 %v23528_v46, %v7357_v56  ;;  %v6807_v15 = vmul.f32 %v23535_v61, %v23534_v4  ;;  %v8375_v53 = vadd.f32 %v23537_v24, %v23536_v44  ;;  %v23540_v5 = vld [vmem:[#allocation21_spill] sm:$0xff]  ;;  %v23550_v46 = vld [vmem:[#allocation36_spill] sm:$0xff] }
 0x5f3   : > { %v8901_v63 = vadd.f32 %v8837_v50, %v7851_v62  ;;  %v8840_v22 = vadd.f32 %v16300_v23, %v8360_v2  ;;  %v8902_v45 = vadd.f32 %v8870_v30, %v20778_v26  ;;  %v6805_v26 = vmul.f32 %v23525_v52, %v23524_v29  ;;  %v23538_v2 = vld [vmem:[#allocation91_spill] sm:$0xff]  ;;  %v23539_v50 = vld [vmem:[#allocation45_spill] sm:$0xff] }
 0x5f4   : > { %v8712_v9 = vpop.f32.mrf.mxu1  ;;  %v6327_v23 = vadd.f32 %v23540_v5, %v23539_v50  ;;  %v7857_v56 = vadd.f32 %v7825_v34, %v6807_v15  ;;  %v23551_v34 = vld [vmem:[#allocation3_spill] sm:$0xff]  ;;  %v23556_v4 = vld [vmem:[#allocation85_spill] sm:$0xff]  ;;  %v23557_v15 = vld [vmem:[#allocation58_spill] sm:$0xff] }
 0x5f5   : > { %v8872_v13 = vmul.f32 %v23523_v37, %v8840_v22  ;;  %v8839_v27 = vadd.f32 %v8712_v9, %v8355_v1  ;;  %8973 = vrot.lane.b32.xlu1 %v8902_v45, %s16916_s26  ;;  %8971 = vrot.lane.b32.xlu0 %v8901_v63, %s16916_s26  ;;  %v7855_v59 = vadd.f32 %v7823_v55, %v6805_v26  ;;  %v23541_v1 = vld [vmem:[#allocation53_spill] sm:$0xff]  ;;  %v23542_v22 = vld [vmem:[#allocation51_spill] sm:$0xff]  ;;  %v23543_v45 = vld [vmem:[#allocation94_spill] sm:$0xff] }
 0x5f6   : > { %v16303_v39 = vpop.f32.mrf.mxu1  ;;  %v7827_v63 = vadd.f32 %v23541_v1, %v7367_v32  ;;  %v7377_v55 = vadd.f32 %v23543_v45, %v23542_v22  ;;  %v23544_v9 = vld [vmem:[#allocation105_spill] sm:$0xff]  ;;  %v8385_v16 = vadd.f32 %v23551_v34, %v23550_v46  ;;  %v23562_v1 = vld [vmem:[#allocation104_spill] sm:$0xff] }
 0x5f7   : > { %v8903_v31 = vadd.f32 %v8839_v27, %v7853_v35  ;;  %v8842_v41 = vadd.f32 %v16303_v39, %v8370_v10  ;;  %v8904_v20 = vadd.f32 %v8872_v13, %v23527_v6  ;;  %v23545_v10 = vld [vmem:[#allocation122_spill] sm:$0xff]  ;;  %v23546_v27 = vld [vmem:[#allocation13_spill] sm:$0xff]  ;;  %v23547_v39 = vld [vmem:[#allocation84_spill] sm:$0xff]  ;;  %v21087_v6 = vpop.f32.mrf.mxu0 }
 0x5f8   : > { %v8722_v33 = vpop.f32.mrf.mxu1  ;;  %v8390_v13 = vadd.f32 %v23545_v10, %v23544_v9  ;;  %v23561_v5 = vld [vmem:[#allocation117_spill] sm:$0xff]  ;;  %v23569_v46 = vld [vmem:[#allocation96_spill] sm:$0xff] }
 0x5f9   : > { %v8874_v51 = vmul.f32 %v23533_v58, %v8842_v41  ;;  %v8841_v12 = vadd.f32 %v8722_v33, %v8365_v48  ;;  %8977 = vrot.lane.b32.xlu1 %v8904_v20, %s16916_s26  ;;  %8975 = vrot.lane.b32.xlu0 %v8903_v31, %s16916_s26  ;;  %v6809_v48 = vmul.f32 %v23548_v0, %v23547_v39  ;;  %v23549_v31 = vld [vmem:[#allocation101_spill] sm:$0xff]  ;;  %v21104_v45 = vpop.f32.mrf.mxu0 }
 0x5fa   : > { %v16306_v40 = vpop.f32.mrf.mxu1  ;;  %v6779_v41 = vadd.f32 %v23549_v31, %v6327_v23  ;;  %v23564_v10 = vld [vmem:[#allocation93_spill] sm:$0xff] }
 0x5fb   : > { %v8905_v62 = vadd.f32 %v8841_v12, %v7855_v59  ;;  %v8844_v38 = vadd.f32 %v16306_v40, %v8380_v14  ;;  %v8906_v30 = vadd.f32 %v8874_v51, %v23538_v2  ;;  %v23552_v59 = vld [vmem:[#allocation55_spill] sm:$0xff]  ;;  %v6337_v14 = vadd.f32 %v23554_v28, %v23553_v8  ;;  %v23555_v51 = vld [vmem:[#allocation60_spill] sm:$0xff]  ;;  %v23572_v8 = vld [vmem:[#allocation118_spill] sm:$0xff] }
 0x5fc   : > { %v8732_v35 = vpop.f32.mrf.mxu1  ;;  %v7829_v12 = vadd.f32 %v23555_v51, %v7377_v55  ;;  %v7387_v40 = vadd.f32 %v23557_v15, %v23556_v4  ;;  %v7859_v44 = vadd.f32 %v7827_v63, %v6809_v48  ;;  %v23560_v2 = vld [vmem:[#allocation15_spill] sm:$0xff]  ;;  %v6811_v23 = vmul.f32 %v23561_v5, %v6779_v41  ;;  %v23567_v48 = vld [vmem:[#allocation56_spill] sm:$0xff]  ;;  %v8434_v4 = vpop.f32.mrf.mxu0 }
 0x5fd   : > { %v8876_v29 = vmul.f32 %v23546_v27, %v8844_v38  ;;  %v8843_v26 = vadd.f32 %v8732_v35, %v8375_v53  ;;  %8981 = vrot.lane.b32.xlu1 %v8906_v30, %s16916_s26  ;;  %8979 = vrot.lane.b32.xlu0 %v8905_v62, %s16916_s26  ;;  %v23558_v53 = vld [vmem:[#allocation109_spill] sm:$0xff]  ;;  %v23559_v62 = vld [vmem:[#allocation127_spill] sm:$0xff]  ;;  %v6781_v22 = vadd.f32 %v23562_v1, %v6337_v14  ;;  %v23579_v1 = vld [vmem:[#allocation24_spill] sm:$0xff] }
 0x5fe   : > { %v16309_v20 = vpop.f32.mrf.mxu1  ;;  %v8400_v38 = vadd.f32 %v23559_v62, %v23558_v53  ;;  %v7831_v31 = vadd.f32 %v23567_v48, %v7387_v40  ;;  %v7861_v34 = vadd.f32 %v7829_v12, %v6811_v23  ;;  %v23573_v14 = vld [vmem:[#allocation49_spill] sm:$0xff]  ;;  %v23575_v53 = vld [vmem:[#allocation32_spill] sm:$0xff] }
 0x5ff   : > { %v8907_v3 = vadd.f32 %v8843_v26, %v7857_v56  ;;  %v8846_v32 = vadd.f32 %v16309_v20, %v8390_v13  ;;  %v8908_v33 = vadd.f32 %v8876_v29, %v23552_v59  ;;  %v23563_v56 = vld [vmem:[#allocation68_spill] sm:$0xff]  ;;  %v23566_v26 = vld [vmem:[#allocation89_spill] sm:$0xff]  ;;  %v23568_v20 = vld [vmem:[#allocation47_spill] sm:$0xff]  ;;  %v6813_v28 = vmul.f32 %v23572_v8, %v6781_v22 }
 0x600   : > { %v8742_v24 = vpop.f32.mrf.mxu1  ;;  %v8395_v63 = vadd.f32 %v20995_v47, %v23563_v56  ;;  %v23565_v29 = vld [vmem:[#allocation80_spill] sm:$0xff]  ;;  %v7397_v41 = vadd.f32 %v23569_v46, %v23568_v20  ;;  %v23574_v40 = vld [vmem:[#allocation17_spill] sm:$0xff]  ;;  %v16271_v20 = vpop.f32.mrf.mxu0 }
 0x601   : > { %v8878_v30 = vmul.f32 %v23560_v2, %v8846_v32  ;;  %v8845_v50 = vadd.f32 %v8742_v24, %v8385_v16  ;;  %8985 = vrot.lane.b32.xlu1 %v8908_v33, %s16916_s26  ;;  %8983 = vrot.lane.b32.xlu0 %v8907_v3, %s16916_s26  ;;  %v6347_v39 = vadd.f32 %v23566_v26, %v23565_v29  ;;  %v23570_v3 = vld [vmem:[#allocation18_spill] sm:$0xff]  ;;  %v23571_v59 = vld [vmem:[#allocation20_spill] sm:$0xff]  ;;  %v23576_v62 = vld [vmem:[#allocation41_spill] sm:$0xff] }
 0x602   : > { %v16312_v55 = vpop.f32.mrf.mxu1  ;;  %v8410_v32 = vadd.f32 %v21009_v11, %v23570_v3  ;;  %v8405_v12 = vadd.f32 %v21024_v54, %v23574_v40  ;;  %v7863_v22 = vadd.f32 %v7831_v31, %v6813_v28  ;;  %v23583_v29 = vld [vmem:[#allocation119_spill] sm:$0xff]  ;;  %v23589_v28 = vld [vmem:[#allocation97_spill] sm:$0xff] }
 0x603   : > { %v8909_v35 = vadd.f32 %v8845_v50, %v7859_v44  ;;  %v8848_v9 = vadd.f32 %v16312_v55, %v8400_v38  ;;  %v8910_v13 = vadd.f32 %v8878_v30, %v23564_v10  ;;  %v6783_v51 = vadd.f32 %v23573_v14, %v6347_v39  ;;  %v23577_v38 = vld [vmem:[#allocation92_spill] sm:$0xff]  ;;  %v23578_v50 = vld [vmem:[#allocation29_spill] sm:$0xff]  ;;  %v23582_v10 = vld [vmem:[#allocation42_spill] sm:$0xff] }
 0x604   : > { %v8752_v16 = vpop.f32.mrf.mxu1  ;;  %v6357_v30 = vadd.f32 %v23577_v38, %v23576_v62  ;;  %v7833_v23 = vadd.f32 %v23578_v50, %v7397_v41  ;;  %v23580_v55 = vld [vmem:[#allocation61_spill] sm:$0xff]  ;;  %v23584_v39 = vld [vmem:[#allocation54_spill] sm:$0xff]  ;;  %v23586_v3 = vld [vmem:[#allocation63_spill] sm:$0xff] }
 0x605   : > { %v8880_v33 = vmul.f32 %v23571_v59, %v8848_v9  ;;  %v8847_v47 = vadd.f32 %v8752_v16, %v8395_v63  ;;  %8989 = vrot.lane.b32.xlu1 %v8910_v13, %s16916_s26  ;;  %8987 = vrot.lane.b32.xlu0 %v8909_v35, %s16916_s26  ;;  %v7407_v56 = vadd.f32 %v23580_v55, %v23579_v1  ;;  %v23581_v35 = vld [vmem:[#allocation70_spill] sm:$0xff]  ;;  %v23585_v41 = vld [vmem:[#allocation37_spill] sm:$0xff]  ;;  %v23591_v40 = vld [vmem:[#allocation99_spill] sm:$0xff]  ;;  %v8444_v55 = vpop.f32.mrf.mxu0 }
 0x606   : > { %v16315_v15 = vpop.f32.mrf.mxu1  ;;  %v8420_v9 = vadd.f32 %v21039_v21, %v23581_v35  ;;  %v6815_v26 = vmul.f32 %v23583_v29, %v6783_v51  ;;  %v6785_v48 = vadd.f32 %v23584_v39, %v6357_v30  ;;  %v8415_v31 = vadd.f32 %v21054_v25, %v23585_v41  ;;  %v23594_v38 = vld [vmem:[#allocation120_spill] sm:$0xff]  ;;  %v23600_v39 = vld [vmem:[#allocation31_spill] sm:$0xff] }
 0x607   : > { %v8911_v44 = vadd.f32 %v8847_v47, %v7861_v34  ;;  %v8850_v24 = vadd.f32 %v16315_v15, %v8410_v32  ;;  %v8912_v11 = vadd.f32 %v8880_v33, %v23575_v53  ;;  %v23587_v32 = vld [vmem:[#allocation22_spill] sm:$0xff]  ;;  %v23588_v33 = vld [vmem:[#allocation43_spill] sm:$0xff]  ;;  %v7835_v14 = vadd.f32 %v23589_v28, %v7407_v56  ;;  %v23595_v50 = vld [vmem:[#allocation112_spill] sm:$0xff] }
 0x608   : > { %v8762_v63 = vpop.f32.mrf.mxu1  ;;  %v6367_v47 = vadd.f32 %v23588_v33, %v23587_v32  ;;  %v23590_v15 = vld [vmem:[#allocation87_spill] sm:$0xff]  ;;  %v7865_v51 = vadd.f32 %v7833_v23, %v6815_v26  ;;  %v6817_v30 = vmul.f32 %v23594_v38, %v6785_v48  ;;  %v23601_v41 = vld [vmem:[#allocation88_spill] sm:$0xff]  ;;  %v23604_v32 = vld [vmem:[#allocation78_spill] sm:$0xff] }
 0x609   : > { %v8882_v13 = vmul.f32 %v23582_v10, %v8850_v24  ;;  %v8849_v54 = vadd.f32 %v8762_v63, %v8405_v12  ;;  %8993 = vrot.lane.b32.xlu1 %v8912_v11, %s16916_s26  ;;  %8991 = vrot.lane.b32.xlu0 %v8911_v44, %s16916_s26  ;;  %v7417_v12 = vadd.f32 %v23591_v40, %v23590_v15  ;;  %v23592_v24 = vld [vmem:[#allocation113_spill] sm:$0xff]  ;;  %v23606_v15 = vld [vmem:[#allocation6_spill] sm:$0xff] }
 0x60a   : > { %v16318_v46 = vpop.f32.mrf.mxu1  ;;  %v8430_v53 = vadd.f32 %v21069_v17, %v23592_v24  ;;  %v23593_v11 = vld [vmem:[#allocation77_spill] sm:$0xff]  ;;  %v6787_v1 = vadd.f32 %v23595_v50, %v6367_v47  ;;  %v7867_v48 = vadd.f32 %v7835_v14, %v6817_v30  ;;  %v23610_v30 = vld [vmem:[#allocation95_spill] sm:$0xff]  ;;  %v10746_v10 = vld [vmem:[#allocation2 + $0x8] sm:$0xff] }
 0x60b   : > { %v8913_v34 = vadd.f32 %v8849_v54, %v7863_v22  ;;  %v8852_v16 = vadd.f32 %v16318_v46, %v8420_v9  ;;  %v8914_v21 = vadd.f32 %v8882_v13, %v23586_v3  ;;  %v23596_v22 = vld [vmem:[#allocation38_spill] sm:$0xff]  ;;  %v23597_v9 = vld [vmem:[#allocation59_spill] sm:$0xff]  ;;  %v23598_v13 = vld [vmem:[#allocation81_spill] sm:$0xff]  ;;  %v7837_v46 = vadd.f32 %v23600_v39, %v7417_v12  ;;  %v16274_v12 = vpop.f32.mrf.mxu0 }
 0x60c   : > { %v8772_v44 = vpop.f32.mrf.mxu1  ;;  %v8425_v23 = vadd.f32 %v21087_v6, %v23596_v22  ;;  %v23599_v54 = vld [vmem:[#allocation48_spill] sm:$0xff]  ;;  %v23603_v3 = vld [vmem:[#allocation71_spill] sm:$0xff]  ;;  %v23605_v47 = vld [vmem:[#allocation9_spill] sm:$0xff] }
 0x60d   : > { %v8884_v62 = vmul.f32 %v23593_v11, %v8852_v16  ;;  %v8851_v25 = vadd.f32 %v8772_v44, %v8415_v31  ;;  %8997 = vrot.lane.b32.xlu1 %v8914_v21, %s16916_s26  ;;  %8995 = vrot.lane.b32.xlu0 %v8913_v34, %s16916_s26  ;;  %v6377_v26 = vadd.f32 %v23599_v54, %v23598_v13  ;;  %v23602_v31 = vld [vmem:[#allocation34_spill] sm:$0xff]  ;;  %v23607_v44 = vld [vmem:[#allocation73_spill] sm:$0xff]  ;;  %v13925_v11 = vld [vmem:[%s23047_s18 + $0x30] sm:$0xff] }
 0x60e   : > { %v16321_v56 = vpop.f32.mrf.mxu1  ;;  %v7427_v34 = vadd.f32 %v23602_v31, %v23601_v41  ;;  %v8440_v21 = vadd.f32 %v21104_v45, %v23603_v3  ;;  %v6819_v28 = vmul.f32 %v23605_v47, %v6787_v1  ;;  %v8435_v24 = vadd.f32 %v8434_v4, %v23607_v44  ;;  %v23609_v45 = vld [vmem:[#allocation82_spill] sm:$0xff]  ;;  %v23616_v4 = vld [vmem:[#allocation16_spill] sm:$0xff] }
 0x60f   : > { %v8915_v63 = vadd.f32 %v8851_v25, %v7865_v51  ;;  %v8854_v35 = vadd.f32 %v16321_v56, %v8430_v53  ;;  %v8916_v17 = vadd.f32 %v8884_v62, %v23597_v9  ;;  %v6789_v40 = vadd.f32 %v23606_v15, %v6377_v26  ;;  %v23608_v62 = vld [vmem:[#allocation66_spill] sm:$0xff]  ;;  %v23611_v56 = vld [vmem:[#allocation100_spill] sm:$0xff] }
 0x610   : > { %v8782_v16 = vpop.f32.mrf.mxu1  ;;  %v6387_v50 = vadd.f32 %v23610_v30, %v23609_v45  ;;  %v7839_v22 = vadd.f32 %v23611_v56, %v7427_v34  ;;  %v7869_v9 = vadd.f32 %v7837_v46, %v6819_v28  ;;  %v23615_v54 = vld [vmem:[#allocation86_spill] sm:$0xff]  ;;  %v23618_v3 = vld [vmem:[#allocation76_spill] sm:$0xff]  ;;  %v23625_v45 = vld [vmem:[#allocation123_spill] sm:$0xff] }
 0x611   : > { %v8886_v33 = vmul.f32 %v23604_v32, %v8854_v35  ;;  %v8853_v6 = vadd.f32 %v8782_v16, %v8425_v23  ;;  %9001 = vrot.lane.b32.xlu1 %v8916_v17, %s16916_s26  ;;  %8999 = vrot.lane.b32.xlu0 %v8915_v63, %s16916_s26  ;;  %v23612_v23 = vld [vmem:[#allocation50_spill] sm:$0xff]  ;;  %v23613_v35 = vld [vmem:[#allocation69_spill] sm:$0xff]  ;;  %v6821_v41 = vmul.f32 %v23616_v4, %v6789_v40  ;;  %v8454_v16 = vpop.f32.mrf.mxu0  ;;  %v23622_v44 = vld [vmem:[#allocation64_spill] sm:$0xff] }
 0x612   : > { %v16324_v51 = vpop.f32.mrf.mxu1  ;;  %v7437_v63 = vadd.f32 %v23613_v35, %v23612_v23  ;;  %v23614_v17 = vld [vmem:[#allocation74_spill] sm:$0xff]  ;;  %v8460_v30 = vadd.f32 %v16274_v12, %v23625_v45  ;;  %v23637_v45 = vld [vmem:[#allocation40_spill] sm:$0xff] }
 0x613   : > { %v8917_v14 = vadd.f32 %v8853_v6, %v7867_v48  ;;  %v8856_v53 = vadd.f32 %v16324_v51, %v8440_v21  ;;  %v8918_v25 = vadd.f32 %v8886_v33, %v23608_v62  ;;  %v8450_v13 = vadd.f32 %v16271_v20, %v23614_v17  ;;  %v23617_v31 = vld [vmem:[#allocation30_spill] sm:$0xff]  ;;  %v23620_v20 = vld [vmem:[#allocation44_spill] sm:$0xff]  ;;  %v23624_v62 = vld [vmem:[#allocation65_spill] sm:$0xff]  ;;  %v16277_v17 = vpop.f32.mrf.mxu0 }
 0x614   : > { %v8792_v1 = vpop.f32.mrf.mxu1  ;;  %v6791_v48 = vadd.f32 %v23617_v31, %v6387_v50  ;;  %v8445_v21 = vadd.f32 %v8444_v55, %v23618_v3  ;;  %v23619_v6 = vld [vmem:[#allocation62_spill] sm:$0xff]  ;;  %v23626_v50 = vld [vmem:[#allocation39_spill] sm:$0xff] }
 0x615   : > { %v8888_v26 = vmul.f32 %v23615_v54, %v8856_v53  ;;  %v8855_v39 = vadd.f32 %v8792_v1, %v8435_v24  ;;  %9005 = vrot.lane.b32.xlu1 %v8918_v25, %s16916_s26  ;;  %9003 = vrot.lane.b32.xlu0 %v8917_v14, %s16916_s26  ;;  %v23621_v15 = vld [vmem:[#allocation98_spill] sm:$0xff]  ;;  %v7841_v24 = vadd.f32 %v23622_v44, %v7437_v63  ;;  %v23623_v53 = vld [vmem:[#allocation52_spill] sm:$0xff]  ;;  %v23627_v55 = vld [vmem:[#allocation83_spill] sm:$0xff] }
 0x616   : > { %v16327_v34 = vpop.f32.mrf.mxu1  ;;  %v6397_v51 = vadd.f32 %v23621_v15, %v23620_v20  ;;  %v7447_v14 = vadd.f32 %v23624_v62, %v23623_v53  ;;  %v7871_v25 = vadd.f32 %v7839_v22, %v6821_v41  ;;  %v6823_v35 = vmul.f32 %v23627_v55, %v6791_v48  ;;  %v23630_v41 = vld [vmem:[#allocation33_spill] sm:$0xff]  ;;  %v23631_v12 = vld [vmem:[#allocation102_spill] sm:$0xff]  ;;  %v23634_v48 = vld [vmem:[#allocation4_spill] sm:$0xff] }
 0x617   : > { %v8919_v33 = vadd.f32 %v8855_v39, %v7869_v9  ;;  %v8858_v46 = vadd.f32 %v16327_v34, %v8450_v13  ;;  %v8920_v28 = vadd.f32 %v8888_v26, %v23619_v6  ;;  %v23628_v9 = vld [vmem:[#allocation25_spill] sm:$0xff]  ;;  %v23629_v13 = vld [vmem:[#allocation124_spill] sm:$0xff]  ;;  %v23635_v44 = vld [vmem:[#allocation126_spill] sm:$0xff] }
 0x618   : > { %v8802_v40 = vpop.f32.mrf.mxu1  ;;  %v6793_v1 = vadd.f32 %v23628_v9, %v6397_v51  ;;  %v8455_v26 = vadd.f32 %v8454_v16, %v23629_v13  ;;  %v7843_v34 = vadd.f32 %v23631_v12, %v7447_v14  ;;  %v7873_v3 = vadd.f32 %v7841_v24, %v6823_v35  ;;  %v8464_v16 = vpop.f32.mrf.mxu0  ;;  %v23636_v14 = vld [vmem:[#allocation103_spill] sm:$0xff]  ;;  %v13820_v13 = vld [vmem:[%s23047_s18 + $0x68] sm:$0xff] }
 0x619   : > { %v8890_v56 = vmul.f32 %v23626_v50, %v8858_v46  ;;  %v8857_v23 = vadd.f32 %v8802_v40, %v8445_v21  ;;  %9009 = vrot.lane.b32.xlu1 %v8920_v28, %s16916_s26  ;;  %9007 = vrot.lane.b32.xlu0 %v8919_v33, %s16916_s26  ;;  %v23632_v46 = vld [vmem:[#allocation125_spill] sm:$0xff]  ;;  %v23633_v28 = vld [vmem:[#allocation26_spill] sm:$0xff]  ;;  %v8465_v53 = vadd.f32 %v8464_v16, %v23635_v44  ;;  %v23638_v9 = vld [vmem:[#allocation67_spill] sm:$0xff] }
 0x61a   : > { %v16330_v63 = vpop.f32.mrf.mxu1  ;;  %v8470_v6 = vadd.f32 %v16277_v17, %v23632_v46  ;;  %v6825_v15 = vmul.f32 %v23634_v48, %v6793_v1  ;;  %v13822_v17 = vld [vmem:[%s23047_s18 + $0x78] sm:$0xff] }
 0x61b   : > { %v8921_v39 = vadd.f32 %v8857_v23, %v7871_v25  ;;  %v8860_v22 = vadd.f32 %v16330_v63, %v8460_v30  ;;  %v8922_v31 = vadd.f32 %v8890_v56, %v23630_v41  ;;  %v13821_v63 = vld [vmem:[%s23047_s18 + $0x70] sm:$0xff]  ;;  %16390 = vmatprep.subr.mxu1 %v13822_v17 }
 0x61c   : > { %v8812_v21 = vpop.f32.mrf.mxu1  ;;  %v7875_v56 = vadd.f32 %v7843_v34, %v6825_v15  ;;  %16391 = vmatpush3.msra.mxu1 %v13822_v17 }
 0x61d   : > { %v8892_v33 = vmul.f32 %v23633_v28, %v8860_v22  ;;  %v8859_v20 = vadd.f32 %v8812_v21, %v8455_v26  ;;  %9013 = vrot.lane.b32.xlu1 %v8922_v31, %s16916_s26  ;;  %9011 = vrot.lane.b32.xlu0 %v8921_v39, %s16916_s26  ;;  %v21228_v31 = vld [vmem:[%s23042_s13] ss:$0 sm:$0xff] }
 0x61e   : > { %v16333_v51 = vpop.f32.mrf.mxu1  ;;  %16392 = vmatprep.subr.mxu1 %v13821_v63  ;;  %v21234_v21 = vld [vmem:[%s23043_s14] ss:$0 sm:$0xff] }
 0x61f   : > { %v8923_v62 = vadd.f32 %v8859_v20, %v7873_v3  ;;  %v8862_v25 = vadd.f32 %v16333_v51, %v8470_v6  ;;  %v8924_v24 = vadd.f32 %v8892_v33, %v23636_v14  ;;  %16393 = vmatpush3.msra.mxu1 %v13821_v63 }
 0x620   : > { %v8822_v40 = vpop.f32.mrf.mxu1  ;;  %16394 = vmatprep.subr.mxu1 %v13820_v13 }
 0x621   : > { %v8894_v30 = vmul.f32 %v23637_v45, %v8862_v25  ;;  %v8861_v23 = vadd.f32 %v8822_v40, %v8465_v53  ;;  %9017 = vrot.lane.b32.xlu1 %v8924_v24, %s16916_s26  ;;  %9015 = vrot.lane.b32.xlu0 %v8923_v62, %s16916_s26 }
 0x622   : > { %16395 = vmatpush3.msra.mxu1 %v13820_v13 }
 0x623   : > { %v8925_v35 = vadd.f32 %v8861_v23, %v7875_v56  ;;  %v8926_v1 = vadd.f32 %v8894_v30, %v23638_v9 }
 0x625   : > { %9021 = vrot.lane.b32.xlu1 %v8926_v1, %s16916_s26  ;;  %9019 = vrot.lane.b32.xlu0 %v8925_v35, %s16916_s26 }
 0x65b   : > { %v8962_v26 = vpop.permute.xlu1 %8961  ;;  %v8960_v39 = vpop.permute.xlu0 %8959 }
 0x65c   : > { %9057 = vst.msk [vmem:[%s17119_s29 + $0x8] sm:$0xff] %vm9055_vm6, %v8962_v26  ;;  %9056 = vst.msk [vmem:[%s17119_s29] sm:$0xff] %vm9055_vm6, %v8960_v39 }
 0x65f   : > { %v8966_v22 = vpop.permute.xlu1 %8965  ;;  %v8964_v41 = vpop.permute.xlu0 %8963 }
 0x660   : > { %9059 = vst.msk [vmem:[%s17119_s29 + $0x18] sm:$0xff] %vm9055_vm6, %v8966_v22  ;;  %9058 = vst.msk [vmem:[%s17119_s29 + $0x10] sm:$0xff] %vm9055_vm6, %v8964_v41 }
 0x663   : > { %v8970_v12 = vpop.permute.xlu1 %8969  ;;  %v8968_v34 = vpop.permute.xlu0 %8967  ;;  %v9088_v3 = vld [vmem:[%s17119_s29] sm:$0xff]  ;;  %v9089_v46 = vld [vmem:[%s17119_s29 + $0x8] sm:$0xff] }
 0x664   : > { %9061 = vst.msk [vmem:[%s17119_s29 + $0x28] sm:$0xff] %vm9055_vm6, %v8970_v12  ;;  %9060 = vst.msk [vmem:[%s17119_s29 + $0x20] sm:$0xff] %vm9055_vm6, %v8968_v34  ;;  %v9127_v6 = vmul.f32 %v21228_v31, %v9088_v3  ;;  %v9128_v33 = vmul.f32 %v21228_v31, %v9089_v46 }
 0x666   : > { %v9166_v20 = vadd.f32 %v21234_v21, %v9127_v6  ;;  %v9167_v15 = vadd.f32 %v21234_v21, %v9128_v33 }
 0x667   : > { %v8974_v16 = vpop.permute.xlu1 %8973  ;;  %v8972_v51 = vpop.permute.xlu0 %8971  ;;  %v9090_v44 = vld [vmem:[%s17119_s29 + $0x10] sm:$0xff]  ;;  %v9091_v53 = vld [vmem:[%s17119_s29 + $0x18] sm:$0xff] }
 0x668   : > { %9063 = vst.msk [vmem:[%s17119_s29 + $0x38] sm:$0xff] %vm9055_vm6, %v8974_v16  ;;  %9062 = vst.msk [vmem:[%s17119_s29 + $0x30] sm:$0xff] %vm9055_vm6, %v8972_v51  ;;  %v9198_v62 = vmax.f32 %v9166_v20, 0.0  ;;  %v9199_v25 = vmax.f32 %v9167_v15, 0.0  ;;  %v9129_v14 = vmul.f32 %v21228_v31, %v9090_v44  ;;  %v9130_v24 = vmul.f32 %v21228_v31, %v9091_v53 }
 0x66a   : > { %16342 = vmatprep.mubr.msk.f32.mxu0 %vm668_vm0, %v9198_v62  ;;  %v9168_v40 = vadd.f32 %v21234_v21, %v9129_v14  ;;  %v9169_v30 = vadd.f32 %v21234_v21, %v9130_v24 }
 0x66b   : > { %v8978_v56 = vpop.permute.xlu1 %8977  ;;  %16343 = vmatmul.mubr.msk.f32.vlgmr.msra.gmra.mxu0 %vm668_vm0, %v9199_v25  ;;  %v8976_v23 = vpop.permute.xlu0 %8975  ;;  %v9092_v35 = vld [vmem:[%s17119_s29 + $0x20] sm:$0xff]  ;;  %v9093_v9 = vld [vmem:[%s17119_s29 + $0x28] sm:$0xff] }
 0x66c   : > { %9065 = vst.msk [vmem:[%s17119_s29 + $0x48] sm:$0xff] %vm9055_vm6, %v8978_v56  ;;  %9064 = vst.msk [vmem:[%s17119_s29 + $0x40] sm:$0xff] %vm9055_vm6, %v8976_v23  ;;  %v9200_v1 = vmax.f32 %v9168_v40, 0.0  ;;  %v9201_v17 = vmax.f32 %v9169_v30, 0.0  ;;  %v9131_v63 = vmul.f32 %v21228_v31, %v9092_v35  ;;  %v9132_v13 = vmul.f32 %v21228_v31, %v9093_v9 }
 0x66e   : > { %16345 = vmatprep.mubr.msk.f32.mxu0 %vm668_vm0, %v9200_v1  ;;  %v9170_v26 = vadd.f32 %v21234_v21, %v9131_v63  ;;  %v9171_v39 = vadd.f32 %v21234_v21, %v9132_v13 }
 0x66f   : > { %v8982_v22 = vpop.permute.xlu1 %8981  ;;  %16346 = vmatmul.mubr.msk.f32.gmra.mxu0 %vm668_vm0, %v9201_v17  ;;  %v8980_v41 = vpop.permute.xlu0 %8979  ;;  %v9094_v12 = vld [vmem:[%s17119_s29 + $0x30] sm:$0xff]  ;;  %v9095_v34 = vld [vmem:[%s17119_s29 + $0x38] sm:$0xff] }
 0x670   : > { %9067 = vst.msk [vmem:[%s17119_s29 + $0x58] sm:$0xff] %vm9055_vm6, %v8982_v22  ;;  %9066 = vst.msk [vmem:[%s17119_s29 + $0x50] sm:$0xff] %vm9055_vm6, %v8980_v41  ;;  %v9202_v3 = vmax.f32 %v9170_v26, 0.0  ;;  %v9203_v46 = vmax.f32 %v9171_v39, 0.0  ;;  %v9133_v6 = vmul.f32 %v21228_v31, %v9094_v12  ;;  %v9134_v33 = vmul.f32 %v21228_v31, %v9095_v34 }
 0x672   : > { %16348 = vmatprep.mubr.msk.f32.mxu0 %vm668_vm0, %v9202_v3  ;;  %v9172_v20 = vadd.f32 %v21234_v21, %v9133_v6  ;;  %v9173_v15 = vadd.f32 %v21234_v21, %v9134_v33 }
 0x673   : > { %v8986_v16 = vpop.permute.xlu1 %8985  ;;  %16349 = vmatmul.mubr.msk.f32.gmra.mxu0 %vm668_vm0, %v9203_v46  ;;  %v8984_v51 = vpop.permute.xlu0 %8983  ;;  %v9096_v44 = vld [vmem:[%s17119_s29 + $0x40] sm:$0xff]  ;;  %v9097_v53 = vld [vmem:[%s17119_s29 + $0x48] sm:$0xff] }
 0x674   : > { %9069 = vst.msk [vmem:[%s17119_s29 + $0x68] sm:$0xff] %vm9055_vm6, %v8986_v16  ;;  %9068 = vst.msk [vmem:[%s17119_s29 + $0x60] sm:$0xff] %vm9055_vm6, %v8984_v51  ;;  %v9204_v62 = vmax.f32 %v9172_v20, 0.0  ;;  %v9205_v25 = vmax.f32 %v9173_v15, 0.0  ;;  %v9135_v14 = vmul.f32 %v21228_v31, %v9096_v44  ;;  %v9136_v24 = vmul.f32 %v21228_v31, %v9097_v53 }
 0x676   : > { %16351 = vmatprep.mubr.msk.f32.mxu0 %vm668_vm0, %v9204_v62  ;;  %v9174_v40 = vadd.f32 %v21234_v21, %v9135_v14  ;;  %v9175_v30 = vadd.f32 %v21234_v21, %v9136_v24 }
 0x677   : > { %v8990_v56 = vpop.permute.xlu1 %8989  ;;  %16352 = vmatmul.mubr.msk.f32.gmra.mxu0 %vm668_vm0, %v9205_v25  ;;  %v8988_v23 = vpop.permute.xlu0 %8987  ;;  %v9098_v35 = vld [vmem:[%s17119_s29 + $0x50] sm:$0xff]  ;;  %v9099_v9 = vld [vmem:[%s17119_s29 + $0x58] sm:$0xff] }
 0x678   : > { %9071 = vst.msk [vmem:[%s17119_s29 + $0x78] sm:$0xff] %vm9055_vm6, %v8990_v56  ;;  %9070 = vst.msk [vmem:[%s17119_s29 + $0x70] sm:$0xff] %vm9055_vm6, %v8988_v23  ;;  %v9206_v1 = vmax.f32 %v9174_v40, 0.0  ;;  %v9207_v17 = vmax.f32 %v9175_v30, 0.0  ;;  %v9137_v63 = vmul.f32 %v21228_v31, %v9098_v35  ;;  %v9138_v13 = vmul.f32 %v21228_v31, %v9099_v9 }
 0x67a   : > { %16354 = vmatprep.mubr.msk.f32.mxu0 %vm668_vm0, %v9206_v1  ;;  %v9176_v26 = vadd.f32 %v21234_v21, %v9137_v63  ;;  %v9177_v39 = vadd.f32 %v21234_v21, %v9138_v13 }
 0x67b   : > { %v8994_v22 = vpop.permute.xlu1 %8993  ;;  %16355 = vmatmul.mubr.msk.f32.gmra.mxu0 %vm668_vm0, %v9207_v17  ;;  %v8992_v41 = vpop.permute.xlu0 %8991  ;;  %v9100_v12 = vld [vmem:[%s17119_s29 + $0x60] sm:$0xff]  ;;  %v9101_v34 = vld [vmem:[%s17119_s29 + $0x68] sm:$0xff] }
 0x67c   : > { %9073 = vst.msk [vmem:[%s17119_s29 + $0x88] sm:$0xff] %vm9055_vm6, %v8994_v22  ;;  %9072 = vst.msk [vmem:[%s17119_s29 + $0x80] sm:$0xff] %vm9055_vm6, %v8992_v41  ;;  %v9208_v3 = vmax.f32 %v9176_v26, 0.0  ;;  %v9209_v46 = vmax.f32 %v9177_v39, 0.0  ;;  %v9139_v6 = vmul.f32 %v21228_v31, %v9100_v12  ;;  %v9140_v33 = vmul.f32 %v21228_v31, %v9101_v34 }
 0x67e   : > { %16357 = vmatprep.mubr.msk.f32.mxu0 %vm668_vm0, %v9208_v3  ;;  %v9178_v20 = vadd.f32 %v21234_v21, %v9139_v6  ;;  %v9179_v15 = vadd.f32 %v21234_v21, %v9140_v33 }
 0x67f   : > { %v8998_v16 = vpop.permute.xlu1 %8997  ;;  %16358 = vmatmul.mubr.msk.f32.gmra.mxu0 %vm668_vm0, %v9209_v46  ;;  %v8996_v51 = vpop.permute.xlu0 %8995  ;;  %v9102_v44 = vld [vmem:[%s17119_s29 + $0x70] sm:$0xff]  ;;  %v9103_v53 = vld [vmem:[%s17119_s29 + $0x78] sm:$0xff] }
 0x680   : > { %9075 = vst.msk [vmem:[%s17119_s29 + $0x98] sm:$0xff] %vm9055_vm6, %v8998_v16  ;;  %9074 = vst.msk [vmem:[%s17119_s29 + $0x90] sm:$0xff] %vm9055_vm6, %v8996_v51  ;;  %v9210_v62 = vmax.f32 %v9178_v20, 0.0  ;;  %v9211_v25 = vmax.f32 %v9179_v15, 0.0  ;;  %v9141_v14 = vmul.f32 %v21228_v31, %v9102_v44  ;;  %v9142_v24 = vmul.f32 %v21228_v31, %v9103_v53 }
 0x682   : > { %16360 = vmatprep.mubr.msk.f32.mxu0 %vm668_vm0, %v9210_v62  ;;  %v9180_v40 = vadd.f32 %v21234_v21, %v9141_v14  ;;  %v9181_v30 = vadd.f32 %v21234_v21, %v9142_v24 }
 0x683   : > { %v9002_v56 = vpop.permute.xlu1 %9001  ;;  %16361 = vmatmul.mubr.msk.f32.gmra.mxu0 %vm668_vm0, %v9211_v25  ;;  %v9000_v23 = vpop.permute.xlu0 %8999  ;;  %v9104_v35 = vld [vmem:[%s17119_s29 + $0x80] sm:$0xff]  ;;  %v9105_v9 = vld [vmem:[%s17119_s29 + $0x88] sm:$0xff] }
 0x684   : > { %9077 = vst.msk [vmem:[%s17119_s29 + $0xa8] sm:$0xff] %vm9055_vm6, %v9002_v56  ;;  %9076 = vst.msk [vmem:[%s17119_s29 + $0xa0] sm:$0xff] %vm9055_vm6, %v9000_v23  ;;  %v9212_v1 = vmax.f32 %v9180_v40, 0.0  ;;  %v9213_v17 = vmax.f32 %v9181_v30, 0.0  ;;  %v9143_v63 = vmul.f32 %v21228_v31, %v9104_v35  ;;  %v9144_v13 = vmul.f32 %v21228_v31, %v9105_v9 }
 0x686   : > { %16363 = vmatprep.mubr.msk.f32.mxu0 %vm668_vm0, %v9212_v1  ;;  %v9182_v26 = vadd.f32 %v21234_v21, %v9143_v63  ;;  %v9183_v39 = vadd.f32 %v21234_v21, %v9144_v13 }
 0x687   : > { %v9006_v22 = vpop.permute.xlu1 %9005  ;;  %16364 = vmatmul.mubr.msk.f32.gmra.mxu0 %vm668_vm0, %v9213_v17  ;;  %v9004_v41 = vpop.permute.xlu0 %9003  ;;  %v9106_v12 = vld [vmem:[%s17119_s29 + $0x90] sm:$0xff]  ;;  %v9107_v34 = vld [vmem:[%s17119_s29 + $0x98] sm:$0xff] }
 0x688   : > { %9079 = vst.msk [vmem:[%s17119_s29 + $0xb8] sm:$0xff] %vm9055_vm6, %v9006_v22  ;;  %9078 = vst.msk [vmem:[%s17119_s29 + $0xb0] sm:$0xff] %vm9055_vm6, %v9004_v41  ;;  %v9214_v3 = vmax.f32 %v9182_v26, 0.0  ;;  %v9215_v46 = vmax.f32 %v9183_v39, 0.0  ;;  %v9145_v6 = vmul.f32 %v21228_v31, %v9106_v12  ;;  %v9146_v33 = vmul.f32 %v21228_v31, %v9107_v34 }
 0x68a   : > { %16366 = vmatprep.mubr.msk.f32.mxu0 %vm668_vm0, %v9214_v3  ;;  %v9184_v20 = vadd.f32 %v21234_v21, %v9145_v6  ;;  %v9185_v15 = vadd.f32 %v21234_v21, %v9146_v33 }
 0x68b   : > { %v9010_v16 = vpop.permute.xlu1 %9009  ;;  %16367 = vmatmul.mubr.msk.f32.gmra.mxu0 %vm668_vm0, %v9215_v46  ;;  %v9008_v51 = vpop.permute.xlu0 %9007  ;;  %v9108_v44 = vld [vmem:[%s17119_s29 + $0xa0] sm:$0xff]  ;;  %v9109_v53 = vld [vmem:[%s17119_s29 + $0xa8] sm:$0xff] }
 0x68c   : > { %9081 = vst.msk [vmem:[%s17119_s29 + $0xc8] sm:$0xff] %vm9055_vm6, %v9010_v16  ;;  %9080 = vst.msk [vmem:[%s17119_s29 + $0xc0] sm:$0xff] %vm9055_vm6, %v9008_v51  ;;  %v9216_v62 = vmax.f32 %v9184_v20, 0.0  ;;  %v9217_v25 = vmax.f32 %v9185_v15, 0.0  ;;  %v9147_v14 = vmul.f32 %v21228_v31, %v9108_v44  ;;  %v9148_v24 = vmul.f32 %v21228_v31, %v9109_v53 }
 0x68e   : > { %16369 = vmatprep.mubr.msk.f32.mxu0 %vm668_vm0, %v9216_v62  ;;  %v9186_v40 = vadd.f32 %v21234_v21, %v9147_v14  ;;  %v9187_v30 = vadd.f32 %v21234_v21, %v9148_v24 }
 0x68f   : > { %v9014_v56 = vpop.permute.xlu1 %9013  ;;  %16370 = vmatmul.mubr.msk.f32.gmra.mxu0 %vm668_vm0, %v9217_v25  ;;  %v9012_v23 = vpop.permute.xlu0 %9011  ;;  %v9110_v35 = vld [vmem:[%s17119_s29 + $0xb0] sm:$0xff]  ;;  %v9111_v9 = vld [vmem:[%s17119_s29 + $0xb8] sm:$0xff] }
 0x690   : > { %9083 = vst.msk [vmem:[%s17119_s29 + $0xd8] sm:$0xff] %vm9055_vm6, %v9014_v56  ;;  %9082 = vst.msk [vmem:[%s17119_s29 + $0xd0] sm:$0xff] %vm9055_vm6, %v9012_v23  ;;  %v9218_v1 = vmax.f32 %v9186_v40, 0.0  ;;  %v9219_v17 = vmax.f32 %v9187_v30, 0.0  ;;  %v9149_v63 = vmul.f32 %v21228_v31, %v9110_v35  ;;  %v9150_v13 = vmul.f32 %v21228_v31, %v9111_v9 }
 0x692   : > { %16372 = vmatprep.mubr.msk.f32.mxu0 %vm668_vm0, %v9218_v1  ;;  %v9188_v26 = vadd.f32 %v21234_v21, %v9149_v63  ;;  %v9189_v39 = vadd.f32 %v21234_v21, %v9150_v13 }
 0x693   : > { %v9018_v22 = vpop.permute.xlu1 %9017  ;;  %16373 = vmatmul.mubr.msk.f32.gmra.mxu0 %vm668_vm0, %v9219_v17  ;;  %v9016_v41 = vpop.permute.xlu0 %9015  ;;  %v9112_v12 = vld [vmem:[%s17119_s29 + $0xc0] sm:$0xff]  ;;  %v9113_v34 = vld [vmem:[%s17119_s29 + $0xc8] sm:$0xff] }
 0x694   : > { %9085 = vst.msk [vmem:[%s17119_s29 + $0xe8] sm:$0xff] %vm9055_vm6, %v9018_v22  ;;  %9084 = vst.msk [vmem:[%s17119_s29 + $0xe0] sm:$0xff] %vm9055_vm6, %v9016_v41  ;;  %v9220_v3 = vmax.f32 %v9188_v26, 0.0  ;;  %v9221_v46 = vmax.f32 %v9189_v39, 0.0  ;;  %v9151_v6 = vmul.f32 %v21228_v31, %v9112_v12  ;;  %v9152_v33 = vmul.f32 %v21228_v31, %v9113_v34 }
 0x696   : > { %16375 = vmatprep.mubr.msk.f32.mxu0 %vm668_vm0, %v9220_v3  ;;  %v9190_v20 = vadd.f32 %v21234_v21, %v9151_v6  ;;  %v9191_v15 = vadd.f32 %v21234_v21, %v9152_v33 }
 0x697   : > { %v9022_v16 = vpop.permute.xlu1 %9021  ;;  %16376 = vmatmul.mubr.msk.f32.gmra.mxu0 %vm668_vm0, %v9221_v46  ;;  %v9020_v51 = vpop.permute.xlu0 %9019  ;;  %v9114_v44 = vld [vmem:[%s17119_s29 + $0xd0] sm:$0xff]  ;;  %v9115_v53 = vld [vmem:[%s17119_s29 + $0xd8] sm:$0xff] }
 0x698   : > { %9087 = vst.msk [vmem:[%s17119_s29 + $0xf8] sm:$0xff] %vm9055_vm6, %v9022_v16  ;;  %9086 = vst.msk [vmem:[%s17119_s29 + $0xf0] sm:$0xff] %vm9055_vm6, %v9020_v51  ;;  %v9222_v62 = vmax.f32 %v9190_v20, 0.0  ;;  %v9223_v25 = vmax.f32 %v9191_v15, 0.0  ;;  %v9153_v14 = vmul.f32 %v21228_v31, %v9114_v44  ;;  %v9154_v24 = vmul.f32 %v21228_v31, %v9115_v53  ;;  %v13819_v20 = vld [vmem:[%s23047_s18 + $0x60] sm:$0xff]  ;;  %v9730_v15 = vld [vmem:[%s23047_s18 + $0x8] sm:$0xff] }
 0x699   : > { %16396 = vmatprep.subr.mxu1 %v13819_v20  ;;  %v9729_v16 = vld [vmem:[%s23047_s18] sm:$0xff]  ;;  %v9698_v44 = vld [vmem:[#allocation2 + $0xf] sm:$0xff]  ;;  %v21439_v53 = vld [vmem:[%s23047_s18 + $0xd8] sm:$0xff] }
 0x69a   : > { %16378 = vmatprep.mubr.msk.f32.mxu0 %vm668_vm0, %v9222_v62  ;;  %v9192_v40 = vadd.f32 %v21234_v21, %v9153_v14  ;;  %v9193_v30 = vadd.f32 %v21234_v21, %v9154_v24  ;;  %16397 = vmatpush3.msra.mxu1 %v13819_v20  ;;  %v9697_v51 = vld [vmem:[#allocation2 + $0x7] sm:$0xff]  ;;  %v13930_v62 = vld [vmem:[%s23047_s18 + $0x98] sm:$0xff] }
 0x69b   : > { %16379 = vmatmul.mubr.msk.f32.gmra.mxu0 %vm668_vm0, %v9223_v25  ;;  %v9116_v56 = vld [vmem:[%s17119_s29 + $0xe0] sm:$0xff]  ;;  %v9117_v23 = vld [vmem:[%s17119_s29 + $0xe8] sm:$0xff]  ;;  %16502 = vmatprep.subr.mxu1 %v21439_v53  ;;  %v13929_v25 = vld [vmem:[%s23047_s18 + $0x90] sm:$0xff] }
 0x69c   : > { %v9224_v35 = vmax.f32 %v9192_v40, 0.0  ;;  %v9225_v9 = vmax.f32 %v9193_v30, 0.0  ;;  %v9155_v1 = vmul.f32 %v21228_v31, %v9116_v56  ;;  %v9156_v17 = vmul.f32 %v21228_v31, %v9117_v23  ;;  %v13928_v14 = vld [vmem:[%s23047_s18 + $0x88] sm:$0xff]  ;;  %v13927_v24 = vld [vmem:[%s23047_s18 + $0x80] sm:$0xff] }
 0x69d   : > { %v21457_v40 = vld [vmem:[%s23045_s16] ss:$0 sm:$0xff] }
 0x69e   : > { %16381 = vmatprep.mubr.msk.f32.mxu0 %vm668_vm0, %v9224_v35  ;;  %v9194_v63 = vadd.f32 %v21234_v21, %v9155_v1  ;;  %v9195_v13 = vadd.f32 %v21234_v21, %v9156_v17  ;;  %v21462_v56 = vld [vmem:[%s23046_s17] ss:$0 sm:$0xff] }
 0x69f   : > { %16382 = vmatmul.mubr.msk.f32.gmra.mxu0 %vm668_vm0, %v9225_v9  ;;  %v9118_v26 = vld [vmem:[%s17119_s29 + $0xf0] sm:$0xff]  ;;  %v9119_v39 = vld [vmem:[%s17119_s29 + $0xf8] sm:$0xff] }
 0x6a0   : > { %v9226_v22 = vmax.f32 %v9194_v63, 0.0  ;;  %v9227_v41 = vmax.f32 %v9195_v13, 0.0  ;;  %v9157_v12 = vmul.f32 %v21228_v31, %v9118_v26  ;;  %v9158_v34 = vmul.f32 %v21228_v31, %v9119_v39  ;;  %v9732_v31 = vld [vmem:[%s23047_s18 + $0x18] sm:$0xff] }
 0x6a1   : > { %16446 = vmatprep.subr.mxu0 %v9732_v31 }
 0x6a2   : > { %16384 = vmatprep.mubr.msk.f32.mxu0 %vm668_vm0, %v9226_v22  ;;  %v9196_v3 = vadd.f32 %v21234_v21, %v9157_v12  ;;  %v9197_v46 = vadd.f32 %v21234_v21, %v9158_v34  ;;  %16447 = vmatpush3.msra.mxu0 %v9732_v31  ;;  %v9731_v21 = vld [vmem:[%s23047_s18 + $0x10] sm:$0xff]  ;;  %v21472_v22 = vld [vmem:[%s23047_s18 + $0xf8] sm:$0xff] }
 0x6a3   : > { %16385 = vmatmul.mubr.msk.f32.gmra.mxu0 %vm668_vm0, %v9227_v41  ;;  %16448 = vmatprep.subr.mxu0 %v9731_v21 }
 0x6a4   : > { %v9228_v6 = vmax.f32 %v9196_v3, 0.0  ;;  %v9229_v33 = vmax.f32 %v9197_v46, 0.0  ;;  %16449 = vmatpush3.msra.mxu0 %v9731_v21 }
 0x6a5   : > { %16450 = vmatprep.subr.mxu0 %v9730_v15 }
 0x6a6   : > { %16387 = vmatprep.mubr.msk.f32.mxu0 %vm668_vm0, %v9228_v6  ;;  %16451 = vmatpush3.msra.mxu0 %v9730_v15 }
 0x6a7   : > { %16388 = vmatmul.mubr.msk.f32.gmra.mxu0 %vm668_vm0, %v9229_v33  ;;  %16452 = vmatprep.subr.mxu0 %v9729_v16 }
 0x6a8   : > { %16453 = vmatpush3.msra.mxu0 %v9729_v16  ;;  %16454 = vmatprep.mubr.msk.f32.mxu0 %vm668_vm0, %v9697_v51 }
 0x6a9   : > { %16558 = vmatprep.subr.mxu0 %v13930_v62 }
 0x6ab   : > { %16455 = vmatmul.mubr.msk.f32.vlgmr.msra.gmra.mxu0 %vm668_vm0, %v9698_v44 }
 0x6ac   : > { %16559 = vmatpush3.msra.mxu0 %v13930_v62 }
 0x6ad   : > { %16560 = vmatprep.subr.mxu0 %v13929_v25 }
 0x6ae   : > { %16561 = vmatpush3.msra.mxu0 %v13929_v25 }
 0x6af   : > { %16562 = vmatprep.subr.mxu0 %v13928_v14 }
 0x6b0   : > { %16563 = vmatpush3.msra.mxu0 %v13928_v14 }
 0x6b1   : > { %16564 = vmatprep.subr.mxu0 %v13927_v24 }
 0x6b2   : > { %16565 = vmatpush3.msra.mxu0 %v13927_v24 }
 0x6b3   : > { %16670 = vmatprep.subr.mxu0 %v21472_v22 }
 0x72b   : > { %v16344_v30 = vpop.f32.mrf.mxu0 }
 0x72c   : > { %v9563_v23 = vmul.f32 %v16344_v30, %v21457_v40 }
 0x72d   : > { %v9396_v35 = vpop.f32.mrf.mxu0 }
 0x72e   : > { %v9602_v9 = vadd.f32 %v21462_v56, %v9563_v23  ;;  %v9562_v1 = vmul.f32 %v21457_v40, %v9396_v35 }
 0x72f   : > { %v16347_v17 = vpop.f32.mrf.mxu0 }
 0x730   : > { %v9634_v63 = vmax.f32 %v9602_v9, 0.0  ;;  %v9601_v13 = vadd.f32 %v21462_v56, %v9562_v1  ;;  %v9565_v26 = vmul.f32 %v16347_v17, %v21457_v40 }
 0x731   : > { %v9406_v39 = vpop.f32.mrf.mxu0 }
 0x732   : > { %9666 = vst.msk [vmem:[#allocation2 + $0x20] sm:$0xff] %vm668_vm0, %v9634_v63  ;;  %v9633_v41 = vmax.f32 %v9601_v13, 0.0  ;;  %v9604_v12 = vadd.f32 %v21462_v56, %v9565_v26  ;;  %v9564_v34 = vmul.f32 %v21457_v40, %v9406_v39  ;;  %v13889_v13 = vld [vmem:[%s23047_s18 + $0xd0] sm:$0xff] }
 0x733   : > { %v16350_v3 = vpop.f32.mrf.mxu0 }
 0x734   : > { %9665 = vst.msk [vmem:[#allocation2 + $0x18] sm:$0xff] %vm668_vm0, %v9633_v41  ;;  %v9636_v46 = vmax.f32 %v9604_v12, 0.0  ;;  %v9603_v6 = vadd.f32 %v21462_v56, %v9564_v34  ;;  %v9567_v33 = vmul.f32 %v16350_v3, %v21457_v40 }
 0x735   : > { %v9416_v20 = vpop.f32.mrf.mxu0 }
 0x736   : > { %9668 = vst.msk [vmem:[#allocation2 + $0x30] sm:$0xff] %vm668_vm0, %v9636_v46  ;;  %v9635_v31 = vmax.f32 %v9603_v6, 0.0  ;;  %v9606_v21 = vadd.f32 %v21462_v56, %v9567_v33  ;;  %v9566_v15 = vmul.f32 %v21457_v40, %v9416_v20 }
 0x737   : > { %v16353_v16 = vpop.f32.mrf.mxu0 }
 0x738   : > { %9667 = vst.msk [vmem:[#allocation2 + $0x28] sm:$0xff] %vm668_vm0, %v9635_v31  ;;  %v9638_v51 = vmax.f32 %v9606_v21, 0.0  ;;  %v9605_v44 = vadd.f32 %v21462_v56, %v9566_v15  ;;  %v9569_v62 = vmul.f32 %v16353_v16, %v21457_v40 }
 0x739   : > { %v9426_v25 = vpop.f32.mrf.mxu0 }
 0x73a   : > { %9670 = vst.msk [vmem:[#allocation2 + $0x40] sm:$0xff] %vm668_vm0, %v9638_v51  ;;  %v9637_v14 = vmax.f32 %v9605_v44, 0.0  ;;  %v9608_v24 = vadd.f32 %v21462_v56, %v9569_v62  ;;  %v9568_v30 = vmul.f32 %v21457_v40, %v9426_v25 }
 0x73b   : > { %v16356_v23 = vpop.f32.mrf.mxu0  ;;  %v9699_v35 = vld [vmem:[#allocation2 + $0x17] sm:$0xff]  ;;  %v9700_v9 = vld [vmem:[#allocation2 + $0x1f] sm:$0xff] }
 0x73c   : > { %9669 = vst.msk [vmem:[#allocation2 + $0x38] sm:$0xff] %vm668_vm0, %v9637_v14  ;;  %v9640_v1 = vmax.f32 %v9608_v24, 0.0  ;;  %v9607_v17 = vadd.f32 %v21462_v56, %v9568_v30  ;;  %v9571_v63 = vmul.f32 %v16356_v23, %v21457_v40  ;;  %16398 = vmatprep.mubr.msk.f32.mxu1 %vm668_vm0, %v9699_v35  ;;  %16457 = vmatprep.mubr.msk.f32.mxu0 %vm668_vm0, %v9699_v35  ;;  %v13887_v30 = vld [vmem:[%s23047_s18 + $0xc0] sm:$0xff] }
 0x73d   : > { %v9436_v26 = vpop.f32.mrf.mxu0  ;;  %16399 = vmatmul.mubr.msk.f32.vlgmr.msra.gmra.mxu1 %vm668_vm0, %v9700_v9  ;;  %16458 = vmatmul.mubr.msk.f32.gmra.mxu0 %vm668_vm0, %v9700_v9 }
 0x73e   : > { %9672 = vst.msk [vmem:[#allocation2 + $0x50] sm:$0xff] %vm668_vm0, %v9640_v1  ;;  %v9639_v39 = vmax.f32 %v9607_v17, 0.0  ;;  %v9610_v41 = vadd.f32 %v21462_v56, %v9571_v63  ;;  %v9570_v12 = vmul.f32 %v21457_v40, %v9436_v26  ;;  %16503 = vmatpush3.msra.mxu1 %v21439_v53  ;;  %v13888_v53 = vld [vmem:[%s23047_s18 + $0xc8] sm:$0xff] }
 0x73f   : > { %v16359_v34 = vpop.f32.mrf.mxu0  ;;  %v21504_v3 = vld [vmem:[#allocation2 + $0x27] sm:$0xff]  ;;  %v21506_v46 = vld [vmem:[#allocation2 + $0x2f] sm:$0xff]  ;;  %16504 = vmatprep.subr.mxu1 %v13889_v13 }
 0x740   : > { %9671 = vst.msk [vmem:[#allocation2 + $0x48] sm:$0xff] %vm668_vm0, %v9639_v39  ;;  %v9642_v6 = vmax.f32 %v9610_v41, 0.0  ;;  %v9609_v33 = vadd.f32 %v21462_v56, %v9570_v12  ;;  %v9573_v20 = vmul.f32 %v16359_v34, %v21457_v40  ;;  %16401 = vmatprep.mubr.msk.f32.mxu1 %vm668_vm0, %v21504_v3  ;;  %16460 = vmatprep.mubr.msk.f32.mxu0 %vm668_vm0, %v21504_v3  ;;  %v21560_v12 = vld [vmem:[%s23047_s18 + $0x38] sm:$0xff] }
 0x741   : > { %v9446_v31 = vpop.f32.mrf.mxu0  ;;  %16402 = vmatmul.mubr.msk.f32.gmra.mxu1 %vm668_vm0, %v21506_v46  ;;  %16461 = vmatmul.mubr.msk.f32.gmra.mxu0 %vm668_vm0, %v21506_v46 }
 0x742   : > { %9674 = vst.msk [vmem:[#allocation2 + $0x60] sm:$0xff] %vm668_vm0, %v9642_v6  ;;  %v9641_v21 = vmax.f32 %v9609_v33, 0.0  ;;  %v9612_v15 = vadd.f32 %v21462_v56, %v9573_v20  ;;  %v9572_v16 = vmul.f32 %v21457_v40, %v9446_v31  ;;  %16505 = vmatpush3.msra.mxu1 %v13889_v13 }
 0x743   : > { %v16362_v51 = vpop.f32.mrf.mxu0  ;;  %v21525_v44 = vld [vmem:[#allocation2 + $0x37] sm:$0xff]  ;;  %v21527_v62 = vld [vmem:[#allocation2 + $0x3f] sm:$0xff]  ;;  %16506 = vmatprep.subr.mxu1 %v13888_v53 }
 0x744   : > { %9673 = vst.msk [vmem:[#allocation2 + $0x58] sm:$0xff] %vm668_vm0, %v9641_v21  ;;  %v9644_v25 = vmax.f32 %v9612_v15, 0.0  ;;  %v9611_v14 = vadd.f32 %v21462_v56, %v9572_v16  ;;  %v9575_v24 = vmul.f32 %v16362_v51, %v21457_v40  ;;  %16404 = vmatprep.mubr.msk.f32.mxu1 %vm668_vm0, %v21525_v44  ;;  %16463 = vmatprep.mubr.msk.f32.mxu0 %vm668_vm0, %v21525_v44 }
 0x745   : > { %v9456_v23 = vpop.f32.mrf.mxu0  ;;  %16405 = vmatmul.mubr.msk.f32.gmra.mxu1 %vm668_vm0, %v21527_v62  ;;  %16464 = vmatmul.mubr.msk.f32.gmra.mxu0 %vm668_vm0, %v21527_v62 }
 0x746   : > { %9676 = vst.msk [vmem:[#allocation2 + $0x70] sm:$0xff] %vm668_vm0, %v9644_v25  ;;  %v9643_v35 = vmax.f32 %v9611_v14, 0.0  ;;  %v9614_v9 = vadd.f32 %v21462_v56, %v9575_v24  ;;  %v9574_v1 = vmul.f32 %v21457_v40, %v9456_v23  ;;  %16507 = vmatpush3.msra.mxu1 %v13888_v53 }
 0x747   : > { %v16365_v17 = vpop.f32.mrf.mxu0  ;;  %v21546_v63 = vld [vmem:[#allocation2 + $0x47] sm:$0xff]  ;;  %v21548_v13 = vld [vmem:[#allocation2 + $0x4f] sm:$0xff]  ;;  %16508 = vmatprep.subr.mxu1 %v13887_v30 }
 0x748   : > { %9675 = vst.msk [vmem:[#allocation2 + $0x68] sm:$0xff] %vm668_vm0, %v9643_v35  ;;  %v9646_v26 = vmax.f32 %v9614_v9, 0.0  ;;  %v9613_v39 = vadd.f32 %v21462_v56, %v9574_v1  ;;  %v9577_v41 = vmul.f32 %v16365_v17, %v21457_v40  ;;  %16407 = vmatprep.mubr.msk.f32.mxu1 %vm668_vm0, %v21546_v63  ;;  %16466 = vmatprep.mubr.msk.f32.mxu0 %vm668_vm0, %v21546_v63 }
 0x749   : > { %v9466_v34 = vpop.f32.mrf.mxu0  ;;  %16408 = vmatmul.mubr.msk.f32.gmra.mxu1 %vm668_vm0, %v21548_v13  ;;  %16467 = vmatmul.mubr.msk.f32.gmra.mxu0 %vm668_vm0, %v21548_v13 }
 0x74a   : > { %9678 = vst.msk [vmem:[#allocation2 + $0x80] sm:$0xff] %vm668_vm0, %v9646_v26  ;;  %v9645_v6 = vmax.f32 %v9613_v39, 0.0  ;;  %v9616_v33 = vadd.f32 %v21462_v56, %v9577_v41  ;;  %v9576_v20 = vmul.f32 %v21457_v40, %v9466_v34  ;;  %16509 = vmatpush3.msra.mxu1 %v13887_v30 }
 0x74b   : > { %v16368_v53 = vpop.f32.mrf.mxu0  ;;  %v21569_v31 = vld [vmem:[#allocation2 + $0x57] sm:$0xff]  ;;  %v21571_v21 = vld [vmem:[#allocation2 + $0x5f] sm:$0xff]  ;;  %16614 = vmatprep.subr.mxu1 %v21560_v12 }
 0x74c   : > { %9677 = vst.msk [vmem:[#allocation2 + $0x78] sm:$0xff] %vm668_vm0, %v9645_v6  ;;  %v9648_v15 = vmax.f32 %v9616_v33, 0.0  ;;  %v9615_v16 = vadd.f32 %v21462_v56, %v9576_v20  ;;  %v9579_v51 = vmul.f32 %v16368_v53, %v21457_v40  ;;  %16410 = vmatprep.mubr.msk.f32.mxu1 %vm668_vm0, %v21569_v31  ;;  %16469 = vmatprep.mubr.msk.f32.mxu0 %vm668_vm0, %v21569_v31 }
 0x74d   : > { %v9476_v25 = vpop.f32.mrf.mxu0  ;;  %16411 = vmatmul.mubr.msk.f32.gmra.mxu1 %vm668_vm0, %v21571_v21  ;;  %16470 = vmatmul.mubr.msk.f32.gmra.mxu0 %vm668_vm0, %v21571_v21 }
 0x74e   : > { %9680 = vst.msk [vmem:[#allocation2 + $0x90] sm:$0xff] %vm668_vm0, %v9648_v15  ;;  %v9647_v14 = vmax.f32 %v9615_v16, 0.0  ;;  %v9618_v24 = vadd.f32 %v21462_v56, %v9579_v51  ;;  %v9578_v30 = vmul.f32 %v21457_v40, %v9476_v25 }
 0x74f   : > { %v16371_v23 = vpop.f32.mrf.mxu0  ;;  %v21588_v35 = vld [vmem:[#allocation2 + $0x67] sm:$0xff]  ;;  %v21590_v9 = vld [vmem:[#allocation2 + $0x6f] sm:$0xff] }
 0x750   : > { %9679 = vst.msk [vmem:[#allocation2 + $0x88] sm:$0xff] %vm668_vm0, %v9647_v14  ;;  %v9650_v1 = vmax.f32 %v9618_v24, 0.0  ;;  %v9617_v17 = vadd.f32 %v21462_v56, %v9578_v30  ;;  %v9581_v26 = vmul.f32 %v16371_v23, %v21457_v40  ;;  %16413 = vmatprep.mubr.msk.f32.mxu1 %vm668_vm0, %v21588_v35  ;;  %16472 = vmatprep.mubr.msk.f32.mxu0 %vm668_vm0, %v21588_v35 }
 0x751   : > { %v9486_v39 = vpop.f32.mrf.mxu0  ;;  %16414 = vmatmul.mubr.msk.f32.gmra.mxu1 %vm668_vm0, %v21590_v9  ;;  %16473 = vmatmul.mubr.msk.f32.gmra.mxu0 %vm668_vm0, %v21590_v9 }
 0x752   : > { %9682 = vst.msk [vmem:[#allocation2 + $0xa0] sm:$0xff] %vm668_vm0, %v9650_v1  ;;  %v9649_v41 = vmax.f32 %v9617_v17, 0.0  ;;  %v9620_v34 = vadd.f32 %v21462_v56, %v9581_v26  ;;  %v9580_v6 = vmul.f32 %v21457_v40, %v9486_v39 }
 0x753   : > { %v16374_v33 = vpop.f32.mrf.mxu0  ;;  %v21606_v20 = vld [vmem:[#allocation2 + $0x77] sm:$0xff]  ;;  %v21608_v53 = vld [vmem:[#allocation2 + $0x7f] sm:$0xff] }
 0x754   : > { %9681 = vst.msk [vmem:[#allocation2 + $0x98] sm:$0xff] %vm668_vm0, %v9649_v41  ;;  %v9652_v15 = vmax.f32 %v9620_v34, 0.0  ;;  %v9619_v16 = vadd.f32 %v21462_v56, %v9580_v6  ;;  %v9583_v51 = vmul.f32 %v16374_v33, %v21457_v40  ;;  %16416 = vmatprep.mubr.msk.f32.mxu1 %vm668_vm0, %v21606_v20  ;;  %16475 = vmatprep.mubr.msk.f32.mxu0 %vm668_vm0, %v21606_v20 }
 0x755   : > { %v9496_v25 = vpop.f32.mrf.mxu0  ;;  %16417 = vmatmul.mubr.msk.f32.gmra.mxu1 %vm668_vm0, %v21608_v53  ;;  %16476 = vmatmul.mubr.msk.f32.gmra.mxu0 %vm668_vm0, %v21608_v53 }
 0x756   : > { %9684 = vst.msk [vmem:[#allocation2 + $0xb0] sm:$0xff] %vm668_vm0, %v9652_v15  ;;  %v9651_v14 = vmax.f32 %v9619_v16, 0.0  ;;  %v9622_v24 = vadd.f32 %v21462_v56, %v9583_v51  ;;  %v9582_v30 = vmul.f32 %v21457_v40, %v9496_v25 }
 0x757   : > { %v16377_v23 = vpop.f32.mrf.mxu0  ;;  %v21624_v1 = vld [vmem:[#allocation2 + $0x87] sm:$0xff]  ;;  %v21626_v17 = vld [vmem:[#allocation2 + $0x8f] sm:$0xff] }
 0x758   : > { %9683 = vst.msk [vmem:[#allocation2 + $0xa8] sm:$0xff] %vm668_vm0, %v9651_v14  ;;  %v9654_v26 = vmax.f32 %v9622_v24, 0.0  ;;  %v9621_v39 = vadd.f32 %v21462_v56, %v9582_v30  ;;  %v9585_v41 = vmul.f32 %v16377_v23, %v21457_v40  ;;  %16419 = vmatprep.mubr.msk.f32.mxu1 %vm668_vm0, %v21624_v1  ;;  %16478 = vmatprep.mubr.msk.f32.mxu0 %vm668_vm0, %v21624_v1 }
 0x759   : > { %v9506_v34 = vpop.f32.mrf.mxu0  ;;  %16420 = vmatmul.mubr.msk.f32.gmra.mxu1 %vm668_vm0, %v21626_v17  ;;  %16479 = vmatmul.mubr.msk.f32.gmra.mxu0 %vm668_vm0, %v21626_v17 }
 0x75a   : > { %9686 = vst.msk [vmem:[#allocation2 + $0xc0] sm:$0xff] %vm668_vm0, %v9654_v26  ;;  %v9653_v6 = vmax.f32 %v9621_v39, 0.0  ;;  %v9624_v33 = vadd.f32 %v21462_v56, %v9585_v41  ;;  %v9584_v15 = vmul.f32 %v21457_v40, %v9506_v34 }
 0x75b   : > { %v16380_v16 = vpop.f32.mrf.mxu0  ;;  %v21642_v51 = vld [vmem:[#allocation2 + $0x97] sm:$0xff]  ;;  %v21644_v25 = vld [vmem:[#allocation2 + $0x9f] sm:$0xff] }
 0x75c   : > { %9685 = vst.msk [vmem:[#allocation2 + $0xb8] sm:$0xff] %vm668_vm0, %v9653_v6  ;;  %v9656_v14 = vmax.f32 %v9624_v33, 0.0  ;;  %v9623_v24 = vadd.f32 %v21462_v56, %v9584_v15  ;;  %v9587_v30 = vmul.f32 %v16380_v16, %v21457_v40  ;;  %16422 = vmatprep.mubr.msk.f32.mxu1 %vm668_vm0, %v21642_v51  ;;  %16481 = vmatprep.mubr.msk.f32.mxu0 %vm668_vm0, %v21642_v51 }
 0x75d   : > { %v9516_v23 = vpop.f32.mrf.mxu0  ;;  %16423 = vmatmul.mubr.msk.f32.gmra.mxu1 %vm668_vm0, %v21644_v25  ;;  %16482 = vmatmul.mubr.msk.f32.gmra.mxu0 %vm668_vm0, %v21644_v25 }
 0x75e   : > { %9688 = vst.msk [vmem:[#allocation2 + $0xd0] sm:$0xff] %vm668_vm0, %v9656_v14  ;;  %v9655_v26 = vmax.f32 %v9623_v24, 0.0  ;;  %v9626_v39 = vadd.f32 %v21462_v56, %v9587_v30  ;;  %v9586_v41 = vmul.f32 %v21457_v40, %v9516_v23 }
 0x75f   : > { %v16383_v34 = vpop.f32.mrf.mxu0  ;;  %v21660_v6 = vld [vmem:[#allocation2 + $0xa7] sm:$0xff]  ;;  %v21662_v33 = vld [vmem:[#allocation2 + $0xaf] sm:$0xff] }
 0x760   : > { %9687 = vst.msk [vmem:[#allocation2 + $0xc8] sm:$0xff] %vm668_vm0, %v9655_v26  ;;  %v9658_v15 = vmax.f32 %v9626_v39, 0.0  ;;  %v9625_v16 = vadd.f32 %v21462_v56, %v9586_v41  ;;  %v9589_v45 = vmul.f32 %v16383_v34, %v21457_v40  ;;  %16425 = vmatprep.mubr.msk.f32.mxu1 %vm668_vm0, %v21660_v6  ;;  %16484 = vmatprep.mubr.msk.f32.mxu0 %vm668_vm0, %v21660_v6 }
 0x761   : > { %v9526_v14 = vpop.f32.mrf.mxu0  ;;  %16426 = vmatmul.mubr.msk.f32.gmra.mxu1 %vm668_vm0, %v21662_v33  ;;  %16485 = vmatmul.mubr.msk.f32.gmra.mxu0 %vm668_vm0, %v21662_v33 }
 0x762   : > { %9690 = vst.msk [vmem:[#allocation2 + $0xe0] sm:$0xff] %vm668_vm0, %v9658_v15  ;;  %v9657_v24 = vmax.f32 %v9625_v16, 0.0  ;;  %v9628_v30 = vadd.f32 %v21462_v56, %v9589_v45  ;;  %v9588_v23 = vmul.f32 %v21457_v40, %v9526_v14 }
 0x763   : > { %v16386_v26 = vpop.f32.mrf.mxu0  ;;  %v21678_v39 = vld [vmem:[#allocation2 + $0xb7] sm:$0xff]  ;;  %v21680_v41 = vld [vmem:[#allocation2 + $0xbf] sm:$0xff] }
 0x764   : > { %9689 = vst.msk [vmem:[#allocation2 + $0xd8] sm:$0xff] %vm668_vm0, %v9657_v24  ;;  %v9660_v34 = vmax.f32 %v9628_v30, 0.0  ;;  %v9627_v28 = vadd.f32 %v21462_v56, %v9588_v23  ;;  %v9591_v50 = vmul.f32 %v16386_v26, %v21457_v40  ;;  %16428 = vmatprep.mubr.msk.f32.mxu1 %vm668_vm0, %v21678_v39  ;;  %16487 = vmatprep.mubr.msk.f32.mxu0 %vm668_vm0, %v21678_v39  ;;  %v22290_v58 = vld [vmem:[#allocation2 + $0xb1] sm:$0xff] }
 0x765   : > { %v9536_v45 = vpop.f32.mrf.mxu0  ;;  %16429 = vmatmul.mubr.msk.f32.gmra.mxu1 %vm668_vm0, %v21680_v41  ;;  %16488 = vmatmul.mubr.msk.f32.gmra.mxu0 %vm668_vm0, %v21680_v41 }
 0x766   : > { %9692 = vst.msk [vmem:[#allocation2 + $0xf0] sm:$0xff] %vm668_vm0, %v9660_v34  ;;  %v9659_v15 = vmax.f32 %v9627_v28, 0.0  ;;  %v9630_v16 = vadd.f32 %v21462_v56, %v9591_v50  ;;  %v9590_v14 = vmul.f32 %v21457_v40, %v9536_v45 }
 0x767   : > { %v16389_v24 = vpop.f32.mrf.mxu0  ;;  %v21696_v30 = vld [vmem:[#allocation2 + $0xc7] sm:$0xff]  ;;  %v21698_v23 = vld [vmem:[#allocation2 + $0xcf] sm:$0xff] }
 0x768   : > { %9691 = vst.msk [vmem:[#allocation2 + $0xe8] sm:$0xff] %vm668_vm0, %v9659_v15  ;;  %v9662_v26 = vmax.f32 %v9630_v16, 0.0  ;;  %v9629_v54 = vadd.f32 %v21462_v56, %v9590_v14  ;;  %v9593_v32 = vmul.f32 %v16389_v24, %v21457_v40  ;;  %16431 = vmatprep.mubr.msk.f32.mxu1 %vm668_vm0, %v21696_v30  ;;  %16490 = vmatprep.mubr.msk.f32.mxu0 %vm668_vm0, %v21696_v30  ;;  %v22306_v60 = vld [vmem:[#allocation2 + $0xc1] sm:$0xff] }
 0x769   : > { %v9546_v50 = vpop.f32.mrf.mxu0  ;;  %16432 = vmatmul.mubr.msk.f32.gmra.mxu1 %vm668_vm0, %v21698_v23  ;;  %16491 = vmatmul.mubr.msk.f32.gmra.mxu0 %vm668_vm0, %v21698_v23 }
 0x76a   : > { %9694 = vst.msk [vmem:[#allocation2 + $0x100] sm:$0xff] %vm668_vm0, %v9662_v26  ;;  %v9661_v28 = vmax.f32 %v9629_v54, 0.0  ;;  %v9632_v34 = vadd.f32 %v21462_v56, %v9593_v32  ;;  %v9592_v45 = vmul.f32 %v21457_v40, %v9546_v50  ;;  %v21754_v50 = vld [vmem:[#allocation2 + $0x18] sm:$0xff] }
 0x76b   : > { %v21714_v15 = vld [vmem:[#allocation2 + $0xd7] sm:$0xff]  ;;  %v21716_v16 = vld [vmem:[#allocation2 + $0xdf] sm:$0xff] }
 0x76c   : > { %9693 = vst.msk [vmem:[#allocation2 + $0xf8] sm:$0xff] %vm668_vm0, %v9661_v28  ;;  %v9664_v14 = vmax.f32 %v9632_v34, 0.0  ;;  %v9631_v24 = vadd.f32 %v21462_v56, %v9592_v45  ;;  %16434 = vmatprep.mubr.msk.f32.mxu1 %vm668_vm0, %v21714_v15  ;;  %16493 = vmatprep.mubr.msk.f32.mxu0 %vm668_vm0, %v21714_v15  ;;  %v21764_v45 = vld [vmem:[#allocation2 + $0x20] sm:$0xff]  ;;  %v22322_v4 = vld [vmem:[#allocation2 + $0xd1] sm:$0xff] }
 0x76d   : > { %16435 = vmatmul.mubr.msk.f32.gmra.mxu1 %vm668_vm0, %v21716_v16  ;;  %16494 = vmatmul.mubr.msk.f32.gmra.mxu0 %vm668_vm0, %v21716_v16 }
 0x76e   : > { %9696 = vst.msk [vmem:[#allocation2 + $0x110] sm:$0xff] %vm668_vm0, %v9664_v14  ;;  %v9663_v32 = vmax.f32 %v9631_v24, 0.0  ;;  %v21770_v14 = vld [vmem:[#allocation2 + $0x28] sm:$0xff]  ;;  %v13997_v24 = vld [vmem:[%s23047_s18 + $0xf0] sm:$0xff] }
 0x76f   : > { %v21729_v54 = vld [vmem:[#allocation2 + $0xe7] sm:$0xff]  ;;  %v21731_v40 = vld [vmem:[#allocation2 + $0xef] sm:$0xff] }
 0x770   : > { %9695 = vst.msk [vmem:[#allocation2 + $0x108] sm:$0xff] %vm668_vm0, %v9663_v32  ;;  %16437 = vmatprep.mubr.msk.f32.mxu1 %vm668_vm0, %v21729_v54  ;;  %16496 = vmatprep.mubr.msk.f32.mxu0 %vm668_vm0, %v21729_v54  ;;  %v21780_v32 = vld [vmem:[#allocation2 + $0x30] sm:$0xff]  ;;  %v22338_v8 = vld [vmem:[#allocation2 + $0xe1] sm:$0xff] }
 0x771   : > { %16438 = vmatmul.mubr.msk.f32.gmra.mxu1 %vm668_vm0, %v21731_v40  ;;  %16497 = vmatmul.mubr.msk.f32.gmra.mxu0 %vm668_vm0, %v21731_v40 }
 0x773   : > { %v21742_v56 = vld [vmem:[#allocation2 + $0xf7] sm:$0xff]  ;;  %v21744_v26 = vld [vmem:[#allocation2 + $0xff] sm:$0xff] }
 0x774   : > { %16440 = vmatprep.mubr.msk.f32.mxu1 %vm668_vm0, %v21742_v56  ;;  %16499 = vmatprep.mubr.msk.f32.mxu0 %vm668_vm0, %v21742_v56  ;;  %v22354_v52 = vld [vmem:[#allocation2 + $0xf1] sm:$0xff] }
 0x775   : > { %16441 = vmatmul.mubr.msk.f32.gmra.mxu1 %vm668_vm0, %v21744_v26  ;;  %16500 = vmatmul.mubr.msk.f32.gmra.mxu0 %vm668_vm0, %v21744_v26 }
 0x776   : > { %16566 = vmatprep.mubr.msk.f32.mxu0 %vm668_vm0, %v21754_v50 }
 0x777   : > { %v21758_v28 = vld [vmem:[#allocation2 + $0x107] sm:$0xff]  ;;  %v21760_v34 = vld [vmem:[#allocation2 + $0x10f] sm:$0xff] }
 0x778   : > { %16443 = vmatprep.mubr.msk.f32.mxu1 %vm668_vm0, %v21758_v28  ;;  %v22370_v49 = vld [vmem:[#allocation2 + $0x101] sm:$0xff] }
 0x779   : > { %16444 = vmatmul.mubr.msk.f32.gmra.mxu1 %vm668_vm0, %v21760_v34  ;;  %16567 = vmatmul.mubr.msk.f32.vlgmr.msra.gmra.mxu0 %vm668_vm0, %v21764_v45  ;;  %23644 = vst [vmem:[#allocation27_spill] sm:$0xff] %v22370_v49 }
 0x77a   : > { %16510 = vmatprep.mubr.msk.f32.mxu1 %vm668_vm0, %v21504_v3  ;;  %16569 = vmatprep.mubr.msk.f32.mxu0 %vm668_vm0, %v21770_v14  ;;  %v21792_v3 = vld [vmem:[#allocation2 + $0x38] sm:$0xff] }
 0x77b   : > { %16671 = vmatpush3.msra.mxu0 %v21472_v22  ;;  %v21796_v22 = vld [vmem:[#allocation2 + $0x40] sm:$0xff] }
 0x77c   : > { %16672 = vmatprep.subr.mxu0 %v13997_v24 }
 0x77d   : > { %16511 = vmatmul.mubr.msk.f32.vlgmr.msra.gmra.mxu1 %vm668_vm0, %v21506_v46  ;;  %16570 = vmatmul.mubr.msk.f32.gmra.mxu0 %vm668_vm0, %v21780_v32  ;;  %v13924_v46 = vld [vmem:[%s23047_s18 + $0x28] sm:$0xff] }
 0x77e   : > { %16615 = vmatpush3.msra.mxu1 %v21560_v12  ;;  %16513 = vmatprep.mubr.msk.f32.mxu1 %vm668_vm0, %v21525_v44  ;;  %v13996_v12 = vld [vmem:[%s23047_s18 + $0xe8] sm:$0xff] }
 0x77f   : > { %16572 = vmatprep.mubr.msk.f32.mxu0 %vm668_vm0, %v21792_v3  ;;  %16616 = vmatprep.subr.mxu1 %v13925_v11  ;;  %v21808_v44 = vld [vmem:[#allocation2 + $0x48] sm:$0xff] }
 0x780   : > { %16617 = vmatpush3.msra.mxu1 %v13925_v11  ;;  %16673 = vmatpush3.msra.mxu0 %v13997_v24  ;;  %v21814_v11 = vld [vmem:[#allocation2 + $0x50] sm:$0xff]  ;;  %v13995_v24 = vld [vmem:[%s23047_s18 + $0xe0] sm:$0xff] }
 0x781   : > { %16514 = vmatmul.mubr.msk.f32.gmra.mxu1 %vm668_vm0, %v21527_v62  ;;  %16573 = vmatmul.mubr.msk.f32.gmra.mxu0 %vm668_vm0, %v21796_v22  ;;  %v13923_v62 = vld [vmem:[%s23047_s18 + $0x20] sm:$0xff] }
 0x782   : > { %16516 = vmatprep.mubr.msk.f32.mxu1 %vm668_vm0, %v21546_v63  ;;  %16575 = vmatprep.mubr.msk.f32.mxu0 %vm668_vm0, %v21808_v44  ;;  %v21826_v63 = vld [vmem:[#allocation2 + $0x58] sm:$0xff] }
 0x783   : > { %16618 = vmatprep.subr.mxu1 %v13924_v46  ;;  %16674 = vmatprep.subr.mxu0 %v13996_v12 }
 0x784   : > { %16619 = vmatpush3.msra.mxu1 %v13924_v46  ;;  %16675 = vmatpush3.msra.mxu0 %v13996_v12  ;;  %v21832_v46 = vld [vmem:[#allocation2 + $0x60] sm:$0xff]  ;;  %v21842_v12 = vld [vmem:[%s23047_s18 + $0x58] sm:$0xff] }
 0x785   : > { %16517 = vmatmul.mubr.msk.f32.gmra.mxu1 %vm668_vm0, %v21548_v13  ;;  %16576 = vmatmul.mubr.msk.f32.gmra.mxu0 %vm668_vm0, %v21814_v11  ;;  %v21837_v13 = vld [vmem:[%s23047_s18 + $0xb8] sm:$0xff] }
 0x786   : > { %16519 = vmatprep.mubr.msk.f32.mxu1 %vm668_vm0, %v21569_v31  ;;  %16578 = vmatprep.mubr.msk.f32.mxu0 %vm668_vm0, %v21826_v63  ;;  %v21848_v31 = vld [vmem:[#allocation2 + $0x68] sm:$0xff] }
 0x787   : > { %16620 = vmatprep.subr.mxu1 %v13923_v62  ;;  %16676 = vmatprep.subr.mxu0 %v13995_v24 }
 0x788   : > { %16621 = vmatpush3.msra.mxu1 %v13923_v62  ;;  %16677 = vmatpush3.msra.mxu0 %v13995_v24  ;;  %v21856_v62 = vld [vmem:[#allocation2 + $0x70] sm:$0xff]  ;;  %v10323_v24 = vld [vmem:[#allocation2 + $0x11f] sm:$0xff] }
 0x789   : > { %16520 = vmatmul.mubr.msk.f32.gmra.mxu1 %vm668_vm0, %v21571_v21  ;;  %16579 = vmatmul.mubr.msk.f32.gmra.mxu0 %vm668_vm0, %v21832_v46  ;;  %v21862_v21 = vld [vmem:[#allocation2 + $0x78] sm:$0xff] }
 0x78a   : > { %16522 = vmatprep.mubr.msk.f32.mxu1 %vm668_vm0, %v21588_v35  ;;  %16581 = vmatprep.mubr.msk.f32.mxu0 %vm668_vm0, %v21848_v31  ;;  %v21868_v35 = vld [vmem:[#allocation2 + $0x80] sm:$0xff] }
 0x78b   : > { %16726 = vmatprep.subr.mxu1 %v21837_v13  ;;  %16782 = vmatprep.subr.mxu0 %v21842_v12 }
 0x78d   : > { %16523 = vmatmul.mubr.msk.f32.gmra.mxu1 %vm668_vm0, %v21590_v9  ;;  %16582 = vmatmul.mubr.msk.f32.gmra.mxu0 %vm668_vm0, %v21856_v62  ;;  %v21874_v9 = vld [vmem:[#allocation2 + $0x88] sm:$0xff] }
 0x78e   : > { %16525 = vmatprep.mubr.msk.f32.mxu1 %vm668_vm0, %v21606_v20  ;;  %16584 = vmatprep.mubr.msk.f32.mxu0 %vm668_vm0, %v21862_v21  ;;  %v21880_v20 = vld [vmem:[#allocation2 + $0x90] sm:$0xff] }
 0x791   : > { %16526 = vmatmul.mubr.msk.f32.gmra.mxu1 %vm668_vm0, %v21608_v53  ;;  %16585 = vmatmul.mubr.msk.f32.gmra.mxu0 %vm668_vm0, %v21868_v35  ;;  %v21886_v53 = vld [vmem:[#allocation2 + $0x98] sm:$0xff] }
 0x792   : > { %16528 = vmatprep.mubr.msk.f32.mxu1 %vm668_vm0, %v21624_v1  ;;  %16587 = vmatprep.mubr.msk.f32.mxu0 %vm668_vm0, %v21874_v9  ;;  %v21892_v1 = vld [vmem:[#allocation2 + $0xa0] sm:$0xff] }
 0x795   : > { %16529 = vmatmul.mubr.msk.f32.gmra.mxu1 %vm668_vm0, %v21626_v17  ;;  %16588 = vmatmul.mubr.msk.f32.gmra.mxu0 %vm668_vm0, %v21880_v20  ;;  %v21898_v17 = vld [vmem:[#allocation2 + $0xa8] sm:$0xff] }
 0x796   : > { %16531 = vmatprep.mubr.msk.f32.mxu1 %vm668_vm0, %v21642_v51  ;;  %16590 = vmatprep.mubr.msk.f32.mxu0 %vm668_vm0, %v21886_v53  ;;  %v21904_v51 = vld [vmem:[#allocation2 + $0xb0] sm:$0xff] }
 0x799   : > { %16532 = vmatmul.mubr.msk.f32.gmra.mxu1 %vm668_vm0, %v21644_v25  ;;  %16591 = vmatmul.mubr.msk.f32.gmra.mxu0 %vm668_vm0, %v21892_v1  ;;  %v21910_v25 = vld [vmem:[#allocation2 + $0xb8] sm:$0xff] }
 0x79a   : > { %16534 = vmatprep.mubr.msk.f32.mxu1 %vm668_vm0, %v21660_v6  ;;  %16593 = vmatprep.mubr.msk.f32.mxu0 %vm668_vm0, %v21898_v17  ;;  %v21916_v6 = vld [vmem:[#allocation2 + $0xc0] sm:$0xff] }
 0x79d   : > { %16535 = vmatmul.mubr.msk.f32.gmra.mxu1 %vm668_vm0, %v21662_v33  ;;  %16594 = vmatmul.mubr.msk.f32.gmra.mxu0 %vm668_vm0, %v21904_v51  ;;  %v21922_v33 = vld [vmem:[#allocation2 + $0xc8] sm:$0xff] }
 0x79e   : > { %16537 = vmatprep.mubr.msk.f32.mxu1 %vm668_vm0, %v21678_v39  ;;  %16596 = vmatprep.mubr.msk.f32.mxu0 %vm668_vm0, %v21910_v25  ;;  %v21928_v39 = vld [vmem:[#allocation2 + $0xd0] sm:$0xff] }
 0x7a1   : > { %16538 = vmatmul.mubr.msk.f32.gmra.mxu1 %vm668_vm0, %v21680_v41  ;;  %16597 = vmatmul.mubr.msk.f32.gmra.mxu0 %vm668_vm0, %v21916_v6  ;;  %v21934_v41 = vld [vmem:[#allocation2 + $0xd8] sm:$0xff] }
 0x7a2   : > { %16540 = vmatprep.mubr.msk.f32.mxu1 %vm668_vm0, %v21696_v30  ;;  %16599 = vmatprep.mubr.msk.f32.mxu0 %vm668_vm0, %v21922_v33  ;;  %v21940_v30 = vld [vmem:[#allocation2 + $0xe0] sm:$0xff] }
 0x7a5   : > { %16541 = vmatmul.mubr.msk.f32.gmra.mxu1 %vm668_vm0, %v21698_v23  ;;  %16600 = vmatmul.mubr.msk.f32.gmra.mxu0 %vm668_vm0, %v21928_v39  ;;  %v21946_v23 = vld [vmem:[#allocation2 + $0xe8] sm:$0xff] }
 0x7a6   : > { %16543 = vmatprep.mubr.msk.f32.mxu1 %vm668_vm0, %v21714_v15  ;;  %16602 = vmatprep.mubr.msk.f32.mxu0 %vm668_vm0, %v21934_v41  ;;  %v21952_v15 = vld [vmem:[#allocation2 + $0xf0] sm:$0xff] }
 0x7a9   : > { %16544 = vmatmul.mubr.msk.f32.gmra.mxu1 %vm668_vm0, %v21716_v16  ;;  %16603 = vmatmul.mubr.msk.f32.gmra.mxu0 %vm668_vm0, %v21940_v30  ;;  %v21958_v16 = vld [vmem:[#allocation2 + $0xf8] sm:$0xff] }
 0x7aa   : > { %16546 = vmatprep.mubr.msk.f32.mxu1 %vm668_vm0, %v21729_v54  ;;  %16605 = vmatprep.mubr.msk.f32.mxu0 %vm668_vm0, %v21946_v23  ;;  %v21964_v54 = vld [vmem:[#allocation2 + $0x100] sm:$0xff] }
 0x7ad   : > { %16547 = vmatmul.mubr.msk.f32.gmra.mxu1 %vm668_vm0, %v21731_v40  ;;  %16606 = vmatmul.mubr.msk.f32.gmra.mxu0 %vm668_vm0, %v21952_v15  ;;  %v21970_v40 = vld [vmem:[#allocation2 + $0x108] sm:$0xff] }
 0x7ae   : > { %16549 = vmatprep.mubr.msk.f32.mxu1 %vm668_vm0, %v21742_v56  ;;  %16608 = vmatprep.mubr.msk.f32.mxu0 %vm668_vm0, %v21958_v16  ;;  %v21976_v56 = vld [vmem:[#allocation2 + $0x110] sm:$0xff] }
 0x7b1   : > { %16550 = vmatmul.mubr.msk.f32.gmra.mxu1 %vm668_vm0, %v21744_v26  ;;  %16609 = vmatmul.mubr.msk.f32.gmra.mxu0 %vm668_vm0, %v21964_v54  ;;  %v10322_v26 = vld [vmem:[#allocation2 + $0x117] sm:$0xff] }
 0x7b2   : > { %16552 = vmatprep.mubr.msk.f32.mxu1 %vm668_vm0, %v21758_v28  ;;  %16611 = vmatprep.mubr.msk.f32.mxu0 %vm668_vm0, %v21970_v40  ;;  %v14033_v28 = vld [vmem:[%s23047_s18 + $0x50] sm:$0xff] }
 0x7b5   : > { %16553 = vmatmul.mubr.msk.f32.gmra.mxu1 %vm668_vm0, %v21760_v34  ;;  %16612 = vmatmul.mubr.msk.f32.gmra.mxu0 %vm668_vm0, %v21976_v56  ;;  %v10747_v34 = vld [vmem:[#allocation2 + $0x10] sm:$0xff] }
 0x7b6   : > { %16555 = vmatprep.mubr.msk.f32.mxu1 %vm668_vm0, %v10322_v26  ;;  %16678 = vmatprep.mubr.msk.f32.mxu0 %vm668_vm0, %v21770_v14  ;;  %v14037_v26 = vld [vmem:[%s23047_s18 + $0xb0] sm:$0xff] }
 0x7b9   : > { %16556 = vmatmul.mubr.msk.f32.gmra.mxu1 %vm668_vm0, %v10323_v24  ;;  %16679 = vmatmul.mubr.msk.f32.vlgmr.msra.gmra.mxu0 %vm668_vm0, %v21780_v32 }
 0x7ba   : > { %16681 = vmatprep.mubr.msk.f32.mxu0 %vm668_vm0, %v21792_v3  ;;  %16622 = vmatprep.mubr.msk.f32.mxu1 %vm668_vm0, %v10746_v10  ;;  %v14036_v10 = vld [vmem:[%s23047_s18 + $0xa8] sm:$0xff] }
 0x7bb   : > { %16783 = vmatpush3.msra.mxu0 %v21842_v12  ;;  %v14032_v12 = vld [vmem:[%s23047_s18 + $0x48] sm:$0xff] }
 0x7bc   : > { %16784 = vmatprep.subr.mxu0 %v14033_v28 }
 0x7bd   : > { %16623 = vmatmul.mubr.msk.f32.vlgmr.msra.gmra.mxu1 %vm668_vm0, %v10747_v34  ;;  %16682 = vmatmul.mubr.msk.f32.gmra.mxu0 %vm668_vm0, %v21796_v22 }
 0x7be   : > { %16727 = vmatpush3.msra.mxu1 %v21837_v13  ;;  %16625 = vmatprep.mubr.msk.f32.mxu1 %vm668_vm0, %v21754_v50  ;;  %v14035_v50 = vld [vmem:[%s23047_s18 + $0xa0] sm:$0xff] }
 0x7bf   : > { %16684 = vmatprep.mubr.msk.f32.mxu0 %vm668_vm0, %v21808_v44  ;;  %16728 = vmatprep.subr.mxu1 %v14037_v26  ;;  %v11767_v13 = vld [vmem:[#allocation2 + $0x21] sm:$0xff] }
 0x7c0   : > { %16729 = vmatpush3.msra.mxu1 %v14037_v26  ;;  %16785 = vmatpush3.msra.mxu0 %v14033_v28  ;;  %v22194_v26 = vld [vmem:[#allocation2 + $0x51] sm:$0xff] }
 0x7c1   : > { %16626 = vmatmul.mubr.msk.f32.gmra.mxu1 %vm668_vm0, %v21764_v45  ;;  %16685 = vmatmul.mubr.msk.f32.gmra.mxu0 %vm668_vm0, %v21814_v11  ;;  %v14031_v45 = vld [vmem:[%s23047_s18 + $0x40] sm:$0xff] }
 0x7c2   : > { %16628 = vmatprep.mubr.msk.f32.mxu1 %vm668_vm0, %v21770_v14  ;;  %16687 = vmatprep.mubr.msk.f32.mxu0 %vm668_vm0, %v21826_v63  ;;  %v22037_v14 = vld [vmem:[%s23047_s18 + $0x118] sm:$0xff] }
 0x7c3   : > { %16730 = vmatprep.subr.mxu1 %v14036_v10  ;;  %16786 = vmatprep.subr.mxu0 %v14032_v12 }
 0x7c4   : > { %16731 = vmatpush3.msra.mxu1 %v14036_v10  ;;  %16787 = vmatpush3.msra.mxu0 %v14032_v12 }
 0x7c5   : > { %16629 = vmatmul.mubr.msk.f32.gmra.mxu1 %vm668_vm0, %v21780_v32  ;;  %16688 = vmatmul.mubr.msk.f32.gmra.mxu0 %vm668_vm0, %v21832_v46  ;;  %v11372_v32 = vld [vmem:[#allocation2 + $0x118] sm:$0xff] }
 0x7c6   : > { %16631 = vmatprep.mubr.msk.f32.mxu1 %vm668_vm0, %v21792_v3  ;;  %16690 = vmatprep.mubr.msk.f32.mxu0 %vm668_vm0, %v21848_v31  ;;  %v11373_v3 = vld [vmem:[#allocation2 + $0x120] sm:$0xff] }
 0x7c7   : > { %16732 = vmatprep.subr.mxu1 %v14035_v50  ;;  %16788 = vmatprep.subr.mxu0 %v14031_v45 }
 0x7c8   : > { %16733 = vmatpush3.msra.mxu1 %v14035_v50  ;;  %16789 = vmatpush3.msra.mxu0 %v14031_v45  ;;  %v22200_v50 = vld [vmem:[#allocation2 + $0x59] sm:$0xff] }
 0x7c9   : > { %16632 = vmatmul.mubr.msk.f32.gmra.mxu1 %vm668_vm0, %v21796_v22  ;;  %16691 = vmatmul.mubr.msk.f32.gmra.mxu0 %vm668_vm0, %v21856_v62  ;;  %v11764_v22 = vld [vmem:[#allocation2 + $0x9] sm:$0xff] }
 0x7ca   : > { %16634 = vmatprep.mubr.msk.f32.mxu1 %vm668_vm0, %v21808_v44  ;;  %16693 = vmatprep.mubr.msk.f32.mxu0 %vm668_vm0, %v21862_v21  ;;  %v22130_v44 = vpop.f32.mrf.mxu0 }
 0x7cb   : > { %16838 = vmatprep.subr.mxu1 %v22037_v14 }
 0x7cd   : > { %16635 = vmatmul.mubr.msk.f32.gmra.mxu1 %vm668_vm0, %v21814_v11  ;;  %16694 = vmatmul.mubr.msk.f32.gmra.mxu0 %vm668_vm0, %v21868_v35  ;;  %v11765_v11 = vld [vmem:[#allocation2 + $0x11] sm:$0xff] }
 0x7ce   : > { %16637 = vmatprep.mubr.msk.f32.mxu1 %vm668_vm0, %v21826_v63  ;;  %16696 = vmatprep.mubr.msk.f32.mxu0 %vm668_vm0, %v21874_v9  ;;  %v11766_v63 = vld [vmem:[#allocation2 + $0x19] sm:$0xff] }
 0x7d1   : > { %16638 = vmatmul.mubr.msk.f32.gmra.mxu1 %vm668_vm0, %v21832_v46  ;;  %16697 = vmatmul.mubr.msk.f32.gmra.mxu0 %vm668_vm0, %v21880_v20  ;;  %v10133_v46 = vpop.f32.mrf.mxu0 }
 0x7d2   : > { %16640 = vmatprep.mubr.msk.f32.mxu1 %vm668_vm0, %v21848_v31  ;;  %16699 = vmatprep.mubr.msk.f32.mxu0 %vm668_vm0, %v21886_v53  ;;  %v14105_v31 = vld [vmem:[%s23047_s18 + $0x110] sm:$0xff] }
 0x7d5   : > { %16641 = vmatmul.mubr.msk.f32.gmra.mxu1 %vm668_vm0, %v21856_v62  ;;  %16700 = vmatmul.mubr.msk.f32.gmra.mxu0 %vm668_vm0, %v21892_v1 }
 0x7d6   : > { %16643 = vmatprep.mubr.msk.f32.mxu1 %vm668_vm0, %v21862_v21  ;;  %16702 = vmatprep.mubr.msk.f32.mxu0 %vm668_vm0, %v21898_v17 }
 0x7d9   : > { %16644 = vmatmul.mubr.msk.f32.gmra.mxu1 %vm668_vm0, %v21868_v35  ;;  %16703 = vmatmul.mubr.msk.f32.gmra.mxu0 %vm668_vm0, %v21904_v51  ;;  %v22147_v35 = vld [vmem:[#allocation2 + $0x29] sm:$0xff] }
 0x7da   : > { %16646 = vmatprep.mubr.msk.f32.mxu1 %vm668_vm0, %v21874_v9  ;;  %16705 = vmatprep.mubr.msk.f32.mxu0 %vm668_vm0, %v21910_v25 }
 0x7dd   : > { %16647 = vmatmul.mubr.msk.f32.gmra.mxu1 %vm668_vm0, %v21880_v20  ;;  %16706 = vmatmul.mubr.msk.f32.gmra.mxu0 %vm668_vm0, %v21916_v6 }
 0x7de   : > { %16649 = vmatprep.mubr.msk.f32.mxu1 %vm668_vm0, %v21886_v53  ;;  %16708 = vmatprep.mubr.msk.f32.mxu0 %vm668_vm0, %v21922_v33 }
 0x7e1   : > { %16650 = vmatmul.mubr.msk.f32.gmra.mxu1 %vm668_vm0, %v21892_v1  ;;  %16709 = vmatmul.mubr.msk.f32.gmra.mxu0 %vm668_vm0, %v21928_v39  ;;  %v22156_v1 = vld [vmem:[#allocation2 + $0x31] sm:$0xff] }
 0x7e2   : > { %16652 = vmatprep.mubr.msk.f32.mxu1 %vm668_vm0, %v21898_v17  ;;  %16711 = vmatprep.mubr.msk.f32.mxu0 %vm668_vm0, %v21934_v41  ;;  %v14104_v17 = vld [vmem:[%s23047_s18 + $0x108] sm:$0xff] }
 0x7e5   : > { %16653 = vmatmul.mubr.msk.f32.gmra.mxu1 %vm668_vm0, %v21904_v51  ;;  %16712 = vmatmul.mubr.msk.f32.gmra.mxu0 %vm668_vm0, %v21940_v30 }
 0x7e6   : > { %16655 = vmatprep.mubr.msk.f32.mxu1 %vm668_vm0, %v21910_v25  ;;  %16714 = vmatprep.mubr.msk.f32.mxu0 %vm668_vm0, %v21946_v23 }
 0x7e9   : > { %16656 = vmatmul.mubr.msk.f32.gmra.mxu1 %vm668_vm0, %v21916_v6  ;;  %16715 = vmatmul.mubr.msk.f32.gmra.mxu0 %vm668_vm0, %v21952_v15  ;;  %v22165_v6 = vld [vmem:[#allocation2 + $0x39] sm:$0xff] }
 0x7ea   : > { %16658 = vmatprep.mubr.msk.f32.mxu1 %vm668_vm0, %v21922_v33  ;;  %16717 = vmatprep.mubr.msk.f32.mxu0 %vm668_vm0, %v21958_v16 }
 0x7ed   : > { %16659 = vmatmul.mubr.msk.f32.gmra.mxu1 %vm668_vm0, %v21928_v39  ;;  %16718 = vmatmul.mubr.msk.f32.gmra.mxu0 %vm668_vm0, %v21964_v54 }
 0x7ee   : > { %16661 = vmatprep.mubr.msk.f32.mxu1 %vm668_vm0, %v21934_v41  ;;  %16720 = vmatprep.mubr.msk.f32.mxu0 %vm668_vm0, %v21970_v40  ;;  %v22184_v40 = vld [vmem:[#allocation2 + $0x49] sm:$0xff] }
 0x7f1   : > { %16662 = vmatmul.mubr.msk.f32.gmra.mxu1 %vm668_vm0, %v21940_v30  ;;  %16721 = vmatmul.mubr.msk.f32.gmra.mxu0 %vm668_vm0, %v21976_v56 }
 0x7f2   : > { %16664 = vmatprep.mubr.msk.f32.mxu1 %vm668_vm0, %v21946_v23  ;;  %16723 = vmatprep.mubr.msk.f32.mxu0 %vm668_vm0, %v11372_v32  ;;  %v22175_v23 = vld [vmem:[#allocation2 + $0x41] sm:$0xff] }
 0x7f5   : > { %16665 = vmatmul.mubr.msk.f32.gmra.mxu1 %vm668_vm0, %v21952_v15  ;;  %16724 = vmatmul.mubr.msk.f32.gmra.mxu0 %vm668_vm0, %v11373_v3  ;;  %v14103_v15 = vld [vmem:[%s23047_s18 + $0x100] sm:$0xff] }
 0x7f6   : > { %16667 = vmatprep.mubr.msk.f32.mxu1 %vm668_vm0, %v21958_v16  ;;  %16790 = vmatprep.mubr.msk.f32.mxu0 %vm668_vm0, %v11764_v22  ;;  %v22210_v22 = vld [vmem:[#allocation2 + $0x61] sm:$0xff] }
 0x7f9   : > { %16668 = vmatmul.mubr.msk.f32.gmra.mxu1 %vm668_vm0, %v21964_v54  ;;  %16791 = vmatmul.mubr.msk.f32.vlgmr.msra.gmra.mxu0 %vm668_vm0, %v11765_v11 }
 0x7fa   : > { %16734 = vmatprep.mubr.msk.f32.mxu1 %vm668_vm0, %v11766_v63  ;;  %16793 = vmatprep.mubr.msk.f32.mxu0 %vm668_vm0, %v11766_v63 }
 0x7fd   : > { %v22143_v62 = vpop.f32.mrf.mxu1  ;;  %v16459_v21 = vpop.f32.mrf.mxu0  ;;  %16735 = vmatmul.mubr.msk.f32.vlgmr.msra.gmra.mxu1 %vm668_vm0, %v11767_v13  ;;  %16794 = vmatmul.mubr.msk.f32.gmra.mxu0 %vm668_vm0, %v11767_v13 }
 0x7fe   : > { %16839 = vmatpush3.msra.mxu1 %v22037_v14  ;;  %16737 = vmatprep.mubr.msk.f32.mxu1 %vm668_vm0, %v22147_v35 }
 0x7ff   : > { %16796 = vmatprep.mubr.msk.f32.mxu0 %vm668_vm0, %v22147_v35  ;;  %v9902_v9 = vpop.f32.mrf.mxu1  ;;  %v10143_v20 = vpop.f32.mrf.mxu0  ;;  %16840 = vmatprep.subr.mxu1 %v14105_v31 }
 0x800   : > { %v22154_v53 = vadd.f32 %v10133_v46, %v9902_v9  ;;  %16841 = vmatpush3.msra.mxu1 %v14105_v31  ;;  %v22216_v46 = vld [vmem:[#allocation2 + $0x69] sm:$0xff] }
 0x801   : > { %v16403_v51 = vpop.f32.mrf.mxu1  ;;  %v16462_v25 = vpop.f32.mrf.mxu0  ;;  %16738 = vmatmul.mubr.msk.f32.gmra.mxu1 %vm668_vm0, %v22156_v1  ;;  %16797 = vmatmul.mubr.msk.f32.gmra.mxu0 %vm668_vm0, %v22156_v1 }
 0x802   : > { %v22167_v33 = vadd.f32 %v16459_v21, %v16403_v51  ;;  %16740 = vmatprep.mubr.msk.f32.mxu1 %vm668_vm0, %v22165_v6  ;;  %16799 = vmatprep.mubr.msk.f32.mxu0 %vm668_vm0, %v22165_v6 }
 0x803   : > { %v9912_v39 = vpop.f32.mrf.mxu1  ;;  %v10153_v41 = vpop.f32.mrf.mxu0  ;;  %16842 = vmatprep.subr.mxu1 %v14104_v17 }
 0x804   : > { %v22173_v30 = vadd.f32 %v10143_v20, %v9912_v39  ;;  %16843 = vmatpush3.msra.mxu1 %v14104_v17  ;;  %v22226_v20 = vld [vmem:[#allocation2 + $0x71] sm:$0xff] }
 0x805   : > { %v16406_v16 = vpop.f32.mrf.mxu1  ;;  %v16465_v54 = vpop.f32.mrf.mxu0  ;;  %16741 = vmatmul.mubr.msk.f32.gmra.mxu1 %vm668_vm0, %v22175_v23  ;;  %16800 = vmatmul.mubr.msk.f32.gmra.mxu0 %vm668_vm0, %v22175_v23 }
 0x806   : > { %v22186_v56 = vadd.f32 %v16462_v25, %v16406_v16  ;;  %16743 = vmatprep.mubr.msk.f32.mxu1 %vm668_vm0, %v22184_v40  ;;  %16802 = vmatprep.mubr.msk.f32.mxu0 %vm668_vm0, %v22184_v40  ;;  %v22232_v25 = vld [vmem:[#allocation2 + $0x79] sm:$0xff] }
 0x807   : > { %v9922_v24 = vpop.f32.mrf.mxu1  ;;  %v10163_v28 = vpop.f32.mrf.mxu0  ;;  %16844 = vmatprep.subr.mxu1 %v14103_v15 }
 0x808   : > { %v22192_v34 = vadd.f32 %v10153_v41, %v9922_v24  ;;  %16845 = vmatpush3.msra.mxu1 %v14103_v15 }
 0x809   : > { %v16409_v10 = vpop.f32.mrf.mxu1  ;;  %v16468_v12 = vpop.f32.mrf.mxu0  ;;  %16744 = vmatmul.mubr.msk.f32.gmra.mxu1 %vm668_vm0, %v22194_v26  ;;  %16803 = vmatmul.mubr.msk.f32.gmra.mxu0 %vm668_vm0, %v22194_v26 }
 0x80a   : > { %v22202_v45 = vadd.f32 %v16465_v54, %v16409_v10  ;;  %16746 = vmatprep.mubr.msk.f32.mxu1 %vm668_vm0, %v22200_v50  ;;  %16805 = vmatprep.mubr.msk.f32.mxu0 %vm668_vm0, %v22200_v50  ;;  %v22242_v54 = vld [vmem:[#allocation2 + $0x81] sm:$0xff]  ;;  %v22248_v10 = vld [vmem:[#allocation2 + $0x89] sm:$0xff] }
 0x80b   : > { %v9932_v14 = vpop.f32.mrf.mxu1  ;;  %v10173_v32 = vpop.f32.mrf.mxu0 }
 0x80c   : > { %v22208_v3 = vadd.f32 %v10163_v28, %v9932_v14 }
 0x80d   : > { %v16412_v11 = vpop.f32.mrf.mxu1  ;;  %v16471_v63 = vpop.f32.mrf.mxu0  ;;  %16747 = vmatmul.mubr.msk.f32.gmra.mxu1 %vm668_vm0, %v22210_v22  ;;  %16806 = vmatmul.mubr.msk.f32.gmra.mxu0 %vm668_vm0, %v22210_v22 }
 0x80e   : > { %v22218_v13 = vadd.f32 %v16468_v12, %v16412_v11  ;;  %16749 = vmatprep.mubr.msk.f32.mxu1 %vm668_vm0, %v22216_v46  ;;  %16808 = vmatprep.mubr.msk.f32.mxu0 %vm668_vm0, %v22216_v46 }
 0x80f   : > { %v9942_v31 = vpop.f32.mrf.mxu1  ;;  %v10183_v21 = vpop.f32.mrf.mxu0 }
 0x810   : > { %v22224_v9 = vadd.f32 %v10173_v32, %v9942_v31 }
 0x811   : > { %v16415_v17 = vpop.f32.mrf.mxu1  ;;  %v16474_v51 = vpop.f32.mrf.mxu0  ;;  %16750 = vmatmul.mubr.msk.f32.gmra.mxu1 %vm668_vm0, %v22226_v20  ;;  %16809 = vmatmul.mubr.msk.f32.gmra.mxu0 %vm668_vm0, %v22226_v20 }
 0x812   : > { %v22234_v39 = vadd.f32 %v16471_v63, %v16415_v17  ;;  %16752 = vmatprep.mubr.msk.f32.mxu1 %vm668_vm0, %v22232_v25  ;;  %16811 = vmatprep.mubr.msk.f32.mxu0 %vm668_vm0, %v22232_v25  ;;  %v22258_v63 = vld [vmem:[#allocation2 + $0x91] sm:$0xff]  ;;  %v22264_v17 = vld [vmem:[#allocation2 + $0x99] sm:$0xff] }
 0x813   : > { %v9952_v41 = vpop.f32.mrf.mxu1  ;;  %v10193_v15 = vpop.f32.mrf.mxu0 }
 0x814   : > { %v22240_v16 = vadd.f32 %v10183_v21, %v9952_v41 }
 0x815   : > { %v16418_v24 = vpop.f32.mrf.mxu1  ;;  %v16477_v28 = vpop.f32.mrf.mxu0  ;;  %16753 = vmatmul.mubr.msk.f32.gmra.mxu1 %vm668_vm0, %v22242_v54  ;;  %16812 = vmatmul.mubr.msk.f32.gmra.mxu0 %vm668_vm0, %v22242_v54 }
 0x816   : > { %v22250_v12 = vadd.f32 %v16474_v51, %v16418_v24  ;;  %16755 = vmatprep.mubr.msk.f32.mxu1 %vm668_vm0, %v22248_v10  ;;  %16814 = vmatprep.mubr.msk.f32.mxu0 %vm668_vm0, %v22248_v10 }
 0x817   : > { %v9962_v14 = vpop.f32.mrf.mxu1  ;;  %v10203_v32 = vpop.f32.mrf.mxu0 }
 0x818   : > { %v22256_v11 = vadd.f32 %v10193_v15, %v9962_v14  ;;  %v22274_v14 = vld [vmem:[#allocation2 + $0xa1] sm:$0xff] }
 0x819   : > { %v16421_v31 = vpop.f32.mrf.mxu1  ;;  %v16480_v21 = vpop.f32.mrf.mxu0  ;;  %16756 = vmatmul.mubr.msk.f32.gmra.mxu1 %vm668_vm0, %v22258_v63  ;;  %16815 = vmatmul.mubr.msk.f32.gmra.mxu0 %vm668_vm0, %v22258_v63 }
 0x81a   : > { %v22266_v51 = vadd.f32 %v16477_v28, %v16421_v31  ;;  %16758 = vmatprep.mubr.msk.f32.mxu1 %vm668_vm0, %v22264_v17  ;;  %16817 = vmatprep.mubr.msk.f32.mxu0 %vm668_vm0, %v22264_v17  ;;  %v22280_v28 = vld [vmem:[#allocation2 + $0xa9] sm:$0xff] }
 0x81b   : > { %v9972_v41 = vpop.f32.mrf.mxu1  ;;  %v10213_v15 = vpop.f32.mrf.mxu0 }
 0x81c   : > { %v22272_v24 = vadd.f32 %v10203_v32, %v9972_v41 }
 0x81d   : > { %v16424_v59 = vpop.f32.mrf.mxu1  ;;  %v16483_v2 = vpop.f32.mrf.mxu0  ;;  %16759 = vmatmul.mubr.msk.f32.gmra.mxu1 %vm668_vm0, %v22274_v14  ;;  %16818 = vmatmul.mubr.msk.f32.gmra.mxu0 %vm668_vm0, %v22274_v14 }
 0x81e   : > { %v22282_v31 = vadd.f32 %v16480_v21, %v16424_v59  ;;  %16761 = vmatprep.mubr.msk.f32.mxu1 %vm668_vm0, %v22280_v28  ;;  %16820 = vmatprep.mubr.msk.f32.mxu0 %vm668_vm0, %v22280_v28  ;;  %v22296_v59 = vld [vmem:[#allocation2 + $0xb9] sm:$0xff] }
 0x81f   : > { %v9982_v32 = vpop.f32.mrf.mxu1  ;;  %v10223_v41 = vpop.f32.mrf.mxu0 }
 0x820   : > { %v22288_v27 = vadd.f32 %v10213_v15, %v9982_v32 }
 0x821   : > { %v16427_v37 = vpop.f32.mrf.mxu1  ;;  %v16486_v57 = vpop.f32.mrf.mxu0  ;;  %16762 = vmatmul.mubr.msk.f32.gmra.mxu1 %vm668_vm0, %v22290_v58  ;;  %16821 = vmatmul.mubr.msk.f32.gmra.mxu0 %vm668_vm0, %v22290_v58 }
 0x822   : > { %v22298_v21 = vadd.f32 %v16483_v2, %v16427_v37  ;;  %16764 = vmatprep.mubr.msk.f32.mxu1 %vm668_vm0, %v22296_v59  ;;  %16823 = vmatprep.mubr.msk.f32.mxu0 %vm668_vm0, %v22296_v59  ;;  %v22312_v37 = vld [vmem:[#allocation2 + $0xc9] sm:$0xff] }
 0x823   : > { %v9992_v15 = vpop.f32.mrf.mxu1  ;;  %v10233_v32 = vpop.f32.mrf.mxu0 }
 0x824   : > { %v22304_v18 = vadd.f32 %v10223_v41, %v9992_v15 }
 0x825   : > { %v16430_v19 = vpop.f32.mrf.mxu1  ;;  %v16489_v48 = vpop.f32.mrf.mxu0  ;;  %16765 = vmatmul.mubr.msk.f32.gmra.mxu1 %vm668_vm0, %v22306_v60  ;;  %16824 = vmatmul.mubr.msk.f32.gmra.mxu0 %vm668_vm0, %v22306_v60 }
 0x826   : > { %v22314_v2 = vadd.f32 %v16486_v57, %v16430_v19  ;;  %16767 = vmatprep.mubr.msk.f32.mxu1 %vm668_vm0, %v22312_v37  ;;  %16826 = vmatprep.mubr.msk.f32.mxu0 %vm668_vm0, %v22312_v37  ;;  %v22328_v19 = vld [vmem:[#allocation2 + $0xd9] sm:$0xff] }
 0x827   : > { %v10002_v41 = vpop.f32.mrf.mxu1  ;;  %v10243_v15 = vpop.f32.mrf.mxu0 }
 0x828   : > { %v22320_v55 = vadd.f32 %v10233_v32, %v10002_v41 }
 0x829   : > { %v16433_v47 = vpop.f32.mrf.mxu1  ;;  %v16492_v38 = vpop.f32.mrf.mxu0  ;;  %16768 = vmatmul.mubr.msk.f32.gmra.mxu1 %vm668_vm0, %v22322_v4  ;;  %16827 = vmatmul.mubr.msk.f32.gmra.mxu0 %vm668_vm0, %v22322_v4 }
 0x82a   : > { %v22330_v57 = vadd.f32 %v16489_v48, %v16433_v47  ;;  %16770 = vmatprep.mubr.msk.f32.mxu1 %vm668_vm0, %v22328_v19  ;;  %16829 = vmatprep.mubr.msk.f32.mxu0 %vm668_vm0, %v22328_v19  ;;  %v22344_v47 = vld [vmem:[#allocation2 + $0xe9] sm:$0xff] }
 0x82b   : > { %v10012_v32 = vpop.f32.mrf.mxu1  ;;  %v10253_v41 = vpop.f32.mrf.mxu0 }
 0x82c   : > { %v22336_v29 = vadd.f32 %v10243_v15, %v10012_v32 }
 0x82d   : > { %v16436_v5 = vpop.f32.mrf.mxu1  ;;  %v16495_v0 = vpop.f32.mrf.mxu0  ;;  %16771 = vmatmul.mubr.msk.f32.gmra.mxu1 %vm668_vm0, %v22338_v8  ;;  %16830 = vmatmul.mubr.msk.f32.gmra.mxu0 %vm668_vm0, %v22338_v8 }
 0x82e   : > { %v22346_v48 = vadd.f32 %v16492_v38, %v16436_v5  ;;  %16773 = vmatprep.mubr.msk.f32.mxu1 %vm668_vm0, %v22344_v47  ;;  %16832 = vmatprep.mubr.msk.f32.mxu0 %vm668_vm0, %v22344_v47  ;;  %v22360_v5 = vld [vmem:[#allocation2 + $0xf9] sm:$0xff] }
 0x82f   : > { %v10022_v15 = vpop.f32.mrf.mxu1  ;;  %v10263_v32 = vpop.f32.mrf.mxu0  ;;  %23641 = vst [vmem:[#allocation57_spill] sm:$0xff] %v22360_v5 }
 0x830   : > { %23639 = vst [vmem:[#allocation28_spill] sm:$0xff] %v22346_v48  ;;  %v22352_v61 = vadd.f32 %v10253_v41, %v10022_v15 }
 0x831   : > { %v16439_v43 = vpop.f32.mrf.mxu1  ;;  %v16498_v42 = vpop.f32.mrf.mxu0  ;;  %16774 = vmatmul.mubr.msk.f32.gmra.mxu1 %vm668_vm0, %v22354_v52  ;;  %16833 = vmatmul.mubr.msk.f32.gmra.mxu0 %vm668_vm0, %v22354_v52 }
 0x832   : > { %23640 = vst [vmem:[#allocation75_spill] sm:$0xff] %v22352_v61  ;;  %v22362_v38 = vadd.f32 %v16495_v0, %v16439_v43  ;;  %16776 = vmatprep.mubr.msk.f32.mxu1 %vm668_vm0, %v22360_v5  ;;  %16835 = vmatprep.mubr.msk.f32.mxu0 %vm668_vm0, %v22360_v5  ;;  %v22376_v43 = vld [vmem:[#allocation2 + $0x109] sm:$0xff] }
 0x833   : > { %v10032_v41 = vpop.f32.mrf.mxu1  ;;  %v10273_v15 = vpop.f32.mrf.mxu0 }
 0x834   : > { %23642 = vst [vmem:[#allocation90_spill] sm:$0xff] %v22362_v38  ;;  %v22368_v36 = vadd.f32 %v10263_v32, %v10032_v41 }
 0x835   : > { %v16442_v7 = vpop.f32.mrf.mxu1  ;;  %v16501_v61 = vpop.f32.mrf.mxu0  ;;  %16777 = vmatmul.mubr.msk.f32.gmra.mxu1 %vm668_vm0, %v22370_v49  ;;  %16836 = vmatmul.mubr.msk.f32.gmra.mxu0 %vm668_vm0, %v22370_v49 }
 0x836   : > { %23643 = vst [vmem:[#allocation46_spill] sm:$0xff] %v22368_v36  ;;  %v22378_v0 = vadd.f32 %v16498_v42, %v16442_v7  ;;  %16779 = vmatprep.mubr.msk.f32.mxu1 %vm668_vm0, %v22376_v43  ;;  %v22384_v36 = vld [vmem:[#allocation2 + $0x111] sm:$0xff] }
 0x837   : > { %v10042_v38 = vpop.f32.mrf.mxu1  ;;  %v10283_v32 = vpop.f32.mrf.mxu0 }
 0x838   : > { %23645 = vst [vmem:[#allocation35_spill] sm:$0xff] %v22378_v0  ;;  %v22382_v41 = vadd.f32 %v10273_v15, %v10042_v38  ;;  %v10139_v38 = vadd.f32 %v22130_v44, %v22143_v62 }
 0x839   : > { %v16445_v5 = vpop.f32.mrf.mxu1  ;;  %v22386_v48 = vpop.f32.mrf.mxu0  ;;  %16780 = vmatmul.mubr.msk.f32.gmra.mxu1 %vm668_vm0, %v22384_v36 }
 0x83a   : > { %23646 = vst [vmem:[#allocation19_spill] sm:$0xff] %v22382_v41  ;;  %23647 = vst [vmem:[#allocation23_spill] sm:$0xff] %v22386_v48  ;;  %v22390_v49 = vadd.f32 %v16501_v61, %v16445_v5  ;;  %16846 = vmatprep.mubr.msk.f32.mxu1 %vm668_vm0, %v22147_v35 }
 0x83b   : > { %v10052_v7 = vpop.f32.mrf.mxu1  ;;  %v22394_v42 = vpop.f32.mrf.mxu0 }
 0x83c   : > { %v22398_v15 = vadd.f32 %v10283_v32, %v10052_v7 }
 0x83d   : > { %v16512_v41 = vpop.f32.mrf.mxu1  ;;  %v22400_v0 = vpop.f32.mrf.mxu0  ;;  %16847 = vmatmul.mubr.msk.f32.vlgmr.msra.gmra.mxu1 %vm668_vm0, %v22156_v1 }
 0x83e   : > { %v22404_v48 = vadd.f32 %v16512_v41, %v10139_v38  ;;  %16849 = vmatprep.mubr.msk.f32.mxu1 %vm668_vm0, %v22165_v6 }
 0x83f   : > { %v10491_v61 = vpop.f32.mrf.mxu1  ;;  %v22408_v35 = vpop.f32.mrf.mxu0 }
 0x840   : > { %v22411_v5 = vadd.f32 %v10491_v61, %v22154_v53 }
 0x841   : > { %v16515_v44 = vpop.f32.mrf.mxu1  ;;  %v22413_v62 = vpop.f32.mrf.mxu0  ;;  %16850 = vmatmul.mubr.msk.f32.gmra.mxu1 %vm668_vm0, %v22175_v23 }
 0x842   : > { %v22418_v32 = vadd.f32 %v16515_v44, %v22167_v33  ;;  %16852 = vmatprep.mubr.msk.f32.mxu1 %vm668_vm0, %v22184_v40 }
 0x843   : > { %v10501_v1 = vpop.f32.mrf.mxu1  ;;  %v22422_v6 = vpop.f32.mrf.mxu0 }
 0x844   : > { %v22425_v41 = vadd.f32 %v10501_v1, %v22173_v30 }
 0x845   : > { %v16518_v53 = vpop.f32.mrf.mxu1  ;;  %v22427_v7 = vpop.f32.mrf.mxu0  ;;  %16853 = vmatmul.mubr.msk.f32.gmra.mxu1 %vm668_vm0, %v22194_v26 }
 0x846   : > { %v22432_v23 = vadd.f32 %v16518_v53, %v22186_v56  ;;  %16855 = vmatprep.mubr.msk.f32.mxu1 %vm668_vm0, %v22200_v50 }
 0x847   : > { %v10511_v33 = vpop.f32.mrf.mxu1  ;;  %v22436_v40 = vpop.f32.mrf.mxu0 }
 0x848   : > { %v22439_v38 = vadd.f32 %v10511_v33, %v22192_v34 }
 0x849   : > { %v16521_v30 = vpop.f32.mrf.mxu1  ;;  %v22441_v61 = vpop.f32.mrf.mxu0  ;;  %16856 = vmatmul.mubr.msk.f32.gmra.mxu1 %vm668_vm0, %v22210_v22 }
 0x84a   : > { %v22446_v26 = vadd.f32 %v16521_v30, %v22202_v45  ;;  %16858 = vmatprep.mubr.msk.f32.mxu1 %vm668_vm0, %v22216_v46 }
 0x84b   : > { %v10521_v56 = vpop.f32.mrf.mxu1  ;;  %v22450_v50 = vpop.f32.mrf.mxu0 }
 0x84c   : > { %v22453_v44 = vadd.f32 %v10521_v56, %v22208_v3 }
 0x84d   : > { %v16524_v34 = vpop.f32.mrf.mxu1  ;;  %v22455_v1 = vpop.f32.mrf.mxu0  ;;  %16859 = vmatmul.mubr.msk.f32.gmra.mxu1 %vm668_vm0, %v22226_v20 }
 0x84e   : > { %v22460_v22 = vadd.f32 %v16524_v34, %v22218_v13  ;;  %16861 = vmatprep.mubr.msk.f32.mxu1 %vm668_vm0, %v22232_v25 }
 0x84f   : > { %v10531_v45 = vpop.f32.mrf.mxu1  ;;  %v22464_v46 = vpop.f32.mrf.mxu0 }
 0x850   : > { %v22467_v53 = vadd.f32 %v10531_v45, %v22224_v9 }
 0x851   : > { %v16527_v3 = vpop.f32.mrf.mxu1  ;;  %v22469_v33 = vpop.f32.mrf.mxu0  ;;  %16862 = vmatmul.mubr.msk.f32.gmra.mxu1 %vm668_vm0, %v22242_v54 }
 0x852   : > { %v22474_v20 = vadd.f32 %v16527_v3, %v22234_v39  ;;  %16864 = vmatprep.mubr.msk.f32.mxu1 %vm668_vm0, %v22248_v10 }
 0x853   : > { %v10541_v13 = vpop.f32.mrf.mxu1  ;;  %v22478_v25 = vpop.f32.mrf.mxu0 }
 0x854   : > { %v22481_v30 = vadd.f32 %v10541_v13, %v22240_v16 }
 0x855   : > { %v16530_v9 = vpop.f32.mrf.mxu1  ;;  %v22483_v56 = vpop.f32.mrf.mxu0  ;;  %16865 = vmatmul.mubr.msk.f32.gmra.mxu1 %vm668_vm0, %v22258_v63 }
 0x856   : > { %v22488_v54 = vadd.f32 %v16530_v9, %v22250_v12  ;;  %16867 = vmatprep.mubr.msk.f32.mxu1 %vm668_vm0, %v22264_v17 }
 0x857   : > { %v10551_v39 = vpop.f32.mrf.mxu1  ;;  %v22492_v10 = vpop.f32.mrf.mxu0 }
 0x858   : > { %v22495_v34 = vadd.f32 %v10551_v39, %v22256_v11 }
 0x859   : > { %v16533_v16 = vpop.f32.mrf.mxu1  ;;  %v22497_v45 = vpop.f32.mrf.mxu0  ;;  %16868 = vmatmul.mubr.msk.f32.gmra.mxu1 %vm668_vm0, %v22274_v14 }
 0x85a   : > { %v22502_v63 = vadd.f32 %v16533_v16, %v22266_v51  ;;  %16870 = vmatprep.mubr.msk.f32.mxu1 %vm668_vm0, %v22280_v28 }
 0x85b   : > { %v10561_v12 = vpop.f32.mrf.mxu1  ;;  %v22506_v17 = vpop.f32.mrf.mxu0 }
 0x85c   : > { %v22509_v3 = vadd.f32 %v10561_v12, %v22272_v24 }
 0x85d   : > { %v16536_v11 = vpop.f32.mrf.mxu1  ;;  %v22511_v13 = vpop.f32.mrf.mxu0  ;;  %16871 = vmatmul.mubr.msk.f32.gmra.mxu1 %vm668_vm0, %v22290_v58 }
 0x85e   : > { %v22516_v14 = vadd.f32 %v16536_v11, %v22282_v31  ;;  %16873 = vmatprep.mubr.msk.f32.mxu1 %vm668_vm0, %v22296_v59 }
 0x85f   : > { %v10571_v51 = vpop.f32.mrf.mxu1  ;;  %v22520_v28 = vpop.f32.mrf.mxu0 }
 0x860   : > { %v22523_v9 = vadd.f32 %v10571_v51, %v22288_v27 }
 0x861   : > { %v16539_v24 = vpop.f32.mrf.mxu1  ;;  %v22525_v39 = vpop.f32.mrf.mxu0  ;;  %16874 = vmatmul.mubr.msk.f32.gmra.mxu1 %vm668_vm0, %v22306_v60 }
 0x862   : > { %v22530_v58 = vadd.f32 %v16539_v24, %v22298_v21  ;;  %16876 = vmatprep.mubr.msk.f32.mxu1 %vm668_vm0, %v22312_v37 }
 0x863   : > { %v10581_v31 = vpop.f32.mrf.mxu1  ;;  %v22534_v59 = vpop.f32.mrf.mxu0 }
 0x864   : > { %v22537_v16 = vadd.f32 %v10581_v31, %v22304_v18 }
 0x865   : > { %v16542_v27 = vpop.f32.mrf.mxu1  ;;  %v22539_v12 = vpop.f32.mrf.mxu0  ;;  %16877 = vmatmul.mubr.msk.f32.gmra.mxu1 %vm668_vm0, %v22322_v4 }
 0x866   : > { %v22544_v60 = vadd.f32 %v16542_v27, %v22314_v2  ;;  %16879 = vmatprep.mubr.msk.f32.mxu1 %vm668_vm0, %v22328_v19  ;;  %v23654_v27 = vld [vmem:[#allocation28_spill] sm:$0xff] }
 0x867   : > { %v10591_v21 = vpop.f32.mrf.mxu1  ;;  %v22548_v37 = vpop.f32.mrf.mxu0 }
 0x868   : > { %23648 = vst [vmem:[#allocation72_spill] sm:$0xff] %v22548_v37  ;;  %v22551_v11 = vadd.f32 %v10591_v21, %v22320_v55 }
 0x869   : > { %v16545_v18 = vpop.f32.mrf.mxu1  ;;  %v22553_v51 = vpop.f32.mrf.mxu0  ;;  %16880 = vmatmul.mubr.msk.f32.gmra.mxu1 %vm668_vm0, %v22338_v8 }
 0x86a   : > { %23649 = vst [vmem:[#allocation5_spill] sm:$0xff] %v22553_v51  ;;  %v22558_v4 = vadd.f32 %v16545_v18, %v22330_v57  ;;  %16882 = vmatprep.mubr.msk.f32.mxu1 %vm668_vm0, %v22344_v47  ;;  %v23656_v57 = vld [vmem:[#allocation57_spill] sm:$0xff]  ;;  %v23658_v18 = vld [vmem:[#allocation75_spill] sm:$0xff] }
 0x86b   : > { %v10601_v2 = vpop.f32.mrf.mxu1  ;;  %v22562_v19 = vpop.f32.mrf.mxu0  ;;  %v23661_v51 = vld [vmem:[#allocation27_spill] sm:$0xff] }
 0x86c   : > { %23650 = vst [vmem:[#allocation91_spill] sm:$0xff] %v22558_v4  ;;  %23651 = vst [vmem:[#allocation45_spill] sm:$0xff] %v22562_v19  ;;  %v22565_v24 = vadd.f32 %v10601_v2, %v22336_v29 }
 0x86d   : > { %v16548_v55 = vpop.f32.mrf.mxu1  ;;  %v22567_v31 = vpop.f32.mrf.mxu0  ;;  %16883 = vmatmul.mubr.msk.f32.gmra.mxu1 %vm668_vm0, %v22354_v52 }
 0x86e   : > { %23652 = vst [vmem:[#allocation21_spill] sm:$0xff] %v22565_v24  ;;  %23653 = vst [vmem:[#allocation53_spill] sm:$0xff] %v22567_v31  ;;  %v22572_v8 = vadd.f32 %v16548_v55, %v23654_v27  ;;  %16885 = vmatprep.mubr.msk.f32.mxu1 %vm668_vm0, %v23656_v57  ;;  %v23662_v31 = vld [vmem:[#allocation90_spill] sm:$0xff]  ;;  %v12390_v57 = vld [vmem:[#allocation2 + $0x119] sm:$0xff] }
 0x86f   : > { %v10611_v21 = vpop.f32.mrf.mxu1  ;;  %v22576_v47 = vpop.f32.mrf.mxu0 }
 0x870   : > { %23655 = vst [vmem:[#allocation51_spill] sm:$0xff] %v22572_v8  ;;  %23657 = vst [vmem:[#allocation94_spill] sm:$0xff] %v22576_v47  ;;  %v22579_v19 = vadd.f32 %v10611_v21, %v23658_v18  ;;  %v23665_v47 = vld [vmem:[#allocation46_spill] sm:$0xff] }
 0x871   : > { %v16551_v29 = vpop.f32.mrf.mxu1  ;;  %v22581_v2 = vpop.f32.mrf.mxu0  ;;  %16886 = vmatmul.mubr.msk.f32.gmra.mxu1 %vm668_vm0, %v23661_v51  ;;  %v23668_v51 = vld [vmem:[#allocation35_spill] sm:$0xff] }
 0x872   : > { %23659 = vst [vmem:[#allocation105_spill] sm:$0xff] %v22579_v19  ;;  %23660 = vst [vmem:[#allocation122_spill] sm:$0xff] %v22581_v2  ;;  %v22586_v52 = vadd.f32 %v16551_v29, %v23662_v31  ;;  %16888 = vmatprep.mubr.msk.f32.mxu1 %vm668_vm0, %v22376_v43  ;;  %v12391_v31 = vld [vmem:[#allocation2 + $0x121] sm:$0xff] }
 0x873   : > { %v10621_v55 = vpop.f32.mrf.mxu1  ;;  %v22590_v27 = vpop.f32.mrf.mxu0 }
 0x874   : > { %23663 = vst [vmem:[#allocation84_spill] sm:$0xff] %v22586_v52  ;;  %23664 = vst [vmem:[#allocation101_spill] sm:$0xff] %v22590_v27  ;;  %v22593_v8 = vadd.f32 %v10621_v55, %v23665_v47  ;;  %v23671_v27 = vld [vmem:[#allocation19_spill] sm:$0xff] }
 0x875   : > { %v16554_v21 = vpop.f32.mrf.mxu1  ;;  %v22595_v18 = vpop.f32.mrf.mxu0  ;;  %16889 = vmatmul.mubr.msk.f32.gmra.mxu1 %vm668_vm0, %v22384_v36 }
 0x876   : > { %23666 = vst [vmem:[#allocation36_spill] sm:$0xff] %v22593_v8  ;;  %23667 = vst [vmem:[#allocation3_spill] sm:$0xff] %v22595_v18  ;;  %v22600_v2 = vadd.f32 %v16554_v21, %v23668_v51  ;;  %16891 = vmatprep.mubr.msk.f32.mxu1 %vm668_vm0, %v12390_v57 }
 0x877   : > { %v10631_v43 = vpop.f32.mrf.mxu1  ;;  %v22603_v29 = vpop.f32.mrf.mxu0 }
 0x878   : > { %23669 = vst [vmem:[#allocation55_spill] sm:$0xff] %v22600_v2  ;;  %23670 = vst [vmem:[#allocation79_spill] sm:$0xff] %v22603_v29  ;;  %v22606_v52 = vadd.f32 %v10631_v43, %v23671_v27  ;;  %v23675_v2 = vld [vmem:[#allocation23_spill] sm:$0xff] }
 0x879   : > { %v16557_v47 = vpop.f32.mrf.mxu1  ;;  %v16680_v55 = vpop.f32.mrf.mxu0  ;;  %16892 = vmatmul.mubr.msk.f32.gmra.mxu1 %vm668_vm0, %v12391_v31  ;;  %v23676_v31 = vld [vmem:[#allocation106_spill] sm:$0xff]  ;;  %vm12942_vm0 = vcmask 326912  }
 0x87a   : > { %23672 = vst [vmem:[#allocation121_spill] sm:$0xff] %v22606_v52  ;;  %v22610_v18 = vadd.f32 %v16557_v47, %v22390_v49  ;;  %v10682_v49 = vmul.f32 %v23676_v31, %v22411_v5  ;;  %v23678_v31 = vld [vmem:[#allocation108_spill] sm:$0xff] }
 0x87b   : > { %v10641_v36 = vpop.f32.mrf.mxu1  ;;  %v11541_v8 = vpop.f32.mrf.mxu0 }
 0x87c   : > { %23673 = vst [vmem:[#allocation60_spill] sm:$0xff] %v22610_v18  ;;  %v22613_v21 = vadd.f32 %v10641_v36, %v22398_v15 }
 0x87d   : > { %v16624_v57 = vpop.f32.mrf.mxu1  ;;  %v16683_v51 = vpop.f32.mrf.mxu0 }
 0x87e   : > { %23674 = vst [vmem:[#allocation85_spill] sm:$0xff] %v22613_v21  ;;  %v11189_v19 = vadd.f32 %v16624_v57, %v23675_v2 }
 0x87f   : > { %v11183_v29 = vpop.f32.mrf.mxu1  ;;  %v11551_v4 = vpop.f32.mrf.mxu0 }
 0x880   : > { %v11701_v27 = vadd.f32 %v16680_v55, %v11189_v19  ;;  %v11184_v43 = vadd.f32 %v11183_v29, %v22394_v42  ;;  %v23677_v29 = vld [vmem:[#allocation107_spill] sm:$0xff] }
 0x881   : > { %v16627_v52 = vpop.f32.mrf.mxu1  ;;  %v16686_v24 = vpop.f32.mrf.mxu0  ;;  %v10684_v55 = vmul.f32 %v23677_v29, %v22425_v41 }
 0x882   : > { %v22620_v47 = vadd.f32 %v11701_v27, %v22404_v48  ;;  %v11700_v18 = vadd.f32 %v11541_v8, %v11184_v43  ;;  %v11199_v15 = vadd.f32 %v16627_v52, %v22400_v0 }
 0x883   : > { %v11193_v36 = vpop.f32.mrf.mxu1  ;;  %v11561_v21 = vpop.f32.mrf.mxu0 }
 0x884   : > { %v11703_v37 = vadd.f32 %v16683_v51, %v11199_v15  ;;  %v11194_v2 = vadd.f32 %v11193_v36, %v22408_v35  ;;  %v22624_v57 = vadd.f32 %v11700_v18, %v10682_v49  ;;  %v10686_v49 = vmul.f32 %v23678_v31, %v22439_v38 }
 0x885   : > { %v16630_v19 = vpop.f32.mrf.mxu1  ;;  %v16689_v42 = vpop.f32.mrf.mxu0 }
 0x886   : > { %v22629_v5 = vadd.f32 %v11703_v37, %v22418_v32  ;;  %v11702_v48 = vadd.f32 %v11551_v4, %v11194_v2  ;;  %v11209_v8 = vadd.f32 %v16630_v19, %v22413_v62  ;;  %v23679_v19 = vld [vmem:[#allocation110_spill] sm:$0xff] }
 0x887   : > { %v11203_v27 = vpop.f32.mrf.mxu1  ;;  %v11571_v0 = vpop.f32.mrf.mxu0  ;;  %v10688_v29 = vmul.f32 %v23679_v19, %v22453_v44 }
 0x888   : > { %v11705_v52 = vadd.f32 %v16686_v24, %v11209_v8  ;;  %v11204_v51 = vadd.f32 %v11203_v27, %v22422_v6  ;;  %v22633_v43 = vadd.f32 %v11702_v48, %v10684_v55 }
 0x889   : > { %v16633_v35 = vpop.f32.mrf.mxu1  ;;  %v16692_v18 = vpop.f32.mrf.mxu0 }
 0x88a   : > { %v22638_v41 = vadd.f32 %v11705_v52, %v22432_v23  ;;  %v11704_v32 = vadd.f32 %v11561_v21, %v11204_v51  ;;  %v11219_v37 = vadd.f32 %v16633_v35, %v22427_v7  ;;  %v23680_v52 = vld [vmem:[#allocation111_spill] sm:$0xff] }
 0x88b   : > { %v11213_v4 = vpop.f32.mrf.mxu1  ;;  %v11581_v62 = vpop.f32.mrf.mxu0  ;;  %v10690_v51 = vmul.f32 %v23680_v52, %v22467_v53 }
 0x88c   : > { %v11707_v15 = vadd.f32 %v16689_v42, %v11219_v37  ;;  %v11214_v24 = vadd.f32 %v11213_v4, %v22436_v40  ;;  %v22642_v36 = vadd.f32 %v11704_v32, %v10686_v49  ;;  %v23681_v37 = vld [vmem:[#allocation114_spill] sm:$0xff] }
 0x88d   : > { %v16636_v6 = vpop.f32.mrf.mxu1  ;;  %v16695_v2 = vpop.f32.mrf.mxu0  ;;  %v10692_v4 = vmul.f32 %v23681_v37, %v22481_v30 }
 0x88e   : > { %v22647_v38 = vadd.f32 %v11707_v15, %v22446_v26  ;;  %v11706_v23 = vadd.f32 %v11571_v0, %v11214_v24  ;;  %v11229_v21 = vadd.f32 %v16636_v6, %v22441_v61 }
 0x88f   : > { %v11223_v55 = vpop.f32.mrf.mxu1  ;;  %v11591_v7 = vpop.f32.mrf.mxu0 }
 0x890   : > { %v11709_v48 = vadd.f32 %v16692_v18, %v11229_v21  ;;  %v11224_v42 = vadd.f32 %v11223_v55, %v22450_v50  ;;  %v22651_v8 = vadd.f32 %v11706_v23, %v10688_v29  ;;  %v23682_v29 = vld [vmem:[#allocation115_spill] sm:$0xff] }
 0x891   : > { %v16639_v40 = vpop.f32.mrf.mxu1  ;;  %v16698_v27 = vpop.f32.mrf.mxu0  ;;  %v10694_v23 = vmul.f32 %v23682_v29, %v22495_v34 }
 0x892   : > { %v22656_v44 = vadd.f32 %v11709_v48, %v22460_v22  ;;  %v11708_v26 = vadd.f32 %v11581_v62, %v11224_v42  ;;  %v11239_v0 = vadd.f32 %v16639_v40, %v22455_v1 }
 0x893   : > { %v11233_v35 = vpop.f32.mrf.mxu1  ;;  %v11601_v61 = vpop.f32.mrf.mxu0 }
 0x894   : > { %v11711_v31 = vadd.f32 %v16695_v2, %v11239_v0  ;;  %v11234_v18 = vadd.f32 %v11233_v35, %v22464_v46  ;;  %v22660_v49 = vadd.f32 %v11708_v26, %v10690_v51 }
 0x895   : > { %v16642_v50 = vpop.f32.mrf.mxu1  ;;  %v16701_v32 = vpop.f32.mrf.mxu0 }
 0x896   : > { %v22665_v53 = vadd.f32 %v11711_v31, %v22474_v20  ;;  %v11710_v22 = vadd.f32 %v11591_v7, %v11234_v18  ;;  %v11249_v62 = vadd.f32 %v16642_v50, %v22469_v33  ;;  %v23686_v18 = vld [vmem:[#allocation117_spill] sm:$0xff] }
 0x897   : > { %v11243_v15 = vpop.f32.mrf.mxu1  ;;  %v11611_v1 = vpop.f32.mrf.mxu0  ;;  %v10698_v50 = vmul.f32 %v23686_v18, %v22523_v9  ;;  %v23701_v18 = vld [vmem:[#allocation45_spill] sm:$0xff] }
 0x898   : > { %v11713_v24 = vadd.f32 %v16698_v27, %v11249_v62  ;;  %v11244_v6 = vadd.f32 %v11243_v15, %v22478_v25  ;;  %v22669_v2 = vadd.f32 %v11710_v22, %v10692_v4  ;;  %v23683_v27 = vld [vmem:[#allocation116_spill] sm:$0xff] }
 0x899   : > { %v16645_v46 = vpop.f32.mrf.mxu1  ;;  %v16704_v19 = vpop.f32.mrf.mxu0  ;;  %v10696_v52 = vmul.f32 %v23683_v27, %v22509_v3 }
 0x89a   : > { %v22674_v30 = vadd.f32 %v11713_v24, %v22488_v54  ;;  %v11712_v20 = vadd.f32 %v11601_v61, %v11244_v6  ;;  %v11259_v21 = vadd.f32 %v16645_v46, %v22483_v56 }
 0x89b   : > { %v11253_v55 = vpop.f32.mrf.mxu1  ;;  %v11621_v33 = vpop.f32.mrf.mxu0 }
 0x89c   : > { %v11715_v7 = vadd.f32 %v16701_v32, %v11259_v21  ;;  %v11254_v48 = vadd.f32 %v11253_v55, %v22492_v10  ;;  %v22678_v42 = vadd.f32 %v11712_v20, %v10694_v23  ;;  %v23692_v21 = vld [vmem:[#allocation119_spill] sm:$0xff] }
 0x89d   : > { %v16648_v25 = vpop.f32.mrf.mxu1  ;;  %v16707_v40 = vpop.f32.mrf.mxu0  ;;  %v10702_v55 = vmul.f32 %v23692_v21, %v22551_v11 }
 0x89e   : > { %v22683_v34 = vadd.f32 %v11715_v7, %v22502_v63  ;;  %v11714_v54 = vadd.f32 %v11611_v1, %v11254_v48  ;;  %v11269_v51 = vadd.f32 %v16648_v25, %v22497_v45  ;;  %v23689_v1 = vld [vmem:[#allocation118_spill] sm:$0xff]  ;;  %v23694_v25 = vld [vmem:[#allocation72_spill] sm:$0xff] }
 0x89f   : > { %v11263_v26 = vpop.f32.mrf.mxu1  ;;  %v11631_v56 = vpop.f32.mrf.mxu0  ;;  %v10700_v24 = vmul.f32 %v23689_v1, %v22537_v16 }
 0x8a0   : > { %23684 = vst [vmem:[#allocation58_spill] sm:$0xff] %v22683_v34  ;;  %v11717_v0 = vadd.f32 %v16704_v19, %v11269_v51  ;;  %v11264_v35 = vadd.f32 %v11263_v26, %v22506_v17  ;;  %v22687_v61 = vadd.f32 %v11714_v54, %v10696_v52  ;;  %v23696_v54 = vld [vmem:[#allocation21_spill] sm:$0xff]  ;;  %v23697_v51 = vld [vmem:[#allocation120_spill] sm:$0xff] }
 0x8a1   : > { %v16651_v10 = vpop.f32.mrf.mxu1  ;;  %v16710_v31 = vpop.f32.mrf.mxu0  ;;  %v10704_v26 = vmul.f32 %v23697_v51, %v23696_v54  ;;  %v23715_v51 = vld [vmem:[#allocation101_spill] sm:$0xff] }
 0x8a2   : > { %23685 = vst [vmem:[#allocation109_spill] sm:$0xff] %v22687_v61  ;;  %v22692_v3 = vadd.f32 %v11717_v0, %v22516_v14  ;;  %v11716_v63 = vadd.f32 %v11621_v33, %v11264_v35  ;;  %v11279_v32 = vadd.f32 %v16651_v10, %v22511_v13  ;;  %v23700_v0 = vld [vmem:[#allocation5_spill] sm:$0xff] }
 0x8a3   : > { %v11273_v37 = vpop.f32.mrf.mxu1  ;;  %v11641_v45 = vpop.f32.mrf.mxu0 }
 0x8a4   : > { %23687 = vst [vmem:[#allocation127_spill] sm:$0xff] %v22692_v3  ;;  %v11719_v4 = vadd.f32 %v16707_v40, %v11279_v32  ;;  %v11274_v22 = vadd.f32 %v11273_v37, %v22520_v28  ;;  %v22696_v62 = vadd.f32 %v11716_v63, %v10698_v50 }
 0x8a5   : > { %v16654_v17 = vpop.f32.mrf.mxu1  ;;  %v16713_v15 = vpop.f32.mrf.mxu0 }
 0x8a6   : > { %23688 = vst [vmem:[#allocation104_spill] sm:$0xff] %v22696_v62  ;;  %v22701_v9 = vadd.f32 %v11719_v4, %v22530_v58  ;;  %v11718_v14 = vadd.f32 %v11631_v56, %v11274_v22  ;;  %v11289_v6 = vadd.f32 %v16654_v17, %v22525_v39  ;;  %v23698_v56 = vld [vmem:[#allocation91_spill] sm:$0xff]  ;;  %v23704_v4 = vld [vmem:[#allocation9_spill] sm:$0xff]  ;;  %v23745_v62 = vld [vmem:[#allocation8_spill] sm:$0xff] }
 0x8a7   : > { %v11283_v46 = vpop.f32.mrf.mxu1  ;;  %v11651_v13 = vpop.f32.mrf.mxu0  ;;  %v23705_v17 = vld [vmem:[#allocation51_spill] sm:$0xff] }
 0x8a8   : > { %23690 = vst [vmem:[#allocation68_spill] sm:$0xff] %v22701_v9  ;;  %v11721_v19 = vadd.f32 %v16710_v31, %v11289_v6  ;;  %v11284_v29 = vadd.f32 %v11283_v46, %v22534_v59  ;;  %v22705_v23 = vadd.f32 %v11718_v14, %v10700_v24  ;;  %v23707_v24 = vld [vmem:[#allocation53_spill] sm:$0xff] }
 0x8a9   : > { %v16657_v28 = vpop.f32.mrf.mxu1  ;;  %v16716_v20 = vpop.f32.mrf.mxu0 }
 0x8aa   : > { %23691 = vst [vmem:[#allocation93_spill] sm:$0xff] %v22705_v23  ;;  %v22710_v16 = vadd.f32 %v11721_v19, %v22544_v60  ;;  %v11720_v58 = vadd.f32 %v11641_v45, %v11284_v29  ;;  %v11299_v33 = vadd.f32 %v16657_v28, %v22539_v12  ;;  %v23703_v45 = vld [vmem:[#allocation105_spill] sm:$0xff]  ;;  %v23708_v19 = vld [vmem:[#allocation94_spill] sm:$0xff] }
 0x8ab   : > { %v11293_v7 = vpop.f32.mrf.mxu1  ;;  %v11661_v39 = vpop.f32.mrf.mxu0  ;;  %v10706_v22 = vmul.f32 %v23704_v4, %v23703_v45 }
 0x8ac   : > { %23693 = vst [vmem:[#allocation80_spill] sm:$0xff] %v22710_v16  ;;  %v11723_v48 = vadd.f32 %v16713_v15, %v11299_v33  ;;  %v11294_v40 = vadd.f32 %v11293_v7, %v23694_v25  ;;  %v22714_v27 = vadd.f32 %v11720_v58, %v10702_v55  ;;  %v23710_v55 = vld [vmem:[#allocation36_spill] sm:$0xff] }
 0x8ad   : > { %v16660_v59 = vpop.f32.mrf.mxu1  ;;  %v16719_v52 = vpop.f32.mrf.mxu0  ;;  %v23711_v58 = vld [vmem:[#allocation16_spill] sm:$0xff] }
 0x8ae   : > { %23695 = vst [vmem:[#allocation89_spill] sm:$0xff] %v22714_v27  ;;  %v22719_v11 = vadd.f32 %v11723_v48, %v23698_v56  ;;  %v11722_v60 = vadd.f32 %v11651_v13, %v11294_v40  ;;  %v11309_v35 = vadd.f32 %v16660_v59, %v23700_v0  ;;  %v10708_v33 = vmul.f32 %v23711_v58, %v23710_v55  ;;  %v23712_v7 = vld [vmem:[#allocation84_spill] sm:$0xff]  ;;  %v23714_v40 = vld [vmem:[#allocation122_spill] sm:$0xff]  ;;  %v23717_v0 = vld [vmem:[#allocation121_spill] sm:$0xff] }
 0x8af   : > { %v11303_v10 = vpop.f32.mrf.mxu1  ;;  %v11671_v12 = vpop.f32.mrf.mxu0 }
 0x8b0   : > { %23699 = vst [vmem:[#allocation56_spill] sm:$0xff] %v22719_v11  ;;  %v11725_v31 = vadd.f32 %v16716_v20, %v11309_v35  ;;  %v11304_v50 = vadd.f32 %v11303_v10, %v23701_v18  ;;  %v22723_v63 = vadd.f32 %v11722_v60, %v10704_v26  ;;  %v23718_v35 = vld [vmem:[#allocation83_spill] sm:$0xff] }
 0x8b1   : > { %v16663_v32 = vpop.f32.mrf.mxu1  ;;  %v16722_v37 = vpop.f32.mrf.mxu0  ;;  %v10710_v10 = vmul.f32 %v23718_v35, %v23717_v0 }
 0x8b2   : > { %23702 = vst [vmem:[#allocation47_spill] sm:$0xff] %v22723_v63  ;;  %v22728_v15 = vadd.f32 %v11725_v31, %v23705_v17  ;;  %v11724_v1 = vadd.f32 %v11661_v39, %v11304_v50  ;;  %v11319_v14 = vadd.f32 %v16663_v32, %v23707_v24  ;;  %v23719_v31 = vld [vmem:[#allocation55_spill] sm:$0xff] }
 0x8b3   : > { %v11313_v6 = vpop.f32.mrf.mxu1  ;;  %v11681_v46 = vpop.f32.mrf.mxu0  ;;  %v23721_v32 = vld [vmem:[#allocation3_spill] sm:$0xff] }
 0x8b4   : > { %23706 = vst [vmem:[#allocation96_spill] sm:$0xff] %v22728_v15  ;;  %v11727_v13 = vadd.f32 %v16719_v52, %v11319_v14  ;;  %v11314_v29 = vadd.f32 %v11313_v6, %v23708_v19  ;;  %v22732_v28 = vadd.f32 %v11724_v1, %v10706_v22  ;;  %v23722_v22 = vld [vmem:[#allocation79_spill] sm:$0xff]  ;;  %v23724_v14 = vld [vmem:[#allocation85_spill] sm:$0xff]  ;;  %v23725_v6 = vld [vmem:[#allocation4_spill] sm:$0xff] }
 0x8b5   : > { %v16666_v20 = vpop.f32.mrf.mxu1  ;;  %v16725_v21 = vpop.f32.mrf.mxu0  ;;  %v23726_v19 = vld [vmem:[#allocation60_spill] sm:$0xff] }
 0x8b6   : > { %23709 = vst [vmem:[#allocation18_spill] sm:$0xff] %v22732_v28  ;;  %v22737_v48 = vadd.f32 %v11727_v13, %v23712_v7  ;;  %v11726_v25 = vadd.f32 %v11671_v12, %v11314_v29  ;;  %v11329_v39 = vadd.f32 %v16666_v20, %v23714_v40  ;;  %v10712_v13 = vmul.f32 %v23725_v6, %v23724_v14 }
 0x8b7   : > { %v11323_v59 = vpop.f32.mrf.mxu1  ;;  %v11691_v56 = vpop.f32.mrf.mxu0 }
 0x8b8   : > { %23713 = vst [vmem:[#allocation49_spill] sm:$0xff] %v22737_v48  ;;  %v11729_v54 = vadd.f32 %v16722_v37, %v11329_v39  ;;  %v11324_v26 = vadd.f32 %v11323_v59, %v23715_v51  ;;  %v22741_v52 = vadd.f32 %v11726_v25, %v10708_v33 }
 0x8b9   : > { %v16669_v60 = vpop.f32.mrf.mxu1  ;;  %v16792_v1 = vpop.f32.mrf.mxu0 }
 0x8ba   : > { %23716 = vst [vmem:[#allocation17_spill] sm:$0xff] %v22741_v52  ;;  %v22746_v18 = vadd.f32 %v11729_v54, %v23719_v31  ;;  %v11728_v50 = vadd.f32 %v11681_v46, %v11324_v26  ;;  %v11339_v45 = vadd.f32 %v16669_v60, %v23721_v32 }
 0x8bb   : > { %v11333_v12 = vpop.f32.mrf.mxu1  ;;  %v12201_v46 = vpop.f32.mrf.mxu0 }
 0x8bc   : > { %23720 = vst [vmem:[#allocation32_spill] sm:$0xff] %v22746_v18  ;;  %v11731_v4 = vadd.f32 %v16725_v21, %v11339_v45  ;;  %v11334_v17 = vadd.f32 %v11333_v12, %v23722_v22  ;;  %v22750_v37 = vadd.f32 %v11728_v50, %v10710_v10 }
 0x8bd   : > { %v16736_v24 = vpop.f32.mrf.mxu1  ;;  %v16795_v21 = vpop.f32.mrf.mxu0 }
 0x8be   : > { %23723 = vst [vmem:[#allocation41_spill] sm:$0xff] %v22750_v37  ;;  %v22755_v29 = vadd.f32 %v11731_v4, %v23726_v19  ;;  %v11730_v20 = vadd.f32 %v11691_v56, %v11334_v17 }
 0x8bf   : > { %v11970_v55 = vpop.f32.mrf.mxu1  ;;  %v12211_v39 = vpop.f32.mrf.mxu0 }
 0x8c0   : > { %23727 = vst [vmem:[#allocation92_spill] sm:$0xff] %v22755_v29  ;;  %v22757_v58 = vadd.f32 %v11730_v20, %v10712_v13 }
 0x8c1   : > { %v16739_v33 = vpop.f32.mrf.mxu1  ;;  %v16798_v51 = vpop.f32.mrf.mxu0 }
 0x8c2   : > { %23728 = vst [vmem:[#allocation29_spill] sm:$0xff] %v22757_v58 }
 0x8c3   : > { %v11980_v7 = vpop.f32.mrf.mxu1  ;;  %v12221_v56 = vpop.f32.mrf.mxu0 }
 0x8c4   : > { %v12212_v34 = vadd.f32 %v12211_v39, %v11980_v7 }
 0x8c5   : > { %v16742_v25 = vpop.f32.mrf.mxu1  ;;  %v16801_v10 = vpop.f32.mrf.mxu0 }
 0x8c7   : > { %v22759_v40 = vpop.f32.mrf.mxu1  ;;  %v22777_v32 = vpop.f32.mrf.mxu0 }
 0x8c9   : > { %v22761_v59 = vpop.f32.mrf.mxu1  ;;  %v22783_v4 = vpop.f32.mrf.mxu0 }
 0x8cb   : > { %v22763_v54 = vpop.f32.mrf.mxu1  ;;  %v22789_v14 = vpop.f32.mrf.mxu0 }
 0x8cd   : > { %v22765_v26 = vpop.f32.mrf.mxu1  ;;  %v22795_v19 = vpop.f32.mrf.mxu0 }
 0x8ce   : > { %v12247_v7 = vadd.f32 %v22783_v4, %v22765_v26 }
 0x8cf   : > { %v22767_v60 = vpop.f32.mrf.mxu1  ;;  %v22801_v58 = vpop.f32.mrf.mxu0 }
 0x8d1   : > { %v22769_v0 = vpop.f32.mrf.mxu1  ;;  %v22807_v48 = vpop.f32.mrf.mxu0 }
 0x8d2   : > { %v12257_v26 = vadd.f32 %v22795_v19, %v22769_v0  ;;  %v23750_v19 = vld [vmem:[#allocation14_spill] sm:$0xff] }
 0x8d3   : > { %v22771_v35 = vpop.f32.mrf.mxu1  ;;  %v22813_v28 = vpop.f32.mrf.mxu0 }
 0x8d5   : > { %v22773_v31 = vpop.f32.mrf.mxu1  ;;  %v22819_v16 = vpop.f32.mrf.mxu0 }
 0x8d6   : > { %v12267_v0 = vadd.f32 %v22807_v48, %v22773_v31  ;;  %v23751_v31 = vld [vmem:[#allocation13_spill] sm:$0xff] }
 0x8d7   : > { %v22775_v50 = vpop.f32.mrf.mxu1 }
 0x8d9   : > { %v22779_v45 = vpop.f32.mrf.mxu1 }
 0x8da   : > { %v12277_v48 = vadd.f32 %v22819_v16, %v22779_v45 }
 0x8db   : > { %v22781_v12 = vpop.f32.mrf.mxu1 }
 0x8dd   : > { %v22785_v22 = vpop.f32.mrf.mxu1 }
 0x8df   : > { %v22787_v17 = vpop.f32.mrf.mxu1 }
 0x8e0   : > { %23729 = vst [vmem:[#allocation24_spill] sm:$0xff] %v22787_v17  ;;  %v23746_v17 = vld [vmem:[#allocation7_spill] sm:$0xff] }
 0x8e1   : > { %v22791_v6 = vpop.f32.mrf.mxu1 }
 0x8e2   : > { %23730 = vst [vmem:[#allocation61_spill] sm:$0xff] %v22791_v6 }
 0x8e3   : > { %v22793_v13 = vpop.f32.mrf.mxu1 }
 0x8e4   : > { %23731 = vst [vmem:[#allocation70_spill] sm:$0xff] %v22793_v13 }
 0x8e5   : > { %v22797_v20 = vpop.f32.mrf.mxu1 }
 0x8e6   : > { %23732 = vst [vmem:[#allocation54_spill] sm:$0xff] %v22797_v20  ;;  %v12202_v20 = vadd.f32 %v12201_v46, %v11970_v55  ;;  %v12232_v46 = vadd.f32 %v22777_v32, %v22763_v54 }
 0x8e7   : > { %v22799_v29 = vpop.f32.mrf.mxu1 }
 0x8e8   : > { %23733 = vst [vmem:[#allocation37_spill] sm:$0xff] %v22799_v29 }
 0x8e9   : > { %v22803_v18 = vpop.f32.mrf.mxu1 }
 0x8ea   : > { %23734 = vst [vmem:[#allocation63_spill] sm:$0xff] %v22803_v18  ;;  %v22825_v18 = vpop.f32.mrf.mxu0 }
 0x8eb   : > { %v22805_v37 = vpop.f32.mrf.mxu1 }
 0x8ec   : > { %23735 = vst [vmem:[#allocation22_spill] sm:$0xff] %v22805_v37 }
 0x8ed   : > { %v22809_v52 = vpop.f32.mrf.mxu1 }
 0x8ee   : > { %23736 = vst [vmem:[#allocation43_spill] sm:$0xff] %v22809_v52  ;;  %v12207_v52 = vadd.f32 %v16792_v1, %v16736_v24  ;;  %v12227_v24 = vadd.f32 %v16798_v51, %v16742_v25 }
 0x8ef   : > { %v22811_v15 = vpop.f32.mrf.mxu1 }
 0x8f0   : > { %23737 = vst [vmem:[#allocation97_spill] sm:$0xff] %v22811_v15  ;;  %v22831_v15 = vpop.f32.mrf.mxu0 }
 0x8f1   : > { %v22815_v11 = vpop.f32.mrf.mxu1  ;;  %23744 = vst [vmem:[#allocation81_spill] sm:$0xff] %v22831_v15 }
 0x8f2   : > { %23738 = vst [vmem:[#allocation87_spill] sm:$0xff] %v22815_v11 }
 0x8f3   : > { %v22817_v63 = vpop.f32.mrf.mxu1 }
 0x8f4   : > { %23739 = vst [vmem:[#allocation99_spill] sm:$0xff] %v22817_v63  ;;  %v12217_v63 = vadd.f32 %v16795_v21, %v16739_v33  ;;  %v23748_v21 = vld [vmem:[#allocation12_spill] sm:$0xff] }
 0x8f5   : > { %v22821_v27 = vpop.f32.mrf.mxu1 }
 0x8f6   : > { %23740 = vst [vmem:[#allocation113_spill] sm:$0xff] %v22821_v27  ;;  %v22834_v27 = vpop.f32.mrf.mxu0 }
 0x8f7   : > { %v22823_v9 = vpop.f32.mrf.mxu1 }
 0x8f8   : > { %23741 = vst [vmem:[#allocation112_spill] sm:$0xff] %v22823_v9  ;;  %v23752_v16 = vld [vmem:[#allocation81_spill] sm:$0xff] }
 0x8f9   : > { %v22827_v37 = vpop.f32.mrf.mxu1  ;;  %v12287_v45 = vadd.f32 %v23752_v16, %v22785_v22 }
 0x8fa   : > { %23742 = vst [vmem:[#allocation38_spill] sm:$0xff] %v22827_v37 }
 0x8fb   : > { %v22829_v23 = vpop.f32.mrf.mxu1 }
 0x8fc   : > { %23743 = vst [vmem:[#allocation59_spill] sm:$0xff] %v22829_v23 }
 0x8fd   : > { %v16848_v29 = vpop.f32.mrf.mxu1 }
 0x8fe   : > { %v12719_v11 = vadd.f32 %v16848_v29, %v12207_v52  ;;  %v12237_v52 = vadd.f32 %v16801_v10, %v22761_v59  ;;  %v23749_v10 = vld [vmem:[#allocation11_spill] sm:$0xff] }
 0x8ff   : > { %v12559_v3 = vpop.f32.mrf.mxu1 }
 0x900   : > { %v12751_v13 = vmul.f32 %v23745_v62, %v12719_v11  ;;  %v12718_v6 = vadd.f32 %v12559_v3, %v12202_v20  ;;  %v22841_v3 = vpop.f32.mrf.mxu0  ;;  %v12222_v11 = vadd.f32 %v12221_v56, %v22759_v40 }
 0x901   : > { %v16851_v9 = vpop.f32.mrf.mxu1 }
 0x902   : > { %v12782_v61 = vadd.f32 %v12718_v6, %v22624_v57  ;;  %v12721_v37 = vadd.f32 %v16851_v9, %v12217_v63  ;;  %v12783_v23 = vadd.f32 %v12751_v13, %v22620_v47 }
 0x903   : > { %v12569_v1 = vpop.f32.mrf.mxu1 }
 0x904   : > { %v12753_v15 = vmul.f32 %v23746_v17, %v12721_v37  ;;  %v12720_v55 = vadd.f32 %v12569_v1, %v12212_v34  ;;  %12848 = vrot.lane.b32.xlu1 %v12783_v23, %s16917_s24  ;;  %12846 = vrot.lane.b32.xlu0 %v12782_v61, %s16917_s24  ;;  %v23747_v37 = vld [vmem:[#allocation10_spill] sm:$0xff]  ;;  %v22850_v61 = vpop.f32.mrf.mxu0 }
 0x905   : > { %v16854_v62 = vpop.f32.mrf.mxu1 }
 0x906   : > { %v12784_v57 = vadd.f32 %v12720_v55, %v22633_v43  ;;  %v12723_v9 = vadd.f32 %v16854_v62, %v12227_v24  ;;  %v12785_v47 = vadd.f32 %v12753_v15, %v22629_v5  ;;  %v22861_v39 = vpop.f32.mrf.mxu0 }
 0x907   : > { %v12579_v63 = vpop.f32.mrf.mxu1 }
 0x908   : > { %v12755_v34 = vmul.f32 %v23747_v37, %v12723_v9  ;;  %v12722_v29 = vadd.f32 %v12579_v63, %v12222_v11  ;;  %12852 = vrot.lane.b32.xlu1 %v12785_v47, %s16917_s24  ;;  %12850 = vrot.lane.b32.xlu0 %v12784_v57, %s16917_s24  ;;  %v12301_v17 = vpop.f32.mrf.mxu0 }
 0x909   : > { %v16857_v23 = vpop.f32.mrf.mxu1 }
 0x90a   : > { %v12786_v43 = vadd.f32 %v12722_v29, %v22642_v36  ;;  %v12725_v33 = vadd.f32 %v16857_v23, %v12237_v52  ;;  %v12787_v5 = vadd.f32 %v12755_v34, %v22638_v41  ;;  %v12242_v36 = vadd.f32 %v22789_v14, %v22767_v60  ;;  %v16825_v24 = vpop.f32.mrf.mxu0  ;;  %v23753_v52 = vld [vmem:[#allocation15_spill] sm:$0xff] }
 0x90b   : > { %v12589_v15 = vpop.f32.mrf.mxu1  ;;  %v12252_v60 = vadd.f32 %v22801_v58, %v22771_v35  ;;  %v12262_v58 = vadd.f32 %v22813_v28, %v22775_v50  ;;  %v12272_v28 = vadd.f32 %v22825_v18, %v22781_v12 }
 0x90c   : > { %v12757_v25 = vmul.f32 %v23748_v21, %v12725_v33  ;;  %v12724_v40 = vadd.f32 %v12589_v15, %v12232_v46  ;;  %12856 = vrot.lane.b32.xlu1 %v12787_v5, %s16917_s24  ;;  %12854 = vrot.lane.b32.xlu0 %v12786_v43, %s16917_s24  ;;  %v12311_v9 = vpop.f32.mrf.mxu0  ;;  %v23754_v46 = vld [vmem:[#allocation24_spill] sm:$0xff]  ;;  %v23757_v15 = vld [vmem:[#allocation61_spill] sm:$0xff] }
 0x90d   : > { %v16860_v59 = vpop.f32.mrf.mxu1  ;;  %v12282_v18 = vadd.f32 %v22834_v27, %v23754_v46  ;;  %v12297_v22 = vadd.f32 %v22841_v3, %v23757_v15 }
 0x90e   : > { %v12788_v54 = vadd.f32 %v12724_v40, %v22651_v8  ;;  %v12727_v41 = vadd.f32 %v16860_v59, %v12247_v7  ;;  %v12789_v51 = vadd.f32 %v12757_v25, %v22647_v38  ;;  %v16828_v29 = vpop.f32.mrf.mxu0  ;;  %v23758_v7 = vld [vmem:[#allocation20_spill] sm:$0xff] }
 0x90f   : > { %v12599_v56 = vpop.f32.mrf.mxu1 }
 0x910   : > { %v12759_v32 = vmul.f32 %v23749_v10, %v12727_v41  ;;  %v12726_v4 = vadd.f32 %v12599_v56, %v12242_v36  ;;  %12860 = vrot.lane.b32.xlu1 %v12789_v51, %s16917_s24  ;;  %12858 = vrot.lane.b32.xlu0 %v12788_v54, %s16917_s24  ;;  %v12321_v40 = vpop.f32.mrf.mxu0  ;;  %v23759_v36 = vld [vmem:[#allocation70_spill] sm:$0xff]  ;;  %v23760_v54 = vld [vmem:[#allocation104_spill] sm:$0xff]  ;;  %v23761_v56 = vld [vmem:[#allocation127_spill] sm:$0xff] }
 0x911   : > { %v16863_v6 = vpop.f32.mrf.mxu1  ;;  %v12292_v27 = vadd.f32 %v22850_v61, %v23759_v36 }
 0x912   : > { %v12790_v8 = vadd.f32 %v12726_v4, %v22660_v49  ;;  %v12729_v14 = vadd.f32 %v16863_v6, %v12257_v26  ;;  %v12791_v38 = vadd.f32 %v12759_v32, %v22656_v44  ;;  %v23762_v32 = vld [vmem:[#allocation54_spill] sm:$0xff] }
 0x913   : > { %v12609_v13 = vpop.f32.mrf.mxu1  ;;  %v12307_v3 = vadd.f32 %v22861_v39, %v23762_v32  ;;  %v23763_v4 = vld [vmem:[#allocation42_spill] sm:$0xff]  ;;  %v23768_v39 = vld [vmem:[#allocation77_spill] sm:$0xff] }
 0x914   : > { %v12761_v20 = vmul.f32 %v23750_v19, %v12729_v14  ;;  %v12728_v1 = vadd.f32 %v12609_v13, %v12252_v60  ;;  %12864 = vrot.lane.b32.xlu1 %v12791_v38, %s16917_s24  ;;  %12862 = vrot.lane.b32.xlu0 %v12790_v8, %s16917_s24  ;;  %v16831_v8 = vpop.f32.mrf.mxu0  ;;  %v23764_v38 = vld [vmem:[#allocation37_spill] sm:$0xff] }
 0x915   : > { %v16866_v55 = vpop.f32.mrf.mxu1  ;;  %v12302_v61 = vadd.f32 %v12301_v17, %v23764_v38  ;;  %v23765_v13 = vld [vmem:[#allocation93_spill] sm:$0xff] }
 0x916   : > { %v12792_v49 = vadd.f32 %v12728_v1, %v22669_v2  ;;  %v12731_v35 = vadd.f32 %v16866_v55, %v12267_v0  ;;  %v12793_v44 = vadd.f32 %v12761_v20, %v22665_v53  ;;  %v23766_v20 = vld [vmem:[#allocation68_spill] sm:$0xff]  ;;  %v23770_v17 = vld [vmem:[#allocation89_spill] sm:$0xff] }
 0x917   : > { %v12619_v62 = vpop.f32.mrf.mxu1 }
 0x918   : > { %v12763_v11 = vmul.f32 %v23751_v31, %v12731_v35  ;;  %v12730_v57 = vadd.f32 %v12619_v62, %v12262_v58  ;;  %12868 = vrot.lane.b32.xlu1 %v12793_v44, %s16917_s24  ;;  %12866 = vrot.lane.b32.xlu0 %v12792_v49, %s16917_s24  ;;  %v23767_v58 = vld [vmem:[#allocation63_spill] sm:$0xff]  ;;  %v12331_v62 = vpop.f32.mrf.mxu0  ;;  %v23769_v31 = vld [vmem:[#allocation22_spill] sm:$0xff] }
 0x919   : > { %v16869_v47 = vpop.f32.mrf.mxu1  ;;  %v12317_v49 = vadd.f32 %v16825_v24, %v23767_v58  ;;  %v23773_v24 = vld [vmem:[#allocation78_spill] sm:$0xff] }
 0x91a   : > { %v12794_v2 = vadd.f32 %v12730_v57, %v22678_v42  ;;  %v12733_v50 = vadd.f32 %v16869_v47, %v12277_v48  ;;  %v12795_v53 = vadd.f32 %v12763_v11, %v22674_v30  ;;  %v23755_v42 = vld [vmem:[#allocation109_spill] sm:$0xff]  ;;  %v23756_v30 = vld [vmem:[#allocation58_spill] sm:$0xff]  ;;  %v12312_v11 = vadd.f32 %v12311_v9, %v23769_v31  ;;  %v23775_v9 = vld [vmem:[#allocation47_spill] sm:$0xff] }
 0x91b   : > { %v12629_v63 = vpop.f32.mrf.mxu1 }
 0x91c   : > { %v12765_v37 = vmul.f32 %v23753_v52, %v12733_v50  ;;  %v12732_v34 = vadd.f32 %v12629_v63, %v12272_v28  ;;  %12872 = vrot.lane.b32.xlu1 %v12795_v53, %s16917_s24  ;;  %12870 = vrot.lane.b32.xlu0 %v12794_v2, %s16917_s24  ;;  %v23771_v28 = vld [vmem:[#allocation80_spill] sm:$0xff]  ;;  %v23772_v53 = vld [vmem:[#allocation43_spill] sm:$0xff]  ;;  %v16834_v52 = vpop.f32.mrf.mxu0 }
 0x91d   : > { %v16872_v23 = vpop.f32.mrf.mxu1  ;;  %v12327_v63 = vadd.f32 %v16828_v29, %v23772_v53  ;;  %v23778_v29 = vld [vmem:[#allocation86_spill] sm:$0xff] }
 0x91e   : > { %v12796_v12 = vadd.f32 %v12732_v34, %v23755_v42  ;;  %v12735_v43 = vadd.f32 %v16872_v23, %v12287_v45  ;;  %v12797_v33 = vadd.f32 %v12765_v37, %v23756_v30  ;;  %v23774_v34 = vld [vmem:[#allocation97_spill] sm:$0xff]  ;;  %v23776_v42 = vld [vmem:[#allocation56_spill] sm:$0xff]  ;;  %v23777_v30 = vld [vmem:[#allocation87_spill] sm:$0xff] }
 0x91f   : > { %v12639_v5 = vpop.f32.mrf.mxu1  ;;  %v12322_v23 = vadd.f32 %v12321_v40, %v23774_v34  ;;  %v23780_v40 = vld [vmem:[#allocation18_spill] sm:$0xff] }
 0x920   : > { %v12767_v21 = vmul.f32 %v23758_v7, %v12735_v43  ;;  %v12734_v25 = vadd.f32 %v12639_v5, %v12282_v18  ;;  %12876 = vrot.lane.b32.xlu1 %v12797_v33, %s16917_s24  ;;  %12874 = vrot.lane.b32.xlu0 %v12796_v12, %s16917_s24  ;;  %v12337_v33 = vadd.f32 %v16831_v8, %v23777_v30  ;;  %v23785_v8 = vld [vmem:[#allocation17_spill] sm:$0xff] }
 0x921   : > { %v16875_v59 = vpop.f32.mrf.mxu1 }
 0x922   : > { %v12798_v41 = vadd.f32 %v12734_v25, %v23760_v54  ;;  %v12737_v51 = vadd.f32 %v16875_v59, %v12297_v22  ;;  %v12799_v26 = vadd.f32 %v12767_v21, %v23761_v56  ;;  %v12341_v22 = vpop.f32.mrf.mxu0  ;;  %v23779_v21 = vld [vmem:[#allocation99_spill] sm:$0xff] }
 0x923   : > { %v12649_v10 = vpop.f32.mrf.mxu1  ;;  %v12332_v25 = vadd.f32 %v12331_v62, %v23779_v21  ;;  %v23790_v62 = vld [vmem:[#allocation41_spill] sm:$0xff] }
 0x924   : > { %v12769_v6 = vmul.f32 %v23763_v4, %v12737_v51  ;;  %v12736_v60 = vadd.f32 %v12649_v10, %v12292_v27  ;;  %12880 = vrot.lane.b32.xlu1 %v12799_v26, %s16917_s24  ;;  %12878 = vrot.lane.b32.xlu0 %v12798_v41, %s16917_s24  ;;  %v23781_v27 = vld [vmem:[#allocation96_spill] sm:$0xff]  ;;  %v23782_v51 = vld [vmem:[#allocation113_spill] sm:$0xff]  ;;  %v23783_v26 = vld [vmem:[#allocation39_spill] sm:$0xff] }
 0x925   : > { %v16878_v14 = vpop.f32.mrf.mxu1  ;;  %v12347_v56 = vadd.f32 %v16834_v52, %v23782_v51 }
 0x926   : > { %v12800_v0 = vadd.f32 %v12736_v60, %v23765_v13  ;;  %v12739_v19 = vadd.f32 %v16878_v14, %v12307_v3  ;;  %v12801_v1 = vadd.f32 %v12769_v6, %v23766_v20  ;;  %v16837_v3 = vpop.f32.mrf.mxu0  ;;  %v23784_v6 = vld [vmem:[#allocation112_spill] sm:$0xff] }
 0x927   : > { %v12659_v55 = vpop.f32.mrf.mxu1  ;;  %v12342_v60 = vadd.f32 %v12341_v22, %v23784_v6 }
 0x928   : > { %v12771_v35 = vmul.f32 %v23768_v39, %v12739_v19  ;;  %v12738_v44 = vadd.f32 %v12659_v55, %v12302_v61  ;;  %12884 = vrot.lane.b32.xlu1 %v12801_v1, %s16917_s24  ;;  %12882 = vrot.lane.b32.xlu0 %v12800_v0, %s16917_s24  ;;  %v23786_v61 = vld [vmem:[#allocation49_spill] sm:$0xff]  ;;  %v23787_v19 = vld [vmem:[#allocation38_spill] sm:$0xff] }
 0x929   : > { %v16881_v48 = vpop.f32.mrf.mxu1  ;;  %v12357_v20 = vadd.f32 %v16837_v3, %v23787_v19  ;;  %v23788_v1 = vld [vmem:[#allocation26_spill] sm:$0xff] }
 0x92a   : > { %v12802_v57 = vadd.f32 %v12738_v44, %v23770_v17  ;;  %v12741_v47 = vadd.f32 %v16881_v48, %v12317_v49  ;;  %v12803_v2 = vadd.f32 %v12771_v35, %v23771_v28  ;;  %v12351_v49 = vpop.f32.mrf.mxu0  ;;  %v23789_v35 = vld [vmem:[#allocation59_spill] sm:$0xff] }
 0x92b   : > { %v12669_v50 = vpop.f32.mrf.mxu1  ;;  %v12352_v44 = vadd.f32 %v12351_v49, %v23789_v35 }
 0x92c   : > { %v12773_v16 = vmul.f32 %v23773_v24, %v12741_v47  ;;  %v12740_v45 = vadd.f32 %v12669_v50, %v12312_v11  ;;  %12888 = vrot.lane.b32.xlu1 %v12803_v2, %s16917_s24  ;;  %12886 = vrot.lane.b32.xlu0 %v12802_v57, %s16917_s24  ;;  %v23791_v11 = vld [vmem:[#allocation32_spill] sm:$0xff]  ;;  %v23793_v50 = vld [vmem:[#allocation29_spill] sm:$0xff] }
 0x92d   : > { %v16884_v37 = vpop.f32.mrf.mxu1  ;;  %v23792_v47 = vld [vmem:[#allocation40_spill] sm:$0xff] }
 0x92e   : > { %v12804_v46 = vadd.f32 %v12740_v45, %v23775_v9  ;;  %v12743_v18 = vadd.f32 %v16884_v37, %v12327_v63  ;;  %v12805_v12 = vadd.f32 %v12773_v16, %v23776_v42  ;;  %v23794_v63 = vld [vmem:[#allocation92_spill] sm:$0xff] }
 0x92f   : > { %v12679_v43 = vpop.f32.mrf.mxu1 }
 0x930   : > { %v12775_v5 = vmul.f32 %v23778_v29, %v12743_v18  ;;  %v12742_v15 = vadd.f32 %v12679_v43, %v12322_v23  ;;  %12892 = vrot.lane.b32.xlu1 %v12805_v12, %s16917_s24  ;;  %12890 = vrot.lane.b32.xlu0 %v12804_v46, %s16917_s24 }
 0x931   : > { %v16887_v7 = vpop.f32.mrf.mxu1 }
 0x932   : > { %v12806_v59 = vadd.f32 %v12742_v15, %v23780_v40  ;;  %v12745_v36 = vadd.f32 %v16887_v7, %v12337_v33  ;;  %v12807_v54 = vadd.f32 %v12775_v5, %v23781_v27 }
 0x933   : > { %v12689_v41 = vpop.f32.mrf.mxu1 }
 0x934   : > { %v12777_v10 = vmul.f32 %v23783_v26, %v12745_v36  ;;  %v12744_v32 = vadd.f32 %v12689_v41, %v12332_v25  ;;  %12896 = vrot.lane.b32.xlu1 %v12807_v54, %s16917_s24  ;;  %12894 = vrot.lane.b32.xlu0 %v12806_v59, %s16917_s24 }
 0x935   : > { %v16890_v4 = vpop.f32.mrf.mxu1 }
 0x936   : > { %v12808_v14 = vadd.f32 %v12744_v32, %v23785_v8  ;;  %v12747_v38 = vadd.f32 %v16890_v4, %v12347_v56  ;;  %v12809_v13 = vadd.f32 %v12777_v10, %v23786_v61 }
 0x937   : > { %v12699_v0 = vpop.f32.mrf.mxu1 }
 0x938   : > { %v12779_v55 = vmul.f32 %v23788_v1, %v12747_v38  ;;  %v12746_v58 = vadd.f32 %v12699_v0, %v12342_v60  ;;  %12900 = vrot.lane.b32.xlu1 %v12809_v13, %s16917_s24  ;;  %12898 = vrot.lane.b32.xlu0 %v12808_v14, %s16917_s24 }
 0x939   : > { %v16893_v39 = vpop.f32.mrf.mxu1 }
 0x93a   : > { %v12810_v48 = vadd.f32 %v12746_v58, %v23790_v62  ;;  %v12749_v31 = vadd.f32 %v16893_v39, %v12357_v20  ;;  %v12811_v17 = vadd.f32 %v12779_v55, %v23791_v11 }
 0x93b   : > { %v12709_v57 = vpop.f32.mrf.mxu1 }
 0x93c   : > { %v12781_v28 = vmul.f32 %v23792_v47, %v12749_v31  ;;  %v12748_v2 = vadd.f32 %v12709_v57, %v12352_v44  ;;  %12904 = vrot.lane.b32.xlu1 %v12811_v17, %s16917_s24  ;;  %12902 = vrot.lane.b32.xlu0 %v12810_v48, %s16917_s24 }
 0x93e   : > { %v12812_v53 = vadd.f32 %v12748_v2, %v23793_v50  ;;  %v12813_v24 = vadd.f32 %v12781_v28, %v23794_v63 }
 0x940   : > { %12908 = vrot.lane.b32.xlu1 %v12813_v24, %s16917_s24  ;;  %12906 = vrot.lane.b32.xlu0 %v12812_v53, %s16917_s24 }
 0x976   : > { %v12849_v16 = vpop.permute.xlu1 %12848  ;;  %v12847_v45 = vpop.permute.xlu0 %12846 }
 0x977   : > { %12944 = vst.msk [vmem:[%s17119_s29 + $0x8] sm:$0xff] %vm12942_vm0, %v12849_v16  ;;  %12943 = vst.msk [vmem:[%s17119_s29] sm:$0xff] %vm12942_vm0, %v12847_v45 }
 0x97a   : > { %v12853_v52 = vpop.permute.xlu1 %12852  ;;  %v12851_v37 = vpop.permute.xlu0 %12850 }
 0x97b   : > { %12946 = vst.msk [vmem:[%s17119_s29 + $0x18] sm:$0xff] %vm12942_vm0, %v12853_v52  ;;  %12945 = vst.msk [vmem:[%s17119_s29 + $0x10] sm:$0xff] %vm12942_vm0, %v12851_v37 }
 0x97e   : > { %v12857_v34 = vpop.permute.xlu1 %12856  ;;  %v12855_v23 = vpop.permute.xlu0 %12854 }
 0x97f   : > { %12948 = vst.msk [vmem:[%s17119_s29 + $0x28] sm:$0xff] %vm12942_vm0, %v12857_v34  ;;  %12947 = vst.msk [vmem:[%s17119_s29 + $0x20] sm:$0xff] %vm12942_vm0, %v12855_v23 }
 0x982   : > { %v12861_v9 = vpop.permute.xlu1 %12860  ;;  %v12859_v46 = vpop.permute.xlu0 %12858 }
 0x983   : > { %12950 = vst.msk [vmem:[%s17119_s29 + $0x38] sm:$0xff] %vm12942_vm0, %v12861_v9  ;;  %12949 = vst.msk [vmem:[%s17119_s29 + $0x30] sm:$0xff] %vm12942_vm0, %v12859_v46 }
 0x986   : > { %v12865_v18 = vpop.permute.xlu1 %12864  ;;  %v12863_v42 = vpop.permute.xlu0 %12862 }
 0x987   : > { %12952 = vst.msk [vmem:[%s17119_s29 + $0x48] sm:$0xff] %vm12942_vm0, %v12865_v18  ;;  %12951 = vst.msk [vmem:[%s17119_s29 + $0x40] sm:$0xff] %vm12942_vm0, %v12863_v42 }
 0x98a   : > { %v12869_v12 = vpop.permute.xlu1 %12868  ;;  %v12867_v43 = vpop.permute.xlu0 %12866 }
 0x98b   : > { %12954 = vst.msk [vmem:[%s17119_s29 + $0x58] sm:$0xff] %vm12942_vm0, %v12869_v12  ;;  %12953 = vst.msk [vmem:[%s17119_s29 + $0x50] sm:$0xff] %vm12942_vm0, %v12867_v43 }
 0x98e   : > { %v12873_v30 = vpop.permute.xlu1 %12872  ;;  %v12871_v33 = vpop.permute.xlu0 %12870 }
 0x98f   : > { %12956 = vst.msk [vmem:[%s17119_s29 + $0x68] sm:$0xff] %vm12942_vm0, %v12873_v30  ;;  %12955 = vst.msk [vmem:[%s17119_s29 + $0x60] sm:$0xff] %vm12942_vm0, %v12871_v33 }
 0x992   : > { %v12877_v29 = vpop.permute.xlu1 %12876  ;;  %v12875_v5 = vpop.permute.xlu0 %12874 }
 0x993   : > { %12958 = vst.msk [vmem:[%s17119_s29 + $0x78] sm:$0xff] %vm12942_vm0, %v12877_v29  ;;  %12957 = vst.msk [vmem:[%s17119_s29 + $0x70] sm:$0xff] %vm12942_vm0, %v12875_v5 }
 0x996   : > { %v12881_v15 = vpop.permute.xlu1 %12880  ;;  %v12879_v22 = vpop.permute.xlu0 %12878 }
 0x997   : > { %12960 = vst.msk [vmem:[%s17119_s29 + $0x88] sm:$0xff] %vm12942_vm0, %v12881_v15  ;;  %12959 = vst.msk [vmem:[%s17119_s29 + $0x80] sm:$0xff] %vm12942_vm0, %v12879_v22 }
 0x99a   : > { %v12885_v7 = vpop.permute.xlu1 %12884  ;;  %v12883_v21 = vpop.permute.xlu0 %12882 }
 0x99b   : > { %12962 = vst.msk [vmem:[%s17119_s29 + $0x98] sm:$0xff] %vm12942_vm0, %v12885_v7  ;;  %12961 = vst.msk [vmem:[%s17119_s29 + $0x90] sm:$0xff] %vm12942_vm0, %v12883_v21 }
 0x99e   : > { %v12889_v25 = vpop.permute.xlu1 %12888  ;;  %v12887_v40 = vpop.permute.xlu0 %12886 }
 0x99f   : > { %12964 = vst.msk [vmem:[%s17119_s29 + $0xa8] sm:$0xff] %vm12942_vm0, %v12889_v25  ;;  %12963 = vst.msk [vmem:[%s17119_s29 + $0xa0] sm:$0xff] %vm12942_vm0, %v12887_v40 }
 0x9a2   : > { %v12893_v59 = vpop.permute.xlu1 %12892  ;;  %v12891_v36 = vpop.permute.xlu0 %12890 }
 0x9a3   : > { %12966 = vst.msk [vmem:[%s17119_s29 + $0xb8] sm:$0xff] %vm12942_vm0, %v12893_v59  ;;  %12965 = vst.msk [vmem:[%s17119_s29 + $0xb0] sm:$0xff] %vm12942_vm0, %v12891_v36 }
 0x9a6   : > { %v12897_v27 = vpop.permute.xlu1 %12896  ;;  %v12895_v54 = vpop.permute.xlu0 %12894 }
 0x9a7   : > { %12968 = vst.msk [vmem:[%s17119_s29 + $0xc8] sm:$0xff] %vm12942_vm0, %v12897_v27  ;;  %12967 = vst.msk [vmem:[%s17119_s29 + $0xc0] sm:$0xff] %vm12942_vm0, %v12895_v54 }
 0x9aa   : > { %v12901_v41 = vpop.permute.xlu1 %12900  ;;  %v12899_v51 = vpop.permute.xlu0 %12898 }
 0x9ab   : > { %12970 = vst.msk [vmem:[%s17119_s29 + $0xd8] sm:$0xff] %vm12942_vm0, %v12901_v41  ;;  %12969 = vst.msk [vmem:[%s17119_s29 + $0xd0] sm:$0xff] %vm12942_vm0, %v12899_v51 }
 0x9ae   : > { %v12905_v56 = vpop.permute.xlu1 %12904  ;;  %v12903_v26 = vpop.permute.xlu0 %12902 }
 0x9af   : > { %12972 = vst.msk [vmem:[%s17119_s29 + $0xe8] sm:$0xff] %vm12942_vm0, %v12905_v56  ;;  %12971 = vst.msk [vmem:[%s17119_s29 + $0xe0] sm:$0xff] %vm12942_vm0, %v12903_v26 }
 0x9b2   : > { %v12909_v10 = vpop.permute.xlu1 %12908  ;;  %v12907_v32 = vpop.permute.xlu0 %12906 }
 0x9b3   : > { %12974 = vst.msk [vmem:[%s17119_s29 + $0xf8] sm:$0xff] %vm12942_vm0, %v12909_v10  ;;  %12973 = vst.msk [vmem:[%s17119_s29 + $0xf0] sm:$0xff] %vm12942_vm0, %v12907_v32 }
 0x9b4 PF: > { %s29_s0 = sadd.s32 1, %s16912_s0  }
 0x9b5   : > { %p26_p4 = scmp.ge.s32.totalorder %s29_s0, 4  }
 0x9b7   :  { %28 = sbr.rel (!%p26_p4) target bundleno = 5 (0x5), region = 150 }

</bundles_post_ra>
